<compile_context>
chip_gen: v7x
topology: tpu7x:2x2x1
jax: 0.10.0
libtpu: 0.0.40
codegen_flags: <defaults>
</compile_context>

<pallas_src>
import functools
import math

import jax
import jax.numpy as jnp
from jax.experimental import pallas as pl
from jax.experimental.pallas import tpu as pltpu


# ----------------------------- helpers ---------------------------------------
def _round_up(x, m):
    return ((x + m - 1) // m) * m


def _pick_tm(mp, cap=512):
    """Largest multiple of 16 that divides mp and is <= cap (exact-fit M tile)."""
    best = 16
    d = 16
    limit = min(mp, cap)
    while d <= limit:
        if mp % d == 0:
            best = d
        d += 16
    return best


def _default_vmem_limit():
    """Per-chip VMEM budget: never above half of physical VMEM (v7x = 64 MiB/TC)."""
    try:
        cap = pltpu.get_tpu_info().vmem_capacity_bytes
    except Exception:
        cap = 64 << 20  # conservative fallback
    return int(min(cap // 2, 48 << 20))


_VMEM_LIMIT = _default_vmem_limit()


# ----------------------------- Pallas kernels --------------------------------
def _matmul_bias_relu_kernel(x_ref, w_ref, b_ref, o_ref):
    """Single-shot (no K reduction) matmul, fused f32 bias add + ReLU."""
    acc = jnp.dot(x_ref[...], w_ref[...], preferred_element_type=jnp.float32)
    acc = acc + b_ref[...]
    o_ref[...] = jnp.maximum(acc, 0.0).astype(o_ref.dtype)


def _fused_fc_kernel(x_ref, w1_ref, b1_ref, w2_ref, b2_ref, wh_ref, bh_ref, o_ref):
    """fc1 -> relu -> fc2 -> relu -> fused (V|A) head, all resident in VMEM."""
    h1 = jnp.dot(x_ref[...], w1_ref[...], preferred_element_type=jnp.float32)
    h1 = jnp.maximum(h1 + b1_ref[...], 0.0).astype(jnp.bfloat16)
    h2 = jnp.dot(h1, w2_ref[...], preferred_element_type=jnp.float32)
    h2 = jnp.maximum(h2 + b2_ref[...], 0.0).astype(jnp.bfloat16)
    out = jnp.dot(h2, wh_ref[...], preferred_element_type=jnp.float32)
    o_ref[...] = out + bh_ref[...]


# ----------------------------- conv (im2col + matmul) ------------------------
def _conv_matmul(patches, w_mat, b_pad):
    """relu(patches @ w_mat + b).  patches: (M, K); w_mat: (K, Np) bf16; b: (1, Np) f32."""
    M, K = patches.shape
    K2, Np = w_mat.shape
    assert K == K2
    Mp = _round_up(M, 16)
    if Mp != M:
        patches = jnp.pad(patches, ((0, Mp - M), (0, 0)))
    xp = patches.astype(jnp.bfloat16)
    tm = _pick_tm(Mp)

    out = pl.pallas_call(
        _matmul_bias_relu_kernel,
        out_shape=jax.ShapeDtypeStruct((Mp, Np), jnp.bfloat16),
        grid=(Mp // tm,),
        in_specs=[
            pl.BlockSpec((tm, K), lambda i: (i, 0)),     # K is full-dim: no K padding
            pl.BlockSpec((K, Np), lambda i: (0, 0)),     # weight stays resident
            pl.BlockSpec((1, Np), lambda i: (0, 0)),
        ],
        out_specs=pl.BlockSpec((tm, Np), lambda i: (i, 0)),
        compiler_params=pltpu.CompilerParams(
            dimension_semantics=("parallel",),
            vmem_limit_bytes=_VMEM_LIMIT,
        ),
    )(xp, w_mat, b_pad)
    return out[:M]


def conv2d_relu(x_nhwc, w_mat, b_pad, *, kh, kw, stride, cout):
    """x: (B, H, W, C) -> (B, OH, OW, cout).  Patch order (ki, kj, c) matches w_mat."""
    B, H, W, C = x_nhwc.shape
    OH = (H - kh) // stride + 1
    OW = (W - kw) // stride + 1
    cols = []
    for i in range(kh):
        for j in range(kw):
            sl = jax.lax.slice(
                x_nhwc,
                (0, i, j, 0),
                (B, i + stride * (OH - 1) + 1, j + stride * (OW - 1) + 1, C),
                (1, stride, stride, 1),
            )  # (B, OH, OW, C)
            cols.append(sl)
    patches = jnp.stack(cols, axis=3).reshape(B * OH * OW, kh * kw * C)
    y = _conv_matmul(patches, w_mat, b_pad)            # (B*OH*OW, Np) bf16
    return y[:, :cout].reshape(B, OH, OW, cout)        # NHWC, no transposes


# ----------------------------- fused FC + heads ------------------------------
def fused_fc_heads(x_flat, p):
    """x_flat: (B, 3136) -> (Bp, 128) f32 where columns [0]=V, [1:1+A]=A."""
    M, K = x_flat.shape
    Mp = _round_up(M, 16)
    if Mp != M:
        x_flat = jnp.pad(x_flat, ((0, Mp - M), (0, 0)))
    xp = x_flat.astype(jnp.bfloat16)
    np_head = p["head_w"].shape[1]

    vmem = pl.BlockSpec(memory_space=pltpu.MemorySpace.VMEM)
    out = pl.pallas_call(
        _fused_fc_kernel,
        out_shape=jax.ShapeDtypeStruct((Mp, np_head), jnp.float32),
        in_specs=[vmem] * 7,
        out_specs=vmem,
        compiler_params=pltpu.CompilerParams(vmem_limit_bytes=_VMEM_LIMIT),
    )(xp, p["fc1_w"], p["fc1_b"], p["fc2_w"], p["fc2_b"], p["head_w"], p["head_b"])
    return out


# ----------------------------- params -----------------------------------------
def init_params(key, num_actions):
    """PyTorch-layout params, PyTorch-default-style uniform(-1/sqrt(fan_in), +)."""
    def u(k, shape, fan_in):
        bound = 1.0 / math.sqrt(fan_in)
        return jax.random.uniform(k, shape, jnp.float32, -bound, bound)

    ks = jax.random.split(key, 14)
    p = {}
    p["conv1_w"] = u(ks[0], (32, 4, 8, 8), 4 * 8 * 8)
    p["conv1_b"] = u(ks[1], (32,), 4 * 8 * 8)
    p["conv2_w"] = u(ks[2], (64, 32, 4, 4), 32 * 4 * 4)
    p["conv2_b"] = u(ks[3], (64,), 32 * 4 * 4)
    p["conv3_w"] = u(ks[4], (64, 64, 3, 3), 64 * 3 * 3)
    p["conv3_b"] = u(ks[5], (64,), 64 * 3 * 3)
    p["fc1_w"] = u(ks[6], (64 * 7 * 7, 1024), 64 * 7 * 7)
    p["fc1_b"] = u(ks[7], (1024,), 64 * 7 * 7)
    p["fc2_w"] = u(ks[8], (1024, 512), 1024)
    p["fc2_b"] = u(ks[9], (512,), 1024)
    p["V_w"] = u(ks[10], (512, 1), 512)
    p["V_b"] = u(ks[11], (1,), 512)
    p["A_w"] = u(ks[12], (512, num_actions), 512)
    p["A_b"] = u(ks[13], (num_actions,), 512)
    return p


def prepare_params(raw, num_actions):
    """One-time conversion to kernel layout: transpose, permute, pad N to 128, cast bf16."""
    p = {}

    def conv_prep(w, b):
        cout, cin, kh, kw = w.shape
        # (Cout, Cin, kh, kw) -> (kh, kw, Cin, Cout) -> (kh*kw*Cin, Cout): (ki, kj, c) order
        w_mat = jnp.transpose(w, (2, 3, 1, 0)).reshape(kh * kw * cin, cout)
        npad = _round_up(cout, 128)
        w_mat = jnp.pad(w_mat, ((0, 0), (0, npad - cout))).astype(jnp.bfloat16)
        b_pad = jnp.pad(b, (0, npad - cout)).reshape(1, npad).astype(jnp.float32)
        return w_mat, b_pad

    p["c1_w"], p["c1_b"] = conv_prep(raw["conv1_w"], raw["conv1_b"])
    p["c2_w"], p["c2_b"] = conv_prep(raw["conv2_w"], raw["conv2_b"])
    p["c3_w"], p["c3_b"] = conv_prep(raw["conv3_w"], raw["conv3_b"])

    # fc1 rows are indexed c*49 + h*7 + w in PyTorch; we flatten NHWC (h*7*64 + w*64 + c),
    # so permute the rows once here instead of transposing activations every forward.
    w1 = raw["fc1_w"].reshape(64, 7, 7, 1024).transpose(1, 2, 0, 3).reshape(64 * 7 * 7, 1024)
    p["fc1_w"] = w1.astype(jnp.bfloat16)
    p["fc1_b"] = raw["fc1_b"].reshape(1, 1024).astype(jnp.float32)
    p["fc2_w"] = raw["fc2_w"].astype(jnp.bfloat16)
    p["fc2_b"] = raw["fc2_b"].reshape(1, 512).astype(jnp.float32)

    # Fuse V and A heads along N, pad to one 128-lane slab.
    n_heads = 1 + num_actions
    npad = _round_up(n_heads, 128)
    wh = jnp.concatenate([raw["V_w"], raw["A_w"]], axis=1)          # (512, 1+A)
    bh = jnp.concatenate([raw["V_b"], raw["A_b"]], axis=0)          # (1+A,)
    p["head_w"] = jnp.pad(wh, ((0, 0), (0, npad - n_heads))).astype(jnp.bfloat16)
    p["head_b"] = jnp.pad(bh, (0, npad - n_heads)).reshape(1, npad).astype(jnp.float32)
    return p


# ----------------------------- model forward ---------------------------------
def forward(params, state, *, num_actions):
    """state: (B, 4, 84, 84) f32 NCHW -> (values (B,1), advantages (B,A)), both f32."""
    x = state.reshape(-1, 4, 84, 84).transpose(0, 2, 3, 1)                 # NHWC once
    c1 = conv2d_relu(x, params["c1_w"], params["c1_b"], kh=8, kw=8, stride=4, cout=32)
    c2 = conv2d_relu(c1, params["c2_w"], params["c2_b"], kh=4, kw=4, stride=2, cout=64)
    c3 = conv2d_relu(c2, params["c3_w"], params["c3_b"], kh=3, kw=3, stride=1, cout=64)
    flat_in = c3.reshape(-1, 7 * 7 * 64)            # NHWC flatten; fc1 rows pre-permuted
    B = flat_in.shape[0]
    head_out = fused_fc_heads(flat_in, params)      # (Bp, 128) f32
    values = head_out[:B, :1]
    advantages = head_out[:B, 1:1 + num_actions]
    return values, advantages                       # raw V/A pair, matching the PyTorch module


if __name__ == "__main__":
    num_actions = 6
    batch = 2

    key = jax.random.PRNGKey(0)
    k_x, k_p = jax.random.split(key)
    # Spatial size must be 84x84: fc1 is hard-wired to 64*7*7 features.
    state = jax.random.uniform(k_x, (batch, 4, 84, 84), jnp.float32)
    raw = init_params(k_p, num_actions)
    params = prepare_params(raw, num_actions)       # one-time weight layout/pad/cast

    fwd = jax.jit(functools.partial(forward, num_actions=num_actions))
    values, advantages = fwd(params, state)
    jax.block_until_ready((values, advantages))

    assert values.shape == (batch, 1)
    assert advantages.shape == (batch, num_actions)
    assert values.dtype == jnp.float32 and advantages.dtype == jnp.float32
    print("KERNEL_OK")
</pallas_src>

<mosaic_0001>
module attributes {stable_mosaic.version = 11 : i64} {
  func.func @_matmul_bias_relu_kernel(%arg0: i32, %arg1: memref<400x256xbf16, #tpu.memory_space<vmem>>, %arg2: memref<256x128xbf16, #tpu.memory_space<vmem>>, %arg3: memref<1x128xf32, #tpu.memory_space<vmem>>, %arg4: memref<400x128xbf16, #tpu.memory_space<vmem>>) attributes {dimension_semantics = [#tpu.dimension_semantics<parallel>], iteration_bounds = array<i64: 2>, scalar_prefetch = 0 : i64, scratch_operands = 0 : i64, tpu.core_type = #tpu.core_type<tc>, window_params = [{transform_indices = @transform_0, window_bounds = array<i64: 400, 256>}, {pipeline_mode = #tpu.pipeline_mode<synchronous>, transform_indices = @transform_1, window_bounds = array<i64: 256, 128>}, {pipeline_mode = #tpu.pipeline_mode<synchronous>, transform_indices = @transform_2, window_bounds = array<i64: 1, 128>}, {transform_indices = @transform_3, window_bounds = array<i64: 400, 128>}]} {
    %c0 = arith.constant 0 : index
    %c0_0 = arith.constant 0 : index
    %0 = vector.load %arg1[%c0, %c0_0] : memref<400x256xbf16, #tpu.memory_space<vmem>>, vector<400x256xbf16>
    %c0_1 = arith.constant 0 : index
    %c0_2 = arith.constant 0 : index
    %1 = vector.load %arg2[%c0_1, %c0_2] : memref<256x128xbf16, #tpu.memory_space<vmem>>, vector<256x128xbf16>
    %cst = arith.constant dense<0.000000e+00> : vector<400x128xf32>
    %2 = tpu.matmul %0, %1, %cst {dimension_numbers = #tpu.dot_dimension_numbers<[1], [0], [0], [1], [0, 0, 1, 1], [], []>} : vector<400x256xbf16>, vector<256x128xbf16>, vector<400x128xf32> -> vector<400x128xf32>
    %c0_3 = arith.constant 0 : index
    %c0_4 = arith.constant 0 : index
    %3 = vector.load %arg3[%c0_3, %c0_4] : memref<1x128xf32, #tpu.memory_space<vmem>>, vector<1x128xf32>
    %4 = vector.broadcast %3 : vector<1x128xf32> to vector<400x128xf32>
    %5 = arith.addf %2, %4 : vector<400x128xf32>
    %cst_5 = arith.constant 0.000000e+00 : f32
    %6 = vector.broadcast %cst_5 : f32 to vector<400x128xf32>
    %7 = arith.maximumf %5, %6 : vector<400x128xf32>
    %8 = arith.truncf %7 : vector<400x128xf32> to vector<400x128xbf16>
    %c0_6 = arith.constant 0 : index
    %c0_7 = arith.constant 0 : index
    %9 = vector.load %arg4[%c0_6, %c0_7] : memref<400x128xbf16, #tpu.memory_space<vmem>>, vector<400x128xbf16>
    tpu.vector_store %arg4[%c0_6, %c0_7], %8 {strides = array<i32>} : memref<400x128xbf16, #tpu.memory_space<vmem>>, vector<400x128xbf16>,
    return
  }
  func.func @transform_0(%arg0: i32) -> (i32, i32) {
    %c0_i32 = arith.constant 0 : i32
    %c0_i32_0 = arith.constant 0 : i32
    return %arg0, %c0_i32 : i32, i32
  }
  func.func @transform_1(%arg0: i32) -> (i32, i32) {
    %c0_i32 = arith.constant 0 : i32
    %c0_i32_0 = arith.constant 0 : i32
    %c0_i32_1 = arith.constant 0 : i32
    return %c0_i32, %c0_i32_0 : i32, i32
  }
  func.func @transform_2(%arg0: i32) -> (i32, i32) {
    %c0_i32 = arith.constant 0 : i32
    %c0_i32_0 = arith.constant 0 : i32
    %c0_i32_1 = arith.constant 0 : i32
    return %c0_i32, %c0_i32_0 : i32, i32
  }
  func.func @transform_3(%arg0: i32) -> (i32, i32) {
    %c0_i32 = arith.constant 0 : i32
    %c0_i32_0 = arith.constant 0 : i32
    return %arg0, %c0_i32 : i32, i32
  }
}

module attributes {stable_mosaic.version = 11 : i64} {
  func.func @_matmul_bias_relu_kernel(%arg0: i32, %arg1: memref<176x512xbf16, #tpu.memory_space<vmem>>, %arg2: memref<512x128xbf16, #tpu.memory_space<vmem>>, %arg3: memref<1x128xf32, #tpu.memory_space<vmem>>, %arg4: memref<176x128xbf16, #tpu.memory_space<vmem>>) attributes {dimension_semantics = [#tpu.dimension_semantics<parallel>], iteration_bounds = array<i64: 1>, scalar_prefetch = 0 : i64, scratch_operands = 0 : i64, tpu.core_type = #tpu.core_type<tc>, window_params = [{transform_indices = @transform_0, window_bounds = array<i64: 176, 512>}, {pipeline_mode = #tpu.pipeline_mode<synchronous>, transform_indices = @transform_1, window_bounds = array<i64: 512, 128>}, {pipeline_mode = #tpu.pipeline_mode<synchronous>, transform_indices = @transform_2, window_bounds = array<i64: 1, 128>}, {transform_indices = @transform_3, window_bounds = array<i64: 176, 128>}]} {
    %c0 = arith.constant 0 : index
    %c0_0 = arith.constant 0 : index
    %0 = vector.load %arg1[%c0, %c0_0] : memref<176x512xbf16, #tpu.memory_space<vmem>>, vector<176x512xbf16>
    %c0_1 = arith.constant 0 : index
    %c0_2 = arith.constant 0 : index
    %1 = vector.load %arg2[%c0_1, %c0_2] : memref<512x128xbf16, #tpu.memory_space<vmem>>, vector<512x128xbf16>
    %cst = arith.constant dense<0.000000e+00> : vector<176x128xf32>
    %2 = tpu.matmul %0, %1, %cst {dimension_numbers = #tpu.dot_dimension_numbers<[1], [0], [0], [1], [0, 0, 1, 1], [], []>} : vector<176x512xbf16>, vector<512x128xbf16>, vector<176x128xf32> -> vector<176x128xf32>
    %c0_3 = arith.constant 0 : index
    %c0_4 = arith.constant 0 : index
    %3 = vector.load %arg3[%c0_3, %c0_4] : memref<1x128xf32, #tpu.memory_space<vmem>>, vector<1x128xf32>
    %4 = vector.broadcast %3 : vector<1x128xf32> to vector<176x128xf32>
    %5 = arith.addf %2, %4 : vector<176x128xf32>
    %cst_5 = arith.constant 0.000000e+00 : f32
    %6 = vector.broadcast %cst_5 : f32 to vector<176x128xf32>
    %7 = arith.maximumf %5, %6 : vector<176x128xf32>
    %8 = arith.truncf %7 : vector<176x128xf32> to vector<176x128xbf16>
    %c0_6 = arith.constant 0 : index
    %c0_7 = arith.constant 0 : index
    %9 = vector.load %arg4[%c0_6, %c0_7] : memref<176x128xbf16, #tpu.memory_space<vmem>>, vector<176x128xbf16>
    tpu.vector_store %arg4[%c0_6, %c0_7], %8 {strides = array<i32>} : memref<176x128xbf16, #tpu.memory_space<vmem>>, vector<176x128xbf16>,
    return
  }
  func.func @transform_0(%arg0: i32) -> (i32, i32) {
    %c0_i32 = arith.constant 0 : i32
    %c0_i32_0 = arith.constant 0 : i32
    return %arg0, %c0_i32 : i32, i32
  }
  func.func @transform_1(%arg0: i32) -> (i32, i32) {
    %c0_i32 = arith.constant 0 : i32
    %c0_i32_0 = arith.constant 0 : i32
    %c0_i32_1 = arith.constant 0 : i32
    return %c0_i32, %c0_i32_0 : i32, i32
  }
  func.func @transform_2(%arg0: i32) -> (i32, i32) {
    %c0_i32 = arith.constant 0 : i32
    %c0_i32_0 = arith.constant 0 : i32
    %c0_i32_1 = arith.constant 0 : i32
    return %c0_i32, %c0_i32_0 : i32, i32
  }
  func.func @transform_3(%arg0: i32) -> (i32, i32) {
    %c0_i32 = arith.constant 0 : i32
    %c0_i32_0 = arith.constant 0 : i32
    return %arg0, %c0_i32 : i32, i32
  }
}

module attributes {stable_mosaic.version = 11 : i64} {
  func.func @_matmul_bias_relu_kernel(%arg0: i32, %arg1: memref<112x576xbf16, #tpu.memory_space<vmem>>, %arg2: memref<576x128xbf16, #tpu.memory_space<vmem>>, %arg3: memref<1x128xf32, #tpu.memory_space<vmem>>, %arg4: memref<112x128xbf16, #tpu.memory_space<vmem>>) attributes {dimension_semantics = [#tpu.dimension_semantics<parallel>], iteration_bounds = array<i64: 1>, scalar_prefetch = 0 : i64, scratch_operands = 0 : i64, tpu.core_type = #tpu.core_type<tc>, window_params = [{transform_indices = @transform_0, window_bounds = array<i64: 112, 576>}, {pipeline_mode = #tpu.pipeline_mode<synchronous>, transform_indices = @transform_1, window_bounds = array<i64: 576, 128>}, {pipeline_mode = #tpu.pipeline_mode<synchronous>, transform_indices = @transform_2, window_bounds = array<i64: 1, 128>}, {transform_indices = @transform_3, window_bounds = array<i64: 112, 128>}]} {
    %c0 = arith.constant 0 : index
    %c0_0 = arith.constant 0 : index
    %0 = vector.load %arg1[%c0, %c0_0] : memref<112x576xbf16, #tpu.memory_space<vmem>>, vector<112x576xbf16>
    %c0_1 = arith.constant 0 : index
    %c0_2 = arith.constant 0 : index
    %1 = vector.load %arg2[%c0_1, %c0_2] : memref<576x128xbf16, #tpu.memory_space<vmem>>, vector<576x128xbf16>
    %cst = arith.constant dense<0.000000e+00> : vector<112x128xf32>
    %2 = tpu.matmul %0, %1, %cst {dimension_numbers = #tpu.dot_dimension_numbers<[1], [0], [0], [1], [0, 0, 1, 1], [], []>} : vector<112x576xbf16>, vector<576x128xbf16>, vector<112x128xf32> -> vector<112x128xf32>
    %c0_3 = arith.constant 0 : index
    %c0_4 = arith.constant 0 : index
    %3 = vector.load %arg3[%c0_3, %c0_4] : memref<1x128xf32, #tpu.memory_space<vmem>>, vector<1x128xf32>
    %4 = vector.broadcast %3 : vector<1x128xf32> to vector<112x128xf32>
    %5 = arith.addf %2, %4 : vector<112x128xf32>
    %cst_5 = arith.constant 0.000000e+00 : f32
    %6 = vector.broadcast %cst_5 : f32 to vector<112x128xf32>
    %7 = arith.maximumf %5, %6 : vector<112x128xf32>
    %8 = arith.truncf %7 : vector<112x128xf32> to vector<112x128xbf16>
    %c0_6 = arith.constant 0 : index
    %c0_7 = arith.constant 0 : index
    %9 = vector.load %arg4[%c0_6, %c0_7] : memref<112x128xbf16, #tpu.memory_space<vmem>>, vector<112x128xbf16>
    tpu.vector_store %arg4[%c0_6, %c0_7], %8 {strides = array<i32>} : memref<112x128xbf16, #tpu.memory_space<vmem>>, vector<112x128xbf16>,
    return
  }
  func.func @transform_0(%arg0: i32) -> (i32, i32) {
    %c0_i32 = arith.constant 0 : i32
    %c0_i32_0 = arith.constant 0 : i32
    return %arg0, %c0_i32 : i32, i32
  }
  func.func @transform_1(%arg0: i32) -> (i32, i32) {
    %c0_i32 = arith.constant 0 : i32
    %c0_i32_0 = arith.constant 0 : i32
    %c0_i32_1 = arith.constant 0 : i32
    return %c0_i32, %c0_i32_0 : i32, i32
  }
  func.func @transform_2(%arg0: i32) -> (i32, i32) {
    %c0_i32 = arith.constant 0 : i32
    %c0_i32_0 = arith.constant 0 : i32
    %c0_i32_1 = arith.constant 0 : i32
    return %c0_i32, %c0_i32_0 : i32, i32
  }
  func.func @transform_3(%arg0: i32) -> (i32, i32) {
    %c0_i32 = arith.constant 0 : i32
    %c0_i32_0 = arith.constant 0 : i32
    return %arg0, %c0_i32 : i32, i32
  }
}

module attributes {stable_mosaic.version = 11 : i64} {
  func.func @_fused_fc_kernel(%arg0: memref<16x3136xbf16, #tpu.memory_space<vmem>>, %arg1: memref<3136x1024xbf16, #tpu.memory_space<vmem>>, %arg2: memref<1x1024xf32, #tpu.memory_space<vmem>>, %arg3: memref<1024x512xbf16, #tpu.memory_space<vmem>>, %arg4: memref<1x512xf32, #tpu.memory_space<vmem>>, %arg5: memref<512x128xbf16, #tpu.memory_space<vmem>>, %arg6: memref<1x128xf32, #tpu.memory_space<vmem>>, %arg7: memref<16x128xf32, #tpu.memory_space<vmem>>) attributes {dimension_semantics = [], scalar_prefetch = 0 : i64, scratch_operands = 0 : i64, tpu.core_type = #tpu.core_type<tc>} {
    %c0 = arith.constant 0 : index
    %c0_0 = arith.constant 0 : index
    %0 = vector.load %arg0[%c0, %c0_0] : memref<16x3136xbf16, #tpu.memory_space<vmem>>, vector<16x3136xbf16>
    %c0_1 = arith.constant 0 : index
    %c0_2 = arith.constant 0 : index
    %1 = vector.load %arg1[%c0_1, %c0_2] : memref<3136x1024xbf16, #tpu.memory_space<vmem>>, vector<3136x1024xbf16>
    %cst = arith.constant dense<0.000000e+00> : vector<16x1024xf32>
    %2 = tpu.matmul %0, %1, %cst {dimension_numbers = #tpu.dot_dimension_numbers<[1], [0], [0], [1], [0, 0, 1, 1], [], []>} : vector<16x3136xbf16>, vector<3136x1024xbf16>, vector<16x1024xf32> -> vector<16x1024xf32>
    %c0_3 = arith.constant 0 : index
    %c0_4 = arith.constant 0 : index
    %3 = vector.load %arg2[%c0_3, %c0_4] : memref<1x1024xf32, #tpu.memory_space<vmem>>, vector<1x1024xf32>
    %4 = vector.broadcast %3 : vector<1x1024xf32> to vector<16x1024xf32>
    %5 = arith.addf %2, %4 : vector<16x1024xf32>
    %cst_5 = arith.constant 0.000000e+00 : f32
    %6 = vector.broadcast %cst_5 : f32 to vector<16x1024xf32>
    %7 = arith.maximumf %5, %6 : vector<16x1024xf32>
    %8 = arith.truncf %7 : vector<16x1024xf32> to vector<16x1024xbf16>
    %c0_6 = arith.constant 0 : index
    %c0_7 = arith.constant 0 : index
    %9 = vector.load %arg3[%c0_6, %c0_7] : memref<1024x512xbf16, #tpu.memory_space<vmem>>, vector<1024x512xbf16>
    %cst_8 = arith.constant dense<0.000000e+00> : vector<16x512xf32>
    %10 = tpu.matmul %8, %9, %cst_8 {dimension_numbers = #tpu.dot_dimension_numbers<[1], [0], [0], [1], [0, 0, 1, 1], [], []>} : vector<16x1024xbf16>, vector<1024x512xbf16>, vector<16x512xf32> -> vector<16x512xf32>
    %c0_9 = arith.constant 0 : index
    %c0_10 = arith.constant 0 : index
    %11 = vector.load %arg4[%c0_9, %c0_10] : memref<1x512xf32, #tpu.memory_space<vmem>>, vector<1x512xf32>
    %12 = vector.broadcast %11 : vector<1x512xf32> to vector<16x512xf32>
    %13 = arith.addf %10, %12 : vector<16x512xf32>
    %cst_11 = arith.constant 0.000000e+00 : f32
    %14 = vector.broadcast %cst_11 : f32 to vector<16x512xf32>
    %15 = arith.maximumf %13, %14 : vector<16x512xf32>
    %16 = arith.truncf %15 : vector<16x512xf32> to vector<16x512xbf16>
    %c0_12 = arith.constant 0 : index
    %c0_13 = arith.constant 0 : index
    %17 = vector.load %arg5[%c0_12, %c0_13] : memref<512x128xbf16, #tpu.memory_space<vmem>>, vector<512x128xbf16>
    %cst_14 = arith.constant dense<0.000000e+00> : vector<16x128xf32>
    %18 = tpu.matmul %16, %17, %cst_14 {dimension_numbers = #tpu.dot_dimension_numbers<[1], [0], [0], [1], [0, 0, 1, 1], [], []>} : vector<16x512xbf16>, vector<512x128xbf16>, vector<16x128xf32> -> vector<16x128xf32>
    %c0_15 = arith.constant 0 : index
    %c0_16 = arith.constant 0 : index
    %19 = vector.load %arg6[%c0_15, %c0_16] : memref<1x128xf32, #tpu.memory_space<vmem>>, vector<1x128xf32>
    %20 = vector.broadcast %19 : vector<1x128xf32> to vector<16x128xf32>
    %21 = arith.addf %18, %20 : vector<16x128xf32>
    %c0_17 = arith.constant 0 : index
    %c0_18 = arith.constant 0 : index
    %22 = vector.load %arg7[%c0_17, %c0_18] : memref<16x128xf32, #tpu.memory_space<vmem>>, vector<16x128xf32>
    tpu.vector_store %arg7[%c0_17, %c0_18], %21 {strides = array<i32>} : memref<16x128xf32, #tpu.memory_space<vmem>>, vector<16x128xf32>,
    return
  }
}

</mosaic_0001>

<bundles_post_ra>
// kernel: forward.4
= control target key start
LH: loop header
LB: loop body
LE: loop exit
PB: predicated region body
PF: predicated region fallthrough
CT: control target
= control target key end

     0   :  { %s1690_s12 = smov 0   ;;  %s1925_s0 = inlined_call_operand.vmem [shape: bf16[800,256], index: 0, kind: input, shape index: {}]   ;;  %s1926_s1 = inlined_call_operand.vmem [shape: bf16[256,128], index: 1, kind: input, shape index: {}]   ;;  %s1927_s2 = inlined_call_operand.vmem [shape: f32[1,128], index: 2, kind: input, shape index: {}]   ;;  %s1928_s3 = inlined_call_operand.vmem [shape: bf16[800,128], index: 3, kind: output, shape index: {}]  }
   0x1 LB: > { %s1202_s13 = sadd.s32 4294967295, %s1667_s12   ;;  %p1206_p0 = scmp.ge.s32.totalorder %s1667_s12, 1  ;;  %s1667_s12 = sphi %s1690_s12, %s13_s12  }
   0x2   : > { %p139_p1 = scmp.lt.s32.totalorder %s1667_s12, 3 }
   0x4   : > { %p140_p2 = pnand %p1206_p0, %p139_p1 }
   0x5   : > { %v1570_v0 = vld [vmem:[%s1926_s1] sm:$0xff] (!%p140_p2)   ;;  %v1669_v1 = vmov (!%p140_p2), 0   ;;  %s164_s16 = smul.u32 (!%p140_p2), 50, %s1202_s13  ;;  %v1571_v2 = vld [vmem:[%s1926_s1 + $0x8] sm:$0xff] (!%p140_p2)   ;;  %v1572_v3 = vld [vmem:[%s1926_s1 + $0x10] sm:$0xff] (!%p140_p2)  }
   0x6   : > { %143 = sbr.rel (%p140_p2) target bundleno = 387 (0x183), region = 32  ;;  %613 = vmatprep.subr.bf16.mxu0 (!%p140_p2), %v1669_v1  ;;  %1529 = vmatprep.subr.bf16.mxu1 (!%p140_p2), %v1669_v1  ;;  %v1573_v4 = vld [vmem:[%s1926_s1 + $0x18] sm:$0xff] (!%p140_p2)   ;;  %v1574_v5 = vld [vmem:[%s1926_s1 + $0x20] sm:$0xff] (!%p140_p2)   ;;  %v1575_v7 = vld [vmem:[%s1926_s1 + $0x28] sm:$0xff] (!%p140_p2)  }
   0x7   : > { %614 = vmatpush1.bf16.msra.mxu0 (!%p140_p2), %v1570_v0  ;;  %1545 = vmatpush1.bf16.msra.mxu1 (!%p140_p2), %v1570_v0  ;;  %p165_p3 = scmp.lt.s32.totalorder (!%p140_p2), %s164_s16, 99  ;;  %v1576_v9 = vld [vmem:[%s1926_s1 + $0x30] sm:$0xff] (!%p140_p2)   ;;  %v1577_v10 = vld [vmem:[%s1926_s1 + $0x38] sm:$0xff] (!%p140_p2)   ;;  %v1578_v11 = vld [vmem:[%s1926_s1 + $0x40] sm:$0xff] (!%p140_p2)  }
   0x8   : > { %615 = vmatprep.subr.bf16.mxu0 (!%p140_p2), %v1669_v1  ;;  %1530 = vmatprep.subr.bf16.mxu1 (!%p140_p2), %v1669_v1  ;;  %v1579_v12 = vld [vmem:[%s1926_s1 + $0x48] sm:$0xff] (!%p140_p2)   ;;  %v1580_v13 = vld [vmem:[%s1926_s1 + $0x50] sm:$0xff] (!%p140_p2)   ;;  %v1581_v14 = vld [vmem:[%s1926_s1 + $0x58] sm:$0xff] (!%p140_p2)  }
   0x9   : > { %v1582_v15 = vld [vmem:[%s1926_s1 + $0x60] sm:$0xff] (!%p140_p2)   ;;  %v1583_v16 = vld [vmem:[%s1926_s1 + $0x68] sm:$0xff] (!%p140_p2)   ;;  %v1584_v17 = vld [vmem:[%s1926_s1 + $0x70] sm:$0xff] (!%p140_p2)  }
   0xa   : > { %v1585_v18 = vld [vmem:[%s1926_s1 + $0x78] sm:$0xff] (!%p140_p2)  }
   0xb   : > { %616 = vmatpush1.bf16.msra.mxu0 (!%p140_p2), %v1571_v2  ;;  %1546 = vmatpush1.bf16.msra.mxu1 (!%p140_p2), %v1571_v2 }
   0xc   : > { %617 = vmatprep.subr.bf16.mxu0 (!%p140_p2), %v1669_v1  ;;  %1531 = vmatprep.subr.bf16.mxu1 (!%p140_p2), %v1669_v1 }
   0xd   : > { %s1930_s16 = smov (!%p165_p3, %s164_s16), 99 }
   0xe   : > { %s1329_s23 = sshll.u32 %s1930_s16, 3  ;;  %s1209_s29 = sshll.u32 %s1930_s16, 2 }
   0xf   : > { %618 = vmatpush1.bf16.msra.mxu0 %v1572_v3  ;;  %1547 = vmatpush1.bf16.msra.mxu1 %v1572_v3  ;;  %s1727_s28 = scalar_lea.vmem %s1925_s0, %s1329_s23  ;;  %v1839_v3 = vld [vmem:[%s1927_s2] ss:$0 sm:$0xff]  ;;  %s1849_s4 = scalar_lea.vmem %s1928_s3, %s1209_s29 }
  0x10   : > { %619 = vmatprep.subr.bf16.mxu0 %v1669_v1  ;;  %1532 = vmatprep.subr.bf16.mxu1 %v1669_v1  ;;  %v1588_v6 = vld [vmem:[%s1727_s28 + $0x4] ss:$8 sps:$4 sm:$0xff]   ;;  %v1591_v8 = vld [vmem:[%s1727_s28 + $0xd4] ss:$8 sps:$4 sm:$0xff]   ;;  %v1586_v19 = vld [vmem:[%s1727_s28] ss:$8 sps:$4 sm:$0xff]  }
  0x11   : > { %645 = vmatprep.mubr.bf16.mxu0 %v1588_v6  ;;  %749 = vmatprep.mubr.bf16.mxu1 %v1591_v8  ;;  %v1589_v20 = vld [vmem:[%s1727_s28 + $0xd0] ss:$8 sps:$4 sm:$0xff]   ;;  %v1592_v21 = vld [vmem:[%s1727_s28 + $0x14] ss:$8 sps:$4 sm:$0xff]   ;;  %v1595_v22 = vld [vmem:[%s1727_s28 + $0xe4] ss:$8 sps:$4 sm:$0xff]  }
  0x12   : > { %v1594_v23 = vld [vmem:[%s1727_s28 + $0x10] ss:$8 sps:$4 sm:$0xff]   ;;  %v1597_v24 = vld [vmem:[%s1727_s28 + $0xe0] ss:$8 sps:$4 sm:$0xff]   ;;  %v1598_v25 = vld [vmem:[%s1727_s28 + $0x24] ss:$8 sps:$4 sm:$0xff]  }
  0x13   : > { %620 = vmatpush1.bf16.msra.mxu0 %v1573_v4  ;;  %1548 = vmatpush1.bf16.msra.mxu1 %v1573_v4  ;;  %v1601_v26 = vld [vmem:[%s1727_s28 + $0xf4] ss:$8 sps:$4 sm:$0xff]   ;;  %v1600_v27 = vld [vmem:[%s1727_s28 + $0x20] ss:$8 sps:$4 sm:$0xff]   ;;  %v1603_v28 = vld [vmem:[%s1727_s28 + $0xf0] ss:$8 sps:$4 sm:$0xff]  }
  0x14   : > { %621 = vmatprep.subr.bf16.mxu0 %v1669_v1  ;;  %1533 = vmatprep.subr.bf16.mxu1 %v1669_v1  ;;  %v1604_v29 = vld [vmem:[%s1727_s28 + $0x34] ss:$8 sps:$4 sm:$0xff]   ;;  %v1607_v30 = vld [vmem:[%s1727_s28 + $0x104] ss:$8 sps:$4 sm:$0xff]   ;;  %v1606_v31 = vld [vmem:[%s1727_s28 + $0x30] ss:$8 sps:$4 sm:$0xff]  }
  0x15   : > { %v1609_v32 = vld [vmem:[%s1727_s28 + $0x100] ss:$8 sps:$4 sm:$0xff]   ;;  %v1610_v33 = vld [vmem:[%s1727_s28 + $0x44] ss:$8 sps:$4 sm:$0xff]   ;;  %v1613_v34 = vld [vmem:[%s1727_s28 + $0x114] ss:$8 sps:$4 sm:$0xff]  }
  0x16   : > { %v1612_v35 = vld [vmem:[%s1727_s28 + $0x40] ss:$8 sps:$4 sm:$0xff]   ;;  %v1615_v36 = vld [vmem:[%s1727_s28 + $0x110] ss:$8 sps:$4 sm:$0xff]   ;;  %v1616_v37 = vld [vmem:[%s1727_s28 + $0x54] ss:$8 sps:$4 sm:$0xff]  }
  0x17   : > { %622 = vmatpush1.bf16.msra.mxu0 %v1574_v5  ;;  %1549 = vmatpush1.bf16.msra.mxu1 %v1574_v5  ;;  %v1619_v38 = vld [vmem:[%s1727_s28 + $0x124] ss:$8 sps:$4 sm:$0xff]   ;;  %v1618_v39 = vld [vmem:[%s1727_s28 + $0x50] ss:$8 sps:$4 sm:$0xff]   ;;  %v1621_v40 = vld [vmem:[%s1727_s28 + $0x120] ss:$8 sps:$4 sm:$0xff]  }
  0x18   : > { %623 = vmatprep.subr.bf16.mxu0 %v1669_v1  ;;  %1534 = vmatprep.subr.bf16.mxu1 %v1669_v1  ;;  %v1622_v41 = vld [vmem:[%s1727_s28 + $0x64] ss:$8 sps:$4 sm:$0xff]   ;;  %v1625_v42 = vld [vmem:[%s1727_s28 + $0x134] ss:$8 sps:$4 sm:$0xff]   ;;  %v1624_v43 = vld [vmem:[%s1727_s28 + $0x60] ss:$8 sps:$4 sm:$0xff]  }
  0x19   : > { %v1627_v44 = vld [vmem:[%s1727_s28 + $0x130] ss:$8 sps:$4 sm:$0xff]   ;;  %v1628_v45 = vld [vmem:[%s1727_s28 + $0x74] ss:$8 sps:$4 sm:$0xff]   ;;  %v1631_v46 = vld [vmem:[%s1727_s28 + $0x144] ss:$8 sps:$4 sm:$0xff]  }
  0x1a   : > { %v1630_v47 = vld [vmem:[%s1727_s28 + $0x70] ss:$8 sps:$4 sm:$0xff]   ;;  %v1633_v48 = vld [vmem:[%s1727_s28 + $0x140] ss:$8 sps:$4 sm:$0xff]   ;;  %v1634_v49 = vld [vmem:[%s1727_s28 + $0x84] ss:$8 sps:$4 sm:$0xff]  }
  0x1b   : > { %624 = vmatpush1.bf16.msra.mxu0 %v1575_v7  ;;  %1550 = vmatpush1.bf16.msra.mxu1 %v1575_v7  ;;  %v1637_v50 = vld [vmem:[%s1727_s28 + $0x154] ss:$8 sps:$4 sm:$0xff]   ;;  %v1636_v51 = vld [vmem:[%s1727_s28 + $0x80] ss:$8 sps:$4 sm:$0xff]   ;;  %v1639_v52 = vld [vmem:[%s1727_s28 + $0x150] ss:$8 sps:$4 sm:$0xff]  }
  0x1c   : > { %625 = vmatprep.subr.bf16.mxu0 %v1669_v1  ;;  %1535 = vmatprep.subr.bf16.mxu1 %v1669_v1  ;;  %v1640_v53 = vld [vmem:[%s1727_s28 + $0x94] ss:$8 sps:$4 sm:$0xff]   ;;  %v1643_v54 = vld [vmem:[%s1727_s28 + $0x164] ss:$8 sps:$4 sm:$0xff]   ;;  %v1642_v55 = vld [vmem:[%s1727_s28 + $0x90] ss:$8 sps:$4 sm:$0xff]  }
  0x1d   : > { %v1645_v56 = vld [vmem:[%s1727_s28 + $0x160] ss:$8 sps:$4 sm:$0xff]   ;;  %v1646_v57 = vld [vmem:[%s1727_s28 + $0xa4] ss:$8 sps:$4 sm:$0xff]   ;;  %v1649_v58 = vld [vmem:[%s1727_s28 + $0x174] ss:$8 sps:$4 sm:$0xff]  }
  0x1e   : > { %v1648_v59 = vld [vmem:[%s1727_s28 + $0xa0] ss:$8 sps:$4 sm:$0xff]   ;;  %v1651_v60 = vld [vmem:[%s1727_s28 + $0x170] ss:$8 sps:$4 sm:$0xff]   ;;  %v1652_v61 = vld [vmem:[%s1727_s28 + $0xb4] ss:$8 sps:$4 sm:$0xff]  }
  0x1f   : > { %626 = vmatpush1.bf16.msra.mxu0 %v1576_v9  ;;  %1551 = vmatpush1.bf16.msra.mxu1 %v1576_v9  ;;  %v1655_v62 = vld [vmem:[%s1727_s28 + $0x184] ss:$8 sps:$4 sm:$0xff]   ;;  %v1654_v63 = vld [vmem:[%s1727_s28 + $0xb0] ss:$8 sps:$4 sm:$0xff]   ;;  %v1657_v0 = vld [vmem:[%s1727_s28 + $0x180] ss:$8 sps:$4 sm:$0xff]  }
  0x20   : > { %627 = vmatprep.subr.bf16.mxu0 %v1669_v1  ;;  %1536 = vmatprep.subr.bf16.mxu1 %v1669_v1  ;;  %v1660_v2 = vld [vmem:[%s1727_s28 + $0xc0] ss:$8 sps:$4 sm:$0xff]  }
  0x23   : > { %628 = vmatpush1.bf16.msra.mxu0 %v1577_v10  ;;  %1552 = vmatpush1.bf16.msra.mxu1 %v1577_v10 }
  0x24   : > { %629 = vmatprep.subr.bf16.mxu0 %v1669_v1  ;;  %1537 = vmatprep.subr.bf16.mxu1 %v1669_v1 }
  0x27   : > { %630 = vmatpush1.bf16.msra.mxu0 %v1578_v11  ;;  %1553 = vmatpush1.bf16.msra.mxu1 %v1578_v11 }
  0x28   : > { %631 = vmatprep.subr.bf16.mxu0 %v1669_v1  ;;  %1538 = vmatprep.subr.bf16.mxu1 %v1669_v1 }
  0x2b   : > { %632 = vmatpush1.bf16.msra.mxu0 %v1579_v12  ;;  %1554 = vmatpush1.bf16.msra.mxu1 %v1579_v12 }
  0x2c   : > { %633 = vmatprep.subr.bf16.mxu0 %v1669_v1  ;;  %1539 = vmatprep.subr.bf16.mxu1 %v1669_v1 }
  0x2f   : > { %634 = vmatpush1.bf16.msra.mxu0 %v1580_v13  ;;  %1555 = vmatpush1.bf16.msra.mxu1 %v1580_v13 }
  0x30   : > { %635 = vmatprep.subr.bf16.mxu0 %v1669_v1  ;;  %1540 = vmatprep.subr.bf16.mxu1 %v1669_v1 }
  0x33   : > { %636 = vmatpush1.bf16.msra.mxu0 %v1581_v14  ;;  %1556 = vmatpush1.bf16.msra.mxu1 %v1581_v14 }
  0x34   : > { %637 = vmatprep.subr.bf16.mxu0 %v1669_v1  ;;  %1541 = vmatprep.subr.bf16.mxu1 %v1669_v1 }
  0x37   : > { %638 = vmatpush1.bf16.msra.mxu0 %v1582_v15  ;;  %1557 = vmatpush1.bf16.msra.mxu1 %v1582_v15 }
  0x38   : > { %639 = vmatprep.subr.bf16.mxu0 %v1669_v1  ;;  %1542 = vmatprep.subr.bf16.mxu1 %v1669_v1 }
  0x3b   : > { %640 = vmatpush1.bf16.msra.mxu0 %v1583_v16  ;;  %1558 = vmatpush1.bf16.msra.mxu1 %v1583_v16 }
  0x3c   : > { %641 = vmatprep.subr.bf16.mxu0 %v1669_v1  ;;  %1543 = vmatprep.subr.bf16.mxu1 %v1669_v1 }
  0x3f   : > { %642 = vmatpush1.bf16.msra.mxu0 %v1584_v17  ;;  %1559 = vmatpush1.bf16.msra.mxu1 %v1584_v17 }
  0x40   : > { %643 = vmatprep.subr.bf16.mxu0 %v1669_v1  ;;  %1544 = vmatprep.subr.bf16.mxu1 %v1669_v1  ;;  %v1658_v1 = vld [vmem:[%s1727_s28 + $0xc4] ss:$8 sps:$4 sm:$0xff]  }
  0x43   : > { %644 = vmatpush1.bf16.msra.mxu0 %v1585_v18  ;;  %1560 = vmatpush1.bf16.msra.mxu1 %v1585_v18 }
  0x46   : > { %646 = vmatmul.mubr.bf16.vlgmr.msra.gmra.mrb[0].mxu0 %v1586_v19  ;;  %750 = vmatmul.mubr.bf16.vlgmr.msra.gmra.mrb[0].mxu1 %v1589_v20 }
  0x47   : > { %653 = vmatprep.mubr.bf16.mxu0 %v1592_v21  ;;  %757 = vmatprep.mubr.bf16.mxu1 %v1595_v22 }
  0x4e   : > { %654 = vmatmul.mubr.bf16.gmra.mrb[4].mxu0 %v1594_v23  ;;  %758 = vmatmul.mubr.bf16.gmra.mrb[4].mxu1 %v1597_v24 }
  0x4f   : > { %661 = vmatprep.mubr.bf16.mxu0 %v1598_v25  ;;  %765 = vmatprep.mubr.bf16.mxu1 %v1601_v26 }
  0x56   : > { %662 = vmatmul.mubr.bf16.gmra.mrb[8].mxu0 %v1600_v27  ;;  %766 = vmatmul.mubr.bf16.gmra.mrb[8].mxu1 %v1603_v28 }
  0x57   : > { %669 = vmatprep.mubr.bf16.mxu0 %v1604_v29  ;;  %773 = vmatprep.mubr.bf16.mxu1 %v1607_v30 }
  0x5e   : > { %670 = vmatmul.mubr.bf16.gmra.mrb[12].mxu0 %v1606_v31  ;;  %774 = vmatmul.mubr.bf16.gmra.mrb[12].mxu1 %v1609_v32 }
  0x5f   : > { %677 = vmatprep.mubr.bf16.mxu0 %v1610_v33  ;;  %781 = vmatprep.mubr.bf16.mxu1 %v1613_v34 }
  0x66   : > { %678 = vmatmul.mubr.bf16.gmra.mrb[16].mxu0 %v1612_v35  ;;  %782 = vmatmul.mubr.bf16.gmra.mrb[16].mxu1 %v1615_v36 }
  0x67   : > { %685 = vmatprep.mubr.bf16.mxu0 %v1616_v37  ;;  %789 = vmatprep.mubr.bf16.mxu1 %v1619_v38 }
  0x6e   : > { %686 = vmatmul.mubr.bf16.gmra.mrb[20].mxu0 %v1618_v39  ;;  %790 = vmatmul.mubr.bf16.gmra.mrb[20].mxu1 %v1621_v40 }
  0x6f   : > { %693 = vmatprep.mubr.bf16.mxu0 %v1622_v41  ;;  %797 = vmatprep.mubr.bf16.mxu1 %v1625_v42 }
  0x76   : > { %694 = vmatmul.mubr.bf16.gmra.mrb[24].mxu0 %v1624_v43  ;;  %798 = vmatmul.mubr.bf16.gmra.mrb[24].mxu1 %v1627_v44 }
  0x77   : > { %701 = vmatprep.mubr.bf16.mxu0 %v1628_v45  ;;  %805 = vmatprep.mubr.bf16.mxu1 %v1631_v46 }
  0x7e   : > { %702 = vmatmul.mubr.bf16.gmra.mrb[28].mxu0 %v1630_v47  ;;  %806 = vmatmul.mubr.bf16.gmra.mrb[28].mxu1 %v1633_v48 }
  0x7f   : > { %709 = vmatprep.mubr.bf16.mxu0 %v1634_v49  ;;  %813 = vmatprep.mubr.bf16.mxu1 %v1637_v50 }
  0x86   : > { %710 = vmatmul.mubr.bf16.gmra.mrb[32].mxu0 %v1636_v51  ;;  %814 = vmatmul.mubr.bf16.gmra.mrb[32].mxu1 %v1639_v52 }
  0x87   : > { %717 = vmatprep.mubr.bf16.mxu0 %v1640_v53  ;;  %821 = vmatprep.mubr.bf16.mxu1 %v1643_v54 }
  0x8e   : > { %718 = vmatmul.mubr.bf16.gmra.mrb[36].mxu0 %v1642_v55  ;;  %822 = vmatmul.mubr.bf16.gmra.mrb[36].mxu1 %v1645_v56 }
  0x8f   : > { %725 = vmatprep.mubr.bf16.mxu0 %v1646_v57  ;;  %829 = vmatprep.mubr.bf16.mxu1 %v1649_v58 }
  0x96   : > { %726 = vmatmul.mubr.bf16.gmra.mrb[40].mxu0 %v1648_v59  ;;  %830 = vmatmul.mubr.bf16.gmra.mrb[40].mxu1 %v1651_v60 }
  0x97   : > { %733 = vmatprep.mubr.bf16.mxu0 %v1652_v61  ;;  %837 = vmatprep.mubr.bf16.mxu1 %v1655_v62 }
  0x9e   : > { %734 = vmatmul.mubr.bf16.gmra.mrb[44].mxu0 %v1654_v63  ;;  %838 = vmatmul.mubr.bf16.gmra.mrb[44].mxu1 %v1657_v0 }
  0x9f   : > { %741 = vmatprep.mubr.bf16.mxu0 %v1658_v1 }
  0xa6   : > { %742 = vmatmul.mubr.bf16.gmra.mrb[48].mxu0 %v1660_v2 }
 0x119   : > { %v647_v4 = vpop.f32.mrb[0].mxu0  ;;  %v751_v5 = vpop.f32.mrb[0].mxu1 }
 0x11a   : > { %v648_v6 = vadd.f32 %v1839_v3, %v647_v4  ;;  %v649_v7 = vpop.f32.mrb[1].mxu0  ;;  %v752_v8 = vadd.f32 %v1839_v3, %v751_v5  ;;  %v753_v9 = vpop.f32.mrb[1].mxu1 }
 0x11b   : > { %v650_v10 = vpop.f32.mrb[2].mxu0  ;;  %v754_v11 = vpop.f32.mrb[2].mxu1 }
 0x11c   : > { %v651_v12 = vadd.f32 %v1839_v3, %v650_v10  ;;  %v652_v13 = vpop.f32.mrb[3].mxu0  ;;  %v872_v14 = vmax.f32 %v752_v8, 0.0  ;;  %v755_v15 = vadd.f32 %v1839_v3, %v754_v11  ;;  %v756_v16 = vpop.f32.mrb[3].mxu1  ;;  %v846_v17 = vmax.f32 %v648_v6, 0.0 }
 0x11e   : > { %v847_v18 = vmax.f32 %v651_v12, 0.0  ;;  %v873_v19 = vmax.f32 %v755_v15, 0.0 }
 0x120   : > { %v1383_v20 = vpack.c.bf16 %v847_v18, %v846_v17  ;;  %v1448_v21 = vpack.c.bf16 %v873_v19, %v872_v14 }
 0x121   : > { %v655_v22 = vpop.f32.mrb[4].mxu0  ;;  %v759_v23 = vpop.f32.mrb[4].mxu1 }
 0x122   : > { %1384 = vst [vmem:[%s1849_s4] sm:$0xff] %v1383_v20   ;;  %1517 = vst [vmem:[%s1849_s4 + $0x68] sm:$0xff] %v1448_v21   ;;  %v656_v24 = vadd.f32 %v1839_v3, %v655_v22  ;;  %v657_v25 = vpop.f32.mrb[5].mxu0  ;;  %v760_v26 = vadd.f32 %v1839_v3, %v759_v23  ;;  %v761_v27 = vpop.f32.mrb[5].mxu1 }
 0x123   : > { %v658_v28 = vpop.f32.mrb[6].mxu0  ;;  %v762_v29 = vpop.f32.mrb[6].mxu1 }
 0x124   : > { %v659_v30 = vadd.f32 %v1839_v3, %v658_v28  ;;  %v660_v31 = vpop.f32.mrb[7].mxu0  ;;  %v874_v32 = vmax.f32 %v760_v26, 0.0  ;;  %v763_v33 = vadd.f32 %v1839_v3, %v762_v29  ;;  %v764_v34 = vpop.f32.mrb[7].mxu1  ;;  %v848_v35 = vmax.f32 %v656_v24, 0.0 }
 0x126   : > { %v849_v36 = vmax.f32 %v659_v30, 0.0  ;;  %v875_v37 = vmax.f32 %v763_v33, 0.0 }
 0x128   : > { %v1388_v38 = vpack.c.bf16 %v849_v36, %v848_v35  ;;  %v1453_v39 = vpack.c.bf16 %v875_v37, %v874_v32 }
 0x129   : > { %v663_v40 = vpop.f32.mrb[8].mxu0  ;;  %v767_v41 = vpop.f32.mrb[8].mxu1 }
 0x12a   : > { %1505 = vst [vmem:[%s1849_s4 + $0x8] sm:$0xff] %v1388_v38   ;;  %1518 = vst [vmem:[%s1849_s4 + $0x70] sm:$0xff] %v1453_v39   ;;  %v664_v42 = vadd.f32 %v1839_v3, %v663_v40  ;;  %v665_v43 = vpop.f32.mrb[9].mxu0  ;;  %v768_v44 = vadd.f32 %v1839_v3, %v767_v41  ;;  %v769_v45 = vpop.f32.mrb[9].mxu1 }
 0x12b   : > { %v666_v46 = vpop.f32.mrb[10].mxu0  ;;  %v770_v47 = vpop.f32.mrb[10].mxu1 }
 0x12c   : > { %v667_v48 = vadd.f32 %v1839_v3, %v666_v46  ;;  %v668_v49 = vpop.f32.mrb[11].mxu0  ;;  %v876_v50 = vmax.f32 %v768_v44, 0.0  ;;  %v771_v51 = vadd.f32 %v1839_v3, %v770_v47  ;;  %v772_v52 = vpop.f32.mrb[11].mxu1  ;;  %v850_v53 = vmax.f32 %v664_v42, 0.0 }
 0x12e   : > { %v851_v54 = vmax.f32 %v667_v48, 0.0  ;;  %v877_v55 = vmax.f32 %v771_v51, 0.0 }
 0x130   : > { %v1393_v56 = vpack.c.bf16 %v851_v54, %v850_v53  ;;  %v1458_v57 = vpack.c.bf16 %v877_v55, %v876_v50 }
 0x131   : > { %v671_v58 = vpop.f32.mrb[12].mxu0  ;;  %v775_v59 = vpop.f32.mrb[12].mxu1 }
 0x132   : > { %1506 = vst [vmem:[%s1849_s4 + $0x10] sm:$0xff] %v1393_v56   ;;  %1519 = vst [vmem:[%s1849_s4 + $0x78] sm:$0xff] %v1458_v57   ;;  %v672_v60 = vadd.f32 %v1839_v3, %v671_v58  ;;  %v673_v61 = vpop.f32.mrb[13].mxu0  ;;  %v776_v62 = vadd.f32 %v1839_v3, %v775_v59  ;;  %v777_v63 = vpop.f32.mrb[13].mxu1 }
 0x133   : > { %v674_v0 = vpop.f32.mrb[14].mxu0  ;;  %v778_v1 = vpop.f32.mrb[14].mxu1 }
 0x134   : > { %v675_v2 = vadd.f32 %v1839_v3, %v674_v0  ;;  %v676_v4 = vpop.f32.mrb[15].mxu0  ;;  %v878_v5 = vmax.f32 %v776_v62, 0.0  ;;  %v779_v6 = vadd.f32 %v1839_v3, %v778_v1  ;;  %v780_v7 = vpop.f32.mrb[15].mxu1  ;;  %v852_v8 = vmax.f32 %v672_v60, 0.0 }
 0x136   : > { %v853_v9 = vmax.f32 %v675_v2, 0.0  ;;  %v879_v10 = vmax.f32 %v779_v6, 0.0 }
 0x138   : > { %v1398_v11 = vpack.c.bf16 %v853_v9, %v852_v8  ;;  %v1463_v12 = vpack.c.bf16 %v879_v10, %v878_v5 }
 0x139   : > { %v679_v13 = vpop.f32.mrb[16].mxu0  ;;  %v783_v14 = vpop.f32.mrb[16].mxu1 }
 0x13a   : > { %1507 = vst [vmem:[%s1849_s4 + $0x18] sm:$0xff] %v1398_v11   ;;  %1520 = vst [vmem:[%s1849_s4 + $0x80] sm:$0xff] %v1463_v12   ;;  %v680_v15 = vadd.f32 %v1839_v3, %v679_v13  ;;  %v681_v16 = vpop.f32.mrb[17].mxu0  ;;  %v784_v17 = vadd.f32 %v1839_v3, %v783_v14  ;;  %v785_v18 = vpop.f32.mrb[17].mxu1 }
 0x13b   : > { %v682_v19 = vpop.f32.mrb[18].mxu0  ;;  %v786_v20 = vpop.f32.mrb[18].mxu1 }
 0x13c   : > { %v683_v21 = vadd.f32 %v1839_v3, %v682_v19  ;;  %v684_v22 = vpop.f32.mrb[19].mxu0  ;;  %v880_v23 = vmax.f32 %v784_v17, 0.0  ;;  %v787_v24 = vadd.f32 %v1839_v3, %v786_v20  ;;  %v788_v25 = vpop.f32.mrb[19].mxu1  ;;  %v854_v26 = vmax.f32 %v680_v15, 0.0 }
 0x13e   : > { %v855_v27 = vmax.f32 %v683_v21, 0.0  ;;  %v881_v28 = vmax.f32 %v787_v24, 0.0 }
 0x140   : > { %v1403_v29 = vpack.c.bf16 %v855_v27, %v854_v26  ;;  %v1468_v30 = vpack.c.bf16 %v881_v28, %v880_v23 }
 0x141   : > { %v687_v31 = vpop.f32.mrb[20].mxu0  ;;  %v791_v32 = vpop.f32.mrb[20].mxu1 }
 0x142   : > { %1508 = vst [vmem:[%s1849_s4 + $0x20] sm:$0xff] %v1403_v29   ;;  %1521 = vst [vmem:[%s1849_s4 + $0x88] sm:$0xff] %v1468_v30   ;;  %v688_v33 = vadd.f32 %v1839_v3, %v687_v31  ;;  %v689_v34 = vpop.f32.mrb[21].mxu0  ;;  %v792_v35 = vadd.f32 %v1839_v3, %v791_v32  ;;  %v793_v36 = vpop.f32.mrb[21].mxu1 }
 0x143   : > { %v690_v37 = vpop.f32.mrb[22].mxu0  ;;  %v794_v38 = vpop.f32.mrb[22].mxu1 }
 0x144   : > { %v691_v39 = vadd.f32 %v1839_v3, %v690_v37  ;;  %v692_v40 = vpop.f32.mrb[23].mxu0  ;;  %v882_v41 = vmax.f32 %v792_v35, 0.0  ;;  %v795_v42 = vadd.f32 %v1839_v3, %v794_v38  ;;  %v796_v43 = vpop.f32.mrb[23].mxu1  ;;  %v856_v44 = vmax.f32 %v688_v33, 0.0 }
 0x146   : > { %v857_v45 = vmax.f32 %v691_v39, 0.0  ;;  %v883_v46 = vmax.f32 %v795_v42, 0.0 }
 0x148   : > { %v1408_v47 = vpack.c.bf16 %v857_v45, %v856_v44  ;;  %v1473_v48 = vpack.c.bf16 %v883_v46, %v882_v41 }
 0x149   : > { %v695_v49 = vpop.f32.mrb[24].mxu0  ;;  %v799_v50 = vpop.f32.mrb[24].mxu1 }
 0x14a   : > { %1509 = vst [vmem:[%s1849_s4 + $0x28] sm:$0xff] %v1408_v47   ;;  %1522 = vst [vmem:[%s1849_s4 + $0x90] sm:$0xff] %v1473_v48   ;;  %v696_v51 = vadd.f32 %v1839_v3, %v695_v49  ;;  %v697_v52 = vpop.f32.mrb[25].mxu0  ;;  %v800_v53 = vadd.f32 %v1839_v3, %v799_v50  ;;  %v801_v54 = vpop.f32.mrb[25].mxu1 }
 0x14b   : > { %v698_v55 = vpop.f32.mrb[26].mxu0  ;;  %v802_v56 = vpop.f32.mrb[26].mxu1 }
 0x14c   : > { %v699_v57 = vadd.f32 %v1839_v3, %v698_v55  ;;  %v700_v58 = vpop.f32.mrb[27].mxu0  ;;  %v884_v59 = vmax.f32 %v800_v53, 0.0  ;;  %v803_v60 = vadd.f32 %v1839_v3, %v802_v56  ;;  %v804_v61 = vpop.f32.mrb[27].mxu1  ;;  %v858_v62 = vmax.f32 %v696_v51, 0.0 }
 0x14e   : > { %v859_v63 = vmax.f32 %v699_v57, 0.0  ;;  %v885_v0 = vmax.f32 %v803_v60, 0.0 }
 0x150   : > { %v1413_v1 = vpack.c.bf16 %v859_v63, %v858_v62  ;;  %v1478_v2 = vpack.c.bf16 %v885_v0, %v884_v59 }
 0x151   : > { %v703_v4 = vpop.f32.mrb[28].mxu0  ;;  %v807_v5 = vpop.f32.mrb[28].mxu1 }
 0x152   : > { %1510 = vst [vmem:[%s1849_s4 + $0x30] sm:$0xff] %v1413_v1   ;;  %1523 = vst [vmem:[%s1849_s4 + $0x98] sm:$0xff] %v1478_v2   ;;  %v704_v6 = vadd.f32 %v1839_v3, %v703_v4  ;;  %v705_v7 = vpop.f32.mrb[29].mxu0  ;;  %v808_v8 = vadd.f32 %v1839_v3, %v807_v5  ;;  %v809_v9 = vpop.f32.mrb[29].mxu1 }
 0x153   : > { %v706_v10 = vpop.f32.mrb[30].mxu0  ;;  %v810_v11 = vpop.f32.mrb[30].mxu1 }
 0x154   : > { %v707_v12 = vadd.f32 %v1839_v3, %v706_v10  ;;  %v708_v13 = vpop.f32.mrb[31].mxu0  ;;  %v886_v14 = vmax.f32 %v808_v8, 0.0  ;;  %v811_v15 = vadd.f32 %v1839_v3, %v810_v11  ;;  %v812_v16 = vpop.f32.mrb[31].mxu1  ;;  %v860_v17 = vmax.f32 %v704_v6, 0.0 }
 0x156   : > { %v861_v18 = vmax.f32 %v707_v12, 0.0  ;;  %v887_v19 = vmax.f32 %v811_v15, 0.0 }
 0x158   : > { %v1418_v20 = vpack.c.bf16 %v861_v18, %v860_v17  ;;  %v1483_v21 = vpack.c.bf16 %v887_v19, %v886_v14 }
 0x159   : > { %v711_v22 = vpop.f32.mrb[32].mxu0  ;;  %v815_v23 = vpop.f32.mrb[32].mxu1 }
 0x15a   : > { %1511 = vst [vmem:[%s1849_s4 + $0x38] sm:$0xff] %v1418_v20   ;;  %1524 = vst [vmem:[%s1849_s4 + $0xa0] sm:$0xff] %v1483_v21   ;;  %v712_v24 = vadd.f32 %v1839_v3, %v711_v22  ;;  %v713_v25 = vpop.f32.mrb[33].mxu0  ;;  %v816_v26 = vadd.f32 %v1839_v3, %v815_v23  ;;  %v817_v27 = vpop.f32.mrb[33].mxu1 }
 0x15b   : > { %v714_v28 = vpop.f32.mrb[34].mxu0  ;;  %v818_v29 = vpop.f32.mrb[34].mxu1 }
 0x15c   : > { %v715_v30 = vadd.f32 %v1839_v3, %v714_v28  ;;  %v716_v31 = vpop.f32.mrb[35].mxu0  ;;  %v888_v32 = vmax.f32 %v816_v26, 0.0  ;;  %v819_v33 = vadd.f32 %v1839_v3, %v818_v29  ;;  %v820_v34 = vpop.f32.mrb[35].mxu1  ;;  %v862_v35 = vmax.f32 %v712_v24, 0.0 }
 0x15e   : > { %v863_v36 = vmax.f32 %v715_v30, 0.0  ;;  %v889_v37 = vmax.f32 %v819_v33, 0.0 }
 0x160   : > { %v1423_v38 = vpack.c.bf16 %v863_v36, %v862_v35  ;;  %v1488_v39 = vpack.c.bf16 %v889_v37, %v888_v32 }
 0x161   : > { %v719_v40 = vpop.f32.mrb[36].mxu0  ;;  %v823_v41 = vpop.f32.mrb[36].mxu1 }
 0x162   : > { %1512 = vst [vmem:[%s1849_s4 + $0x40] sm:$0xff] %v1423_v38   ;;  %1525 = vst [vmem:[%s1849_s4 + $0xa8] sm:$0xff] %v1488_v39   ;;  %v720_v42 = vadd.f32 %v1839_v3, %v719_v40  ;;  %v721_v43 = vpop.f32.mrb[37].mxu0  ;;  %v824_v44 = vadd.f32 %v1839_v3, %v823_v41  ;;  %v825_v45 = vpop.f32.mrb[37].mxu1 }
 0x163   : > { %v722_v46 = vpop.f32.mrb[38].mxu0  ;;  %v826_v47 = vpop.f32.mrb[38].mxu1 }
 0x164   : > { %v723_v48 = vadd.f32 %v1839_v3, %v722_v46  ;;  %v724_v49 = vpop.f32.mrb[39].mxu0  ;;  %v890_v50 = vmax.f32 %v824_v44, 0.0  ;;  %v827_v51 = vadd.f32 %v1839_v3, %v826_v47  ;;  %v828_v52 = vpop.f32.mrb[39].mxu1  ;;  %v864_v53 = vmax.f32 %v720_v42, 0.0 }
 0x166   : > { %v865_v54 = vmax.f32 %v723_v48, 0.0  ;;  %v891_v55 = vmax.f32 %v827_v51, 0.0 }
 0x168   : > { %v1428_v56 = vpack.c.bf16 %v865_v54, %v864_v53  ;;  %v1493_v57 = vpack.c.bf16 %v891_v55, %v890_v50 }
 0x169   : > { %v727_v58 = vpop.f32.mrb[40].mxu0  ;;  %v831_v59 = vpop.f32.mrb[40].mxu1 }
 0x16a   : > { %1513 = vst [vmem:[%s1849_s4 + $0x48] sm:$0xff] %v1428_v56   ;;  %1526 = vst [vmem:[%s1849_s4 + $0xb0] sm:$0xff] %v1493_v57   ;;  %v728_v60 = vadd.f32 %v1839_v3, %v727_v58  ;;  %v729_v61 = vpop.f32.mrb[41].mxu0  ;;  %v832_v62 = vadd.f32 %v1839_v3, %v831_v59  ;;  %v833_v63 = vpop.f32.mrb[41].mxu1 }
 0x16b   : > { %v730_v0 = vpop.f32.mrb[42].mxu0  ;;  %v834_v1 = vpop.f32.mrb[42].mxu1 }
 0x16c   : > { %v731_v2 = vadd.f32 %v1839_v3, %v730_v0  ;;  %v732_v4 = vpop.f32.mrb[43].mxu0  ;;  %v892_v5 = vmax.f32 %v832_v62, 0.0  ;;  %v835_v6 = vadd.f32 %v1839_v3, %v834_v1  ;;  %v836_v7 = vpop.f32.mrb[43].mxu1  ;;  %v866_v8 = vmax.f32 %v728_v60, 0.0 }
 0x16e   : > { %v867_v9 = vmax.f32 %v731_v2, 0.0  ;;  %v893_v10 = vmax.f32 %v835_v6, 0.0 }
 0x170   : > { %v1433_v11 = vpack.c.bf16 %v867_v9, %v866_v8  ;;  %v1498_v12 = vpack.c.bf16 %v893_v10, %v892_v5 }
 0x171   : > { %v735_v13 = vpop.f32.mrb[44].mxu0  ;;  %v839_v14 = vpop.f32.mrb[44].mxu1 }
 0x172   : > { %1514 = vst [vmem:[%s1849_s4 + $0x50] sm:$0xff] %v1433_v11   ;;  %1527 = vst [vmem:[%s1849_s4 + $0xb8] sm:$0xff] %v1498_v12   ;;  %v736_v15 = vadd.f32 %v1839_v3, %v735_v13  ;;  %v737_v16 = vpop.f32.mrb[45].mxu0  ;;  %v840_v17 = vadd.f32 %v1839_v3, %v839_v14  ;;  %v841_v18 = vpop.f32.mrb[45].mxu1 }
 0x173   : > { %v738_v19 = vpop.f32.mrb[46].mxu0  ;;  %v842_v20 = vpop.f32.mrb[46].mxu1 }
 0x174   : > { %v739_v21 = vadd.f32 %v1839_v3, %v738_v19  ;;  %v740_v22 = vpop.f32.mrb[47].mxu0  ;;  %v894_v23 = vmax.f32 %v840_v17, 0.0  ;;  %v843_v24 = vadd.f32 %v1839_v3, %v842_v20  ;;  %v844_v25 = vpop.f32.mrb[47].mxu1  ;;  %v868_v26 = vmax.f32 %v736_v15, 0.0 }
 0x176   : > { %v869_v27 = vmax.f32 %v739_v21, 0.0  ;;  %v895_v28 = vmax.f32 %v843_v24, 0.0 }
 0x178   : > { %v1438_v29 = vpack.c.bf16 %v869_v27, %v868_v26  ;;  %v1503_v30 = vpack.c.bf16 %v895_v28, %v894_v23 }
 0x179   : > { %v743_v31 = vpop.f32.mrb[48].mxu0 }
 0x17a   : > { %1515 = vst [vmem:[%s1849_s4 + $0x58] sm:$0xff] %v1438_v29   ;;  %1528 = vst [vmem:[%s1849_s4 + $0xc0] sm:$0xff] %v1503_v30   ;;  %v744_v32 = vadd.f32 %v1839_v3, %v743_v31  ;;  %v745_v33 = vpop.f32.mrb[49].mxu0 }
 0x17b   : > { %v746_v34 = vpop.f32.mrb[50].mxu0 }
 0x17c   : > { %v747_v35 = vadd.f32 %v1839_v3, %v746_v34  ;;  %v748_v36 = vpop.f32.mrb[51].mxu0  ;;  %v870_v37 = vmax.f32 %v744_v32, 0.0 }
 0x17e   : > { %v871_v38 = vmax.f32 %v747_v35, 0.0 }
 0x180   : > { %v1443_v39 = vpack.c.bf16 %v871_v38, %v870_v37 }
 0x182   : > { %1516 = vst [vmem:[%s1849_s4 + $0x60] sm:$0xff] %v1443_v39  }
 0x183 PF: > { %s13_s12 = sadd.s32 1, %s1667_s12  }
 0x184   : > { %p10_p4 = scmp.ge.s32.totalorder %s13_s12, 4  }
 0x186   :  { %12 = sbr.rel (!%p10_p4) target bundleno = 1 (0x1), region = 62 }

// kernel: forward.5
= control target key start
LH: loop header
LB: loop body
LE: loop exit
PB: predicated region body
PF: predicated region fallthrough
CT: control target
= control target key end

     0   :  { %s1676_s1 = inlined_call_operand.vmem [shape: bf16[512,128], index: 1, kind: input, shape index: {}]   ;;  %s1677_s0 = inlined_call_operand.vmem [shape: bf16[176,512], index: 0, kind: input, shape index: {}]   ;;  %s1678_s2 = inlined_call_operand.vmem [shape: f32[1,128], index: 2, kind: input, shape index: {}]   ;;  %s1679_s3 = inlined_call_operand.vmem [shape: bf16[176,128], index: 3, kind: output, shape index: {}]  }
   0x1   :  { %v1270_v0 = vld [vmem:[%s1676_s1 + $0x40] sm:$0xff]   ;;  %v1274_v4 = vld [vmem:[%s1676_s1 + $0x48] sm:$0xff]   ;;  %v1278_v8 = vld [vmem:[%s1676_s1 + $0x50] sm:$0xff]  }
   0x2   :  { %v1271_v1 = vld [vmem:[%s1676_s1 + $0xc0] sm:$0xff]   ;;  %1106 = vmatprep.subr.bf16.mxu0 %v1270_v0  ;;  %v1275_v5 = vld [vmem:[%s1676_s1 + $0xc8] sm:$0xff]   ;;  %v1279_v9 = vld [vmem:[%s1676_s1 + $0xd0] sm:$0xff]  }
   0x3   :  { %v1272_v2 = vld [vmem:[%s1676_s1] sm:$0xff]   ;;  %1188 = vmatprep.subr.bf16.mxu1 %v1271_v1  ;;  %v1276_v6 = vld [vmem:[%s1676_s1 + $0x8] sm:$0xff]   ;;  %v1280_v10 = vld [vmem:[%s1676_s1 + $0x10] sm:$0xff]  }
   0x4   :  { %v1273_v3 = vld [vmem:[%s1676_s1 + $0x80] sm:$0xff]   ;;  %1107 = vmatpush3.bf16.msra.mxu0 %v1272_v2  ;;  %v1277_v7 = vld [vmem:[%s1676_s1 + $0x88] sm:$0xff]   ;;  %v1281_v11 = vld [vmem:[%s1676_s1 + $0x90] sm:$0xff]  }
   0x5   :  { %1189 = vmatpush3.bf16.msra.mxu1 %v1273_v3  ;;  %1108 = vmatprep.subr.bf16.mxu0 %v1274_v4  ;;  %v1282_v12 = vld [vmem:[%s1676_s1 + $0x58] sm:$0xff]   ;;  %v1286_v16 = vld [vmem:[%s1676_s1 + $0x60] sm:$0xff]   ;;  %v1290_v20 = vld [vmem:[%s1676_s1 + $0x68] sm:$0xff]  }
   0x6   :  { %1190 = vmatprep.subr.bf16.mxu1 %v1275_v5  ;;  %v1283_v13 = vld [vmem:[%s1676_s1 + $0xd8] sm:$0xff]   ;;  %v1287_v17 = vld [vmem:[%s1676_s1 + $0xe0] sm:$0xff]   ;;  %v1291_v21 = vld [vmem:[%s1676_s1 + $0xe8] sm:$0xff]  }
   0x7   :  { %v1284_v14 = vld [vmem:[%s1676_s1 + $0x18] sm:$0xff]   ;;  %v1288_v18 = vld [vmem:[%s1676_s1 + $0x20] sm:$0xff]   ;;  %v1292_v22 = vld [vmem:[%s1676_s1 + $0x28] sm:$0xff]  }
   0x8   :  { %1109 = vmatpush3.bf16.msra.mxu0 %v1276_v6  ;;  %v1285_v15 = vld [vmem:[%s1676_s1 + $0x98] sm:$0xff]   ;;  %v1289_v19 = vld [vmem:[%s1676_s1 + $0xa0] sm:$0xff]   ;;  %v1293_v23 = vld [vmem:[%s1676_s1 + $0xa8] sm:$0xff]  }
   0x9   :  { %1191 = vmatpush3.bf16.msra.mxu1 %v1277_v7  ;;  %1110 = vmatprep.subr.bf16.mxu0 %v1278_v8  ;;  %v1294_v24 = vld [vmem:[%s1676_s1 + $0x70] sm:$0xff]   ;;  %v1298_v28 = vld [vmem:[%s1676_s1 + $0x78] sm:$0xff]  }
   0xa   :  { %1192 = vmatprep.subr.bf16.mxu1 %v1279_v9  ;;  %v1295_v25 = vld [vmem:[%s1676_s1 + $0xf0] sm:$0xff]   ;;  %v1299_v29 = vld [vmem:[%s1676_s1 + $0xf8] sm:$0xff]  }
   0xb   :  { %v1296_v26 = vld [vmem:[%s1676_s1 + $0x30] sm:$0xff]   ;;  %v1300_v30 = vld [vmem:[%s1676_s1 + $0x38] sm:$0xff]  }
   0xc   :  { %1111 = vmatpush3.bf16.msra.mxu0 %v1280_v10  ;;  %v1297_v27 = vld [vmem:[%s1676_s1 + $0xb0] sm:$0xff]   ;;  %v1301_v31 = vld [vmem:[%s1676_s1 + $0xb8] sm:$0xff]  }
   0xd   :  { %1193 = vmatpush3.bf16.msra.mxu1 %v1281_v11  ;;  %1112 = vmatprep.subr.bf16.mxu0 %v1282_v12  ;;  %v1302_v32 = vld [vmem:[%s1677_s0] ss:$16 sps:$4 sm:$0xff]   ;;  %v1304_v33 = vld [vmem:[%s1677_s0 + $0x4] ss:$16 sps:$4 sm:$0xff]   ;;  %v1305_v34 = vld [vmem:[%s1677_s0 + $0x8] ss:$16 sps:$4 sm:$0xff]  }
   0xe   :  { %1194 = vmatprep.subr.bf16.mxu1 %v1283_v13  ;;  %v1307_v35 = vld [vmem:[%s1677_s0 + $0xc] ss:$16 sps:$4 sm:$0xff]   ;;  %574 = vmatprep.mubr.bf16.mxu0 %v1304_v33  ;;  %v1308_v36 = vld [vmem:[%s1677_s0 + $0x24] ss:$16 sps:$4 sm:$0xff]   ;;  %v1312_v38 = vld [vmem:[%s1677_s0 + $0x20] ss:$16 sps:$4 sm:$0xff]  }
   0xf   :  { %695 = vmatprep.mubr.bf16.mxu1 %v1307_v35  ;;  %v1310_v37 = vld [vmem:[%s1677_s0 + $0x2c] ss:$16 sps:$4 sm:$0xff]   ;;  %v1313_v39 = vld [vmem:[%s1677_s0 + $0x28] ss:$16 sps:$4 sm:$0xff]   ;;  %v1314_v40 = vld [vmem:[%s1677_s0 + $0x44] ss:$16 sps:$4 sm:$0xff]  }
  0x10   :  { %1113 = vmatpush3.bf16.msra.mxu0 %v1284_v14  ;;  %v1316_v41 = vld [vmem:[%s1677_s0 + $0x4c] ss:$16 sps:$4 sm:$0xff]   ;;  %v1318_v42 = vld [vmem:[%s1677_s0 + $0x40] ss:$16 sps:$4 sm:$0xff]   ;;  %v1319_v43 = vld [vmem:[%s1677_s0 + $0x48] ss:$16 sps:$4 sm:$0xff]  }
  0x11   :  { %1195 = vmatpush3.bf16.msra.mxu1 %v1285_v15  ;;  %1114 = vmatprep.subr.bf16.mxu0 %v1286_v16  ;;  %v1320_v44 = vld [vmem:[%s1677_s0 + $0x64] ss:$16 sps:$4 sm:$0xff]   ;;  %v1322_v45 = vld [vmem:[%s1677_s0 + $0x6c] ss:$16 sps:$4 sm:$0xff]   ;;  %v1324_v46 = vld [vmem:[%s1677_s0 + $0x60] ss:$16 sps:$4 sm:$0xff]  }
  0x12   :  { %1196 = vmatprep.subr.bf16.mxu1 %v1287_v17  ;;  %v1325_v47 = vld [vmem:[%s1677_s0 + $0x68] ss:$16 sps:$4 sm:$0xff]   ;;  %v1326_v48 = vld [vmem:[%s1677_s0 + $0x84] ss:$16 sps:$4 sm:$0xff]   ;;  %v1328_v49 = vld [vmem:[%s1677_s0 + $0x8c] ss:$16 sps:$4 sm:$0xff]  }
  0x13   :  { %v1330_v50 = vld [vmem:[%s1677_s0 + $0x80] ss:$16 sps:$4 sm:$0xff]   ;;  %v1331_v51 = vld [vmem:[%s1677_s0 + $0x88] ss:$16 sps:$4 sm:$0xff]   ;;  %v1332_v52 = vld [vmem:[%s1677_s0 + $0xa4] ss:$16 sps:$4 sm:$0xff]  }
  0x14   :  { %1115 = vmatpush3.bf16.msra.mxu0 %v1288_v18  ;;  %v1334_v53 = vld [vmem:[%s1677_s0 + $0xac] ss:$16 sps:$4 sm:$0xff]   ;;  %v1336_v54 = vld [vmem:[%s1677_s0 + $0xa0] ss:$16 sps:$4 sm:$0xff]   ;;  %v1337_v55 = vld [vmem:[%s1677_s0 + $0xa8] ss:$16 sps:$4 sm:$0xff]  }
  0x15   :  { %1197 = vmatpush3.bf16.msra.mxu1 %v1289_v19  ;;  %1116 = vmatprep.subr.bf16.mxu0 %v1290_v20  ;;  %v1338_v56 = vld [vmem:[%s1677_s0 + $0xc4] ss:$16 sps:$4 sm:$0xff]   ;;  %v1340_v57 = vld [vmem:[%s1677_s0 + $0xcc] ss:$16 sps:$4 sm:$0xff]   ;;  %v1342_v58 = vld [vmem:[%s1677_s0 + $0xc0] ss:$16 sps:$4 sm:$0xff]  }
  0x16   :  { %1198 = vmatprep.subr.bf16.mxu1 %v1291_v21  ;;  %v1343_v59 = vld [vmem:[%s1677_s0 + $0xc8] ss:$16 sps:$4 sm:$0xff]   ;;  %v1344_v60 = vld [vmem:[%s1677_s0 + $0xe4] ss:$16 sps:$4 sm:$0xff]   ;;  %v1346_v61 = vld [vmem:[%s1677_s0 + $0xec] ss:$16 sps:$4 sm:$0xff]  }
  0x17   :  { %v1348_v62 = vld [vmem:[%s1677_s0 + $0xe0] ss:$16 sps:$4 sm:$0xff]   ;;  %v1349_v63 = vld [vmem:[%s1677_s0 + $0xe8] ss:$16 sps:$4 sm:$0xff]   ;;  %v1350_v0 = vld [vmem:[%s1677_s0 + $0x104] ss:$16 sps:$4 sm:$0xff]  }
  0x18   :  { %1117 = vmatpush3.bf16.msra.mxu0 %v1292_v22  ;;  %v1352_v1 = vld [vmem:[%s1677_s0 + $0x10c] ss:$16 sps:$4 sm:$0xff]   ;;  %v1354_v2 = vld [vmem:[%s1677_s0 + $0x100] ss:$16 sps:$4 sm:$0xff]   ;;  %v1355_v3 = vld [vmem:[%s1677_s0 + $0x108] ss:$16 sps:$4 sm:$0xff]  }
  0x19   :  { %1199 = vmatpush3.bf16.msra.mxu1 %v1293_v23  ;;  %1118 = vmatprep.subr.bf16.mxu0 %v1294_v24  ;;  %v1356_v4 = vld [vmem:[%s1677_s0 + $0x124] ss:$16 sps:$4 sm:$0xff]   ;;  %v1358_v5 = vld [vmem:[%s1677_s0 + $0x12c] ss:$16 sps:$4 sm:$0xff]   ;;  %v1360_v6 = vld [vmem:[%s1677_s0 + $0x120] ss:$16 sps:$4 sm:$0xff]  }
  0x1a   :  { %1200 = vmatprep.subr.bf16.mxu1 %v1295_v25  ;;  %v1361_v7 = vld [vmem:[%s1677_s0 + $0x128] ss:$16 sps:$4 sm:$0xff]   ;;  %v1362_v8 = vld [vmem:[%s1677_s0 + $0x144] ss:$16 sps:$4 sm:$0xff]   ;;  %v1364_v9 = vld [vmem:[%s1677_s0 + $0x14c] ss:$16 sps:$4 sm:$0xff]  }
  0x1b   :  { %v1366_v10 = vld [vmem:[%s1677_s0 + $0x140] ss:$16 sps:$4 sm:$0xff]   ;;  %v1367_v11 = vld [vmem:[%s1677_s0 + $0x148] ss:$16 sps:$4 sm:$0xff]  }
  0x1c   :  { %1119 = vmatpush3.bf16.msra.mxu0 %v1296_v26  ;;  %v1619_v14 = vld [vmem:[%s1678_s2] ss:$0 sm:$0xff] }
  0x1d   :  { %1201 = vmatpush3.bf16.msra.mxu1 %v1297_v27  ;;  %1120 = vmatprep.subr.bf16.mxu0 %v1298_v28 }
  0x1e   :  { %1202 = vmatprep.subr.bf16.mxu1 %v1299_v29 }
  0x20   :  { %1121 = vmatpush3.bf16.msra.mxu0 %v1300_v30 }
  0x21   :  { %1203 = vmatpush3.bf16.msra.mxu1 %v1301_v31 }
  0x23   :  { %575 = vmatmul.mubr.bf16.vlgmr.msra.gmra.mrb[0].mxu0 %v1302_v32 }
  0x24   :  { %696 = vmatmul.mubr.bf16.vlgmr.msra.gmra.mrb[0].mxu1 %v1305_v34  ;;  %582 = vmatprep.mubr.bf16.mxu0 %v1308_v36 }
  0x25   :  { %703 = vmatprep.mubr.bf16.mxu1 %v1310_v37 }
  0x2b   :  { %583 = vmatmul.mubr.bf16.gmra.mrb[4].mxu0 %v1312_v38 }
  0x2c   :  { %704 = vmatmul.mubr.bf16.gmra.mrb[4].mxu1 %v1313_v39  ;;  %590 = vmatprep.mubr.bf16.mxu0 %v1314_v40 }
  0x2d   :  { %711 = vmatprep.mubr.bf16.mxu1 %v1316_v41 }
  0x33   :  { %591 = vmatmul.mubr.bf16.gmra.mrb[8].mxu0 %v1318_v42 }
  0x34   :  { %712 = vmatmul.mubr.bf16.gmra.mrb[8].mxu1 %v1319_v43  ;;  %598 = vmatprep.mubr.bf16.mxu0 %v1320_v44 }
  0x35   :  { %719 = vmatprep.mubr.bf16.mxu1 %v1322_v45 }
  0x3b   :  { %599 = vmatmul.mubr.bf16.gmra.mrb[12].mxu0 %v1324_v46 }
  0x3c   :  { %720 = vmatmul.mubr.bf16.gmra.mrb[12].mxu1 %v1325_v47  ;;  %606 = vmatprep.mubr.bf16.mxu0 %v1326_v48 }
  0x3d   :  { %727 = vmatprep.mubr.bf16.mxu1 %v1328_v49 }
  0x43   :  { %607 = vmatmul.mubr.bf16.gmra.mrb[16].mxu0 %v1330_v50 }
  0x44   :  { %728 = vmatmul.mubr.bf16.gmra.mrb[16].mxu1 %v1331_v51  ;;  %614 = vmatprep.mubr.bf16.mxu0 %v1332_v52 }
  0x45   :  { %735 = vmatprep.mubr.bf16.mxu1 %v1334_v53 }
  0x4b   :  { %615 = vmatmul.mubr.bf16.gmra.mrb[20].mxu0 %v1336_v54 }
  0x4c   :  { %736 = vmatmul.mubr.bf16.gmra.mrb[20].mxu1 %v1337_v55  ;;  %622 = vmatprep.mubr.bf16.mxu0 %v1338_v56 }
  0x4d   :  { %743 = vmatprep.mubr.bf16.mxu1 %v1340_v57 }
  0x53   :  { %623 = vmatmul.mubr.bf16.gmra.mrb[24].mxu0 %v1342_v58 }
  0x54   :  { %744 = vmatmul.mubr.bf16.gmra.mrb[24].mxu1 %v1343_v59  ;;  %630 = vmatprep.mubr.bf16.mxu0 %v1344_v60 }
  0x55   :  { %751 = vmatprep.mubr.bf16.mxu1 %v1346_v61 }
  0x5b   :  { %631 = vmatmul.mubr.bf16.gmra.mrb[28].mxu0 %v1348_v62 }
  0x5c   :  { %752 = vmatmul.mubr.bf16.gmra.mrb[28].mxu1 %v1349_v63  ;;  %638 = vmatprep.mubr.bf16.mxu0 %v1350_v0 }
  0x5d   :  { %759 = vmatprep.mubr.bf16.mxu1 %v1352_v1 }
  0x63   :  { %639 = vmatmul.mubr.bf16.gmra.mrb[32].mxu0 %v1354_v2 }
  0x64   :  { %760 = vmatmul.mubr.bf16.gmra.mrb[32].mxu1 %v1355_v3  ;;  %646 = vmatprep.mubr.bf16.mxu0 %v1356_v4 }
  0x65   :  { %767 = vmatprep.mubr.bf16.mxu1 %v1358_v5 }
  0x6b   :  { %647 = vmatmul.mubr.bf16.gmra.mrb[36].mxu0 %v1360_v6 }
  0x6c   :  { %768 = vmatmul.mubr.bf16.gmra.mrb[36].mxu1 %v1361_v7  ;;  %654 = vmatprep.mubr.bf16.mxu0 %v1362_v8 }
  0x6d   :  { %775 = vmatprep.mubr.bf16.mxu1 %v1364_v9 }
  0x73   :  { %655 = vmatmul.mubr.bf16.gmra.mrb[40].mxu0 %v1366_v10 }
  0x74   :  { %776 = vmatmul.mubr.bf16.gmra.mrb[40].mxu1 %v1367_v11 }
  0xf6   :  { %v1122_v12 = vpop.f32.mrb[0].mxu0 }
  0xf7   :  { %v1204_v13 = vpop.f32.mrb[0].mxu1  ;;  %v1123_v15 = vpop.f32.mrb[1].mxu0 }
  0xf8   :  { %v1124_v16 = vadd.f32 %v1123_v15, %v1122_v12  ;;  %v1205_v17 = vpop.f32.mrb[1].mxu1  ;;  %v1125_v18 = vpop.f32.mrb[2].mxu0 }
  0xf9   :  { %v1206_v19 = vadd.f32 %v1205_v17, %v1204_v13  ;;  %v1207_v20 = vpop.f32.mrb[2].mxu1  ;;  %v1126_v21 = vpop.f32.mrb[3].mxu0 }
  0xfa   :  { %v577_v22 = vadd.f32 %v1124_v16, %v1619_v14  ;;  %v1127_v23 = vadd.f32 %v1126_v21, %v1125_v18  ;;  %v1208_v24 = vpop.f32.mrb[3].mxu1 }
  0xfb   :  { %v1209_v25 = vadd.f32 %v1208_v24, %v1207_v20 }
  0xfc   :  { %v698_v26 = vadd.f32 %v1206_v19, %v577_v22  ;;  %v580_v27 = vadd.f32 %v1127_v23, %v1619_v14 }
  0xfe   :  { %v701_v28 = vadd.f32 %v1209_v25, %v580_v27  ;;  %v1128_v29 = vpop.f32.mrb[4].mxu0  ;;  %v784_v32 = vmax.f32 %v698_v26, 0.0 }
  0xff   :  { %v1210_v30 = vpop.f32.mrb[4].mxu1  ;;  %v1129_v31 = vpop.f32.mrb[5].mxu0 }
 0x100   :  { %v785_v33 = vmax.f32 %v701_v28, 0.0  ;;  %v1130_v34 = vadd.f32 %v1129_v31, %v1128_v29  ;;  %v1211_v35 = vpop.f32.mrb[5].mxu1  ;;  %v1131_v36 = vpop.f32.mrb[6].mxu0 }
 0x101   :  { %v1212_v37 = vadd.f32 %v1211_v35, %v1210_v30  ;;  %v1213_v38 = vpop.f32.mrb[6].mxu1  ;;  %v1132_v39 = vpop.f32.mrb[7].mxu0 }
 0x102   :  { %v1044_v40 = vpack.c.bf16 %v785_v33, %v784_v32  ;;  %v585_v41 = vadd.f32 %v1130_v34, %v1619_v14  ;;  %v1133_v42 = vadd.f32 %v1132_v39, %v1131_v36  ;;  %v1214_v43 = vpop.f32.mrb[7].mxu1 }
 0x103   :  { %v1215_v44 = vadd.f32 %v1214_v43, %v1213_v38 }
 0x104   :  { %1045 = vst [vmem:[%s1679_s3] sm:$0xff] %v1044_v40   ;;  %v706_v45 = vadd.f32 %v1212_v37, %v585_v41  ;;  %v588_v46 = vadd.f32 %v1133_v42, %v1619_v14 }
 0x106   :  { %v709_v47 = vadd.f32 %v1215_v44, %v588_v46  ;;  %v1134_v48 = vpop.f32.mrb[8].mxu0  ;;  %v786_v51 = vmax.f32 %v706_v45, 0.0 }
 0x107   :  { %v1216_v49 = vpop.f32.mrb[8].mxu1  ;;  %v1135_v50 = vpop.f32.mrb[9].mxu0 }
 0x108   :  { %v787_v52 = vmax.f32 %v709_v47, 0.0  ;;  %v1136_v53 = vadd.f32 %v1135_v50, %v1134_v48  ;;  %v1217_v54 = vpop.f32.mrb[9].mxu1  ;;  %v1137_v55 = vpop.f32.mrb[10].mxu0 }
 0x109   :  { %v1218_v56 = vadd.f32 %v1217_v54, %v1216_v49  ;;  %v1219_v57 = vpop.f32.mrb[10].mxu1  ;;  %v1138_v58 = vpop.f32.mrb[11].mxu0 }
 0x10a   :  { %v1049_v59 = vpack.c.bf16 %v787_v52, %v786_v51  ;;  %v593_v60 = vadd.f32 %v1136_v53, %v1619_v14  ;;  %v1139_v61 = vadd.f32 %v1138_v58, %v1137_v55  ;;  %v1220_v62 = vpop.f32.mrb[11].mxu1 }
 0x10b   :  { %v1221_v63 = vadd.f32 %v1220_v62, %v1219_v57 }
 0x10c   :  { %1096 = vst [vmem:[%s1679_s3 + $0x8] sm:$0xff] %v1049_v59   ;;  %v714_v0 = vadd.f32 %v1218_v56, %v593_v60  ;;  %v596_v1 = vadd.f32 %v1139_v61, %v1619_v14 }
 0x10e   :  { %v717_v2 = vadd.f32 %v1221_v63, %v596_v1  ;;  %v1140_v3 = vpop.f32.mrb[12].mxu0  ;;  %v788_v6 = vmax.f32 %v714_v0, 0.0 }
 0x10f   :  { %v1222_v4 = vpop.f32.mrb[12].mxu1  ;;  %v1141_v5 = vpop.f32.mrb[13].mxu0 }
 0x110   :  { %v789_v7 = vmax.f32 %v717_v2, 0.0  ;;  %v1142_v8 = vadd.f32 %v1141_v5, %v1140_v3  ;;  %v1223_v9 = vpop.f32.mrb[13].mxu1  ;;  %v1143_v10 = vpop.f32.mrb[14].mxu0 }
 0x111   :  { %v1224_v11 = vadd.f32 %v1223_v9, %v1222_v4  ;;  %v1225_v12 = vpop.f32.mrb[14].mxu1  ;;  %v1144_v13 = vpop.f32.mrb[15].mxu0 }
 0x112   :  { %v1054_v15 = vpack.c.bf16 %v789_v7, %v788_v6  ;;  %v601_v16 = vadd.f32 %v1142_v8, %v1619_v14  ;;  %v1145_v17 = vadd.f32 %v1144_v13, %v1143_v10  ;;  %v1226_v18 = vpop.f32.mrb[15].mxu1 }
 0x113   :  { %v1227_v19 = vadd.f32 %v1226_v18, %v1225_v12 }
 0x114   :  { %1097 = vst [vmem:[%s1679_s3 + $0x10] sm:$0xff] %v1054_v15   ;;  %v722_v20 = vadd.f32 %v1224_v11, %v601_v16  ;;  %v604_v21 = vadd.f32 %v1145_v17, %v1619_v14 }
 0x116   :  { %v725_v22 = vadd.f32 %v1227_v19, %v604_v21  ;;  %v1146_v23 = vpop.f32.mrb[16].mxu0  ;;  %v790_v26 = vmax.f32 %v722_v20, 0.0 }
 0x117   :  { %v1228_v24 = vpop.f32.mrb[16].mxu1  ;;  %v1147_v25 = vpop.f32.mrb[17].mxu0 }
 0x118   :  { %v791_v27 = vmax.f32 %v725_v22, 0.0  ;;  %v1148_v28 = vadd.f32 %v1147_v25, %v1146_v23  ;;  %v1229_v29 = vpop.f32.mrb[17].mxu1  ;;  %v1149_v30 = vpop.f32.mrb[18].mxu0 }
 0x119   :  { %v1230_v31 = vadd.f32 %v1229_v29, %v1228_v24  ;;  %v1231_v32 = vpop.f32.mrb[18].mxu1  ;;  %v1150_v33 = vpop.f32.mrb[19].mxu0 }
 0x11a   :  { %v1059_v34 = vpack.c.bf16 %v791_v27, %v790_v26  ;;  %v609_v35 = vadd.f32 %v1148_v28, %v1619_v14  ;;  %v1151_v36 = vadd.f32 %v1150_v33, %v1149_v30  ;;  %v1232_v37 = vpop.f32.mrb[19].mxu1 }
 0x11b   :  { %v1233_v38 = vadd.f32 %v1232_v37, %v1231_v32 }
 0x11c   :  { %1098 = vst [vmem:[%s1679_s3 + $0x18] sm:$0xff] %v1059_v34   ;;  %v730_v39 = vadd.f32 %v1230_v31, %v609_v35  ;;  %v612_v40 = vadd.f32 %v1151_v36, %v1619_v14 }
 0x11e   :  { %v733_v41 = vadd.f32 %v1233_v38, %v612_v40  ;;  %v1152_v42 = vpop.f32.mrb[20].mxu0  ;;  %v792_v45 = vmax.f32 %v730_v39, 0.0 }
 0x11f   :  { %v1234_v43 = vpop.f32.mrb[20].mxu1  ;;  %v1153_v44 = vpop.f32.mrb[21].mxu0 }
 0x120   :  { %v793_v46 = vmax.f32 %v733_v41, 0.0  ;;  %v1154_v47 = vadd.f32 %v1153_v44, %v1152_v42  ;;  %v1235_v48 = vpop.f32.mrb[21].mxu1  ;;  %v1155_v49 = vpop.f32.mrb[22].mxu0 }
 0x121   :  { %v1236_v50 = vadd.f32 %v1235_v48, %v1234_v43  ;;  %v1237_v51 = vpop.f32.mrb[22].mxu1  ;;  %v1156_v52 = vpop.f32.mrb[23].mxu0 }
 0x122   :  { %v1064_v53 = vpack.c.bf16 %v793_v46, %v792_v45  ;;  %v617_v54 = vadd.f32 %v1154_v47, %v1619_v14  ;;  %v1157_v55 = vadd.f32 %v1156_v52, %v1155_v49  ;;  %v1238_v56 = vpop.f32.mrb[23].mxu1 }
 0x123   :  { %v1239_v57 = vadd.f32 %v1238_v56, %v1237_v51 }
 0x124   :  { %1099 = vst [vmem:[%s1679_s3 + $0x20] sm:$0xff] %v1064_v53   ;;  %v738_v58 = vadd.f32 %v1236_v50, %v617_v54  ;;  %v620_v59 = vadd.f32 %v1157_v55, %v1619_v14 }
 0x126   :  { %v741_v60 = vadd.f32 %v1239_v57, %v620_v59  ;;  %v1158_v61 = vpop.f32.mrb[24].mxu0  ;;  %v794_v0 = vmax.f32 %v738_v58, 0.0 }
 0x127   :  { %v1240_v62 = vpop.f32.mrb[24].mxu1  ;;  %v1159_v63 = vpop.f32.mrb[25].mxu0 }
 0x128   :  { %v795_v1 = vmax.f32 %v741_v60, 0.0  ;;  %v1160_v2 = vadd.f32 %v1159_v63, %v1158_v61  ;;  %v1241_v3 = vpop.f32.mrb[25].mxu1  ;;  %v1161_v4 = vpop.f32.mrb[26].mxu0 }
 0x129   :  { %v1242_v5 = vadd.f32 %v1241_v3, %v1240_v62  ;;  %v1243_v6 = vpop.f32.mrb[26].mxu1  ;;  %v1162_v7 = vpop.f32.mrb[27].mxu0 }
 0x12a   :  { %v1069_v8 = vpack.c.bf16 %v795_v1, %v794_v0  ;;  %v625_v9 = vadd.f32 %v1160_v2, %v1619_v14  ;;  %v1163_v10 = vadd.f32 %v1162_v7, %v1161_v4  ;;  %v1244_v11 = vpop.f32.mrb[27].mxu1 }
 0x12b   :  { %v1245_v12 = vadd.f32 %v1244_v11, %v1243_v6 }
 0x12c   :  { %1100 = vst [vmem:[%s1679_s3 + $0x28] sm:$0xff] %v1069_v8   ;;  %v746_v13 = vadd.f32 %v1242_v5, %v625_v9  ;;  %v628_v15 = vadd.f32 %v1163_v10, %v1619_v14 }
 0x12e   :  { %v749_v16 = vadd.f32 %v1245_v12, %v628_v15  ;;  %v1164_v17 = vpop.f32.mrb[28].mxu0  ;;  %v796_v20 = vmax.f32 %v746_v13, 0.0 }
 0x12f   :  { %v1246_v18 = vpop.f32.mrb[28].mxu1  ;;  %v1165_v19 = vpop.f32.mrb[29].mxu0 }
 0x130   :  { %v797_v21 = vmax.f32 %v749_v16, 0.0  ;;  %v1166_v22 = vadd.f32 %v1165_v19, %v1164_v17  ;;  %v1247_v23 = vpop.f32.mrb[29].mxu1  ;;  %v1167_v24 = vpop.f32.mrb[30].mxu0 }
 0x131   :  { %v1248_v25 = vadd.f32 %v1247_v23, %v1246_v18  ;;  %v1249_v26 = vpop.f32.mrb[30].mxu1  ;;  %v1168_v27 = vpop.f32.mrb[31].mxu0 }
 0x132   :  { %v1074_v28 = vpack.c.bf16 %v797_v21, %v796_v20  ;;  %v633_v29 = vadd.f32 %v1166_v22, %v1619_v14  ;;  %v1169_v30 = vadd.f32 %v1168_v27, %v1167_v24  ;;  %v1250_v31 = vpop.f32.mrb[31].mxu1 }
 0x133   :  { %v1251_v32 = vadd.f32 %v1250_v31, %v1249_v26 }
 0x134   :  { %1101 = vst [vmem:[%s1679_s3 + $0x30] sm:$0xff] %v1074_v28   ;;  %v754_v33 = vadd.f32 %v1248_v25, %v633_v29  ;;  %v636_v34 = vadd.f32 %v1169_v30, %v1619_v14 }
 0x136   :  { %v757_v35 = vadd.f32 %v1251_v32, %v636_v34  ;;  %v1170_v36 = vpop.f32.mrb[32].mxu0  ;;  %v798_v39 = vmax.f32 %v754_v33, 0.0 }
 0x137   :  { %v1252_v37 = vpop.f32.mrb[32].mxu1  ;;  %v1171_v38 = vpop.f32.mrb[33].mxu0 }
 0x138   :  { %v799_v40 = vmax.f32 %v757_v35, 0.0  ;;  %v1172_v41 = vadd.f32 %v1171_v38, %v1170_v36  ;;  %v1253_v42 = vpop.f32.mrb[33].mxu1  ;;  %v1173_v43 = vpop.f32.mrb[34].mxu0 }
 0x139   :  { %v1254_v44 = vadd.f32 %v1253_v42, %v1252_v37  ;;  %v1255_v45 = vpop.f32.mrb[34].mxu1  ;;  %v1174_v46 = vpop.f32.mrb[35].mxu0 }
 0x13a   :  { %v1079_v47 = vpack.c.bf16 %v799_v40, %v798_v39  ;;  %v641_v48 = vadd.f32 %v1172_v41, %v1619_v14  ;;  %v1175_v49 = vadd.f32 %v1174_v46, %v1173_v43  ;;  %v1256_v50 = vpop.f32.mrb[35].mxu1 }
 0x13b   :  { %v1257_v51 = vadd.f32 %v1256_v50, %v1255_v45 }
 0x13c   :  { %1102 = vst [vmem:[%s1679_s3 + $0x38] sm:$0xff] %v1079_v47   ;;  %v762_v52 = vadd.f32 %v1254_v44, %v641_v48  ;;  %v644_v53 = vadd.f32 %v1175_v49, %v1619_v14 }
 0x13e   :  { %v765_v54 = vadd.f32 %v1257_v51, %v644_v53  ;;  %v1176_v55 = vpop.f32.mrb[36].mxu0  ;;  %v800_v58 = vmax.f32 %v762_v52, 0.0 }
 0x13f   :  { %v1258_v56 = vpop.f32.mrb[36].mxu1  ;;  %v1177_v57 = vpop.f32.mrb[37].mxu0 }
 0x140   :  { %v801_v59 = vmax.f32 %v765_v54, 0.0  ;;  %v1178_v60 = vadd.f32 %v1177_v57, %v1176_v55  ;;  %v1259_v61 = vpop.f32.mrb[37].mxu1  ;;  %v1179_v62 = vpop.f32.mrb[38].mxu0 }
 0x141   :  { %v1260_v63 = vadd.f32 %v1259_v61, %v1258_v56  ;;  %v1261_v0 = vpop.f32.mrb[38].mxu1  ;;  %v1180_v1 = vpop.f32.mrb[39].mxu0 }
 0x142   :  { %v1084_v2 = vpack.c.bf16 %v801_v59, %v800_v58  ;;  %v649_v3 = vadd.f32 %v1178_v60, %v1619_v14  ;;  %v1181_v4 = vadd.f32 %v1180_v1, %v1179_v62  ;;  %v1262_v5 = vpop.f32.mrb[39].mxu1 }
 0x143   :  { %v1263_v6 = vadd.f32 %v1262_v5, %v1261_v0 }
 0x144   :  { %1103 = vst [vmem:[%s1679_s3 + $0x40] sm:$0xff] %v1084_v2   ;;  %v770_v7 = vadd.f32 %v1260_v63, %v649_v3  ;;  %v652_v8 = vadd.f32 %v1181_v4, %v1619_v14 }
 0x146   :  { %v773_v9 = vadd.f32 %v1263_v6, %v652_v8  ;;  %v1182_v10 = vpop.f32.mrb[40].mxu0  ;;  %v802_v13 = vmax.f32 %v770_v7, 0.0 }
 0x147   :  { %v1264_v11 = vpop.f32.mrb[40].mxu1  ;;  %v1183_v12 = vpop.f32.mrb[41].mxu0 }
 0x148   :  { %v803_v15 = vmax.f32 %v773_v9, 0.0  ;;  %v1184_v16 = vadd.f32 %v1183_v12, %v1182_v10  ;;  %v1265_v17 = vpop.f32.mrb[41].mxu1  ;;  %v1185_v18 = vpop.f32.mrb[42].mxu0 }
 0x149   :  { %v1266_v19 = vadd.f32 %v1265_v17, %v1264_v11  ;;  %v1267_v20 = vpop.f32.mrb[42].mxu1  ;;  %v1186_v21 = vpop.f32.mrb[43].mxu0 }
 0x14a   :  { %v1089_v22 = vpack.c.bf16 %v803_v15, %v802_v13  ;;  %v657_v23 = vadd.f32 %v1184_v16, %v1619_v14  ;;  %v1187_v24 = vadd.f32 %v1186_v21, %v1185_v18  ;;  %v1268_v25 = vpop.f32.mrb[43].mxu1 }
 0x14b   :  { %v1269_v26 = vadd.f32 %v1268_v25, %v1267_v20 }
 0x14c   :  { %1104 = vst [vmem:[%s1679_s3 + $0x48] sm:$0xff] %v1089_v22   ;;  %v778_v27 = vadd.f32 %v1266_v19, %v657_v23  ;;  %v660_v28 = vadd.f32 %v1187_v24, %v1619_v14 }
 0x14e   :  { %v781_v29 = vadd.f32 %v1269_v26, %v660_v28  ;;  %v804_v30 = vmax.f32 %v778_v27, 0.0 }
 0x150   :  { %v805_v31 = vmax.f32 %v781_v29, 0.0 }
 0x152   :  { %v1094_v32 = vpack.c.bf16 %v805_v31, %v804_v30 }
 0x154   :  { %1105 = vst [vmem:[%s1679_s3 + $0x50] sm:$0xff] %v1094_v32  }

// kernel: forward.6
= control target key start
LH: loop header
LB: loop body
LE: loop exit
PB: predicated region body
PF: predicated region fallthrough
CT: control target
= control target key end

     0   :  { %v1310_v34 = vmov 0.0   ;;  %vm1311_vm0 = vmmov 0   ;;  %vm527_vm1 = vcmask 523264   ;;  %s1638_s1 = inlined_call_operand.vmem [shape: bf16[576,128], index: 1, kind: input, shape index: {}]   ;;  %s1639_s0 = inlined_call_operand.vmem [shape: bf16[112,576], index: 0, kind: input, shape index: {}]   ;;  %s1640_s2 = inlined_call_operand.vmem [shape: f32[1,128], index: 2, kind: input, shape index: {}]   ;;  %s1641_s3 = inlined_call_operand.vmem [shape: bf16[112,128], index: 3, kind: output, shape index: {}]  }
   0x1   :  { %v1225_v0 = vld [vmem:[%s1638_s1 + $0x40] sm:$0xff]   ;;  %v1229_v4 = vld [vmem:[%s1638_s1 + $0x48] sm:$0xff]   ;;  %v1233_v8 = vld [vmem:[%s1638_s1 + $0x50] sm:$0xff]  }
   0x2   :  { %v1226_v1 = vld [vmem:[%s1638_s1 + $0xc0] sm:$0xff]   ;;  %1052 = vmatprep.subr.bf16.mxu0 %v1225_v0  ;;  %v1230_v5 = vld [vmem:[%s1638_s1 + $0xc8] sm:$0xff]   ;;  %v1234_v9 = vld [vmem:[%s1638_s1 + $0xd0] sm:$0xff]  }
   0x3   :  { %v1227_v2 = vld [vmem:[%s1638_s1] sm:$0xff]   ;;  %1110 = vmatprep.subr.bf16.mxu1 %v1226_v1  ;;  %v1231_v6 = vld [vmem:[%s1638_s1 + $0x8] sm:$0xff]   ;;  %v1235_v10 = vld [vmem:[%s1638_s1 + $0x10] sm:$0xff]  }
   0x4   :  { %v1228_v3 = vld [vmem:[%s1638_s1 + $0x80] sm:$0xff]   ;;  %1053 = vmatpush3.bf16.msra.mxu0 %v1227_v2  ;;  %v1232_v7 = vld [vmem:[%s1638_s1 + $0x88] sm:$0xff]   ;;  %v1236_v11 = vld [vmem:[%s1638_s1 + $0x90] sm:$0xff]  }
   0x5   :  { %1111 = vmatpush3.bf16.msra.mxu1 %v1228_v3  ;;  %1054 = vmatprep.subr.bf16.mxu0 %v1229_v4  ;;  %v1237_v12 = vld [vmem:[%s1638_s1 + $0x58] sm:$0xff]   ;;  %v1241_v16 = vld [vmem:[%s1638_s1 + $0x60] sm:$0xff]   ;;  %v1245_v20 = vld [vmem:[%s1638_s1 + $0x68] sm:$0xff]  }
   0x6   :  { %1112 = vmatprep.subr.bf16.mxu1 %v1230_v5  ;;  %v1238_v13 = vld [vmem:[%s1638_s1 + $0xd8] sm:$0xff]   ;;  %v1242_v17 = vld [vmem:[%s1638_s1 + $0xe0] sm:$0xff]   ;;  %v1246_v21 = vld [vmem:[%s1638_s1 + $0xe8] sm:$0xff]  }
   0x7   :  { %v1239_v14 = vld [vmem:[%s1638_s1 + $0x18] sm:$0xff]   ;;  %v1243_v18 = vld [vmem:[%s1638_s1 + $0x20] sm:$0xff]   ;;  %v1247_v22 = vld [vmem:[%s1638_s1 + $0x28] sm:$0xff]  }
   0x8   :  { %1055 = vmatpush3.bf16.msra.mxu0 %v1231_v6  ;;  %v1240_v15 = vld [vmem:[%s1638_s1 + $0x98] sm:$0xff]   ;;  %v1244_v19 = vld [vmem:[%s1638_s1 + $0xa0] sm:$0xff]   ;;  %v1248_v23 = vld [vmem:[%s1638_s1 + $0xa8] sm:$0xff]  }
   0x9   :  { %1113 = vmatpush3.bf16.msra.mxu1 %v1232_v7  ;;  %1056 = vmatprep.subr.bf16.mxu0 %v1233_v8  ;;  %v1249_v24 = vld [vmem:[%s1638_s1 + $0x70] sm:$0xff]   ;;  %v1253_v28 = vld [vmem:[%s1638_s1 + $0x78] sm:$0xff]   ;;  %v1262_v36 = vld [vmem:[%s1639_s0 + $0xc] ss:$20 sps:$4 sm:$0xff]  }
   0xa   :  { %1114 = vmatprep.subr.bf16.mxu1 %v1234_v9  ;;  %v1250_v25 = vld [vmem:[%s1638_s1 + $0xf0] sm:$0xff]   ;;  %v1254_v29 = vld [vmem:[%s1638_s1 + $0xf8] sm:$0xff]   ;;  %v1263_v37 = vld [vmem:[%s1638_s1 + $0x100] sm:$0xff]   ;;  %670 = vmatprep.mubr.bf16.mxu1 %v1262_v36 }
   0xb   :  { %v1251_v26 = vld [vmem:[%s1638_s1 + $0x30] sm:$0xff]   ;;  %v1255_v30 = vld [vmem:[%s1638_s1 + $0x38] sm:$0xff]   ;;  %v1264_v38 = vld [vmem:[%s1639_s0 + $0x2c] ss:$20 sps:$4 sm:$0xff]  }
   0xc   :  { %1057 = vmatpush3.bf16.msra.mxu0 %v1235_v10  ;;  %v1252_v27 = vld [vmem:[%s1638_s1 + $0xb0] sm:$0xff]   ;;  %v1256_v31 = vld [vmem:[%s1638_s1 + $0xb8] sm:$0xff]   ;;  %v1274_v43 = vld [vmem:[%s1638_s1 + $0x108] sm:$0xff]  }
   0xd   :  { %1115 = vmatpush3.bf16.msra.mxu1 %v1236_v11  ;;  %1058 = vmatprep.subr.bf16.mxu0 %v1237_v12  ;;  %v1257_v32 = vld [vmem:[%s1639_s0] ss:$20 sps:$4 sm:$0xff]   ;;  %v1259_v33 = vld [vmem:[%s1639_s0 + $0x4] ss:$20 sps:$4 sm:$0xff]   ;;  %v1260_v35 = vld [vmem:[%s1639_s0 + $0x8] ss:$20 sps:$4 sm:$0xff]  }
   0xe   :  { %1116 = vmatprep.subr.bf16.mxu1 %v1238_v13  ;;  %581 = vmatprep.mubr.bf16.mxu0 %v1259_v33  ;;  %v1266_v39 = vld [vmem:[%s1639_s0 + $0x34] ss:$20 sps:$4 sm:$0xff]   ;;  %v1269_v41 = vld [vmem:[%s1639_s0 + $0x30] ss:$20 sps:$4 sm:$0xff]   ;;  %v1276_v47 = vld [vmem:[%s1639_s0 + $0x58] ss:$20 sps:$4 sm:$0xff]  }
   0xf   :  { %v1268_v40 = vld [vmem:[%s1639_s0 + $0x28] ss:$20 sps:$4 sm:$0xff]   ;;  %v1283_v45 = vld [vmem:[%s1638_s1 + $0x110] sm:$0xff]   ;;  %v1279_v49 = vld [vmem:[%s1639_s0 + $0x84] ss:$20 sps:$4 sm:$0xff]  }
  0x10   :  { %1059 = vmatpush3.bf16.msra.mxu0 %v1239_v14  ;;  %v1270_v42 = vld [vmem:[%s1639_s0 + $0x54] ss:$20 sps:$4 sm:$0xff]   ;;  %v1272_v44 = vld [vmem:[%s1639_s0 + $0x5c] ss:$20 sps:$4 sm:$0xff]   ;;  %v1281_v51 = vld [vmem:[%s1639_s0 + $0x78] ss:$20 sps:$4 sm:$0xff]  }
  0x11   :  { %1117 = vmatpush3.bf16.msra.mxu1 %v1240_v15  ;;  %1060 = vmatprep.subr.bf16.mxu0 %v1241_v16  ;;  %v1275_v46 = vld [vmem:[%s1639_s0 + $0x50] ss:$20 sps:$4 sm:$0xff]   ;;  %v1296_v50 = vld [vmem:[%s1638_s1 + $0x118] sm:$0xff]   ;;  %v1282_v52 = vld [vmem:[%s1639_s0 + $0x80] ss:$20 sps:$4 sm:$0xff]  }
  0x12   :  { %1118 = vmatprep.subr.bf16.mxu1 %v1242_v17  ;;  %v1277_v48 = vld [vmem:[%s1639_s0 + $0x7c] ss:$20 sps:$4 sm:$0xff]   ;;  %v1284_v53 = vld [vmem:[%s1639_s0 + $0xa4] ss:$20 sps:$4 sm:$0xff]   ;;  %v1286_v54 = vld [vmem:[%s1639_s0 + $0xac] ss:$20 sps:$4 sm:$0xff]  }
  0x13   :  { %v1288_v55 = vld [vmem:[%s1639_s0 + $0xa0] ss:$20 sps:$4 sm:$0xff]   ;;  %v1289_v56 = vld [vmem:[%s1639_s0 + $0xa8] ss:$20 sps:$4 sm:$0xff]   ;;  %v1295_v60 = vld [vmem:[%s1639_s0 + $0xd0] ss:$20 sps:$4 sm:$0xff]  }
  0x14   :  { %1061 = vmatpush3.bf16.msra.mxu0 %v1243_v18  ;;  %v1290_v57 = vld [vmem:[%s1639_s0 + $0xcc] ss:$20 sps:$4 sm:$0xff]   ;;  %v1292_v58 = vld [vmem:[%s1639_s0 + $0xd4] ss:$20 sps:$4 sm:$0xff]   ;;  %v1299_v62 = vld [vmem:[%s1639_s0 + $0xfc] ss:$20 sps:$4 sm:$0xff]  }
  0x15   :  { %1119 = vmatpush3.bf16.msra.mxu1 %v1244_v19  ;;  %1062 = vmatprep.subr.bf16.mxu0 %v1245_v20  ;;  %v1294_v59 = vld [vmem:[%s1639_s0 + $0xc8] ss:$20 sps:$4 sm:$0xff]   ;;  %v1301_v63 = vld [vmem:[%s1639_s0 + $0xf0] ss:$20 sps:$4 sm:$0xff]   ;;  %v1302_v0 = vld [vmem:[%s1639_s0 + $0xf8] ss:$20 sps:$4 sm:$0xff]  }
  0x16   :  { %1120 = vmatprep.subr.bf16.mxu1 %v1246_v21  ;;  %v1297_v61 = vld [vmem:[%s1639_s0 + $0xf4] ss:$20 sps:$4 sm:$0xff]   ;;  %v1303_v1 = vld [vmem:[%s1639_s0 + $0x10] ss:$20 sps:$4 sm:$0xff]   ;;  %v1305_v3 = vld [vmem:[%s1639_s0 + $0x38] ss:$20 sps:$4 sm:$0xff]  }
  0x17   :  { %v1304_v2 = vld [vmem:[%s1639_s0 + $0xb0] ss:$20 sps:$4 sm:$0xff]   ;;  %v1306_v4 = vld [vmem:[%s1639_s0 + $0xd8] ss:$20 sps:$4 sm:$0xff]   ;;  %v1307_v5 = vld [vmem:[%s1639_s0 + $0x60] ss:$20 sps:$4 sm:$0xff]  }
  0x18   :  { %1063 = vmatpush3.bf16.msra.mxu0 %v1247_v22  ;;  %v1308_v6 = vld [vmem:[%s1639_s0 + $0x100] ss:$20 sps:$4 sm:$0xff]   ;;  %v1309_v7 = vld [vmem:[%s1639_s0 + $0x88] ss:$20 sps:$4 sm:$0xff]  }
  0x19   :  { %1121 = vmatpush3.bf16.msra.mxu1 %v1248_v23  ;;  %1064 = vmatprep.subr.bf16.mxu0 %v1249_v24  ;;  %v1577_v9 = vld [vmem:[%s1640_s2] ss:$0 sm:$0xff] }
  0x1a   :  { %1122 = vmatprep.subr.bf16.mxu1 %v1250_v25 }
  0x1c   :  { %1065 = vmatpush3.bf16.msra.mxu0 %v1251_v26 }
  0x1d   :  { %1123 = vmatpush3.bf16.msra.mxu1 %v1252_v27  ;;  %1066 = vmatprep.subr.bf16.mxu0 %v1253_v28 }
  0x1e   :  { %1124 = vmatprep.subr.bf16.mxu1 %v1254_v29 }
  0x20   :  { %1067 = vmatpush3.bf16.msra.mxu0 %v1255_v30 }
  0x21   :  { %1125 = vmatpush3.bf16.msra.mxu1 %v1256_v31  ;;  %1179 = vmatprep.subr.bf16.mxu0 %v1310_v34 }
  0x22   :  { %1215 = vmatprep.subr.bf16.mxu1 %v1310_v34 }
  0x23   :  { %582 = vmatmul.mubr.bf16.vlgmr.msra.gmra.mrb[0].mxu0 %v1257_v32 }
  0x24   :  { %671 = vmatmul.mubr.bf16.vlgmr.msra.gmra.mrb[0].mxu1 %v1260_v35  ;;  %1180 = vmatpush3.bf16.msra.mxu0 %v1263_v37 }
  0x25   :  { %589 = vmatprep.mubr.bf16.mxu0 %v1264_v38  ;;  %1219 = vmatpush3.bf16.msra.mxu1 %v1263_v37 }
  0x26   :  { %678 = vmatprep.mubr.bf16.mxu1 %v1266_v39  ;;  %1181 = vmatprep.subr.bf16.mxu0 %v1310_v34 }
  0x27   :  { %1216 = vmatprep.subr.bf16.mxu1 %v1310_v34 }
  0x28   :  { %1182 = vmatpush3.bf16.msra.mxu0 %v1274_v43 }
  0x29   :  { %1220 = vmatpush3.bf16.msra.mxu1 %v1274_v43  ;;  %1183 = vmatprep.subr.bf16.mxu0 %v1310_v34 }
  0x2a   :  { %1217 = vmatprep.subr.bf16.mxu1 %v1310_v34 }
  0x2b   :  { %590 = vmatmul.mubr.bf16.gmra.mrb[4].mxu0 %v1268_v40 }
  0x2c   :  { %679 = vmatmul.mubr.bf16.gmra.mrb[4].mxu1 %v1269_v41  ;;  %597 = vmatprep.mubr.bf16.mxu0 %v1270_v42 }
  0x2d   :  { %686 = vmatprep.mubr.bf16.mxu1 %v1272_v44  ;;  %1184 = vmatpush3.bf16.msra.mxu0 %v1283_v45 }
  0x2e   :  { %1221 = vmatpush3.bf16.msra.mxu1 %v1283_v45  ;;  %1185 = vmatprep.subr.bf16.mxu0 %v1310_v34 }
  0x2f   :  { %1218 = vmatprep.subr.bf16.mxu1 %v1310_v34 }
  0x31   :  { %1186 = vmatpush3.bf16.msra.mxu0 %v1296_v50 }
  0x32   :  { %1222 = vmatpush3.bf16.msra.mxu1 %v1296_v50 }
  0x33   :  { %598 = vmatmul.mubr.bf16.gmra.mrb[8].mxu0 %v1275_v46 }
  0x34   :  { %687 = vmatmul.mubr.bf16.gmra.mrb[8].mxu1 %v1276_v47  ;;  %605 = vmatprep.mubr.bf16.mxu0 %v1277_v48 }
  0x35   :  { %694 = vmatprep.mubr.bf16.mxu1 %v1279_v49 }
  0x3b   :  { %606 = vmatmul.mubr.bf16.gmra.mrb[12].mxu0 %v1281_v51 }
  0x3c   :  { %695 = vmatmul.mubr.bf16.gmra.mrb[12].mxu1 %v1282_v52  ;;  %613 = vmatprep.mubr.bf16.mxu0 %v1284_v53 }
  0x3d   :  { %702 = vmatprep.mubr.bf16.mxu1 %v1286_v54 }
  0x43   :  { %614 = vmatmul.mubr.bf16.gmra.mrb[16].mxu0 %v1288_v55 }
  0x44   :  { %703 = vmatmul.mubr.bf16.gmra.mrb[16].mxu1 %v1289_v56  ;;  %621 = vmatprep.mubr.bf16.mxu0 %v1290_v57 }
  0x45   :  { %710 = vmatprep.mubr.bf16.mxu1 %v1292_v58 }
  0x4b   :  { %622 = vmatmul.mubr.bf16.gmra.mrb[20].mxu0 %v1294_v59 }
  0x4c   :  { %711 = vmatmul.mubr.bf16.gmra.mrb[20].mxu1 %v1295_v60  ;;  %629 = vmatprep.mubr.bf16.mxu0 %v1297_v61 }
  0x4d   :  { %718 = vmatprep.mubr.bf16.mxu1 %v1299_v62 }
  0x53   :  { %630 = vmatmul.mubr.bf16.gmra.mrb[24].mxu0 %v1301_v63 }
  0x54   :  { %719 = vmatmul.mubr.bf16.gmra.mrb[24].mxu1 %v1302_v0  ;;  %1187 = vmatprep.mubr.msk.bf16.mxu0 %vm1311_vm0, %v1310_v34 }
  0x55   :  { %1203 = vmatprep.mubr.msk.bf16.mxu1 %vm1311_vm0, %v1310_v34 }
  0x5b   :  { %1188 = vmatmul.mubr.msk.bf16.vlgmr.msra.gmra.mrb[28].mxu0 %vm527_vm1, %v1303_v1 }
  0x5c   :  { %1204 = vmatmul.mubr.msk.bf16.vlgmr.msra.gmra.mrb[28].mxu1 %vm527_vm1, %v1304_v2  ;;  %1191 = vmatprep.mubr.msk.bf16.mxu0 %vm1311_vm0, %v1310_v34 }
  0x5d   :  { %1207 = vmatprep.mubr.msk.bf16.mxu1 %vm1311_vm0, %v1310_v34 }
  0x63   :  { %1192 = vmatmul.mubr.msk.bf16.gmra.mrb[32].mxu0 %vm527_vm1, %v1305_v3 }
  0x64   :  { %1208 = vmatmul.mubr.msk.bf16.gmra.mrb[32].mxu1 %vm527_vm1, %v1306_v4  ;;  %1195 = vmatprep.mubr.msk.bf16.mxu0 %vm1311_vm0, %v1310_v34 }
  0x65   :  { %1211 = vmatprep.mubr.msk.bf16.mxu1 %vm1311_vm0, %v1310_v34 }
  0x6b   :  { %1196 = vmatmul.mubr.msk.bf16.gmra.mrb[36].mxu0 %vm527_vm1, %v1307_v5 }
  0x6c   :  { %1212 = vmatmul.mubr.msk.bf16.gmra.mrb[36].mxu1 %vm527_vm1, %v1308_v6  ;;  %1199 = vmatprep.mubr.msk.bf16.mxu0 %vm1311_vm0, %v1310_v34 }
  0x73   :  { %1200 = vmatmul.mubr.msk.bf16.gmra.mrb[40].mxu0 %vm527_vm1, %v1309_v7 }
  0xf6   :  { %v1068_v8 = vpop.f32.mrb[0].mxu0 }
  0xf7   :  { %v1069_v10 = vpop.f32.mrb[1].mxu0  ;;  %v1126_v11 = vpop.f32.mrb[0].mxu1 }
  0xf8   :  { %v1070_v12 = vadd.f32 %v1069_v10, %v1068_v8  ;;  %v1071_v13 = vpop.f32.mrb[2].mxu0  ;;  %v1127_v14 = vpop.f32.mrb[1].mxu1 }
  0xf9   :  { %v1072_v15 = vpop.f32.mrb[3].mxu0  ;;  %v1128_v16 = vadd.f32 %v1127_v14, %v1126_v11  ;;  %v1129_v17 = vpop.f32.mrb[2].mxu1 }
  0xfa   :  { %v584_v18 = vadd.f32 %v1070_v12, %v1577_v9  ;;  %v1073_v19 = vadd.f32 %v1072_v15, %v1071_v13  ;;  %v1130_v20 = vpop.f32.mrb[3].mxu1 }
  0xfb   :  { %v1131_v21 = vadd.f32 %v1130_v20, %v1129_v17 }
  0xfc   :  { %v587_v22 = vadd.f32 %v1073_v19, %v1577_v9  ;;  %v1581_v23 = vadd.f32 %v1128_v16, %v584_v18 }
  0xfe   :  { %v1074_v24 = vpop.f32.mrb[4].mxu0  ;;  %v1583_v25 = vadd.f32 %v1131_v21, %v587_v22 }
  0xff   :  { %v1075_v26 = vpop.f32.mrb[5].mxu0  ;;  %v1132_v27 = vpop.f32.mrb[4].mxu1 }
 0x100   :  { %v1076_v28 = vadd.f32 %v1075_v26, %v1074_v24  ;;  %v1077_v29 = vpop.f32.mrb[6].mxu0  ;;  %v1133_v30 = vpop.f32.mrb[5].mxu1 }
 0x101   :  { %v1078_v31 = vpop.f32.mrb[7].mxu0  ;;  %v1134_v32 = vadd.f32 %v1133_v30, %v1132_v27  ;;  %v1135_v33 = vpop.f32.mrb[6].mxu1 }
 0x102   :  { %v592_v34 = vadd.f32 %v1076_v28, %v1577_v9  ;;  %v1079_v35 = vadd.f32 %v1078_v31, %v1077_v29  ;;  %v1136_v36 = vpop.f32.mrb[7].mxu1 }
 0x103   :  { %v1137_v37 = vadd.f32 %v1136_v36, %v1135_v33 }
 0x104   :  { %v595_v38 = vadd.f32 %v1079_v35, %v1577_v9  ;;  %v1587_v39 = vadd.f32 %v1134_v32, %v592_v34 }
 0x106   :  { %v1080_v40 = vpop.f32.mrb[8].mxu0  ;;  %v1589_v41 = vadd.f32 %v1137_v37, %v595_v38 }
 0x107   :  { %v1081_v42 = vpop.f32.mrb[9].mxu0  ;;  %v1138_v43 = vpop.f32.mrb[8].mxu1 }
 0x108   :  { %v1082_v44 = vadd.f32 %v1081_v42, %v1080_v40  ;;  %v1083_v45 = vpop.f32.mrb[10].mxu0  ;;  %v1139_v46 = vpop.f32.mrb[9].mxu1 }
 0x109   :  { %v1084_v47 = vpop.f32.mrb[11].mxu0  ;;  %v1140_v48 = vadd.f32 %v1139_v46, %v1138_v43  ;;  %v1141_v49 = vpop.f32.mrb[10].mxu1 }
 0x10a   :  { %v600_v50 = vadd.f32 %v1082_v44, %v1577_v9  ;;  %v1085_v51 = vadd.f32 %v1084_v47, %v1083_v45  ;;  %v1142_v52 = vpop.f32.mrb[11].mxu1 }
 0x10b   :  { %v1143_v53 = vadd.f32 %v1142_v52, %v1141_v49 }
 0x10c   :  { %v603_v54 = vadd.f32 %v1085_v51, %v1577_v9  ;;  %v1593_v55 = vadd.f32 %v1140_v48, %v600_v50 }
 0x10e   :  { %v1086_v56 = vpop.f32.mrb[12].mxu0  ;;  %v1595_v57 = vadd.f32 %v1143_v53, %v603_v54 }
 0x10f   :  { %v1087_v58 = vpop.f32.mrb[13].mxu0  ;;  %v1144_v59 = vpop.f32.mrb[12].mxu1 }
 0x110   :  { %v1088_v60 = vadd.f32 %v1087_v58, %v1086_v56  ;;  %v1089_v61 = vpop.f32.mrb[14].mxu0  ;;  %v1145_v62 = vpop.f32.mrb[13].mxu1 }
 0x111   :  { %v1090_v63 = vpop.f32.mrb[15].mxu0  ;;  %v1146_v0 = vadd.f32 %v1145_v62, %v1144_v59  ;;  %v1147_v1 = vpop.f32.mrb[14].mxu1 }
 0x112   :  { %v608_v2 = vadd.f32 %v1088_v60, %v1577_v9  ;;  %v1091_v3 = vadd.f32 %v1090_v63, %v1089_v61  ;;  %v1148_v4 = vpop.f32.mrb[15].mxu1 }
 0x113   :  { %v1149_v5 = vadd.f32 %v1148_v4, %v1147_v1 }
 0x114   :  { %v611_v6 = vadd.f32 %v1091_v3, %v1577_v9  ;;  %v1599_v7 = vadd.f32 %v1146_v0, %v608_v2 }
 0x116   :  { %v1092_v8 = vpop.f32.mrb[16].mxu0  ;;  %v1601_v10 = vadd.f32 %v1149_v5, %v611_v6 }
 0x117   :  { %v1093_v11 = vpop.f32.mrb[17].mxu0  ;;  %v1150_v12 = vpop.f32.mrb[16].mxu1 }
 0x118   :  { %v1094_v13 = vadd.f32 %v1093_v11, %v1092_v8  ;;  %v1095_v14 = vpop.f32.mrb[18].mxu0  ;;  %v1151_v15 = vpop.f32.mrb[17].mxu1 }
 0x119   :  { %v1096_v16 = vpop.f32.mrb[19].mxu0  ;;  %v1152_v17 = vadd.f32 %v1151_v15, %v1150_v12  ;;  %v1153_v18 = vpop.f32.mrb[18].mxu1 }
 0x11a   :  { %v616_v19 = vadd.f32 %v1094_v13, %v1577_v9  ;;  %v1097_v20 = vadd.f32 %v1096_v16, %v1095_v14  ;;  %v1154_v21 = vpop.f32.mrb[19].mxu1 }
 0x11b   :  { %v1155_v22 = vadd.f32 %v1154_v21, %v1153_v18 }
 0x11c   :  { %v619_v24 = vadd.f32 %v1097_v20, %v1577_v9  ;;  %v705_v26 = vadd.f32 %v1152_v17, %v616_v19 }
 0x11e   :  { %v1098_v27 = vpop.f32.mrb[20].mxu0  ;;  %v708_v28 = vadd.f32 %v1155_v22, %v619_v24 }
 0x11f   :  { %v1099_v29 = vpop.f32.mrb[21].mxu0  ;;  %v1156_v30 = vpop.f32.mrb[20].mxu1 }
 0x120   :  { %v1100_v31 = vadd.f32 %v1099_v29, %v1098_v27  ;;  %v1101_v32 = vpop.f32.mrb[22].mxu0  ;;  %v1157_v33 = vpop.f32.mrb[21].mxu1 }
 0x121   :  { %v1102_v34 = vpop.f32.mrb[23].mxu0  ;;  %v1158_v35 = vadd.f32 %v1157_v33, %v1156_v30  ;;  %v1159_v36 = vpop.f32.mrb[22].mxu1 }
 0x122   :  { %v624_v37 = vadd.f32 %v1100_v31, %v1577_v9  ;;  %v1103_v38 = vadd.f32 %v1102_v34, %v1101_v32  ;;  %v1160_v40 = vpop.f32.mrb[23].mxu1 }
 0x123   :  { %v1161_v42 = vadd.f32 %v1160_v40, %v1159_v36 }
 0x124   :  { %v627_v43 = vadd.f32 %v1103_v38, %v1577_v9  ;;  %v713_v44 = vadd.f32 %v1158_v35, %v624_v37 }
 0x126   :  { %v1104_v45 = vpop.f32.mrb[24].mxu0  ;;  %v716_v46 = vadd.f32 %v1161_v42, %v627_v43 }
 0x127   :  { %v1105_v47 = vpop.f32.mrb[25].mxu0  ;;  %v1162_v48 = vpop.f32.mrb[24].mxu1 }
 0x128   :  { %v1106_v49 = vadd.f32 %v1105_v47, %v1104_v45  ;;  %v1107_v50 = vpop.f32.mrb[26].mxu0  ;;  %v1163_v51 = vpop.f32.mrb[25].mxu1 }
 0x129   :  { %v1108_v52 = vpop.f32.mrb[27].mxu0  ;;  %v1164_v53 = vadd.f32 %v1163_v51, %v1162_v48  ;;  %v1165_v54 = vpop.f32.mrb[26].mxu1 }
 0x12a   :  { %v632_v56 = vadd.f32 %v1106_v49, %v1577_v9  ;;  %v1109_v58 = vadd.f32 %v1108_v52, %v1107_v50  ;;  %v1166_v59 = vpop.f32.mrb[27].mxu1 }
 0x12b   :  { %v1167_v60 = vadd.f32 %v1166_v59, %v1165_v54 }
 0x12c   :  { %v635_v61 = vadd.f32 %v1109_v58, %v1577_v9  ;;  %v721_v62 = vadd.f32 %v1164_v53, %v632_v56 }
 0x12e   :  { %v761_v63 = vpop.f32.mrb[28].mxu0  ;;  %v724_v0 = vadd.f32 %v1167_v60, %v635_v61 }
 0x12f   :  { %v762_v1 = vadd.f32 %v761_v63, %v1581_v23  ;;  %v793_v2 = vpop.f32.mrb[28].mxu1  ;;  %v1189_v3 = vpop.f32.mrb[29].mxu0 }
 0x130   :  { %v794_v4 = vadd.f32 %v793_v2, %v705_v26  ;;  %v1205_v5 = vpop.f32.mrb[29].mxu1  ;;  %v764_v6 = vpop.f32.mrb[30].mxu0 }
 0x131   :  { %v765_v8 = vadd.f32 %v764_v6, %v1583_v25  ;;  %v796_v11 = vpop.f32.mrb[30].mxu1  ;;  %v1190_v12 = vpop.f32.mrb[31].mxu0  ;;  %v816_v15 = vmax.f32 %v762_v1, 0.0 }
 0x132   :  { %v797_v13 = vadd.f32 %v796_v11, %v708_v28  ;;  %v1206_v14 = vpop.f32.mrb[31].mxu1  ;;  %v824_v17 = vmax.f32 %v794_v4, 0.0 }
 0x133   :  { %v817_v16 = vmax.f32 %v765_v8, 0.0 }
 0x134   :  { %v825_v9 = vmax.f32 %v797_v13, 0.0 }
 0x135   :  { %v1014_v18 = vpack.c.bf16 %v817_v16, %v816_v15 }
 0x136   :  { %v1034_v19 = vpack.c.bf16 %v825_v9, %v824_v17  ;;  %v769_v20 = vpop.f32.mrb[32].mxu0 }
 0x137   :  { %1015 = vst [vmem:[%s1641_s3] sm:$0xff] %v1014_v18   ;;  %v770_v23 = vadd.f32 %v769_v20, %v1587_v39  ;;  %v801_v21 = vpop.f32.mrb[32].mxu1  ;;  %v1193_v22 = vpop.f32.mrb[33].mxu0 }
 0x138   :  { %1049 = vst [vmem:[%s1641_s3 + $0x20] sm:$0xff] %v1034_v19   ;;  %v802_v25 = vadd.f32 %v801_v21, %v713_v44  ;;  %v1209_v24 = vpop.f32.mrb[33].mxu1  ;;  %v772_v26 = vpop.f32.mrb[34].mxu0 }
 0x139   :  { %v773_v27 = vadd.f32 %v772_v26, %v1589_v41  ;;  %v804_v28 = vpop.f32.mrb[34].mxu1  ;;  %v1194_v29 = vpop.f32.mrb[35].mxu0  ;;  %v818_v32 = vmax.f32 %v770_v23, 0.0 }
 0x13a   :  { %v805_v30 = vadd.f32 %v804_v28, %v716_v46  ;;  %v1210_v31 = vpop.f32.mrb[35].mxu1  ;;  %v826_v34 = vmax.f32 %v802_v25, 0.0 }
 0x13b   :  { %v819_v33 = vmax.f32 %v773_v27, 0.0 }
 0x13c   :  { %v827_v35 = vmax.f32 %v805_v30, 0.0 }
 0x13d   :  { %v1019_v39 = vpack.c.bf16 %v819_v33, %v818_v32 }
 0x13e   :  { %v1039_v36 = vpack.c.bf16 %v827_v35, %v826_v34  ;;  %v777_v37 = vpop.f32.mrb[36].mxu0 }
 0x13f   :  { %1046 = vst [vmem:[%s1641_s3 + $0x8] sm:$0xff] %v1019_v39   ;;  %v778_v38 = vadd.f32 %v777_v37, %v1593_v55  ;;  %v809_v40 = vpop.f32.mrb[36].mxu1  ;;  %v1197_v42 = vpop.f32.mrb[37].mxu0 }
 0x140   :  { %1050 = vst [vmem:[%s1641_s3 + $0x28] sm:$0xff] %v1039_v36   ;;  %v810_v41 = vadd.f32 %v809_v40, %v721_v62  ;;  %v1213_v43 = vpop.f32.mrb[37].mxu1  ;;  %v780_v44 = vpop.f32.mrb[38].mxu0 }
 0x141   :  { %v781_v45 = vadd.f32 %v780_v44, %v1595_v57  ;;  %v812_v46 = vpop.f32.mrb[38].mxu1  ;;  %v1198_v47 = vpop.f32.mrb[39].mxu0  ;;  %v820_v50 = vmax.f32 %v778_v38, 0.0 }
 0x142   :  { %v813_v48 = vadd.f32 %v812_v46, %v724_v0  ;;  %v1214_v49 = vpop.f32.mrb[39].mxu1  ;;  %v828_v52 = vmax.f32 %v810_v41, 0.0 }
 0x143   :  { %v821_v51 = vmax.f32 %v781_v45, 0.0 }
 0x144   :  { %v829_v53 = vmax.f32 %v813_v48, 0.0 }
 0x145   :  { %v1024_v55 = vpack.c.bf16 %v821_v51, %v820_v50 }
 0x146   :  { %v1044_v54 = vpack.c.bf16 %v829_v53, %v828_v52  ;;  %v785_v56 = vpop.f32.mrb[40].mxu0 }
 0x147   :  { %1047 = vst [vmem:[%s1641_s3 + $0x10] sm:$0xff] %v1024_v55   ;;  %v786_v58 = vadd.f32 %v785_v56, %v1599_v7  ;;  %v1201_v59 = vpop.f32.mrb[41].mxu0 }
 0x148   :  { %1051 = vst [vmem:[%s1641_s3 + $0x30] sm:$0xff] %v1044_v54   ;;  %v788_v57 = vpop.f32.mrb[42].mxu0 }
 0x149   :  { %v789_v60 = vadd.f32 %v788_v57, %v1601_v10  ;;  %v1202_v61 = vpop.f32.mrb[43].mxu0  ;;  %v822_v62 = vmax.f32 %v786_v58, 0.0 }
 0x14b   :  { %v823_v63 = vmax.f32 %v789_v60, 0.0 }
 0x14d   :  { %v1029_v0 = vpack.c.bf16 %v823_v63, %v822_v62 }
 0x14f   :  { %1048 = vst [vmem:[%s1641_s3 + $0x18] sm:$0xff] %v1029_v0  }

// kernel: forward.7
= control target key start
LH: loop header
LB: loop body
LE: loop exit
PB: predicated region body
PF: predicated region fallthrough
CT: control target
= control target key end

     0   :  { %vm9628_vm0 = vcmask 523264   ;;  %s22638_s1 = inlined_call_operand.vmem [shape: bf16[3136,1024], index: 1, kind: input, shape index: {}]   ;;  %s22639_s0 = inlined_call_operand.vmem [shape: bf16[16,3136], index: 0, kind: input, shape index: {}]   ;;  %s22640_s2 = inlined_call_operand.vmem [shape: f32[1,1024], index: 2, kind: input, shape index: {}]   ;;  %s22641_s3 = inlined_call_operand.vmem [shape: bf16[1024,512], index: 3, kind: input, shape index: {}]   ;;  %s22642_s5 = inlined_call_operand.vmem [shape: bf16[512,128], index: 5, kind: input, shape index: {}]   ;;  %s22643_s4 = inlined_call_operand.vmem [shape: f32[1,512], index: 4, kind: input, shape index: {}]   ;;  %s22644_s6 = inlined_call_operand.vmem [shape: f32[1,128], index: 6, kind: input, shape index: {}]   ;;  %s22645_s7 = inlined_call_operand.vmem [shape: f32[16,128], index: 7, kind: output, shape index: {}]  }
   0x1   :  { %v53_v0 = vld [vmem:[%s22638_s1] sm:$0xff]  ;;  %v54_v2 = vld [vmem:[%s22638_s1 + $0x8] sm:$0xff] }
   0x2   :  { %v57_v1 = vld [vmem:[%s22638_s1 + $0x20] sm:$0xff]  ;;  %v58_v4 = vld [vmem:[%s22638_s1 + $0x28] sm:$0xff] }
   0x3   :  { %v14183_v3 = vcombine.high %v53_v0, %v57_v1  ;;  %v14182_v5 = vcombine.low %v53_v0, %v57_v1  ;;  %v61_v6 = vld [vmem:[%s22638_s1 + $0x40] sm:$0xff]  ;;  %v14185_v8 = vcombine.high %v54_v2, %v58_v4  ;;  %v14184_v9 = vcombine.low %v54_v2, %v58_v4  ;;  %v62_v11 = vld [vmem:[%s22638_s1 + $0x48] sm:$0xff] }
   0x4   :  { %v65_v7 = vld [vmem:[%s22638_s1 + $0x60] sm:$0xff]  ;;  %v66_v12 = vld [vmem:[%s22638_s1 + $0x68] sm:$0xff] }
   0x5   :  { %v14191_v10 = vcombine.high %v61_v6, %v65_v7  ;;  %v69_v13 = vld [vmem:[%s22638_s1 + $0x80] sm:$0xff]  ;;  %9632 = vmatprep.subr.bf16.mxu0 %v14183_v3  ;;  %v14193_v14 = vcombine.high %v62_v11, %v66_v12  ;;  %v70_v16 = vld [vmem:[%s22638_s1 + $0x88] sm:$0xff]  ;;  %10191 = vmatprep.subr.bf16.mxu1 %v14185_v8  ;;  %v14190_v18 = vcombine.low %v61_v6, %v65_v7 }
   0x6   :  { %v73_v15 = vld [vmem:[%s22638_s1 + $0xa0] sm:$0xff]  ;;  %v74_v17 = vld [vmem:[%s22638_s1 + $0xa8] sm:$0xff]  ;;  %9633 = vmatpush1.bf16.msra.mxu0 %v14182_v5  ;;  %10192 = vmatpush1.bf16.msra.mxu1 %v14184_v9  ;;  %v14192_v19 = vcombine.low %v62_v11, %v66_v12 }
   0x7   :  { %9634 = vmatprep.subr.bf16.mxu0 %v14191_v10  ;;  %v14199_v20 = vcombine.high %v69_v13, %v73_v15  ;;  %10193 = vmatprep.subr.bf16.mxu1 %v14193_v14  ;;  %v14201_v21 = vcombine.high %v70_v16, %v74_v17  ;;  %v77_v22 = vld [vmem:[%s22638_s1 + $0xc0] sm:$0xff]  ;;  %v78_v24 = vld [vmem:[%s22638_s1 + $0xc8] sm:$0xff]  ;;  %v14198_v26 = vcombine.low %v69_v13, %v73_v15 }
   0x8   :  { %v81_v23 = vld [vmem:[%s22638_s1 + $0xe0] sm:$0xff]  ;;  %v82_v25 = vld [vmem:[%s22638_s1 + $0xe8] sm:$0xff]  ;;  %v14200_v27 = vcombine.low %v70_v16, %v74_v17 }
   0x9   :  { %v14207_v28 = vcombine.high %v77_v22, %v81_v23  ;;  %v14209_v29 = vcombine.high %v78_v24, %v82_v25  ;;  %v85_v30 = vld [vmem:[%s22638_s1 + $0x100] sm:$0xff]  ;;  %v86_v32 = vld [vmem:[%s22638_s1 + $0x108] sm:$0xff]  ;;  %v14206_v34 = vcombine.low %v77_v22, %v81_v23  ;;  %v14208_v35 = vcombine.low %v78_v24, %v82_v25 }
   0xa   :  { %9635 = vmatpush1.bf16.msra.mxu0 %v14190_v18  ;;  %10194 = vmatpush1.bf16.msra.mxu1 %v14192_v19  ;;  %v89_v31 = vld [vmem:[%s22638_s1 + $0x120] sm:$0xff]  ;;  %v90_v33 = vld [vmem:[%s22638_s1 + $0x128] sm:$0xff] }
   0xb   :  { %9636 = vmatprep.subr.bf16.mxu0 %v14199_v20  ;;  %10195 = vmatprep.subr.bf16.mxu1 %v14201_v21  ;;  %v14215_v36 = vcombine.high %v85_v30, %v89_v31  ;;  %v14217_v37 = vcombine.high %v86_v32, %v90_v33  ;;  %v93_v38 = vld [vmem:[%s22638_s1 + $0x140] sm:$0xff]  ;;  %v94_v40 = vld [vmem:[%s22638_s1 + $0x148] sm:$0xff]  ;;  %v14214_v42 = vcombine.low %v85_v30, %v89_v31 }
   0xc   :  { %v97_v39 = vld [vmem:[%s22638_s1 + $0x160] sm:$0xff]  ;;  %v98_v41 = vld [vmem:[%s22638_s1 + $0x168] sm:$0xff]  ;;  %v14216_v43 = vcombine.low %v86_v32, %v90_v33 }
   0xd   :  { %v14223_v44 = vcombine.high %v93_v38, %v97_v39  ;;  %v14225_v45 = vcombine.high %v94_v40, %v98_v41  ;;  %v101_v46 = vld [vmem:[%s22638_s1 + $0x180] sm:$0xff]  ;;  %v102_v48 = vld [vmem:[%s22638_s1 + $0x188] sm:$0xff]  ;;  %v14222_v50 = vcombine.low %v93_v38, %v97_v39  ;;  %v14224_v51 = vcombine.low %v94_v40, %v98_v41 }
   0xe   :  { %9637 = vmatpush1.bf16.msra.mxu0 %v14198_v26  ;;  %10196 = vmatpush1.bf16.msra.mxu1 %v14200_v27  ;;  %v105_v47 = vld [vmem:[%s22638_s1 + $0x1a0] sm:$0xff]  ;;  %v106_v49 = vld [vmem:[%s22638_s1 + $0x1a8] sm:$0xff] }
   0xf   :  { %9638 = vmatprep.subr.bf16.mxu0 %v14207_v28  ;;  %10197 = vmatprep.subr.bf16.mxu1 %v14209_v29  ;;  %v14231_v52 = vcombine.high %v101_v46, %v105_v47  ;;  %v14233_v53 = vcombine.high %v102_v48, %v106_v49  ;;  %v109_v54 = vld [vmem:[%s22638_s1 + $0x1c0] sm:$0xff]  ;;  %v110_v57 = vld [vmem:[%s22638_s1 + $0x1c8] sm:$0xff]  ;;  %v14230_v59 = vcombine.low %v101_v46, %v105_v47 }
  0x10   :  { %v113_v55 = vld [vmem:[%s22638_s1 + $0x1e0] sm:$0xff]  ;;  %v114_v58 = vld [vmem:[%s22638_s1 + $0x1e8] sm:$0xff]  ;;  %v14232_v60 = vcombine.low %v102_v48, %v106_v49 }
  0x11   :  { %v16328_v56 = vld [vmem:[%s22639_s0 + $0x4] ss:$100 sps:$4 sm:$0xff]   ;;  %v14239_v61 = vcombine.high %v109_v54, %v113_v55  ;;  %v14241_v62 = vcombine.high %v110_v57, %v114_v58  ;;  %v14238_v3 = vcombine.low %v109_v54, %v113_v55  ;;  %v14240_v4 = vcombine.low %v110_v57, %v114_v58 }
  0x12   :  { %9639 = vmatpush1.bf16.msra.mxu0 %v14206_v34  ;;  %10198 = vmatpush1.bf16.msra.mxu1 %v14208_v35  ;;  %v117_v63 = vld [vmem:[%s22638_s1 + $0x200] sm:$0xff]  ;;  %v118_v1 = vld [vmem:[%s22638_s1 + $0x208] sm:$0xff] }
  0x13   :  { %9640 = vmatprep.subr.bf16.mxu0 %v14215_v36  ;;  %10199 = vmatprep.subr.bf16.mxu1 %v14217_v37  ;;  %v121_v0 = vld [vmem:[%s22638_s1 + $0x220] sm:$0xff]  ;;  %v122_v2 = vld [vmem:[%s22638_s1 + $0x228] sm:$0xff] }
  0x14   :  { %9664 = vmatprep.mubr.bf16.mxu0 %v16328_v56  ;;  %10223 = vmatprep.mubr.bf16.mxu1 %v16328_v56  ;;  %v14247_v5 = vcombine.high %v117_v63, %v121_v0  ;;  %v14249_v6 = vcombine.high %v118_v1, %v122_v2  ;;  %v125_v7 = vld [vmem:[%s22638_s1 + $0x240] sm:$0xff]  ;;  %v126_v9 = vld [vmem:[%s22638_s1 + $0x248] sm:$0xff]  ;;  %v14246_v11 = vcombine.low %v117_v63, %v121_v0 }
  0x15   :  { %v129_v8 = vld [vmem:[%s22638_s1 + $0x260] sm:$0xff]  ;;  %v130_v10 = vld [vmem:[%s22638_s1 + $0x268] sm:$0xff]  ;;  %v14248_v12 = vcombine.low %v118_v1, %v122_v2 }
  0x16   :  { %9641 = vmatpush1.bf16.msra.mxu0 %v14214_v42  ;;  %10200 = vmatpush1.bf16.msra.mxu1 %v14216_v43  ;;  %v14255_v13 = vcombine.high %v125_v7, %v129_v8  ;;  %v14257_v14 = vcombine.high %v126_v9, %v130_v10  ;;  %v133_v15 = vld [vmem:[%s22638_s1 + $0x280] sm:$0xff]  ;;  %v134_v17 = vld [vmem:[%s22638_s1 + $0x288] sm:$0xff]  ;;  %v14254_v19 = vcombine.low %v125_v7, %v129_v8 }
  0x17   :  { %9642 = vmatprep.subr.bf16.mxu0 %v14223_v44  ;;  %10201 = vmatprep.subr.bf16.mxu1 %v14225_v45  ;;  %v137_v16 = vld [vmem:[%s22638_s1 + $0x2a0] sm:$0xff]  ;;  %v138_v18 = vld [vmem:[%s22638_s1 + $0x2a8] sm:$0xff]  ;;  %v14256_v20 = vcombine.low %v126_v9, %v130_v10 }
  0x18   :  { %v14263_v21 = vcombine.high %v133_v15, %v137_v16  ;;  %v14265_v22 = vcombine.high %v134_v17, %v138_v18  ;;  %v141_v23 = vld [vmem:[%s22638_s1 + $0x2c0] sm:$0xff]  ;;  %v142_v25 = vld [vmem:[%s22638_s1 + $0x2c8] sm:$0xff]  ;;  %v14262_v27 = vcombine.low %v133_v15, %v137_v16  ;;  %v14264_v28 = vcombine.low %v134_v17, %v138_v18 }
  0x19   :  { %v145_v24 = vld [vmem:[%s22638_s1 + $0x2e0] sm:$0xff]  ;;  %v146_v26 = vld [vmem:[%s22638_s1 + $0x2e8] sm:$0xff] }
  0x1a   :  { %9643 = vmatpush1.bf16.msra.mxu0 %v14222_v50  ;;  %10202 = vmatpush1.bf16.msra.mxu1 %v14224_v51  ;;  %v14271_v29 = vcombine.high %v141_v23, %v145_v24  ;;  %v14273_v30 = vcombine.high %v142_v25, %v146_v26  ;;  %v149_v31 = vld [vmem:[%s22638_s1 + $0x300] sm:$0xff]  ;;  %v150_v33 = vld [vmem:[%s22638_s1 + $0x308] sm:$0xff]  ;;  %v14270_v35 = vcombine.low %v141_v23, %v145_v24 }
  0x1b   :  { %9644 = vmatprep.subr.bf16.mxu0 %v14231_v52  ;;  %10203 = vmatprep.subr.bf16.mxu1 %v14233_v53  ;;  %v153_v32 = vld [vmem:[%s22638_s1 + $0x320] sm:$0xff]  ;;  %v154_v34 = vld [vmem:[%s22638_s1 + $0x328] sm:$0xff]  ;;  %v14272_v36 = vcombine.low %v142_v25, %v146_v26 }
  0x1c   :  { %v14279_v37 = vcombine.high %v149_v31, %v153_v32  ;;  %v14281_v38 = vcombine.high %v150_v33, %v154_v34  ;;  %v157_v39 = vld [vmem:[%s22638_s1 + $0x340] sm:$0xff]  ;;  %v158_v41 = vld [vmem:[%s22638_s1 + $0x348] sm:$0xff]  ;;  %v14278_v43 = vcombine.low %v149_v31, %v153_v32  ;;  %v14280_v44 = vcombine.low %v150_v33, %v154_v34 }
  0x1d   :  { %v161_v40 = vld [vmem:[%s22638_s1 + $0x360] sm:$0xff]  ;;  %v162_v42 = vld [vmem:[%s22638_s1 + $0x368] sm:$0xff] }
  0x1e   :  { %9645 = vmatpush1.bf16.msra.mxu0 %v14230_v59  ;;  %10204 = vmatpush1.bf16.msra.mxu1 %v14232_v60  ;;  %v14287_v45 = vcombine.high %v157_v39, %v161_v40  ;;  %v14289_v46 = vcombine.high %v158_v41, %v162_v42  ;;  %v165_v47 = vld [vmem:[%s22638_s1 + $0x380] sm:$0xff]  ;;  %v166_v49 = vld [vmem:[%s22638_s1 + $0x388] sm:$0xff]  ;;  %v14286_v51 = vcombine.low %v157_v39, %v161_v40 }
  0x1f   :  { %9646 = vmatprep.subr.bf16.mxu0 %v14239_v61  ;;  %10205 = vmatprep.subr.bf16.mxu1 %v14241_v62  ;;  %v169_v48 = vld [vmem:[%s22638_s1 + $0x3a0] sm:$0xff]  ;;  %v170_v50 = vld [vmem:[%s22638_s1 + $0x3a8] sm:$0xff]  ;;  %v14288_v52 = vcombine.low %v158_v41, %v162_v42 }
  0x20   :  { %v14295_v53 = vcombine.high %v165_v47, %v169_v48  ;;  %v14297_v54 = vcombine.high %v166_v49, %v170_v50  ;;  %v173_v55 = vld [vmem:[%s22638_s1 + $0x3c0] sm:$0xff]  ;;  %v174_v57 = vld [vmem:[%s22638_s1 + $0x3c8] sm:$0xff]  ;;  %v14294_v59 = vcombine.low %v165_v47, %v169_v48  ;;  %v14296_v60 = vcombine.low %v166_v49, %v170_v50 }
  0x21   :  { %v177_v56 = vld [vmem:[%s22638_s1 + $0x3e0] sm:$0xff]  ;;  %v178_v58 = vld [vmem:[%s22638_s1 + $0x3e8] sm:$0xff] }
  0x22   :  { %9647 = vmatpush1.bf16.msra.mxu0 %v14238_v3  ;;  %10206 = vmatpush1.bf16.msra.mxu1 %v14240_v4  ;;  %v14303_v61 = vcombine.high %v173_v55, %v177_v56  ;;  %v14305_v62 = vcombine.high %v174_v57, %v178_v58  ;;  %v181_v63 = vld [vmem:[%s22638_s1 + $0x400] sm:$0xff]  ;;  %v182_v1 = vld [vmem:[%s22638_s1 + $0x408] sm:$0xff]  ;;  %v14302_v3 = vcombine.low %v173_v55, %v177_v56 }
  0x23   :  { %9648 = vmatprep.subr.bf16.mxu0 %v14247_v5  ;;  %10207 = vmatprep.subr.bf16.mxu1 %v14249_v6  ;;  %v185_v0 = vld [vmem:[%s22638_s1 + $0x420] sm:$0xff]  ;;  %v186_v2 = vld [vmem:[%s22638_s1 + $0x428] sm:$0xff]  ;;  %v14304_v4 = vcombine.low %v174_v57, %v178_v58 }
  0x24   :  { %v14311_v5 = vcombine.high %v181_v63, %v185_v0  ;;  %v14313_v6 = vcombine.high %v182_v1, %v186_v2  ;;  %v189_v7 = vld [vmem:[%s22638_s1 + $0x440] sm:$0xff]  ;;  %v190_v10 = vld [vmem:[%s22638_s1 + $0x448] sm:$0xff] }
  0x25   :  { %v193_v8 = vld [vmem:[%s22638_s1 + $0x460] sm:$0xff]  ;;  %v16331_v18 = vld [vmem:[%s22639_s0 + $0xc] ss:$100 sps:$4 sm:$0xff]  }
  0x26   :  { %9649 = vmatpush1.bf16.msra.mxu0 %v14246_v11  ;;  %10208 = vmatpush1.bf16.msra.mxu1 %v14248_v12  ;;  %v16330_v9 = vld [vmem:[%s22639_s0] ss:$100 sps:$4 sm:$0xff]   ;;  %v194_v11 = vld [vmem:[%s22638_s1 + $0x468] sm:$0xff]  ;;  %v14310_v12 = vcombine.low %v181_v63, %v185_v0 }
  0x27   :  { %9650 = vmatprep.subr.bf16.mxu0 %v14255_v13  ;;  %10209 = vmatprep.subr.bf16.mxu1 %v14257_v14  ;;  %v14312_v13 = vcombine.low %v182_v1, %v186_v2  ;;  %v14319_v14 = vcombine.high %v189_v7, %v193_v8  ;;  %v197_v15 = vld [vmem:[%s22638_s1 + $0x480] sm:$0xff]  ;;  %v14321_v16 = vcombine.high %v190_v10, %v194_v11  ;;  %v214_v34 = vld [vmem:[%s22638_s1 + $0x508] sm:$0xff] }
  0x28   :  { %v201_v17 = vld [vmem:[%s22638_s1 + $0x4a0] sm:$0xff]  ;;  %v222_v42 = vld [vmem:[%s22638_s1 + $0x548] sm:$0xff] }
  0x29   :  { %v14327_v23 = vcombine.high %v197_v15, %v201_v17  ;;  %v205_v24 = vld [vmem:[%s22638_s1 + $0x4c0] sm:$0xff] }
  0x2a   :  { %9651 = vmatpush1.bf16.msra.mxu0 %v14254_v19  ;;  %10210 = vmatpush1.bf16.msra.mxu1 %v14256_v20  ;;  %v198_v19 = vld [vmem:[%s22638_s1 + $0x488] sm:$0xff]  ;;  %v209_v25 = vld [vmem:[%s22638_s1 + $0x4e0] sm:$0xff] }
  0x2b   :  { %9652 = vmatprep.subr.bf16.mxu0 %v14263_v21  ;;  %10211 = vmatprep.subr.bf16.mxu1 %v14265_v22  ;;  %v202_v20 = vld [vmem:[%s22638_s1 + $0x4a8] sm:$0xff]  ;;  %v14318_v21 = vcombine.low %v189_v7, %v193_v8  ;;  %v14320_v22 = vcombine.low %v190_v10, %v194_v11  ;;  %v14335_v31 = vcombine.high %v205_v24, %v209_v25  ;;  %v213_v32 = vld [vmem:[%s22638_s1 + $0x500] sm:$0xff] }
  0x2c   :  { %v14329_v26 = vcombine.high %v198_v19, %v202_v20  ;;  %v217_v33 = vld [vmem:[%s22638_s1 + $0x520] sm:$0xff]  ;;  %v254_v11 = vld [vmem:[%s22638_s1 + $0x648] sm:$0xff] }
  0x2d   :  { %v14343_v39 = vcombine.high %v213_v32, %v217_v33  ;;  %v221_v40 = vld [vmem:[%s22638_s1 + $0x540] sm:$0xff] }
  0x2e   :  { %9653 = vmatpush1.bf16.msra.mxu0 %v14262_v27  ;;  %10212 = vmatpush1.bf16.msra.mxu1 %v14264_v28  ;;  %v206_v27 = vld [vmem:[%s22638_s1 + $0x4c8] sm:$0xff]  ;;  %v225_v41 = vld [vmem:[%s22638_s1 + $0x560] sm:$0xff] }
  0x2f   :  { %9654 = vmatprep.subr.bf16.mxu0 %v14271_v29  ;;  %10213 = vmatprep.subr.bf16.mxu1 %v14273_v30  ;;  %v210_v28 = vld [vmem:[%s22638_s1 + $0x4e8] sm:$0xff]  ;;  %v14326_v29 = vcombine.low %v197_v15, %v201_v17  ;;  %v14328_v30 = vcombine.low %v198_v19, %v202_v20  ;;  %v14351_v47 = vcombine.high %v221_v40, %v225_v41  ;;  %v229_v49 = vld [vmem:[%s22638_s1 + $0x580] sm:$0xff] }
  0x30   :  { %v233_v50 = vld [vmem:[%s22638_s1 + $0x5a0] sm:$0xff]  ;;  %v262_v19 = vld [vmem:[%s22638_s1 + $0x688] sm:$0xff] }
  0x31   :  { %v14359_v55 = vcombine.high %v229_v49, %v233_v50  ;;  %v237_v57 = vld [vmem:[%s22638_s1 + $0x5c0] sm:$0xff]  ;;  %v266_v20 = vld [vmem:[%s22638_s1 + $0x6a8] sm:$0xff] }
  0x32   :  { %9655 = vmatpush1.bf16.msra.mxu0 %v14270_v35  ;;  %10214 = vmatpush1.bf16.msra.mxu1 %v14272_v36  ;;  %v14337_v35 = vcombine.high %v206_v27, %v210_v28  ;;  %v218_v36 = vld [vmem:[%s22638_s1 + $0x528] sm:$0xff]  ;;  %v241_v58 = vld [vmem:[%s22638_s1 + $0x5e0] sm:$0xff] }
  0x33   :  { %9656 = vmatprep.subr.bf16.mxu0 %v14279_v37  ;;  %10215 = vmatprep.subr.bf16.mxu1 %v14281_v38  ;;  %v14334_v37 = vcombine.low %v205_v24, %v209_v25  ;;  %v14336_v38 = vcombine.low %v206_v27, %v210_v28  ;;  %v14367_v63 = vcombine.high %v237_v57, %v241_v58  ;;  %v245_v1 = vld [vmem:[%s22638_s1 + $0x600] sm:$0xff]  ;;  %v270_v27 = vld [vmem:[%s22638_s1 + $0x6c8] sm:$0xff] }
  0x34   :  { %v249_v2 = vld [vmem:[%s22638_s1 + $0x620] sm:$0xff]  ;;  %v14393_v24 = vcombine.high %v262_v19, %v266_v20  ;;  %v274_v28 = vld [vmem:[%s22638_s1 + $0x6e8] sm:$0xff] }
  0x35   :  { %v14375_v7 = vcombine.high %v245_v1, %v249_v2  ;;  %v257_v10 = vld [vmem:[%s22638_s1 + $0x660] sm:$0xff] }
  0x36   :  { %9657 = vmatpush1.bf16.msra.mxu0 %v14278_v43  ;;  %10216 = vmatpush1.bf16.msra.mxu1 %v14280_v44  ;;  %v14345_v43 = vcombine.high %v214_v34, %v218_v36  ;;  %v226_v44 = vld [vmem:[%s22638_s1 + $0x568] sm:$0xff]  ;;  %v261_v17 = vld [vmem:[%s22638_s1 + $0x680] sm:$0xff] }
  0x37   :  { %9658 = vmatprep.subr.bf16.mxu0 %v14287_v45  ;;  %10217 = vmatprep.subr.bf16.mxu1 %v14289_v46  ;;  %v14342_v45 = vcombine.low %v213_v32, %v217_v33  ;;  %v14344_v46 = vcombine.low %v214_v34, %v218_v36  ;;  %v14353_v48 = vcombine.high %v222_v42, %v226_v44  ;;  %v269_v25 = vld [vmem:[%s22638_s1 + $0x6c0] sm:$0xff]  ;;  %v282_v36 = vld [vmem:[%s22638_s1 + $0x728] sm:$0xff] }
  0x38   :  { %v14401_v32 = vcombine.high %v270_v27, %v274_v28  ;;  %v277_v33 = vld [vmem:[%s22638_s1 + $0x700] sm:$0xff] }
  0x39   :  { %v281_v34 = vld [vmem:[%s22638_s1 + $0x720] sm:$0xff] }
  0x3a   :  { %9659 = vmatpush1.bf16.msra.mxu0 %v14286_v51  ;;  %10218 = vmatpush1.bf16.msra.mxu1 %v14288_v52  ;;  %v230_v51 = vld [vmem:[%s22638_s1 + $0x588] sm:$0xff] }
  0x3b   :  { %9660 = vmatprep.subr.bf16.mxu0 %v14295_v53  ;;  %10219 = vmatprep.subr.bf16.mxu1 %v14297_v54  ;;  %v234_v52 = vld [vmem:[%s22638_s1 + $0x5a8] sm:$0xff]  ;;  %v14350_v53 = vcombine.low %v221_v40, %v225_v41  ;;  %v14352_v54 = vcombine.low %v222_v42, %v226_v44  ;;  %v285_v41 = vld [vmem:[%s22638_s1 + $0x740] sm:$0xff] }
  0x3c   :  { %v14361_v56 = vcombine.high %v230_v51, %v234_v52  ;;  %v289_v42 = vld [vmem:[%s22638_s1 + $0x760] sm:$0xff]  ;;  %v290_v44 = vld [vmem:[%s22638_s1 + $0x768] sm:$0xff] }
  0x3e   :  { %9661 = vmatpush1.bf16.msra.mxu0 %v14294_v59  ;;  %10220 = vmatpush1.bf16.msra.mxu1 %v14296_v60  ;;  %v238_v59 = vld [vmem:[%s22638_s1 + $0x5c8] sm:$0xff] }
  0x3f   :  { %9662 = vmatprep.subr.bf16.mxu0 %v14303_v61  ;;  %10221 = vmatprep.subr.bf16.mxu1 %v14305_v62  ;;  %v242_v60 = vld [vmem:[%s22638_s1 + $0x5e8] sm:$0xff]  ;;  %v14358_v61 = vcombine.low %v229_v49, %v233_v50  ;;  %v14360_v62 = vcombine.low %v230_v51, %v234_v52  ;;  %v293_v49 = vld [vmem:[%s22638_s1 + $0x780] sm:$0xff] }
  0x40   :  { %v14369_v0 = vcombine.high %v238_v59, %v242_v60  ;;  %v297_v50 = vld [vmem:[%s22638_s1 + $0x7a0] sm:$0xff]  ;;  %v294_v51 = vld [vmem:[%s22638_s1 + $0x788] sm:$0xff] }
  0x41   :  { %v298_v52 = vld [vmem:[%s22638_s1 + $0x7a8] sm:$0xff] }
  0x42   :  { %9663 = vmatpush1.bf16.msra.mxu0 %v14302_v3  ;;  %10222 = vmatpush1.bf16.msra.mxu1 %v14304_v4  ;;  %v246_v3 = vld [vmem:[%s22638_s1 + $0x608] sm:$0xff] }
  0x43   :  { %9675 = vmatprep.subr.bf16.mxu0 %v14311_v5  ;;  %10234 = vmatprep.subr.bf16.mxu1 %v14313_v6  ;;  %v250_v4 = vld [vmem:[%s22638_s1 + $0x628] sm:$0xff]  ;;  %v14366_v5 = vcombine.low %v237_v57, %v241_v58  ;;  %v14368_v6 = vcombine.low %v238_v59, %v242_v60  ;;  %v301_v57 = vld [vmem:[%s22638_s1 + $0x7c0] sm:$0xff] }
  0x44   :  { %v14377_v8 = vcombine.high %v246_v3, %v250_v4  ;;  %v305_v58 = vld [vmem:[%s22638_s1 + $0x7e0] sm:$0xff]  ;;  %v302_v59 = vld [vmem:[%s22638_s1 + $0x7c8] sm:$0xff] }
  0x45   :  { %9665 = vmatmul.mubr.bf16.vlgmr.msra.gmra.mrb[0].mxu0 %v16330_v9  ;;  %10224 = vmatmul.mubr.bf16.vlgmr.msra.gmra.mrb[0].mxu1 %v16330_v9  ;;  %v253_v9 = vld [vmem:[%s22638_s1 + $0x640] sm:$0xff]  ;;  %v306_v60 = vld [vmem:[%s22638_s1 + $0x7e8] sm:$0xff] }
  0x46   :  { %9676 = vmatpush1.bf16.msra.mxu0 %v14310_v12  ;;  %10235 = vmatpush1.bf16.msra.mxu1 %v14312_v13  ;;  %v258_v12 = vld [vmem:[%s22638_s1 + $0x668] sm:$0xff]  ;;  %v14374_v13 = vcombine.low %v245_v1, %v249_v2  ;;  %v14383_v15 = vcombine.high %v253_v9, %v257_v10  ;;  %v309_v1 = vld [vmem:[%s22638_s1 + $0x800] sm:$0xff] }
  0x47   :  { %9677 = vmatprep.subr.bf16.mxu0 %v14319_v14  ;;  %10236 = vmatprep.subr.bf16.mxu1 %v14321_v16  ;;  %v14376_v14 = vcombine.low %v246_v3, %v250_v4  ;;  %v14385_v16 = vcombine.high %v254_v11, %v258_v12  ;;  %v313_v2 = vld [vmem:[%s22638_s1 + $0x820] sm:$0xff]  ;;  %v310_v3 = vld [vmem:[%s22638_s1 + $0x808] sm:$0xff] }
  0x48   :  { %9707 = vmatprep.mubr.bf16.mxu0 %v16331_v18  ;;  %10266 = vmatprep.mubr.bf16.mxu1 %v16331_v18  ;;  %v265_v18 = vld [vmem:[%s22638_s1 + $0x6a0] sm:$0xff]  ;;  %v314_v4 = vld [vmem:[%s22638_s1 + $0x828] sm:$0xff] }
  0x4a   :  { %9678 = vmatpush1.bf16.msra.mxu0 %v14318_v21  ;;  %10237 = vmatpush1.bf16.msra.mxu1 %v14320_v22  ;;  %v14382_v21 = vcombine.low %v253_v9, %v257_v10  ;;  %v14384_v22 = vcombine.low %v254_v11, %v258_v12  ;;  %v317_v9 = vld [vmem:[%s22638_s1 + $0x840] sm:$0xff]  ;;  %v16333_v11 = vld [vmem:[%s22639_s0 + $0x8] ss:$100 sps:$4 sm:$0xff]  }
  0x4b   :  { %9679 = vmatprep.subr.bf16.mxu0 %v14327_v23  ;;  %10238 = vmatprep.subr.bf16.mxu1 %v14329_v26  ;;  %v14391_v23 = vcombine.high %v261_v17, %v265_v18  ;;  %v273_v26 = vld [vmem:[%s22638_s1 + $0x6e0] sm:$0xff]  ;;  %v318_v12 = vld [vmem:[%s22638_s1 + $0x848] sm:$0xff] }
  0x4c   :  { %v321_v10 = vld [vmem:[%s22638_s1 + $0x860] sm:$0xff] }
  0x4e   :  { %9680 = vmatpush1.bf16.msra.mxu0 %v14326_v29  ;;  %10239 = vmatpush1.bf16.msra.mxu1 %v14328_v30  ;;  %v14390_v29 = vcombine.low %v261_v17, %v265_v18  ;;  %v14392_v30 = vcombine.low %v262_v19, %v266_v20  ;;  %v325_v18 = vld [vmem:[%s22638_s1 + $0x880] sm:$0xff]  ;;  %v16334_v20 = vld [vmem:[%s22639_s0 + $0x14] ss:$100 sps:$4 sm:$0xff]  }
  0x4f   :  { %9681 = vmatprep.subr.bf16.mxu0 %v14335_v31  ;;  %10240 = vmatprep.subr.bf16.mxu1 %v14337_v35  ;;  %v14399_v31 = vcombine.high %v269_v25, %v273_v26  ;;  %v278_v35 = vld [vmem:[%s22638_s1 + $0x708] sm:$0xff]  ;;  %v329_v19 = vld [vmem:[%s22638_s1 + $0x8a0] sm:$0xff] }
  0x50   :  { %v14409_v40 = vcombine.high %v278_v35, %v282_v36 }
  0x52   :  { %9682 = vmatpush1.bf16.msra.mxu0 %v14334_v37  ;;  %10241 = vmatpush1.bf16.msra.mxu1 %v14336_v38  ;;  %v14398_v37 = vcombine.low %v269_v25, %v273_v26  ;;  %v14400_v38 = vcombine.low %v270_v27, %v274_v28  ;;  %v14455_v25 = vcombine.high %v325_v18, %v329_v19  ;;  %v333_v27 = vld [vmem:[%s22638_s1 + $0x8c0] sm:$0xff] }
  0x53   :  { %9683 = vmatprep.subr.bf16.mxu0 %v14343_v39  ;;  %10242 = vmatprep.subr.bf16.mxu1 %v14345_v43  ;;  %v14407_v39 = vcombine.high %v277_v33, %v281_v34  ;;  %v286_v43 = vld [vmem:[%s22638_s1 + $0x748] sm:$0xff]  ;;  %v337_v28 = vld [vmem:[%s22638_s1 + $0x8e0] sm:$0xff] }
  0x56   :  { %9684 = vmatpush1.bf16.msra.mxu0 %v14342_v45  ;;  %10243 = vmatpush1.bf16.msra.mxu1 %v14344_v46  ;;  %v14406_v45 = vcombine.low %v277_v33, %v281_v34  ;;  %v14408_v46 = vcombine.low %v278_v35, %v282_v36  ;;  %v14463_v33 = vcombine.high %v333_v27, %v337_v28  ;;  %v341_v35 = vld [vmem:[%s22638_s1 + $0x900] sm:$0xff] }
  0x57   :  { %9685 = vmatprep.subr.bf16.mxu0 %v14351_v47  ;;  %10244 = vmatprep.subr.bf16.mxu1 %v14353_v48  ;;  %v14415_v47 = vcombine.high %v285_v41, %v289_v42  ;;  %v14417_v48 = vcombine.high %v286_v43, %v290_v44  ;;  %v345_v36 = vld [vmem:[%s22638_s1 + $0x920] sm:$0xff] }
  0x5a   :  { %9686 = vmatpush1.bf16.msra.mxu0 %v14350_v53  ;;  %10245 = vmatpush1.bf16.msra.mxu1 %v14352_v54  ;;  %v14414_v53 = vcombine.low %v285_v41, %v289_v42  ;;  %v14416_v54 = vcombine.low %v286_v43, %v290_v44  ;;  %v14471_v41 = vcombine.high %v341_v35, %v345_v36  ;;  %v349_v43 = vld [vmem:[%s22638_s1 + $0x940] sm:$0xff] }
  0x5b   :  { %9687 = vmatprep.subr.bf16.mxu0 %v14359_v55  ;;  %10246 = vmatprep.subr.bf16.mxu1 %v14361_v56  ;;  %v14423_v55 = vcombine.high %v293_v49, %v297_v50  ;;  %v14425_v56 = vcombine.high %v294_v51, %v298_v52  ;;  %v353_v44 = vld [vmem:[%s22638_s1 + $0x960] sm:$0xff] }
  0x5e   :  { %9688 = vmatpush1.bf16.msra.mxu0 %v14358_v61  ;;  %10247 = vmatpush1.bf16.msra.mxu1 %v14360_v62  ;;  %v14422_v61 = vcombine.low %v293_v49, %v297_v50  ;;  %v14424_v62 = vcombine.low %v294_v51, %v298_v52  ;;  %v14479_v49 = vcombine.high %v349_v43, %v353_v44  ;;  %v357_v51 = vld [vmem:[%s22638_s1 + $0x980] sm:$0xff] }
  0x5f   :  { %9689 = vmatprep.subr.bf16.mxu0 %v14367_v63  ;;  %10248 = vmatprep.subr.bf16.mxu1 %v14369_v0  ;;  %v14431_v63 = vcombine.high %v301_v57, %v305_v58  ;;  %v14433_v0 = vcombine.high %v302_v59, %v306_v60  ;;  %v361_v52 = vld [vmem:[%s22638_s1 + $0x9a0] sm:$0xff] }
  0x62   :  { %9690 = vmatpush1.bf16.msra.mxu0 %v14366_v5  ;;  %10249 = vmatpush1.bf16.msra.mxu1 %v14368_v6  ;;  %v14430_v5 = vcombine.low %v301_v57, %v305_v58  ;;  %v14432_v6 = vcombine.low %v302_v59, %v306_v60  ;;  %v14487_v57 = vcombine.high %v357_v51, %v361_v52  ;;  %v365_v59 = vld [vmem:[%s22638_s1 + $0x9c0] sm:$0xff] }
  0x63   :  { %9691 = vmatprep.subr.bf16.mxu0 %v14375_v7  ;;  %10250 = vmatprep.subr.bf16.mxu1 %v14377_v8  ;;  %v14439_v7 = vcombine.high %v309_v1, %v313_v2  ;;  %v14441_v8 = vcombine.high %v310_v3, %v314_v4  ;;  %v369_v60 = vld [vmem:[%s22638_s1 + $0x9e0] sm:$0xff] }
  0x66   :  { %9692 = vmatpush1.bf16.msra.mxu0 %v14374_v13  ;;  %10251 = vmatpush1.bf16.msra.mxu1 %v14376_v14  ;;  %v322_v13 = vld [vmem:[%s22638_s1 + $0x868] sm:$0xff]  ;;  %v14438_v14 = vcombine.low %v309_v1, %v313_v2  ;;  %v14495_v1 = vcombine.high %v365_v59, %v369_v60 }
  0x67   :  { %9693 = vmatprep.subr.bf16.mxu0 %v14383_v15  ;;  %10252 = vmatprep.subr.bf16.mxu1 %v14385_v16  ;;  %v14440_v15 = vcombine.low %v310_v3, %v314_v4  ;;  %v14447_v16 = vcombine.high %v317_v9, %v321_v10  ;;  %v14449_v17 = vcombine.high %v318_v12, %v322_v13  ;;  %v373_v3 = vld [vmem:[%s22638_s1 + $0xa00] sm:$0xff] }
  0x68   :  { %v377_v4 = vld [vmem:[%s22638_s1 + $0xa20] sm:$0xff] }
  0x6a   :  { %9694 = vmatpush1.bf16.msra.mxu0 %v14382_v21  ;;  %10253 = vmatpush1.bf16.msra.mxu1 %v14384_v22  ;;  %v326_v21 = vld [vmem:[%s22638_s1 + $0x888] sm:$0xff] }
  0x6b   :  { %9695 = vmatprep.subr.bf16.mxu0 %v14391_v23  ;;  %10254 = vmatprep.subr.bf16.mxu1 %v14393_v24  ;;  %v330_v22 = vld [vmem:[%s22638_s1 + $0x8a8] sm:$0xff]  ;;  %v14446_v23 = vcombine.low %v317_v9, %v321_v10  ;;  %v14448_v24 = vcombine.low %v318_v12, %v322_v13  ;;  %v14503_v9 = vcombine.high %v373_v3, %v377_v4  ;;  %v385_v12 = vld [vmem:[%s22638_s1 + $0xa60] sm:$0xff] }
  0x6c   :  { %v14457_v26 = vcombine.high %v326_v21, %v330_v22  ;;  %v382_v13 = vld [vmem:[%s22638_s1 + $0xa48] sm:$0xff] }
  0x6e   :  { %9696 = vmatpush1.bf16.msra.mxu0 %v14390_v29  ;;  %10255 = vmatpush1.bf16.msra.mxu1 %v14392_v30  ;;  %v334_v29 = vld [vmem:[%s22638_s1 + $0x8c8] sm:$0xff] }
  0x6f   :  { %9697 = vmatprep.subr.bf16.mxu0 %v14399_v31  ;;  %10256 = vmatprep.subr.bf16.mxu1 %v14401_v32  ;;  %v338_v30 = vld [vmem:[%s22638_s1 + $0x8e8] sm:$0xff]  ;;  %v14454_v31 = vcombine.low %v325_v18, %v329_v19  ;;  %v14456_v32 = vcombine.low %v326_v21, %v330_v22  ;;  %v389_v19 = vld [vmem:[%s22638_s1 + $0xa80] sm:$0xff] }
  0x70   :  { %v14465_v34 = vcombine.high %v334_v29, %v338_v30  ;;  %v390_v21 = vld [vmem:[%s22638_s1 + $0xa88] sm:$0xff] }
  0x71   :  { %v394_v22 = vld [vmem:[%s22638_s1 + $0xaa8] sm:$0xff] }
  0x72   :  { %9698 = vmatpush1.bf16.msra.mxu0 %v14398_v37  ;;  %10257 = vmatpush1.bf16.msra.mxu1 %v14400_v38  ;;  %v342_v37 = vld [vmem:[%s22638_s1 + $0x908] sm:$0xff] }
  0x73   :  { %9699 = vmatprep.subr.bf16.mxu0 %v14407_v39  ;;  %10258 = vmatprep.subr.bf16.mxu1 %v14409_v40  ;;  %v346_v38 = vld [vmem:[%s22638_s1 + $0x928] sm:$0xff]  ;;  %v14462_v39 = vcombine.low %v333_v27, %v337_v28  ;;  %v14464_v40 = vcombine.low %v334_v29, %v338_v30  ;;  %v397_v27 = vld [vmem:[%s22638_s1 + $0xac0] sm:$0xff] }
  0x74   :  { %v14473_v42 = vcombine.high %v342_v37, %v346_v38  ;;  %v401_v28 = vld [vmem:[%s22638_s1 + $0xae0] sm:$0xff]  ;;  %v398_v29 = vld [vmem:[%s22638_s1 + $0xac8] sm:$0xff] }
  0x75   :  { %v402_v30 = vld [vmem:[%s22638_s1 + $0xae8] sm:$0xff] }
  0x76   :  { %9700 = vmatpush1.bf16.msra.mxu0 %v14406_v45  ;;  %10259 = vmatpush1.bf16.msra.mxu1 %v14408_v46  ;;  %v350_v45 = vld [vmem:[%s22638_s1 + $0x948] sm:$0xff] }
  0x77   :  { %9701 = vmatprep.subr.bf16.mxu0 %v14415_v47  ;;  %10260 = vmatprep.subr.bf16.mxu1 %v14417_v48  ;;  %v354_v46 = vld [vmem:[%s22638_s1 + $0x968] sm:$0xff]  ;;  %v14470_v47 = vcombine.low %v341_v35, %v345_v36  ;;  %v14472_v48 = vcombine.low %v342_v37, %v346_v38  ;;  %v405_v35 = vld [vmem:[%s22638_s1 + $0xb00] sm:$0xff] }
  0x78   :  { %v14481_v50 = vcombine.high %v350_v45, %v354_v46  ;;  %v409_v36 = vld [vmem:[%s22638_s1 + $0xb20] sm:$0xff]  ;;  %v406_v37 = vld [vmem:[%s22638_s1 + $0xb08] sm:$0xff] }
  0x79   :  { %v410_v38 = vld [vmem:[%s22638_s1 + $0xb28] sm:$0xff] }
  0x7a   :  { %9702 = vmatpush1.bf16.msra.mxu0 %v14414_v53  ;;  %10261 = vmatpush1.bf16.msra.mxu1 %v14416_v54  ;;  %v358_v53 = vld [vmem:[%s22638_s1 + $0x988] sm:$0xff] }
  0x7b   :  { %9703 = vmatprep.subr.bf16.mxu0 %v14423_v55  ;;  %10262 = vmatprep.subr.bf16.mxu1 %v14425_v56  ;;  %v362_v54 = vld [vmem:[%s22638_s1 + $0x9a8] sm:$0xff]  ;;  %v14478_v55 = vcombine.low %v349_v43, %v353_v44  ;;  %v14480_v56 = vcombine.low %v350_v45, %v354_v46  ;;  %v413_v43 = vld [vmem:[%s22638_s1 + $0xb40] sm:$0xff] }
  0x7c   :  { %v14489_v58 = vcombine.high %v358_v53, %v362_v54  ;;  %v417_v44 = vld [vmem:[%s22638_s1 + $0xb60] sm:$0xff]  ;;  %v414_v45 = vld [vmem:[%s22638_s1 + $0xb48] sm:$0xff] }
  0x7d   :  { %v418_v46 = vld [vmem:[%s22638_s1 + $0xb68] sm:$0xff] }
  0x7e   :  { %9704 = vmatpush1.bf16.msra.mxu0 %v14422_v61  ;;  %10263 = vmatpush1.bf16.msra.mxu1 %v14424_v62  ;;  %v366_v61 = vld [vmem:[%s22638_s1 + $0x9c8] sm:$0xff] }
  0x7f   :  { %9705 = vmatprep.subr.bf16.mxu0 %v14431_v63  ;;  %10264 = vmatprep.subr.bf16.mxu1 %v14433_v0  ;;  %v370_v62 = vld [vmem:[%s22638_s1 + $0x9e8] sm:$0xff]  ;;  %v14486_v63 = vcombine.low %v357_v51, %v361_v52  ;;  %v14488_v0 = vcombine.low %v358_v53, %v362_v54  ;;  %v421_v51 = vld [vmem:[%s22638_s1 + $0xb80] sm:$0xff] }
  0x80   :  { %v14497_v2 = vcombine.high %v366_v61, %v370_v62  ;;  %v425_v52 = vld [vmem:[%s22638_s1 + $0xba0] sm:$0xff]  ;;  %v422_v53 = vld [vmem:[%s22638_s1 + $0xb88] sm:$0xff] }
  0x81   :  { %v426_v54 = vld [vmem:[%s22638_s1 + $0xba8] sm:$0xff] }
  0x82   :  { %9706 = vmatpush1.bf16.msra.mxu0 %v14430_v5  ;;  %10265 = vmatpush1.bf16.msra.mxu1 %v14432_v6  ;;  %v374_v5 = vld [vmem:[%s22638_s1 + $0xa08] sm:$0xff] }
  0x83   :  { %9718 = vmatprep.subr.bf16.mxu0 %v14439_v7  ;;  %10277 = vmatprep.subr.bf16.mxu1 %v14441_v8  ;;  %v378_v6 = vld [vmem:[%s22638_s1 + $0xa28] sm:$0xff]  ;;  %v14494_v7 = vcombine.low %v365_v59, %v369_v60  ;;  %v14496_v8 = vcombine.low %v366_v61, %v370_v62  ;;  %v429_v59 = vld [vmem:[%s22638_s1 + $0xbc0] sm:$0xff] }
  0x84   :  { %v14505_v10 = vcombine.high %v374_v5, %v378_v6  ;;  %v433_v60 = vld [vmem:[%s22638_s1 + $0xbe0] sm:$0xff]  ;;  %v430_v61 = vld [vmem:[%s22638_s1 + $0xbc8] sm:$0xff] }
  0x85   :  { %9708 = vmatmul.mubr.bf16.vlgmr.msra.gmra.mrb[0].mxu0 %v16333_v11  ;;  %10267 = vmatmul.mubr.bf16.vlgmr.msra.gmra.mrb[0].mxu1 %v16333_v11  ;;  %v381_v11 = vld [vmem:[%s22638_s1 + $0xa40] sm:$0xff]  ;;  %v434_v62 = vld [vmem:[%s22638_s1 + $0xbe8] sm:$0xff] }
  0x86   :  { %9719 = vmatpush1.bf16.msra.mxu0 %v14438_v14  ;;  %10278 = vmatpush1.bf16.msra.mxu1 %v14440_v15  ;;  %v386_v14 = vld [vmem:[%s22638_s1 + $0xa68] sm:$0xff]  ;;  %v14502_v15 = vcombine.low %v373_v3, %v377_v4  ;;  %v437_v3 = vld [vmem:[%s22638_s1 + $0xc00] sm:$0xff] }
  0x87   :  { %9720 = vmatprep.subr.bf16.mxu0 %v14447_v16  ;;  %10279 = vmatprep.subr.bf16.mxu1 %v14449_v17  ;;  %v14504_v16 = vcombine.low %v374_v5, %v378_v6  ;;  %v14511_v17 = vcombine.high %v381_v11, %v385_v12  ;;  %v14513_v18 = vcombine.high %v382_v13, %v386_v14  ;;  %v441_v4 = vld [vmem:[%s22638_s1 + $0xc20] sm:$0xff]  ;;  %v438_v5 = vld [vmem:[%s22638_s1 + $0xc08] sm:$0xff] }
  0x88   :  { %9750 = vmatprep.mubr.bf16.mxu0 %v16334_v20  ;;  %10309 = vmatprep.mubr.bf16.mxu1 %v16334_v20  ;;  %v393_v20 = vld [vmem:[%s22638_s1 + $0xaa0] sm:$0xff]  ;;  %v442_v6 = vld [vmem:[%s22638_s1 + $0xc28] sm:$0xff] }
  0x8a   :  { %9721 = vmatpush1.bf16.msra.mxu0 %v14446_v23  ;;  %10280 = vmatpush1.bf16.msra.mxu1 %v14448_v24  ;;  %v14510_v23 = vcombine.low %v381_v11, %v385_v12  ;;  %v14512_v24 = vcombine.low %v382_v13, %v386_v14  ;;  %v445_v11 = vld [vmem:[%s22638_s1 + $0xc40] sm:$0xff]  ;;  %v16336_v13 = vld [vmem:[%s22639_s0 + $0x10] ss:$100 sps:$4 sm:$0xff]   ;;  %v446_v14 = vld [vmem:[%s22638_s1 + $0xc48] sm:$0xff] }
  0x8b   :  { %9722 = vmatprep.subr.bf16.mxu0 %v14455_v25  ;;  %10281 = vmatprep.subr.bf16.mxu1 %v14457_v26  ;;  %v14519_v25 = vcombine.high %v389_v19, %v393_v20  ;;  %v14521_v26 = vcombine.high %v390_v21, %v394_v22  ;;  %v449_v12 = vld [vmem:[%s22638_s1 + $0xc60] sm:$0xff] }
  0x8e   :  { %9723 = vmatpush1.bf16.msra.mxu0 %v14454_v31  ;;  %10282 = vmatpush1.bf16.msra.mxu1 %v14456_v32  ;;  %v14518_v31 = vcombine.low %v389_v19, %v393_v20  ;;  %v14520_v32 = vcombine.low %v390_v21, %v394_v22  ;;  %v453_v20 = vld [vmem:[%s22638_s1 + $0xc80] sm:$0xff] }
  0x8f   :  { %9724 = vmatprep.subr.bf16.mxu0 %v14463_v33  ;;  %10283 = vmatprep.subr.bf16.mxu1 %v14465_v34  ;;  %v14527_v33 = vcombine.high %v397_v27, %v401_v28  ;;  %v14529_v34 = vcombine.high %v398_v29, %v402_v30  ;;  %v457_v21 = vld [vmem:[%s22638_s1 + $0xca0] sm:$0xff] }
  0x90   :  { %v16337_v22 = vld [vmem:[%s22639_s0 + $0x1c] ss:$100 sps:$4 sm:$0xff]  }
  0x92   :  { %9725 = vmatpush1.bf16.msra.mxu0 %v14462_v39  ;;  %10284 = vmatpush1.bf16.msra.mxu1 %v14464_v40  ;;  %v14526_v39 = vcombine.low %v397_v27, %v401_v28  ;;  %v14528_v40 = vcombine.low %v398_v29, %v402_v30  ;;  %v14583_v27 = vcombine.high %v453_v20, %v457_v21  ;;  %v461_v29 = vld [vmem:[%s22638_s1 + $0xcc0] sm:$0xff] }
  0x93   :  { %9726 = vmatprep.subr.bf16.mxu0 %v14471_v41  ;;  %10285 = vmatprep.subr.bf16.mxu1 %v14473_v42  ;;  %v14535_v41 = vcombine.high %v405_v35, %v409_v36  ;;  %v14537_v42 = vcombine.high %v406_v37, %v410_v38  ;;  %v465_v30 = vld [vmem:[%s22638_s1 + $0xce0] sm:$0xff] }
  0x96   :  { %9727 = vmatpush1.bf16.msra.mxu0 %v14470_v47  ;;  %10286 = vmatpush1.bf16.msra.mxu1 %v14472_v48  ;;  %v14534_v47 = vcombine.low %v405_v35, %v409_v36  ;;  %v14536_v48 = vcombine.low %v406_v37, %v410_v38  ;;  %v14591_v35 = vcombine.high %v461_v29, %v465_v30  ;;  %v469_v37 = vld [vmem:[%s22638_s1 + $0xd00] sm:$0xff] }
  0x97   :  { %9728 = vmatprep.subr.bf16.mxu0 %v14479_v49  ;;  %10287 = vmatprep.subr.bf16.mxu1 %v14481_v50  ;;  %v14543_v49 = vcombine.high %v413_v43, %v417_v44  ;;  %v14545_v50 = vcombine.high %v414_v45, %v418_v46  ;;  %v473_v38 = vld [vmem:[%s22638_s1 + $0xd20] sm:$0xff] }
  0x9a   :  { %9729 = vmatpush1.bf16.msra.mxu0 %v14478_v55  ;;  %10288 = vmatpush1.bf16.msra.mxu1 %v14480_v56  ;;  %v14542_v55 = vcombine.low %v413_v43, %v417_v44  ;;  %v14544_v56 = vcombine.low %v414_v45, %v418_v46  ;;  %v14599_v43 = vcombine.high %v469_v37, %v473_v38  ;;  %v477_v45 = vld [vmem:[%s22638_s1 + $0xd40] sm:$0xff] }
  0x9b   :  { %9730 = vmatprep.subr.bf16.mxu0 %v14487_v57  ;;  %10289 = vmatprep.subr.bf16.mxu1 %v14489_v58  ;;  %v14551_v57 = vcombine.high %v421_v51, %v425_v52  ;;  %v14553_v58 = vcombine.high %v422_v53, %v426_v54  ;;  %v481_v46 = vld [vmem:[%s22638_s1 + $0xd60] sm:$0xff] }
  0x9e   :  { %9731 = vmatpush1.bf16.msra.mxu0 %v14486_v63  ;;  %10290 = vmatpush1.bf16.msra.mxu1 %v14488_v0  ;;  %v14550_v63 = vcombine.low %v421_v51, %v425_v52  ;;  %v14552_v0 = vcombine.low %v422_v53, %v426_v54  ;;  %v14607_v51 = vcombine.high %v477_v45, %v481_v46  ;;  %v485_v53 = vld [vmem:[%s22638_s1 + $0xd80] sm:$0xff] }
  0x9f   :  { %9732 = vmatprep.subr.bf16.mxu0 %v14495_v1  ;;  %10291 = vmatprep.subr.bf16.mxu1 %v14497_v2  ;;  %v14559_v1 = vcombine.high %v429_v59, %v433_v60  ;;  %v14561_v2 = vcombine.high %v430_v61, %v434_v62  ;;  %v489_v54 = vld [vmem:[%s22638_s1 + $0xda0] sm:$0xff] }
  0xa2   :  { %9733 = vmatpush1.bf16.msra.mxu0 %v14494_v7  ;;  %10292 = vmatpush1.bf16.msra.mxu1 %v14496_v8  ;;  %v14558_v7 = vcombine.low %v429_v59, %v433_v60  ;;  %v14560_v8 = vcombine.low %v430_v61, %v434_v62  ;;  %v14615_v59 = vcombine.high %v485_v53, %v489_v54  ;;  %v493_v61 = vld [vmem:[%s22638_s1 + $0xdc0] sm:$0xff] }
  0xa3   :  { %9734 = vmatprep.subr.bf16.mxu0 %v14503_v9  ;;  %10293 = vmatprep.subr.bf16.mxu1 %v14505_v10  ;;  %v14567_v9 = vcombine.high %v437_v3, %v441_v4  ;;  %v14569_v10 = vcombine.high %v438_v5, %v442_v6  ;;  %v497_v62 = vld [vmem:[%s22638_s1 + $0xde0] sm:$0xff] }
  0xa6   :  { %9735 = vmatpush1.bf16.msra.mxu0 %v14502_v15  ;;  %10294 = vmatpush1.bf16.msra.mxu1 %v14504_v16  ;;  %v450_v15 = vld [vmem:[%s22638_s1 + $0xc68] sm:$0xff]  ;;  %v14566_v16 = vcombine.low %v437_v3, %v441_v4  ;;  %v14623_v3 = vcombine.high %v493_v61, %v497_v62 }
  0xa7   :  { %9736 = vmatprep.subr.bf16.mxu0 %v14511_v17  ;;  %10295 = vmatprep.subr.bf16.mxu1 %v14513_v18  ;;  %v14568_v17 = vcombine.low %v438_v5, %v442_v6  ;;  %v14575_v18 = vcombine.high %v445_v11, %v449_v12  ;;  %v14577_v19 = vcombine.high %v446_v14, %v450_v15  ;;  %v501_v5 = vld [vmem:[%s22638_s1 + $0xe00] sm:$0xff] }
  0xa8   :  { %v505_v6 = vld [vmem:[%s22638_s1 + $0xe20] sm:$0xff] }
  0xaa   :  { %9737 = vmatpush1.bf16.msra.mxu0 %v14510_v23  ;;  %10296 = vmatpush1.bf16.msra.mxu1 %v14512_v24  ;;  %v454_v23 = vld [vmem:[%s22638_s1 + $0xc88] sm:$0xff] }
  0xab   :  { %9738 = vmatprep.subr.bf16.mxu0 %v14519_v25  ;;  %10297 = vmatprep.subr.bf16.mxu1 %v14521_v26  ;;  %v458_v24 = vld [vmem:[%s22638_s1 + $0xca8] sm:$0xff]  ;;  %v14574_v25 = vcombine.low %v445_v11, %v449_v12  ;;  %v14576_v26 = vcombine.low %v446_v14, %v450_v15  ;;  %v14631_v11 = vcombine.high %v501_v5, %v505_v6  ;;  %v513_v14 = vld [vmem:[%s22638_s1 + $0xe60] sm:$0xff] }
  0xac   :  { %v14585_v28 = vcombine.high %v454_v23, %v458_v24  ;;  %v510_v15 = vld [vmem:[%s22638_s1 + $0xe48] sm:$0xff] }
  0xae   :  { %9739 = vmatpush1.bf16.msra.mxu0 %v14518_v31  ;;  %10298 = vmatpush1.bf16.msra.mxu1 %v14520_v32  ;;  %v462_v31 = vld [vmem:[%s22638_s1 + $0xcc8] sm:$0xff] }
  0xaf   :  { %9740 = vmatprep.subr.bf16.mxu0 %v14527_v33  ;;  %10299 = vmatprep.subr.bf16.mxu1 %v14529_v34  ;;  %v466_v32 = vld [vmem:[%s22638_s1 + $0xce8] sm:$0xff]  ;;  %v14582_v33 = vcombine.low %v453_v20, %v457_v21  ;;  %v14584_v34 = vcombine.low %v454_v23, %v458_v24  ;;  %v517_v21 = vld [vmem:[%s22638_s1 + $0xe80] sm:$0xff] }
  0xb0   :  { %v14593_v36 = vcombine.high %v462_v31, %v466_v32  ;;  %v518_v23 = vld [vmem:[%s22638_s1 + $0xe88] sm:$0xff] }
  0xb1   :  { %v522_v24 = vld [vmem:[%s22638_s1 + $0xea8] sm:$0xff] }
  0xb2   :  { %9741 = vmatpush1.bf16.msra.mxu0 %v14526_v39  ;;  %10300 = vmatpush1.bf16.msra.mxu1 %v14528_v40  ;;  %v470_v39 = vld [vmem:[%s22638_s1 + $0xd08] sm:$0xff] }
  0xb3   :  { %9742 = vmatprep.subr.bf16.mxu0 %v14535_v41  ;;  %10301 = vmatprep.subr.bf16.mxu1 %v14537_v42  ;;  %v474_v40 = vld [vmem:[%s22638_s1 + $0xd28] sm:$0xff]  ;;  %v14590_v41 = vcombine.low %v461_v29, %v465_v30  ;;  %v14592_v42 = vcombine.low %v462_v31, %v466_v32  ;;  %v525_v29 = vld [vmem:[%s22638_s1 + $0xec0] sm:$0xff] }
  0xb4   :  { %v14601_v44 = vcombine.high %v470_v39, %v474_v40  ;;  %v529_v30 = vld [vmem:[%s22638_s1 + $0xee0] sm:$0xff]  ;;  %v526_v31 = vld [vmem:[%s22638_s1 + $0xec8] sm:$0xff] }
  0xb5   :  { %v530_v32 = vld [vmem:[%s22638_s1 + $0xee8] sm:$0xff] }
  0xb6   :  { %9743 = vmatpush1.bf16.msra.mxu0 %v14534_v47  ;;  %10302 = vmatpush1.bf16.msra.mxu1 %v14536_v48  ;;  %v478_v47 = vld [vmem:[%s22638_s1 + $0xd48] sm:$0xff] }
  0xb7   :  { %9744 = vmatprep.subr.bf16.mxu0 %v14543_v49  ;;  %10303 = vmatprep.subr.bf16.mxu1 %v14545_v50  ;;  %v482_v48 = vld [vmem:[%s22638_s1 + $0xd68] sm:$0xff]  ;;  %v14598_v49 = vcombine.low %v469_v37, %v473_v38  ;;  %v14600_v50 = vcombine.low %v470_v39, %v474_v40  ;;  %v533_v37 = vld [vmem:[%s22638_s1 + $0xf00] sm:$0xff] }
  0xb8   :  { %v14609_v52 = vcombine.high %v478_v47, %v482_v48  ;;  %v537_v38 = vld [vmem:[%s22638_s1 + $0xf20] sm:$0xff]  ;;  %v534_v39 = vld [vmem:[%s22638_s1 + $0xf08] sm:$0xff] }
  0xb9   :  { %v538_v40 = vld [vmem:[%s22638_s1 + $0xf28] sm:$0xff] }
  0xba   :  { %9745 = vmatpush1.bf16.msra.mxu0 %v14542_v55  ;;  %10304 = vmatpush1.bf16.msra.mxu1 %v14544_v56  ;;  %v486_v55 = vld [vmem:[%s22638_s1 + $0xd88] sm:$0xff] }
  0xbb   :  { %9746 = vmatprep.subr.bf16.mxu0 %v14551_v57  ;;  %10305 = vmatprep.subr.bf16.mxu1 %v14553_v58  ;;  %v490_v56 = vld [vmem:[%s22638_s1 + $0xda8] sm:$0xff]  ;;  %v14606_v57 = vcombine.low %v477_v45, %v481_v46  ;;  %v14608_v58 = vcombine.low %v478_v47, %v482_v48  ;;  %v541_v45 = vld [vmem:[%s22638_s1 + $0xf40] sm:$0xff] }
  0xbc   :  { %v14617_v60 = vcombine.high %v486_v55, %v490_v56  ;;  %v545_v46 = vld [vmem:[%s22638_s1 + $0xf60] sm:$0xff]  ;;  %v542_v47 = vld [vmem:[%s22638_s1 + $0xf48] sm:$0xff] }
  0xbd   :  { %v546_v48 = vld [vmem:[%s22638_s1 + $0xf68] sm:$0xff] }
  0xbe   :  { %9747 = vmatpush1.bf16.msra.mxu0 %v14550_v63  ;;  %10306 = vmatpush1.bf16.msra.mxu1 %v14552_v0  ;;  %v494_v63 = vld [vmem:[%s22638_s1 + $0xdc8] sm:$0xff] }
  0xbf   :  { %9748 = vmatprep.subr.bf16.mxu0 %v14559_v1  ;;  %10307 = vmatprep.subr.bf16.mxu1 %v14561_v2  ;;  %v498_v0 = vld [vmem:[%s22638_s1 + $0xde8] sm:$0xff]  ;;  %v14614_v1 = vcombine.low %v485_v53, %v489_v54  ;;  %v14616_v2 = vcombine.low %v486_v55, %v490_v56  ;;  %v549_v53 = vld [vmem:[%s22638_s1 + $0xf80] sm:$0xff] }
  0xc0   :  { %v14625_v4 = vcombine.high %v494_v63, %v498_v0  ;;  %v553_v54 = vld [vmem:[%s22638_s1 + $0xfa0] sm:$0xff]  ;;  %v550_v55 = vld [vmem:[%s22638_s1 + $0xf88] sm:$0xff] }
  0xc1   :  { %v554_v56 = vld [vmem:[%s22638_s1 + $0xfa8] sm:$0xff] }
  0xc2   :  { %9749 = vmatpush1.bf16.msra.mxu0 %v14558_v7  ;;  %10308 = vmatpush1.bf16.msra.mxu1 %v14560_v8  ;;  %v502_v7 = vld [vmem:[%s22638_s1 + $0xe08] sm:$0xff] }
  0xc3   :  { %9761 = vmatprep.subr.bf16.mxu0 %v14567_v9  ;;  %10320 = vmatprep.subr.bf16.mxu1 %v14569_v10  ;;  %v506_v8 = vld [vmem:[%s22638_s1 + $0xe28] sm:$0xff]  ;;  %v14622_v9 = vcombine.low %v493_v61, %v497_v62  ;;  %v14624_v10 = vcombine.low %v494_v63, %v498_v0  ;;  %v557_v61 = vld [vmem:[%s22638_s1 + $0xfc0] sm:$0xff] }
  0xc4   :  { %v14633_v12 = vcombine.high %v502_v7, %v506_v8  ;;  %v561_v62 = vld [vmem:[%s22638_s1 + $0xfe0] sm:$0xff]  ;;  %v558_v63 = vld [vmem:[%s22638_s1 + $0xfc8] sm:$0xff] }
  0xc5   :  { %9751 = vmatmul.mubr.bf16.vlgmr.msra.gmra.mrb[0].mxu0 %v16336_v13  ;;  %10310 = vmatmul.mubr.bf16.vlgmr.msra.gmra.mrb[0].mxu1 %v16336_v13  ;;  %v509_v13 = vld [vmem:[%s22638_s1 + $0xe40] sm:$0xff]  ;;  %v562_v0 = vld [vmem:[%s22638_s1 + $0xfe8] sm:$0xff] }
  0xc6   :  { %9762 = vmatpush1.bf16.msra.mxu0 %v14566_v16  ;;  %10321 = vmatpush1.bf16.msra.mxu1 %v14568_v17  ;;  %v514_v16 = vld [vmem:[%s22638_s1 + $0xe68] sm:$0xff]  ;;  %v14630_v17 = vcombine.low %v501_v5, %v505_v6  ;;  %v565_v5 = vld [vmem:[%s22638_s1 + $0x1000] sm:$0xff] }
  0xc7   :  { %9763 = vmatprep.subr.bf16.mxu0 %v14575_v18  ;;  %10322 = vmatprep.subr.bf16.mxu1 %v14577_v19  ;;  %v14632_v18 = vcombine.low %v502_v7, %v506_v8  ;;  %v14639_v19 = vcombine.high %v509_v13, %v513_v14  ;;  %v14641_v20 = vcombine.high %v510_v15, %v514_v16  ;;  %v569_v6 = vld [vmem:[%s22638_s1 + $0x1020] sm:$0xff]  ;;  %v566_v7 = vld [vmem:[%s22638_s1 + $0x1008] sm:$0xff] }
  0xc8   :  { %9793 = vmatprep.mubr.bf16.mxu0 %v16337_v22  ;;  %10352 = vmatprep.mubr.bf16.mxu1 %v16337_v22  ;;  %v521_v22 = vld [vmem:[%s22638_s1 + $0xea0] sm:$0xff]  ;;  %v570_v8 = vld [vmem:[%s22638_s1 + $0x1028] sm:$0xff] }
  0xca   :  { %9764 = vmatpush1.bf16.msra.mxu0 %v14574_v25  ;;  %10323 = vmatpush1.bf16.msra.mxu1 %v14576_v26  ;;  %v14638_v25 = vcombine.low %v509_v13, %v513_v14  ;;  %v14640_v26 = vcombine.low %v510_v15, %v514_v16  ;;  %v573_v13 = vld [vmem:[%s22638_s1 + $0x1040] sm:$0xff]  ;;  %v16339_v15 = vld [vmem:[%s22639_s0 + $0x18] ss:$100 sps:$4 sm:$0xff]   ;;  %v574_v16 = vld [vmem:[%s22638_s1 + $0x1048] sm:$0xff] }
  0xcb   :  { %9765 = vmatprep.subr.bf16.mxu0 %v14583_v27  ;;  %10324 = vmatprep.subr.bf16.mxu1 %v14585_v28  ;;  %v14647_v27 = vcombine.high %v517_v21, %v521_v22  ;;  %v14649_v28 = vcombine.high %v518_v23, %v522_v24  ;;  %v577_v14 = vld [vmem:[%s22638_s1 + $0x1060] sm:$0xff] }
  0xce   :  { %9766 = vmatpush1.bf16.msra.mxu0 %v14582_v33  ;;  %10325 = vmatpush1.bf16.msra.mxu1 %v14584_v34  ;;  %v14646_v33 = vcombine.low %v517_v21, %v521_v22  ;;  %v14648_v34 = vcombine.low %v518_v23, %v522_v24  ;;  %v581_v22 = vld [vmem:[%s22638_s1 + $0x1080] sm:$0xff] }
  0xcf   :  { %9767 = vmatprep.subr.bf16.mxu0 %v14591_v35  ;;  %10326 = vmatprep.subr.bf16.mxu1 %v14593_v36  ;;  %v14655_v35 = vcombine.high %v525_v29, %v529_v30  ;;  %v14657_v36 = vcombine.high %v526_v31, %v530_v32  ;;  %v585_v23 = vld [vmem:[%s22638_s1 + $0x10a0] sm:$0xff] }
  0xd0   :  { %v16340_v24 = vld [vmem:[%s22639_s0 + $0x24] ss:$100 sps:$4 sm:$0xff]  }
  0xd2   :  { %9768 = vmatpush1.bf16.msra.mxu0 %v14590_v41  ;;  %10327 = vmatpush1.bf16.msra.mxu1 %v14592_v42  ;;  %v14654_v41 = vcombine.low %v525_v29, %v529_v30  ;;  %v14656_v42 = vcombine.low %v526_v31, %v530_v32  ;;  %v14711_v29 = vcombine.high %v581_v22, %v585_v23  ;;  %v589_v31 = vld [vmem:[%s22638_s1 + $0x10c0] sm:$0xff] }
  0xd3   :  { %9769 = vmatprep.subr.bf16.mxu0 %v14599_v43  ;;  %10328 = vmatprep.subr.bf16.mxu1 %v14601_v44  ;;  %v14663_v43 = vcombine.high %v533_v37, %v537_v38  ;;  %v14665_v44 = vcombine.high %v534_v39, %v538_v40  ;;  %v593_v32 = vld [vmem:[%s22638_s1 + $0x10e0] sm:$0xff] }
  0xd6   :  { %9770 = vmatpush1.bf16.msra.mxu0 %v14598_v49  ;;  %10329 = vmatpush1.bf16.msra.mxu1 %v14600_v50  ;;  %v14662_v49 = vcombine.low %v533_v37, %v537_v38  ;;  %v14664_v50 = vcombine.low %v534_v39, %v538_v40  ;;  %v14719_v37 = vcombine.high %v589_v31, %v593_v32  ;;  %v597_v39 = vld [vmem:[%s22638_s1 + $0x1100] sm:$0xff] }
  0xd7   :  { %9771 = vmatprep.subr.bf16.mxu0 %v14607_v51  ;;  %10330 = vmatprep.subr.bf16.mxu1 %v14609_v52  ;;  %v14671_v51 = vcombine.high %v541_v45, %v545_v46  ;;  %v14673_v52 = vcombine.high %v542_v47, %v546_v48  ;;  %v601_v40 = vld [vmem:[%s22638_s1 + $0x1120] sm:$0xff] }
  0xda   :  { %9772 = vmatpush1.bf16.msra.mxu0 %v14606_v57  ;;  %10331 = vmatpush1.bf16.msra.mxu1 %v14608_v58  ;;  %v14670_v57 = vcombine.low %v541_v45, %v545_v46  ;;  %v14672_v58 = vcombine.low %v542_v47, %v546_v48  ;;  %v14727_v45 = vcombine.high %v597_v39, %v601_v40  ;;  %v605_v47 = vld [vmem:[%s22638_s1 + $0x1140] sm:$0xff] }
  0xdb   :  { %9773 = vmatprep.subr.bf16.mxu0 %v14615_v59  ;;  %10332 = vmatprep.subr.bf16.mxu1 %v14617_v60  ;;  %v14679_v59 = vcombine.high %v549_v53, %v553_v54  ;;  %v14681_v60 = vcombine.high %v550_v55, %v554_v56  ;;  %v609_v48 = vld [vmem:[%s22638_s1 + $0x1160] sm:$0xff] }
  0xde   :  { %9774 = vmatpush1.bf16.msra.mxu0 %v14614_v1  ;;  %10333 = vmatpush1.bf16.msra.mxu1 %v14616_v2  ;;  %v14678_v1 = vcombine.low %v549_v53, %v553_v54  ;;  %v14680_v2 = vcombine.low %v550_v55, %v554_v56  ;;  %v14735_v53 = vcombine.high %v605_v47, %v609_v48  ;;  %v613_v55 = vld [vmem:[%s22638_s1 + $0x1180] sm:$0xff] }
  0xdf   :  { %9775 = vmatprep.subr.bf16.mxu0 %v14623_v3  ;;  %10334 = vmatprep.subr.bf16.mxu1 %v14625_v4  ;;  %v14687_v3 = vcombine.high %v557_v61, %v561_v62  ;;  %v14689_v4 = vcombine.high %v558_v63, %v562_v0  ;;  %v617_v56 = vld [vmem:[%s22638_s1 + $0x11a0] sm:$0xff] }
  0xe2   :  { %9776 = vmatpush1.bf16.msra.mxu0 %v14622_v9  ;;  %10335 = vmatpush1.bf16.msra.mxu1 %v14624_v10  ;;  %v14686_v9 = vcombine.low %v557_v61, %v561_v62  ;;  %v14688_v10 = vcombine.low %v558_v63, %v562_v0  ;;  %v14743_v61 = vcombine.high %v613_v55, %v617_v56  ;;  %v621_v63 = vld [vmem:[%s22638_s1 + $0x11c0] sm:$0xff] }
  0xe3   :  { %9777 = vmatprep.subr.bf16.mxu0 %v14631_v11  ;;  %10336 = vmatprep.subr.bf16.mxu1 %v14633_v12  ;;  %v14695_v11 = vcombine.high %v565_v5, %v569_v6  ;;  %v14697_v12 = vcombine.high %v566_v7, %v570_v8  ;;  %v625_v0 = vld [vmem:[%s22638_s1 + $0x11e0] sm:$0xff] }
  0xe6   :  { %9778 = vmatpush1.bf16.msra.mxu0 %v14630_v17  ;;  %10337 = vmatpush1.bf16.msra.mxu1 %v14632_v18  ;;  %v578_v17 = vld [vmem:[%s22638_s1 + $0x1068] sm:$0xff]  ;;  %v14694_v18 = vcombine.low %v565_v5, %v569_v6  ;;  %v14751_v5 = vcombine.high %v621_v63, %v625_v0 }
  0xe7   :  { %9779 = vmatprep.subr.bf16.mxu0 %v14639_v19  ;;  %10338 = vmatprep.subr.bf16.mxu1 %v14641_v20  ;;  %v14696_v19 = vcombine.low %v566_v7, %v570_v8  ;;  %v14703_v20 = vcombine.high %v573_v13, %v577_v14  ;;  %v14705_v21 = vcombine.high %v574_v16, %v578_v17  ;;  %v629_v7 = vld [vmem:[%s22638_s1 + $0x1200] sm:$0xff] }
  0xe8   :  { %v633_v8 = vld [vmem:[%s22638_s1 + $0x1220] sm:$0xff] }
  0xea   :  { %9780 = vmatpush1.bf16.msra.mxu0 %v14638_v25  ;;  %10339 = vmatpush1.bf16.msra.mxu1 %v14640_v26  ;;  %v582_v25 = vld [vmem:[%s22638_s1 + $0x1088] sm:$0xff] }
  0xeb   :  { %9781 = vmatprep.subr.bf16.mxu0 %v14647_v27  ;;  %10340 = vmatprep.subr.bf16.mxu1 %v14649_v28  ;;  %v586_v26 = vld [vmem:[%s22638_s1 + $0x10a8] sm:$0xff]  ;;  %v14702_v27 = vcombine.low %v573_v13, %v577_v14  ;;  %v14704_v28 = vcombine.low %v574_v16, %v578_v17  ;;  %v14759_v13 = vcombine.high %v629_v7, %v633_v8  ;;  %v641_v16 = vld [vmem:[%s22638_s1 + $0x1260] sm:$0xff] }
  0xec   :  { %v14713_v30 = vcombine.high %v582_v25, %v586_v26  ;;  %v638_v17 = vld [vmem:[%s22638_s1 + $0x1248] sm:$0xff] }
  0xee   :  { %9782 = vmatpush1.bf16.msra.mxu0 %v14646_v33  ;;  %10341 = vmatpush1.bf16.msra.mxu1 %v14648_v34  ;;  %v590_v33 = vld [vmem:[%s22638_s1 + $0x10c8] sm:$0xff] }
  0xef   :  { %9783 = vmatprep.subr.bf16.mxu0 %v14655_v35  ;;  %10342 = vmatprep.subr.bf16.mxu1 %v14657_v36  ;;  %v594_v34 = vld [vmem:[%s22638_s1 + $0x10e8] sm:$0xff]  ;;  %v14710_v35 = vcombine.low %v581_v22, %v585_v23  ;;  %v14712_v36 = vcombine.low %v582_v25, %v586_v26  ;;  %v645_v23 = vld [vmem:[%s22638_s1 + $0x1280] sm:$0xff] }
  0xf0   :  { %v14721_v38 = vcombine.high %v590_v33, %v594_v34  ;;  %v646_v25 = vld [vmem:[%s22638_s1 + $0x1288] sm:$0xff] }
  0xf1   :  { %v650_v26 = vld [vmem:[%s22638_s1 + $0x12a8] sm:$0xff] }
  0xf2   :  { %9784 = vmatpush1.bf16.msra.mxu0 %v14654_v41  ;;  %10343 = vmatpush1.bf16.msra.mxu1 %v14656_v42  ;;  %v598_v41 = vld [vmem:[%s22638_s1 + $0x1108] sm:$0xff] }
  0xf3   :  { %9785 = vmatprep.subr.bf16.mxu0 %v14663_v43  ;;  %10344 = vmatprep.subr.bf16.mxu1 %v14665_v44  ;;  %v602_v42 = vld [vmem:[%s22638_s1 + $0x1128] sm:$0xff]  ;;  %v14718_v43 = vcombine.low %v589_v31, %v593_v32  ;;  %v14720_v44 = vcombine.low %v590_v33, %v594_v34  ;;  %v653_v31 = vld [vmem:[%s22638_s1 + $0x12c0] sm:$0xff] }
  0xf4   :  { %v14729_v46 = vcombine.high %v598_v41, %v602_v42  ;;  %v657_v32 = vld [vmem:[%s22638_s1 + $0x12e0] sm:$0xff]  ;;  %v654_v33 = vld [vmem:[%s22638_s1 + $0x12c8] sm:$0xff] }
  0xf5   :  { %v658_v34 = vld [vmem:[%s22638_s1 + $0x12e8] sm:$0xff] }
  0xf6   :  { %9786 = vmatpush1.bf16.msra.mxu0 %v14662_v49  ;;  %10345 = vmatpush1.bf16.msra.mxu1 %v14664_v50  ;;  %v606_v49 = vld [vmem:[%s22638_s1 + $0x1148] sm:$0xff] }
  0xf7   :  { %9787 = vmatprep.subr.bf16.mxu0 %v14671_v51  ;;  %10346 = vmatprep.subr.bf16.mxu1 %v14673_v52  ;;  %v610_v50 = vld [vmem:[%s22638_s1 + $0x1168] sm:$0xff]  ;;  %v14726_v51 = vcombine.low %v597_v39, %v601_v40  ;;  %v14728_v52 = vcombine.low %v598_v41, %v602_v42  ;;  %v661_v39 = vld [vmem:[%s22638_s1 + $0x1300] sm:$0xff] }
  0xf8   :  { %v14737_v54 = vcombine.high %v606_v49, %v610_v50  ;;  %v665_v40 = vld [vmem:[%s22638_s1 + $0x1320] sm:$0xff]  ;;  %v662_v41 = vld [vmem:[%s22638_s1 + $0x1308] sm:$0xff] }
  0xf9   :  { %v666_v42 = vld [vmem:[%s22638_s1 + $0x1328] sm:$0xff] }
  0xfa   :  { %9788 = vmatpush1.bf16.msra.mxu0 %v14670_v57  ;;  %10347 = vmatpush1.bf16.msra.mxu1 %v14672_v58  ;;  %v614_v57 = vld [vmem:[%s22638_s1 + $0x1188] sm:$0xff] }
  0xfb   :  { %9789 = vmatprep.subr.bf16.mxu0 %v14679_v59  ;;  %10348 = vmatprep.subr.bf16.mxu1 %v14681_v60  ;;  %v618_v58 = vld [vmem:[%s22638_s1 + $0x11a8] sm:$0xff]  ;;  %v14734_v59 = vcombine.low %v605_v47, %v609_v48  ;;  %v14736_v60 = vcombine.low %v606_v49, %v610_v50  ;;  %v669_v47 = vld [vmem:[%s22638_s1 + $0x1340] sm:$0xff] }
  0xfc   :  { %v14745_v62 = vcombine.high %v614_v57, %v618_v58  ;;  %v673_v48 = vld [vmem:[%s22638_s1 + $0x1360] sm:$0xff]  ;;  %v670_v49 = vld [vmem:[%s22638_s1 + $0x1348] sm:$0xff] }
  0xfd   :  { %v674_v50 = vld [vmem:[%s22638_s1 + $0x1368] sm:$0xff] }
  0xfe   :  { %9790 = vmatpush1.bf16.msra.mxu0 %v14678_v1  ;;  %10349 = vmatpush1.bf16.msra.mxu1 %v14680_v2  ;;  %v622_v1 = vld [vmem:[%s22638_s1 + $0x11c8] sm:$0xff] }
  0xff   :  { %9791 = vmatprep.subr.bf16.mxu0 %v14687_v3  ;;  %10350 = vmatprep.subr.bf16.mxu1 %v14689_v4  ;;  %v626_v2 = vld [vmem:[%s22638_s1 + $0x11e8] sm:$0xff]  ;;  %v14742_v3 = vcombine.low %v613_v55, %v617_v56  ;;  %v14744_v4 = vcombine.low %v614_v57, %v618_v58  ;;  %v677_v55 = vld [vmem:[%s22638_s1 + $0x1380] sm:$0xff] }
 0x100   :  { %v14753_v6 = vcombine.high %v622_v1, %v626_v2  ;;  %v681_v56 = vld [vmem:[%s22638_s1 + $0x13a0] sm:$0xff]  ;;  %v678_v57 = vld [vmem:[%s22638_s1 + $0x1388] sm:$0xff] }
 0x101   :  { %v682_v58 = vld [vmem:[%s22638_s1 + $0x13a8] sm:$0xff] }
 0x102   :  { %9792 = vmatpush1.bf16.msra.mxu0 %v14686_v9  ;;  %10351 = vmatpush1.bf16.msra.mxu1 %v14688_v10  ;;  %v630_v9 = vld [vmem:[%s22638_s1 + $0x1208] sm:$0xff] }
 0x103   :  { %9804 = vmatprep.subr.bf16.mxu0 %v14695_v11  ;;  %10363 = vmatprep.subr.bf16.mxu1 %v14697_v12  ;;  %v634_v10 = vld [vmem:[%s22638_s1 + $0x1228] sm:$0xff]  ;;  %v14750_v11 = vcombine.low %v621_v63, %v625_v0  ;;  %v14752_v12 = vcombine.low %v622_v1, %v626_v2  ;;  %v685_v63 = vld [vmem:[%s22638_s1 + $0x13c0] sm:$0xff] }
 0x104   :  { %v14761_v14 = vcombine.high %v630_v9, %v634_v10  ;;  %v689_v0 = vld [vmem:[%s22638_s1 + $0x13e0] sm:$0xff]  ;;  %v686_v1 = vld [vmem:[%s22638_s1 + $0x13c8] sm:$0xff] }
 0x105   :  { %9794 = vmatmul.mubr.bf16.vlgmr.msra.gmra.mrb[0].mxu0 %v16339_v15  ;;  %10353 = vmatmul.mubr.bf16.vlgmr.msra.gmra.mrb[0].mxu1 %v16339_v15  ;;  %v637_v15 = vld [vmem:[%s22638_s1 + $0x1240] sm:$0xff]  ;;  %v690_v2 = vld [vmem:[%s22638_s1 + $0x13e8] sm:$0xff] }
 0x106   :  { %9805 = vmatpush1.bf16.msra.mxu0 %v14694_v18  ;;  %10364 = vmatpush1.bf16.msra.mxu1 %v14696_v19  ;;  %v642_v18 = vld [vmem:[%s22638_s1 + $0x1268] sm:$0xff]  ;;  %v14758_v19 = vcombine.low %v629_v7, %v633_v8  ;;  %v693_v7 = vld [vmem:[%s22638_s1 + $0x1400] sm:$0xff] }
 0x107   :  { %9806 = vmatprep.subr.bf16.mxu0 %v14703_v20  ;;  %10365 = vmatprep.subr.bf16.mxu1 %v14705_v21  ;;  %v14760_v20 = vcombine.low %v630_v9, %v634_v10  ;;  %v14767_v21 = vcombine.high %v637_v15, %v641_v16  ;;  %v14769_v22 = vcombine.high %v638_v17, %v642_v18  ;;  %v697_v8 = vld [vmem:[%s22638_s1 + $0x1420] sm:$0xff]  ;;  %v694_v9 = vld [vmem:[%s22638_s1 + $0x1408] sm:$0xff] }
 0x108   :  { %9836 = vmatprep.mubr.bf16.mxu0 %v16340_v24  ;;  %10395 = vmatprep.mubr.bf16.mxu1 %v16340_v24  ;;  %v649_v24 = vld [vmem:[%s22638_s1 + $0x12a0] sm:$0xff]  ;;  %v698_v10 = vld [vmem:[%s22638_s1 + $0x1428] sm:$0xff] }
 0x10a   :  { %9807 = vmatpush1.bf16.msra.mxu0 %v14702_v27  ;;  %10366 = vmatpush1.bf16.msra.mxu1 %v14704_v28  ;;  %v14766_v27 = vcombine.low %v637_v15, %v641_v16  ;;  %v14768_v28 = vcombine.low %v638_v17, %v642_v18  ;;  %v701_v15 = vld [vmem:[%s22638_s1 + $0x1440] sm:$0xff]  ;;  %v702_v18 = vld [vmem:[%s22638_s1 + $0x1448] sm:$0xff] }
 0x10b   :  { %9808 = vmatprep.subr.bf16.mxu0 %v14711_v29  ;;  %10367 = vmatprep.subr.bf16.mxu1 %v14713_v30  ;;  %v14775_v29 = vcombine.high %v645_v23, %v649_v24  ;;  %v14777_v30 = vcombine.high %v646_v25, %v650_v26  ;;  %v705_v16 = vld [vmem:[%s22638_s1 + $0x1460] sm:$0xff] }
 0x10c   :  { %v16342_v17 = vld [vmem:[%s22639_s0 + $0x20] ss:$100 sps:$4 sm:$0xff]  }
 0x10e   :  { %9809 = vmatpush1.bf16.msra.mxu0 %v14710_v35  ;;  %10368 = vmatpush1.bf16.msra.mxu1 %v14712_v36  ;;  %v14774_v35 = vcombine.low %v645_v23, %v649_v24  ;;  %v14776_v36 = vcombine.low %v646_v25, %v650_v26  ;;  %v709_v24 = vld [vmem:[%s22638_s1 + $0x1480] sm:$0xff]  ;;  %v16343_v26 = vld [vmem:[%s22639_s0 + $0x2c] ss:$100 sps:$4 sm:$0xff]  }
 0x10f   :  { %9810 = vmatprep.subr.bf16.mxu0 %v14719_v37  ;;  %10369 = vmatprep.subr.bf16.mxu1 %v14721_v38  ;;  %v14783_v37 = vcombine.high %v653_v31, %v657_v32  ;;  %v14785_v38 = vcombine.high %v654_v33, %v658_v34  ;;  %v713_v25 = vld [vmem:[%s22638_s1 + $0x14a0] sm:$0xff] }
 0x112   :  { %9811 = vmatpush1.bf16.msra.mxu0 %v14718_v43  ;;  %10370 = vmatpush1.bf16.msra.mxu1 %v14720_v44  ;;  %v14782_v43 = vcombine.low %v653_v31, %v657_v32  ;;  %v14784_v44 = vcombine.low %v654_v33, %v658_v34  ;;  %v14839_v31 = vcombine.high %v709_v24, %v713_v25  ;;  %v717_v33 = vld [vmem:[%s22638_s1 + $0x14c0] sm:$0xff] }
 0x113   :  { %9812 = vmatprep.subr.bf16.mxu0 %v14727_v45  ;;  %10371 = vmatprep.subr.bf16.mxu1 %v14729_v46  ;;  %v14791_v45 = vcombine.high %v661_v39, %v665_v40  ;;  %v14793_v46 = vcombine.high %v662_v41, %v666_v42  ;;  %v721_v34 = vld [vmem:[%s22638_s1 + $0x14e0] sm:$0xff] }
 0x116   :  { %9813 = vmatpush1.bf16.msra.mxu0 %v14726_v51  ;;  %10372 = vmatpush1.bf16.msra.mxu1 %v14728_v52  ;;  %v14790_v51 = vcombine.low %v661_v39, %v665_v40  ;;  %v14792_v52 = vcombine.low %v662_v41, %v666_v42  ;;  %v14847_v39 = vcombine.high %v717_v33, %v721_v34  ;;  %v725_v41 = vld [vmem:[%s22638_s1 + $0x1500] sm:$0xff] }
 0x117   :  { %9814 = vmatprep.subr.bf16.mxu0 %v14735_v53  ;;  %10373 = vmatprep.subr.bf16.mxu1 %v14737_v54  ;;  %v14799_v53 = vcombine.high %v669_v47, %v673_v48  ;;  %v14801_v54 = vcombine.high %v670_v49, %v674_v50  ;;  %v729_v42 = vld [vmem:[%s22638_s1 + $0x1520] sm:$0xff] }
 0x11a   :  { %9815 = vmatpush1.bf16.msra.mxu0 %v14734_v59  ;;  %10374 = vmatpush1.bf16.msra.mxu1 %v14736_v60  ;;  %v14798_v59 = vcombine.low %v669_v47, %v673_v48  ;;  %v14800_v60 = vcombine.low %v670_v49, %v674_v50  ;;  %v14855_v47 = vcombine.high %v725_v41, %v729_v42  ;;  %v733_v49 = vld [vmem:[%s22638_s1 + $0x1540] sm:$0xff] }
 0x11b   :  { %9816 = vmatprep.subr.bf16.mxu0 %v14743_v61  ;;  %10375 = vmatprep.subr.bf16.mxu1 %v14745_v62  ;;  %v14807_v61 = vcombine.high %v677_v55, %v681_v56  ;;  %v14809_v62 = vcombine.high %v678_v57, %v682_v58  ;;  %v737_v50 = vld [vmem:[%s22638_s1 + $0x1560] sm:$0xff] }
 0x11e   :  { %9817 = vmatpush1.bf16.msra.mxu0 %v14742_v3  ;;  %10376 = vmatpush1.bf16.msra.mxu1 %v14744_v4  ;;  %v14806_v3 = vcombine.low %v677_v55, %v681_v56  ;;  %v14808_v4 = vcombine.low %v678_v57, %v682_v58  ;;  %v14863_v55 = vcombine.high %v733_v49, %v737_v50  ;;  %v741_v57 = vld [vmem:[%s22638_s1 + $0x1580] sm:$0xff] }
 0x11f   :  { %9818 = vmatprep.subr.bf16.mxu0 %v14751_v5  ;;  %10377 = vmatprep.subr.bf16.mxu1 %v14753_v6  ;;  %v14815_v5 = vcombine.high %v685_v63, %v689_v0  ;;  %v14817_v6 = vcombine.high %v686_v1, %v690_v2  ;;  %v745_v58 = vld [vmem:[%s22638_s1 + $0x15a0] sm:$0xff] }
 0x122   :  { %9819 = vmatpush1.bf16.msra.mxu0 %v14750_v11  ;;  %10378 = vmatpush1.bf16.msra.mxu1 %v14752_v12  ;;  %v14814_v11 = vcombine.low %v685_v63, %v689_v0  ;;  %v14816_v12 = vcombine.low %v686_v1, %v690_v2  ;;  %v14871_v63 = vcombine.high %v741_v57, %v745_v58  ;;  %v749_v1 = vld [vmem:[%s22638_s1 + $0x15c0] sm:$0xff] }
 0x123   :  { %9820 = vmatprep.subr.bf16.mxu0 %v14759_v13  ;;  %10379 = vmatprep.subr.bf16.mxu1 %v14761_v14  ;;  %v14823_v13 = vcombine.high %v693_v7, %v697_v8  ;;  %v14825_v14 = vcombine.high %v694_v9, %v698_v10  ;;  %v753_v2 = vld [vmem:[%s22638_s1 + $0x15e0] sm:$0xff] }
 0x126   :  { %9821 = vmatpush1.bf16.msra.mxu0 %v14758_v19  ;;  %10380 = vmatpush1.bf16.msra.mxu1 %v14760_v20  ;;  %v706_v19 = vld [vmem:[%s22638_s1 + $0x1468] sm:$0xff]  ;;  %v14822_v20 = vcombine.low %v693_v7, %v697_v8  ;;  %v14879_v7 = vcombine.high %v749_v1, %v753_v2 }
 0x127   :  { %9822 = vmatprep.subr.bf16.mxu0 %v14767_v21  ;;  %10381 = vmatprep.subr.bf16.mxu1 %v14769_v22  ;;  %v14824_v21 = vcombine.low %v694_v9, %v698_v10  ;;  %v14831_v22 = vcombine.high %v701_v15, %v705_v16  ;;  %v14833_v23 = vcombine.high %v702_v18, %v706_v19  ;;  %v757_v9 = vld [vmem:[%s22638_s1 + $0x1600] sm:$0xff] }
 0x128   :  { %v761_v10 = vld [vmem:[%s22638_s1 + $0x1620] sm:$0xff] }
 0x12a   :  { %9823 = vmatpush1.bf16.msra.mxu0 %v14766_v27  ;;  %10382 = vmatpush1.bf16.msra.mxu1 %v14768_v28  ;;  %v710_v27 = vld [vmem:[%s22638_s1 + $0x1488] sm:$0xff] }
 0x12b   :  { %9824 = vmatprep.subr.bf16.mxu0 %v14775_v29  ;;  %10383 = vmatprep.subr.bf16.mxu1 %v14777_v30  ;;  %v714_v28 = vld [vmem:[%s22638_s1 + $0x14a8] sm:$0xff]  ;;  %v14830_v29 = vcombine.low %v701_v15, %v705_v16  ;;  %v14832_v30 = vcombine.low %v702_v18, %v706_v19  ;;  %v14887_v15 = vcombine.high %v757_v9, %v761_v10  ;;  %v769_v18 = vld [vmem:[%s22638_s1 + $0x1660] sm:$0xff] }
 0x12c   :  { %v14841_v32 = vcombine.high %v710_v27, %v714_v28  ;;  %v766_v19 = vld [vmem:[%s22638_s1 + $0x1648] sm:$0xff] }
 0x12e   :  { %9825 = vmatpush1.bf16.msra.mxu0 %v14774_v35  ;;  %10384 = vmatpush1.bf16.msra.mxu1 %v14776_v36  ;;  %v718_v35 = vld [vmem:[%s22638_s1 + $0x14c8] sm:$0xff] }
 0x12f   :  { %9826 = vmatprep.subr.bf16.mxu0 %v14783_v37  ;;  %10385 = vmatprep.subr.bf16.mxu1 %v14785_v38  ;;  %v722_v36 = vld [vmem:[%s22638_s1 + $0x14e8] sm:$0xff]  ;;  %v14838_v37 = vcombine.low %v709_v24, %v713_v25  ;;  %v14840_v38 = vcombine.low %v710_v27, %v714_v28  ;;  %v773_v25 = vld [vmem:[%s22638_s1 + $0x1680] sm:$0xff] }
 0x130   :  { %v14849_v40 = vcombine.high %v718_v35, %v722_v36  ;;  %v774_v27 = vld [vmem:[%s22638_s1 + $0x1688] sm:$0xff] }
 0x131   :  { %v778_v28 = vld [vmem:[%s22638_s1 + $0x16a8] sm:$0xff] }
 0x132   :  { %9827 = vmatpush1.bf16.msra.mxu0 %v14782_v43  ;;  %10386 = vmatpush1.bf16.msra.mxu1 %v14784_v44  ;;  %v726_v43 = vld [vmem:[%s22638_s1 + $0x1508] sm:$0xff] }
 0x133   :  { %9828 = vmatprep.subr.bf16.mxu0 %v14791_v45  ;;  %10387 = vmatprep.subr.bf16.mxu1 %v14793_v46  ;;  %v730_v44 = vld [vmem:[%s22638_s1 + $0x1528] sm:$0xff]  ;;  %v14846_v45 = vcombine.low %v717_v33, %v721_v34  ;;  %v14848_v46 = vcombine.low %v718_v35, %v722_v36  ;;  %v781_v33 = vld [vmem:[%s22638_s1 + $0x16c0] sm:$0xff] }
 0x134   :  { %v14857_v48 = vcombine.high %v726_v43, %v730_v44  ;;  %v785_v34 = vld [vmem:[%s22638_s1 + $0x16e0] sm:$0xff]  ;;  %v782_v35 = vld [vmem:[%s22638_s1 + $0x16c8] sm:$0xff] }
 0x135   :  { %v786_v36 = vld [vmem:[%s22638_s1 + $0x16e8] sm:$0xff] }
 0x136   :  { %9829 = vmatpush1.bf16.msra.mxu0 %v14790_v51  ;;  %10388 = vmatpush1.bf16.msra.mxu1 %v14792_v52  ;;  %v734_v51 = vld [vmem:[%s22638_s1 + $0x1548] sm:$0xff] }
 0x137   :  { %9830 = vmatprep.subr.bf16.mxu0 %v14799_v53  ;;  %10389 = vmatprep.subr.bf16.mxu1 %v14801_v54  ;;  %v738_v52 = vld [vmem:[%s22638_s1 + $0x1568] sm:$0xff]  ;;  %v14854_v53 = vcombine.low %v725_v41, %v729_v42  ;;  %v14856_v54 = vcombine.low %v726_v43, %v730_v44  ;;  %v789_v41 = vld [vmem:[%s22638_s1 + $0x1700] sm:$0xff] }
 0x138   :  { %v14865_v56 = vcombine.high %v734_v51, %v738_v52  ;;  %v793_v42 = vld [vmem:[%s22638_s1 + $0x1720] sm:$0xff]  ;;  %v790_v43 = vld [vmem:[%s22638_s1 + $0x1708] sm:$0xff] }
 0x139   :  { %v794_v44 = vld [vmem:[%s22638_s1 + $0x1728] sm:$0xff] }
 0x13a   :  { %9831 = vmatpush1.bf16.msra.mxu0 %v14798_v59  ;;  %10390 = vmatpush1.bf16.msra.mxu1 %v14800_v60  ;;  %v742_v59 = vld [vmem:[%s22638_s1 + $0x1588] sm:$0xff] }
 0x13b   :  { %9832 = vmatprep.subr.bf16.mxu0 %v14807_v61  ;;  %10391 = vmatprep.subr.bf16.mxu1 %v14809_v62  ;;  %v746_v60 = vld [vmem:[%s22638_s1 + $0x15a8] sm:$0xff]  ;;  %v14862_v61 = vcombine.low %v733_v49, %v737_v50  ;;  %v14864_v62 = vcombine.low %v734_v51, %v738_v52  ;;  %v797_v49 = vld [vmem:[%s22638_s1 + $0x1740] sm:$0xff] }
 0x13c   :  { %v14873_v0 = vcombine.high %v742_v59, %v746_v60  ;;  %v801_v50 = vld [vmem:[%s22638_s1 + $0x1760] sm:$0xff]  ;;  %v798_v51 = vld [vmem:[%s22638_s1 + $0x1748] sm:$0xff] }
 0x13d   :  { %v802_v52 = vld [vmem:[%s22638_s1 + $0x1768] sm:$0xff] }
 0x13e   :  { %9833 = vmatpush1.bf16.msra.mxu0 %v14806_v3  ;;  %10392 = vmatpush1.bf16.msra.mxu1 %v14808_v4  ;;  %v750_v3 = vld [vmem:[%s22638_s1 + $0x15c8] sm:$0xff] }
 0x13f   :  { %9834 = vmatprep.subr.bf16.mxu0 %v14815_v5  ;;  %10393 = vmatprep.subr.bf16.mxu1 %v14817_v6  ;;  %v754_v4 = vld [vmem:[%s22638_s1 + $0x15e8] sm:$0xff]  ;;  %v14870_v5 = vcombine.low %v741_v57, %v745_v58  ;;  %v14872_v6 = vcombine.low %v742_v59, %v746_v60  ;;  %v805_v57 = vld [vmem:[%s22638_s1 + $0x1780] sm:$0xff] }
 0x140   :  { %v14881_v8 = vcombine.high %v750_v3, %v754_v4  ;;  %v809_v58 = vld [vmem:[%s22638_s1 + $0x17a0] sm:$0xff]  ;;  %v806_v59 = vld [vmem:[%s22638_s1 + $0x1788] sm:$0xff] }
 0x141   :  { %v810_v60 = vld [vmem:[%s22638_s1 + $0x17a8] sm:$0xff] }
 0x142   :  { %9835 = vmatpush1.bf16.msra.mxu0 %v14814_v11  ;;  %10394 = vmatpush1.bf16.msra.mxu1 %v14816_v12  ;;  %v758_v11 = vld [vmem:[%s22638_s1 + $0x1608] sm:$0xff] }
 0x143   :  { %9847 = vmatprep.subr.bf16.mxu0 %v14823_v13  ;;  %10406 = vmatprep.subr.bf16.mxu1 %v14825_v14  ;;  %v762_v12 = vld [vmem:[%s22638_s1 + $0x1628] sm:$0xff]  ;;  %v14878_v13 = vcombine.low %v749_v1, %v753_v2  ;;  %v14880_v14 = vcombine.low %v750_v3, %v754_v4  ;;  %v813_v1 = vld [vmem:[%s22638_s1 + $0x17c0] sm:$0xff] }
 0x144   :  { %v14889_v16 = vcombine.high %v758_v11, %v762_v12  ;;  %v817_v2 = vld [vmem:[%s22638_s1 + $0x17e0] sm:$0xff]  ;;  %v814_v3 = vld [vmem:[%s22638_s1 + $0x17c8] sm:$0xff] }
 0x145   :  { %9837 = vmatmul.mubr.bf16.vlgmr.msra.gmra.mrb[0].mxu0 %v16342_v17  ;;  %10396 = vmatmul.mubr.bf16.vlgmr.msra.gmra.mrb[0].mxu1 %v16342_v17  ;;  %v765_v17 = vld [vmem:[%s22638_s1 + $0x1640] sm:$0xff]  ;;  %v818_v4 = vld [vmem:[%s22638_s1 + $0x17e8] sm:$0xff] }
 0x146   :  { %9848 = vmatpush1.bf16.msra.mxu0 %v14822_v20  ;;  %10407 = vmatpush1.bf16.msra.mxu1 %v14824_v21  ;;  %v770_v20 = vld [vmem:[%s22638_s1 + $0x1668] sm:$0xff]  ;;  %v14886_v21 = vcombine.low %v757_v9, %v761_v10  ;;  %v821_v9 = vld [vmem:[%s22638_s1 + $0x1800] sm:$0xff] }
 0x147   :  { %9849 = vmatprep.subr.bf16.mxu0 %v14831_v22  ;;  %10408 = vmatprep.subr.bf16.mxu1 %v14833_v23  ;;  %v14888_v22 = vcombine.low %v758_v11, %v762_v12  ;;  %v14895_v23 = vcombine.high %v765_v17, %v769_v18  ;;  %v14897_v24 = vcombine.high %v766_v19, %v770_v20  ;;  %v825_v10 = vld [vmem:[%s22638_s1 + $0x1820] sm:$0xff]  ;;  %v822_v11 = vld [vmem:[%s22638_s1 + $0x1808] sm:$0xff] }
 0x148   :  { %9879 = vmatprep.mubr.bf16.mxu0 %v16343_v26  ;;  %10438 = vmatprep.mubr.bf16.mxu1 %v16343_v26  ;;  %v777_v26 = vld [vmem:[%s22638_s1 + $0x16a0] sm:$0xff]  ;;  %v826_v12 = vld [vmem:[%s22638_s1 + $0x1828] sm:$0xff] }
 0x14a   :  { %9850 = vmatpush1.bf16.msra.mxu0 %v14830_v29  ;;  %10409 = vmatpush1.bf16.msra.mxu1 %v14832_v30  ;;  %v14894_v29 = vcombine.low %v765_v17, %v769_v18  ;;  %v14896_v30 = vcombine.low %v766_v19, %v770_v20  ;;  %v829_v17 = vld [vmem:[%s22638_s1 + $0x1840] sm:$0xff]  ;;  %v16345_v19 = vld [vmem:[%s22639_s0 + $0x28] ss:$100 sps:$4 sm:$0xff]  }
 0x14b   :  { %9851 = vmatprep.subr.bf16.mxu0 %v14839_v31  ;;  %10410 = vmatprep.subr.bf16.mxu1 %v14841_v32  ;;  %v14903_v31 = vcombine.high %v773_v25, %v777_v26  ;;  %v14905_v32 = vcombine.high %v774_v27, %v778_v28  ;;  %v833_v18 = vld [vmem:[%s22638_s1 + $0x1860] sm:$0xff]  ;;  %v830_v20 = vld [vmem:[%s22638_s1 + $0x1848] sm:$0xff] }
 0x14e   :  { %9852 = vmatpush1.bf16.msra.mxu0 %v14838_v37  ;;  %10411 = vmatpush1.bf16.msra.mxu1 %v14840_v38  ;;  %v14902_v37 = vcombine.low %v773_v25, %v777_v26  ;;  %v14904_v38 = vcombine.low %v774_v27, %v778_v28  ;;  %v837_v26 = vld [vmem:[%s22638_s1 + $0x1880] sm:$0xff]  ;;  %v16346_v28 = vld [vmem:[%s22639_s0 + $0x34] ss:$100 sps:$4 sm:$0xff]  }
 0x14f   :  { %9853 = vmatprep.subr.bf16.mxu0 %v14847_v39  ;;  %10412 = vmatprep.subr.bf16.mxu1 %v14849_v40  ;;  %v14911_v39 = vcombine.high %v781_v33, %v785_v34  ;;  %v14913_v40 = vcombine.high %v782_v35, %v786_v36  ;;  %v841_v27 = vld [vmem:[%s22638_s1 + $0x18a0] sm:$0xff] }
 0x152   :  { %9854 = vmatpush1.bf16.msra.mxu0 %v14846_v45  ;;  %10413 = vmatpush1.bf16.msra.mxu1 %v14848_v46  ;;  %v14910_v45 = vcombine.low %v781_v33, %v785_v34  ;;  %v14912_v46 = vcombine.low %v782_v35, %v786_v36  ;;  %v14967_v33 = vcombine.high %v837_v26, %v841_v27  ;;  %v845_v35 = vld [vmem:[%s22638_s1 + $0x18c0] sm:$0xff] }
 0x153   :  { %9855 = vmatprep.subr.bf16.mxu0 %v14855_v47  ;;  %10414 = vmatprep.subr.bf16.mxu1 %v14857_v48  ;;  %v14919_v47 = vcombine.high %v789_v41, %v793_v42  ;;  %v14921_v48 = vcombine.high %v790_v43, %v794_v44  ;;  %v849_v36 = vld [vmem:[%s22638_s1 + $0x18e0] sm:$0xff] }
 0x156   :  { %9856 = vmatpush1.bf16.msra.mxu0 %v14854_v53  ;;  %10415 = vmatpush1.bf16.msra.mxu1 %v14856_v54  ;;  %v14918_v53 = vcombine.low %v789_v41, %v793_v42  ;;  %v14920_v54 = vcombine.low %v790_v43, %v794_v44  ;;  %v14975_v41 = vcombine.high %v845_v35, %v849_v36  ;;  %v853_v43 = vld [vmem:[%s22638_s1 + $0x1900] sm:$0xff] }
 0x157   :  { %9857 = vmatprep.subr.bf16.mxu0 %v14863_v55  ;;  %10416 = vmatprep.subr.bf16.mxu1 %v14865_v56  ;;  %v14927_v55 = vcombine.high %v797_v49, %v801_v50  ;;  %v14929_v56 = vcombine.high %v798_v51, %v802_v52  ;;  %v857_v44 = vld [vmem:[%s22638_s1 + $0x1920] sm:$0xff] }
 0x15a   :  { %9858 = vmatpush1.bf16.msra.mxu0 %v14862_v61  ;;  %10417 = vmatpush1.bf16.msra.mxu1 %v14864_v62  ;;  %v14926_v61 = vcombine.low %v797_v49, %v801_v50  ;;  %v14928_v62 = vcombine.low %v798_v51, %v802_v52  ;;  %v14983_v49 = vcombine.high %v853_v43, %v857_v44  ;;  %v861_v51 = vld [vmem:[%s22638_s1 + $0x1940] sm:$0xff] }
 0x15b   :  { %9859 = vmatprep.subr.bf16.mxu0 %v14871_v63  ;;  %10418 = vmatprep.subr.bf16.mxu1 %v14873_v0  ;;  %v14935_v63 = vcombine.high %v805_v57, %v809_v58  ;;  %v14937_v0 = vcombine.high %v806_v59, %v810_v60  ;;  %v865_v52 = vld [vmem:[%s22638_s1 + $0x1960] sm:$0xff] }
 0x15e   :  { %9860 = vmatpush1.bf16.msra.mxu0 %v14870_v5  ;;  %10419 = vmatpush1.bf16.msra.mxu1 %v14872_v6  ;;  %v14934_v5 = vcombine.low %v805_v57, %v809_v58  ;;  %v14936_v6 = vcombine.low %v806_v59, %v810_v60  ;;  %v14991_v57 = vcombine.high %v861_v51, %v865_v52  ;;  %v869_v59 = vld [vmem:[%s22638_s1 + $0x1980] sm:$0xff] }
 0x15f   :  { %9861 = vmatprep.subr.bf16.mxu0 %v14879_v7  ;;  %10420 = vmatprep.subr.bf16.mxu1 %v14881_v8  ;;  %v14943_v7 = vcombine.high %v813_v1, %v817_v2  ;;  %v14945_v8 = vcombine.high %v814_v3, %v818_v4  ;;  %v873_v60 = vld [vmem:[%s22638_s1 + $0x19a0] sm:$0xff] }
 0x162   :  { %9862 = vmatpush1.bf16.msra.mxu0 %v14878_v13  ;;  %10421 = vmatpush1.bf16.msra.mxu1 %v14880_v14  ;;  %v14942_v13 = vcombine.low %v813_v1, %v817_v2  ;;  %v14944_v14 = vcombine.low %v814_v3, %v818_v4  ;;  %v14999_v1 = vcombine.high %v869_v59, %v873_v60  ;;  %v877_v3 = vld [vmem:[%s22638_s1 + $0x19c0] sm:$0xff] }
 0x163   :  { %9863 = vmatprep.subr.bf16.mxu0 %v14887_v15  ;;  %10422 = vmatprep.subr.bf16.mxu1 %v14889_v16  ;;  %v14951_v15 = vcombine.high %v821_v9, %v825_v10  ;;  %v14953_v16 = vcombine.high %v822_v11, %v826_v12  ;;  %v881_v4 = vld [vmem:[%s22638_s1 + $0x19e0] sm:$0xff] }
 0x166   :  { %9864 = vmatpush1.bf16.msra.mxu0 %v14886_v21  ;;  %10423 = vmatpush1.bf16.msra.mxu1 %v14888_v22  ;;  %v834_v21 = vld [vmem:[%s22638_s1 + $0x1868] sm:$0xff]  ;;  %v14950_v22 = vcombine.low %v821_v9, %v825_v10  ;;  %v15007_v9 = vcombine.high %v877_v3, %v881_v4 }
 0x167   :  { %9865 = vmatprep.subr.bf16.mxu0 %v14895_v23  ;;  %10424 = vmatprep.subr.bf16.mxu1 %v14897_v24  ;;  %v14952_v23 = vcombine.low %v822_v11, %v826_v12  ;;  %v14959_v24 = vcombine.high %v829_v17, %v833_v18  ;;  %v14961_v25 = vcombine.high %v830_v20, %v834_v21  ;;  %v885_v11 = vld [vmem:[%s22638_s1 + $0x1a00] sm:$0xff] }
 0x168   :  { %v889_v12 = vld [vmem:[%s22638_s1 + $0x1a20] sm:$0xff] }
 0x16a   :  { %9866 = vmatpush1.bf16.msra.mxu0 %v14894_v29  ;;  %10425 = vmatpush1.bf16.msra.mxu1 %v14896_v30  ;;  %v838_v29 = vld [vmem:[%s22638_s1 + $0x1888] sm:$0xff] }
 0x16b   :  { %9867 = vmatprep.subr.bf16.mxu0 %v14903_v31  ;;  %10426 = vmatprep.subr.bf16.mxu1 %v14905_v32  ;;  %v842_v30 = vld [vmem:[%s22638_s1 + $0x18a8] sm:$0xff]  ;;  %v14958_v31 = vcombine.low %v829_v17, %v833_v18  ;;  %v14960_v32 = vcombine.low %v830_v20, %v834_v21  ;;  %v15015_v17 = vcombine.high %v885_v11, %v889_v12  ;;  %v897_v20 = vld [vmem:[%s22638_s1 + $0x1a60] sm:$0xff] }
 0x16c   :  { %v14969_v34 = vcombine.high %v838_v29, %v842_v30  ;;  %v894_v21 = vld [vmem:[%s22638_s1 + $0x1a48] sm:$0xff] }
 0x16e   :  { %9868 = vmatpush1.bf16.msra.mxu0 %v14902_v37  ;;  %10427 = vmatpush1.bf16.msra.mxu1 %v14904_v38  ;;  %v846_v37 = vld [vmem:[%s22638_s1 + $0x18c8] sm:$0xff] }
 0x16f   :  { %9869 = vmatprep.subr.bf16.mxu0 %v14911_v39  ;;  %10428 = vmatprep.subr.bf16.mxu1 %v14913_v40  ;;  %v850_v38 = vld [vmem:[%s22638_s1 + $0x18e8] sm:$0xff]  ;;  %v14966_v39 = vcombine.low %v837_v26, %v841_v27  ;;  %v14968_v40 = vcombine.low %v838_v29, %v842_v30  ;;  %v901_v27 = vld [vmem:[%s22638_s1 + $0x1a80] sm:$0xff] }
 0x170   :  { %v14977_v42 = vcombine.high %v846_v37, %v850_v38  ;;  %v902_v29 = vld [vmem:[%s22638_s1 + $0x1a88] sm:$0xff] }
 0x171   :  { %v906_v30 = vld [vmem:[%s22638_s1 + $0x1aa8] sm:$0xff] }
 0x172   :  { %9870 = vmatpush1.bf16.msra.mxu0 %v14910_v45  ;;  %10429 = vmatpush1.bf16.msra.mxu1 %v14912_v46  ;;  %v854_v45 = vld [vmem:[%s22638_s1 + $0x1908] sm:$0xff] }
 0x173   :  { %9871 = vmatprep.subr.bf16.mxu0 %v14919_v47  ;;  %10430 = vmatprep.subr.bf16.mxu1 %v14921_v48  ;;  %v858_v46 = vld [vmem:[%s22638_s1 + $0x1928] sm:$0xff]  ;;  %v14974_v47 = vcombine.low %v845_v35, %v849_v36  ;;  %v14976_v48 = vcombine.low %v846_v37, %v850_v38  ;;  %v909_v35 = vld [vmem:[%s22638_s1 + $0x1ac0] sm:$0xff] }
 0x174   :  { %v14985_v50 = vcombine.high %v854_v45, %v858_v46  ;;  %v913_v36 = vld [vmem:[%s22638_s1 + $0x1ae0] sm:$0xff]  ;;  %v910_v37 = vld [vmem:[%s22638_s1 + $0x1ac8] sm:$0xff] }
 0x175   :  { %v914_v38 = vld [vmem:[%s22638_s1 + $0x1ae8] sm:$0xff] }
 0x176   :  { %9872 = vmatpush1.bf16.msra.mxu0 %v14918_v53  ;;  %10431 = vmatpush1.bf16.msra.mxu1 %v14920_v54  ;;  %v862_v53 = vld [vmem:[%s22638_s1 + $0x1948] sm:$0xff] }
 0x177   :  { %9873 = vmatprep.subr.bf16.mxu0 %v14927_v55  ;;  %10432 = vmatprep.subr.bf16.mxu1 %v14929_v56  ;;  %v866_v54 = vld [vmem:[%s22638_s1 + $0x1968] sm:$0xff]  ;;  %v14982_v55 = vcombine.low %v853_v43, %v857_v44  ;;  %v14984_v56 = vcombine.low %v854_v45, %v858_v46  ;;  %v917_v43 = vld [vmem:[%s22638_s1 + $0x1b00] sm:$0xff] }
 0x178   :  { %v14993_v58 = vcombine.high %v862_v53, %v866_v54  ;;  %v921_v44 = vld [vmem:[%s22638_s1 + $0x1b20] sm:$0xff]  ;;  %v918_v45 = vld [vmem:[%s22638_s1 + $0x1b08] sm:$0xff] }
 0x179   :  { %v922_v46 = vld [vmem:[%s22638_s1 + $0x1b28] sm:$0xff] }
 0x17a   :  { %9874 = vmatpush1.bf16.msra.mxu0 %v14926_v61  ;;  %10433 = vmatpush1.bf16.msra.mxu1 %v14928_v62  ;;  %v870_v61 = vld [vmem:[%s22638_s1 + $0x1988] sm:$0xff] }
 0x17b   :  { %9875 = vmatprep.subr.bf16.mxu0 %v14935_v63  ;;  %10434 = vmatprep.subr.bf16.mxu1 %v14937_v0  ;;  %v874_v62 = vld [vmem:[%s22638_s1 + $0x19a8] sm:$0xff]  ;;  %v14990_v63 = vcombine.low %v861_v51, %v865_v52  ;;  %v14992_v0 = vcombine.low %v862_v53, %v866_v54  ;;  %v925_v51 = vld [vmem:[%s22638_s1 + $0x1b40] sm:$0xff] }
 0x17c   :  { %v15001_v2 = vcombine.high %v870_v61, %v874_v62  ;;  %v929_v52 = vld [vmem:[%s22638_s1 + $0x1b60] sm:$0xff]  ;;  %v926_v53 = vld [vmem:[%s22638_s1 + $0x1b48] sm:$0xff] }
 0x17d   :  { %v930_v54 = vld [vmem:[%s22638_s1 + $0x1b68] sm:$0xff] }
 0x17e   :  { %9876 = vmatpush1.bf16.msra.mxu0 %v14934_v5  ;;  %10435 = vmatpush1.bf16.msra.mxu1 %v14936_v6  ;;  %v878_v5 = vld [vmem:[%s22638_s1 + $0x19c8] sm:$0xff] }
 0x17f   :  { %9877 = vmatprep.subr.bf16.mxu0 %v14943_v7  ;;  %10436 = vmatprep.subr.bf16.mxu1 %v14945_v8  ;;  %v882_v6 = vld [vmem:[%s22638_s1 + $0x19e8] sm:$0xff]  ;;  %v14998_v7 = vcombine.low %v869_v59, %v873_v60  ;;  %v15000_v8 = vcombine.low %v870_v61, %v874_v62  ;;  %v933_v59 = vld [vmem:[%s22638_s1 + $0x1b80] sm:$0xff] }
 0x180   :  { %v15009_v10 = vcombine.high %v878_v5, %v882_v6  ;;  %v937_v60 = vld [vmem:[%s22638_s1 + $0x1ba0] sm:$0xff]  ;;  %v934_v61 = vld [vmem:[%s22638_s1 + $0x1b88] sm:$0xff] }
 0x181   :  { %v938_v62 = vld [vmem:[%s22638_s1 + $0x1ba8] sm:$0xff] }
 0x182   :  { %9878 = vmatpush1.bf16.msra.mxu0 %v14942_v13  ;;  %10437 = vmatpush1.bf16.msra.mxu1 %v14944_v14  ;;  %v886_v13 = vld [vmem:[%s22638_s1 + $0x1a08] sm:$0xff] }
 0x183   :  { %9890 = vmatprep.subr.bf16.mxu0 %v14951_v15  ;;  %10449 = vmatprep.subr.bf16.mxu1 %v14953_v16  ;;  %v890_v14 = vld [vmem:[%s22638_s1 + $0x1a28] sm:$0xff]  ;;  %v15006_v15 = vcombine.low %v877_v3, %v881_v4  ;;  %v15008_v16 = vcombine.low %v878_v5, %v882_v6  ;;  %v941_v3 = vld [vmem:[%s22638_s1 + $0x1bc0] sm:$0xff] }
 0x184   :  { %v15017_v18 = vcombine.high %v886_v13, %v890_v14  ;;  %v945_v4 = vld [vmem:[%s22638_s1 + $0x1be0] sm:$0xff]  ;;  %v942_v5 = vld [vmem:[%s22638_s1 + $0x1bc8] sm:$0xff] }
 0x185   :  { %9880 = vmatmul.mubr.bf16.vlgmr.msra.gmra.mrb[0].mxu0 %v16345_v19  ;;  %10439 = vmatmul.mubr.bf16.vlgmr.msra.gmra.mrb[0].mxu1 %v16345_v19  ;;  %v893_v19 = vld [vmem:[%s22638_s1 + $0x1a40] sm:$0xff]  ;;  %v946_v6 = vld [vmem:[%s22638_s1 + $0x1be8] sm:$0xff] }
 0x186   :  { %9891 = vmatpush1.bf16.msra.mxu0 %v14950_v22  ;;  %10450 = vmatpush1.bf16.msra.mxu1 %v14952_v23  ;;  %v898_v22 = vld [vmem:[%s22638_s1 + $0x1a68] sm:$0xff]  ;;  %v15014_v23 = vcombine.low %v885_v11, %v889_v12  ;;  %v949_v11 = vld [vmem:[%s22638_s1 + $0x1c00] sm:$0xff] }
 0x187   :  { %9892 = vmatprep.subr.bf16.mxu0 %v14959_v24  ;;  %10451 = vmatprep.subr.bf16.mxu1 %v14961_v25  ;;  %v15016_v24 = vcombine.low %v886_v13, %v890_v14  ;;  %v15023_v25 = vcombine.high %v893_v19, %v897_v20  ;;  %v15025_v26 = vcombine.high %v894_v21, %v898_v22  ;;  %v953_v12 = vld [vmem:[%s22638_s1 + $0x1c20] sm:$0xff]  ;;  %v950_v13 = vld [vmem:[%s22638_s1 + $0x1c08] sm:$0xff] }
 0x188   :  { %9922 = vmatprep.mubr.bf16.mxu0 %v16346_v28  ;;  %10481 = vmatprep.mubr.bf16.mxu1 %v16346_v28  ;;  %v905_v28 = vld [vmem:[%s22638_s1 + $0x1aa0] sm:$0xff]  ;;  %v954_v14 = vld [vmem:[%s22638_s1 + $0x1c28] sm:$0xff] }
 0x18a   :  { %9893 = vmatpush1.bf16.msra.mxu0 %v14958_v31  ;;  %10452 = vmatpush1.bf16.msra.mxu1 %v14960_v32  ;;  %v15022_v31 = vcombine.low %v893_v19, %v897_v20  ;;  %v15024_v32 = vcombine.low %v894_v21, %v898_v22  ;;  %v957_v19 = vld [vmem:[%s22638_s1 + $0x1c40] sm:$0xff]  ;;  %v16348_v21 = vld [vmem:[%s22639_s0 + $0x30] ss:$100 sps:$4 sm:$0xff]   ;;  %v958_v22 = vld [vmem:[%s22638_s1 + $0x1c48] sm:$0xff] }
 0x18b   :  { %9894 = vmatprep.subr.bf16.mxu0 %v14967_v33  ;;  %10453 = vmatprep.subr.bf16.mxu1 %v14969_v34  ;;  %v15031_v33 = vcombine.high %v901_v27, %v905_v28  ;;  %v15033_v34 = vcombine.high %v902_v29, %v906_v30  ;;  %v961_v20 = vld [vmem:[%s22638_s1 + $0x1c60] sm:$0xff] }
 0x18e   :  { %9895 = vmatpush1.bf16.msra.mxu0 %v14966_v39  ;;  %10454 = vmatpush1.bf16.msra.mxu1 %v14968_v40  ;;  %v15030_v39 = vcombine.low %v901_v27, %v905_v28  ;;  %v15032_v40 = vcombine.low %v902_v29, %v906_v30  ;;  %v965_v28 = vld [vmem:[%s22638_s1 + $0x1c80] sm:$0xff] }
 0x18f   :  { %9896 = vmatprep.subr.bf16.mxu0 %v14975_v41  ;;  %10455 = vmatprep.subr.bf16.mxu1 %v14977_v42  ;;  %v15039_v41 = vcombine.high %v909_v35, %v913_v36  ;;  %v15041_v42 = vcombine.high %v910_v37, %v914_v38  ;;  %v969_v29 = vld [vmem:[%s22638_s1 + $0x1ca0] sm:$0xff] }
 0x190   :  { %v16349_v30 = vld [vmem:[%s22639_s0 + $0x3c] ss:$100 sps:$4 sm:$0xff]  }
 0x192   :  { %9897 = vmatpush1.bf16.msra.mxu0 %v14974_v47  ;;  %10456 = vmatpush1.bf16.msra.mxu1 %v14976_v48  ;;  %v15038_v47 = vcombine.low %v909_v35, %v913_v36  ;;  %v15040_v48 = vcombine.low %v910_v37, %v914_v38  ;;  %v15095_v35 = vcombine.high %v965_v28, %v969_v29  ;;  %v973_v37 = vld [vmem:[%s22638_s1 + $0x1cc0] sm:$0xff] }
 0x193   :  { %9898 = vmatprep.subr.bf16.mxu0 %v14983_v49  ;;  %10457 = vmatprep.subr.bf16.mxu1 %v14985_v50  ;;  %v15047_v49 = vcombine.high %v917_v43, %v921_v44  ;;  %v15049_v50 = vcombine.high %v918_v45, %v922_v46  ;;  %v977_v38 = vld [vmem:[%s22638_s1 + $0x1ce0] sm:$0xff] }
 0x196   :  { %9899 = vmatpush1.bf16.msra.mxu0 %v14982_v55  ;;  %10458 = vmatpush1.bf16.msra.mxu1 %v14984_v56  ;;  %v15046_v55 = vcombine.low %v917_v43, %v921_v44  ;;  %v15048_v56 = vcombine.low %v918_v45, %v922_v46  ;;  %v15103_v43 = vcombine.high %v973_v37, %v977_v38  ;;  %v981_v45 = vld [vmem:[%s22638_s1 + $0x1d00] sm:$0xff] }
 0x197   :  { %9900 = vmatprep.subr.bf16.mxu0 %v14991_v57  ;;  %10459 = vmatprep.subr.bf16.mxu1 %v14993_v58  ;;  %v15055_v57 = vcombine.high %v925_v51, %v929_v52  ;;  %v15057_v58 = vcombine.high %v926_v53, %v930_v54  ;;  %v985_v46 = vld [vmem:[%s22638_s1 + $0x1d20] sm:$0xff] }
 0x19a   :  { %9901 = vmatpush1.bf16.msra.mxu0 %v14990_v63  ;;  %10460 = vmatpush1.bf16.msra.mxu1 %v14992_v0  ;;  %v15054_v63 = vcombine.low %v925_v51, %v929_v52  ;;  %v15056_v0 = vcombine.low %v926_v53, %v930_v54  ;;  %v15111_v51 = vcombine.high %v981_v45, %v985_v46  ;;  %v989_v53 = vld [vmem:[%s22638_s1 + $0x1d40] sm:$0xff] }
 0x19b   :  { %9902 = vmatprep.subr.bf16.mxu0 %v14999_v1  ;;  %10461 = vmatprep.subr.bf16.mxu1 %v15001_v2  ;;  %v15063_v1 = vcombine.high %v933_v59, %v937_v60  ;;  %v15065_v2 = vcombine.high %v934_v61, %v938_v62  ;;  %v993_v54 = vld [vmem:[%s22638_s1 + $0x1d60] sm:$0xff] }
 0x19e   :  { %9903 = vmatpush1.bf16.msra.mxu0 %v14998_v7  ;;  %10462 = vmatpush1.bf16.msra.mxu1 %v15000_v8  ;;  %v15062_v7 = vcombine.low %v933_v59, %v937_v60  ;;  %v15064_v8 = vcombine.low %v934_v61, %v938_v62  ;;  %v15119_v59 = vcombine.high %v989_v53, %v993_v54  ;;  %v997_v61 = vld [vmem:[%s22638_s1 + $0x1d80] sm:$0xff] }
 0x19f   :  { %9904 = vmatprep.subr.bf16.mxu0 %v15007_v9  ;;  %10463 = vmatprep.subr.bf16.mxu1 %v15009_v10  ;;  %v15071_v9 = vcombine.high %v941_v3, %v945_v4  ;;  %v15073_v10 = vcombine.high %v942_v5, %v946_v6  ;;  %v1001_v62 = vld [vmem:[%s22638_s1 + $0x1da0] sm:$0xff] }
 0x1a2   :  { %9905 = vmatpush1.bf16.msra.mxu0 %v15006_v15  ;;  %10464 = vmatpush1.bf16.msra.mxu1 %v15008_v16  ;;  %v15070_v15 = vcombine.low %v941_v3, %v945_v4  ;;  %v15072_v16 = vcombine.low %v942_v5, %v946_v6  ;;  %v15127_v3 = vcombine.high %v997_v61, %v1001_v62  ;;  %v1005_v5 = vld [vmem:[%s22638_s1 + $0x1dc0] sm:$0xff] }
 0x1a3   :  { %9906 = vmatprep.subr.bf16.mxu0 %v15015_v17  ;;  %10465 = vmatprep.subr.bf16.mxu1 %v15017_v18  ;;  %v15079_v17 = vcombine.high %v949_v11, %v953_v12  ;;  %v15081_v18 = vcombine.high %v950_v13, %v954_v14  ;;  %v1009_v6 = vld [vmem:[%s22638_s1 + $0x1de0] sm:$0xff] }
 0x1a6   :  { %9907 = vmatpush1.bf16.msra.mxu0 %v15014_v23  ;;  %10466 = vmatpush1.bf16.msra.mxu1 %v15016_v24  ;;  %v962_v23 = vld [vmem:[%s22638_s1 + $0x1c68] sm:$0xff]  ;;  %v15078_v24 = vcombine.low %v949_v11, %v953_v12  ;;  %v15135_v11 = vcombine.high %v1005_v5, %v1009_v6 }
 0x1a7   :  { %9908 = vmatprep.subr.bf16.mxu0 %v15023_v25  ;;  %10467 = vmatprep.subr.bf16.mxu1 %v15025_v26  ;;  %v15080_v25 = vcombine.low %v950_v13, %v954_v14  ;;  %v15087_v26 = vcombine.high %v957_v19, %v961_v20  ;;  %v15089_v27 = vcombine.high %v958_v22, %v962_v23  ;;  %v1013_v13 = vld [vmem:[%s22638_s1 + $0x1e00] sm:$0xff] }
 0x1a8   :  { %v1017_v14 = vld [vmem:[%s22638_s1 + $0x1e20] sm:$0xff] }
 0x1aa   :  { %9909 = vmatpush1.bf16.msra.mxu0 %v15022_v31  ;;  %10468 = vmatpush1.bf16.msra.mxu1 %v15024_v32  ;;  %v966_v31 = vld [vmem:[%s22638_s1 + $0x1c88] sm:$0xff] }
 0x1ab   :  { %9910 = vmatprep.subr.bf16.mxu0 %v15031_v33  ;;  %10469 = vmatprep.subr.bf16.mxu1 %v15033_v34  ;;  %v970_v32 = vld [vmem:[%s22638_s1 + $0x1ca8] sm:$0xff]  ;;  %v15086_v33 = vcombine.low %v957_v19, %v961_v20  ;;  %v15088_v34 = vcombine.low %v958_v22, %v962_v23  ;;  %v15143_v19 = vcombine.high %v1013_v13, %v1017_v14  ;;  %v1025_v22 = vld [vmem:[%s22638_s1 + $0x1e60] sm:$0xff] }
 0x1ac   :  { %v15097_v36 = vcombine.high %v966_v31, %v970_v32  ;;  %v1022_v23 = vld [vmem:[%s22638_s1 + $0x1e48] sm:$0xff] }
 0x1ae   :  { %9911 = vmatpush1.bf16.msra.mxu0 %v15030_v39  ;;  %10470 = vmatpush1.bf16.msra.mxu1 %v15032_v40  ;;  %v974_v39 = vld [vmem:[%s22638_s1 + $0x1cc8] sm:$0xff] }
 0x1af   :  { %9912 = vmatprep.subr.bf16.mxu0 %v15039_v41  ;;  %10471 = vmatprep.subr.bf16.mxu1 %v15041_v42  ;;  %v978_v40 = vld [vmem:[%s22638_s1 + $0x1ce8] sm:$0xff]  ;;  %v15094_v41 = vcombine.low %v965_v28, %v969_v29  ;;  %v15096_v42 = vcombine.low %v966_v31, %v970_v32  ;;  %v1029_v29 = vld [vmem:[%s22638_s1 + $0x1e80] sm:$0xff] }
 0x1b0   :  { %v15105_v44 = vcombine.high %v974_v39, %v978_v40  ;;  %v1030_v31 = vld [vmem:[%s22638_s1 + $0x1e88] sm:$0xff] }
 0x1b1   :  { %v1034_v32 = vld [vmem:[%s22638_s1 + $0x1ea8] sm:$0xff] }
 0x1b2   :  { %9913 = vmatpush1.bf16.msra.mxu0 %v15038_v47  ;;  %10472 = vmatpush1.bf16.msra.mxu1 %v15040_v48  ;;  %v982_v47 = vld [vmem:[%s22638_s1 + $0x1d08] sm:$0xff] }
 0x1b3   :  { %9914 = vmatprep.subr.bf16.mxu0 %v15047_v49  ;;  %10473 = vmatprep.subr.bf16.mxu1 %v15049_v50  ;;  %v986_v48 = vld [vmem:[%s22638_s1 + $0x1d28] sm:$0xff]  ;;  %v15102_v49 = vcombine.low %v973_v37, %v977_v38  ;;  %v15104_v50 = vcombine.low %v974_v39, %v978_v40  ;;  %v1037_v37 = vld [vmem:[%s22638_s1 + $0x1ec0] sm:$0xff] }
 0x1b4   :  { %v15113_v52 = vcombine.high %v982_v47, %v986_v48  ;;  %v1041_v38 = vld [vmem:[%s22638_s1 + $0x1ee0] sm:$0xff]  ;;  %v1038_v39 = vld [vmem:[%s22638_s1 + $0x1ec8] sm:$0xff] }
 0x1b5   :  { %v1042_v40 = vld [vmem:[%s22638_s1 + $0x1ee8] sm:$0xff] }
 0x1b6   :  { %9915 = vmatpush1.bf16.msra.mxu0 %v15046_v55  ;;  %10474 = vmatpush1.bf16.msra.mxu1 %v15048_v56  ;;  %v990_v55 = vld [vmem:[%s22638_s1 + $0x1d48] sm:$0xff] }
 0x1b7   :  { %9916 = vmatprep.subr.bf16.mxu0 %v15055_v57  ;;  %10475 = vmatprep.subr.bf16.mxu1 %v15057_v58  ;;  %v994_v56 = vld [vmem:[%s22638_s1 + $0x1d68] sm:$0xff]  ;;  %v15110_v57 = vcombine.low %v981_v45, %v985_v46  ;;  %v15112_v58 = vcombine.low %v982_v47, %v986_v48  ;;  %v1045_v45 = vld [vmem:[%s22638_s1 + $0x1f00] sm:$0xff] }
 0x1b8   :  { %v15121_v60 = vcombine.high %v990_v55, %v994_v56  ;;  %v1049_v46 = vld [vmem:[%s22638_s1 + $0x1f20] sm:$0xff]  ;;  %v1046_v47 = vld [vmem:[%s22638_s1 + $0x1f08] sm:$0xff] }
 0x1b9   :  { %v1050_v48 = vld [vmem:[%s22638_s1 + $0x1f28] sm:$0xff] }
 0x1ba   :  { %9917 = vmatpush1.bf16.msra.mxu0 %v15054_v63  ;;  %10476 = vmatpush1.bf16.msra.mxu1 %v15056_v0  ;;  %v998_v63 = vld [vmem:[%s22638_s1 + $0x1d88] sm:$0xff] }
 0x1bb   :  { %9918 = vmatprep.subr.bf16.mxu0 %v15063_v1  ;;  %10477 = vmatprep.subr.bf16.mxu1 %v15065_v2  ;;  %v1002_v0 = vld [vmem:[%s22638_s1 + $0x1da8] sm:$0xff]  ;;  %v15118_v1 = vcombine.low %v989_v53, %v993_v54  ;;  %v15120_v2 = vcombine.low %v990_v55, %v994_v56  ;;  %v1053_v53 = vld [vmem:[%s22638_s1 + $0x1f40] sm:$0xff] }
 0x1bc   :  { %v15129_v4 = vcombine.high %v998_v63, %v1002_v0  ;;  %v1057_v54 = vld [vmem:[%s22638_s1 + $0x1f60] sm:$0xff]  ;;  %v1054_v55 = vld [vmem:[%s22638_s1 + $0x1f48] sm:$0xff] }
 0x1bd   :  { %v1058_v56 = vld [vmem:[%s22638_s1 + $0x1f68] sm:$0xff] }
 0x1be   :  { %9919 = vmatpush1.bf16.msra.mxu0 %v15062_v7  ;;  %10478 = vmatpush1.bf16.msra.mxu1 %v15064_v8  ;;  %v1006_v7 = vld [vmem:[%s22638_s1 + $0x1dc8] sm:$0xff] }
 0x1bf   :  { %9920 = vmatprep.subr.bf16.mxu0 %v15071_v9  ;;  %10479 = vmatprep.subr.bf16.mxu1 %v15073_v10  ;;  %v1010_v8 = vld [vmem:[%s22638_s1 + $0x1de8] sm:$0xff]  ;;  %v15126_v9 = vcombine.low %v997_v61, %v1001_v62  ;;  %v15128_v10 = vcombine.low %v998_v63, %v1002_v0  ;;  %v1061_v61 = vld [vmem:[%s22638_s1 + $0x1f80] sm:$0xff] }
 0x1c0   :  { %v15137_v12 = vcombine.high %v1006_v7, %v1010_v8  ;;  %v1065_v62 = vld [vmem:[%s22638_s1 + $0x1fa0] sm:$0xff]  ;;  %v1062_v63 = vld [vmem:[%s22638_s1 + $0x1f88] sm:$0xff] }
 0x1c1   :  { %v1066_v0 = vld [vmem:[%s22638_s1 + $0x1fa8] sm:$0xff] }
 0x1c2   :  { %9921 = vmatpush1.bf16.msra.mxu0 %v15070_v15  ;;  %10480 = vmatpush1.bf16.msra.mxu1 %v15072_v16  ;;  %v1014_v15 = vld [vmem:[%s22638_s1 + $0x1e08] sm:$0xff] }
 0x1c3   :  { %9933 = vmatprep.subr.bf16.mxu0 %v15079_v17  ;;  %10492 = vmatprep.subr.bf16.mxu1 %v15081_v18  ;;  %v1018_v16 = vld [vmem:[%s22638_s1 + $0x1e28] sm:$0xff]  ;;  %v15134_v17 = vcombine.low %v1005_v5, %v1009_v6  ;;  %v15136_v18 = vcombine.low %v1006_v7, %v1010_v8  ;;  %v1069_v5 = vld [vmem:[%s22638_s1 + $0x1fc0] sm:$0xff] }
 0x1c4   :  { %v15145_v20 = vcombine.high %v1014_v15, %v1018_v16  ;;  %v1073_v6 = vld [vmem:[%s22638_s1 + $0x1fe0] sm:$0xff]  ;;  %v1070_v7 = vld [vmem:[%s22638_s1 + $0x1fc8] sm:$0xff] }
 0x1c5   :  { %9923 = vmatmul.mubr.bf16.vlgmr.msra.gmra.mrb[0].mxu0 %v16348_v21  ;;  %10482 = vmatmul.mubr.bf16.vlgmr.msra.gmra.mrb[0].mxu1 %v16348_v21  ;;  %v1021_v21 = vld [vmem:[%s22638_s1 + $0x1e40] sm:$0xff]  ;;  %v1074_v8 = vld [vmem:[%s22638_s1 + $0x1fe8] sm:$0xff] }
 0x1c6   :  { %9934 = vmatpush1.bf16.msra.mxu0 %v15078_v24  ;;  %10493 = vmatpush1.bf16.msra.mxu1 %v15080_v25  ;;  %v1026_v24 = vld [vmem:[%s22638_s1 + $0x1e68] sm:$0xff]  ;;  %v15142_v25 = vcombine.low %v1013_v13, %v1017_v14  ;;  %v1077_v13 = vld [vmem:[%s22638_s1 + $0x2000] sm:$0xff] }
 0x1c7   :  { %9935 = vmatprep.subr.bf16.mxu0 %v15087_v26  ;;  %10494 = vmatprep.subr.bf16.mxu1 %v15089_v27  ;;  %v15144_v26 = vcombine.low %v1014_v15, %v1018_v16  ;;  %v15151_v27 = vcombine.high %v1021_v21, %v1025_v22  ;;  %v15153_v28 = vcombine.high %v1022_v23, %v1026_v24  ;;  %v1081_v14 = vld [vmem:[%s22638_s1 + $0x2020] sm:$0xff]  ;;  %v1078_v15 = vld [vmem:[%s22638_s1 + $0x2008] sm:$0xff] }
 0x1c8   :  { %9965 = vmatprep.mubr.bf16.mxu0 %v16349_v30  ;;  %10524 = vmatprep.mubr.bf16.mxu1 %v16349_v30  ;;  %v1033_v30 = vld [vmem:[%s22638_s1 + $0x1ea0] sm:$0xff]  ;;  %v1082_v16 = vld [vmem:[%s22638_s1 + $0x2028] sm:$0xff] }
 0x1ca   :  { %9936 = vmatpush1.bf16.msra.mxu0 %v15086_v33  ;;  %10495 = vmatpush1.bf16.msra.mxu1 %v15088_v34  ;;  %v15150_v33 = vcombine.low %v1021_v21, %v1025_v22  ;;  %v15152_v34 = vcombine.low %v1022_v23, %v1026_v24  ;;  %v1085_v21 = vld [vmem:[%s22638_s1 + $0x2040] sm:$0xff]  ;;  %v16351_v23 = vld [vmem:[%s22639_s0 + $0x38] ss:$100 sps:$4 sm:$0xff]   ;;  %v1086_v24 = vld [vmem:[%s22638_s1 + $0x2048] sm:$0xff] }
 0x1cb   :  { %9937 = vmatprep.subr.bf16.mxu0 %v15095_v35  ;;  %10496 = vmatprep.subr.bf16.mxu1 %v15097_v36  ;;  %v15159_v35 = vcombine.high %v1029_v29, %v1033_v30  ;;  %v15161_v36 = vcombine.high %v1030_v31, %v1034_v32  ;;  %v1089_v22 = vld [vmem:[%s22638_s1 + $0x2060] sm:$0xff] }
 0x1ce   :  { %9938 = vmatpush1.bf16.msra.mxu0 %v15094_v41  ;;  %10497 = vmatpush1.bf16.msra.mxu1 %v15096_v42  ;;  %v15158_v41 = vcombine.low %v1029_v29, %v1033_v30  ;;  %v15160_v42 = vcombine.low %v1030_v31, %v1034_v32  ;;  %v1093_v30 = vld [vmem:[%s22638_s1 + $0x2080] sm:$0xff] }
 0x1cf   :  { %9939 = vmatprep.subr.bf16.mxu0 %v15103_v43  ;;  %10498 = vmatprep.subr.bf16.mxu1 %v15105_v44  ;;  %v15167_v43 = vcombine.high %v1037_v37, %v1041_v38  ;;  %v15169_v44 = vcombine.high %v1038_v39, %v1042_v40  ;;  %v1097_v31 = vld [vmem:[%s22638_s1 + $0x20a0] sm:$0xff] }
 0x1d0   :  { %v16352_v32 = vld [vmem:[%s22639_s0 + $0x44] ss:$100 sps:$4 sm:$0xff]  }
 0x1d2   :  { %9940 = vmatpush1.bf16.msra.mxu0 %v15102_v49  ;;  %10499 = vmatpush1.bf16.msra.mxu1 %v15104_v50  ;;  %v15166_v49 = vcombine.low %v1037_v37, %v1041_v38  ;;  %v15168_v50 = vcombine.low %v1038_v39, %v1042_v40  ;;  %v15223_v37 = vcombine.high %v1093_v30, %v1097_v31  ;;  %v1101_v39 = vld [vmem:[%s22638_s1 + $0x20c0] sm:$0xff] }
 0x1d3   :  { %9941 = vmatprep.subr.bf16.mxu0 %v15111_v51  ;;  %10500 = vmatprep.subr.bf16.mxu1 %v15113_v52  ;;  %v15175_v51 = vcombine.high %v1045_v45, %v1049_v46  ;;  %v15177_v52 = vcombine.high %v1046_v47, %v1050_v48  ;;  %v1105_v40 = vld [vmem:[%s22638_s1 + $0x20e0] sm:$0xff] }
 0x1d6   :  { %9942 = vmatpush1.bf16.msra.mxu0 %v15110_v57  ;;  %10501 = vmatpush1.bf16.msra.mxu1 %v15112_v58  ;;  %v15174_v57 = vcombine.low %v1045_v45, %v1049_v46  ;;  %v15176_v58 = vcombine.low %v1046_v47, %v1050_v48  ;;  %v15231_v45 = vcombine.high %v1101_v39, %v1105_v40  ;;  %v1109_v47 = vld [vmem:[%s22638_s1 + $0x2100] sm:$0xff] }
 0x1d7   :  { %9943 = vmatprep.subr.bf16.mxu0 %v15119_v59  ;;  %10502 = vmatprep.subr.bf16.mxu1 %v15121_v60  ;;  %v15183_v59 = vcombine.high %v1053_v53, %v1057_v54  ;;  %v15185_v60 = vcombine.high %v1054_v55, %v1058_v56  ;;  %v1113_v48 = vld [vmem:[%s22638_s1 + $0x2120] sm:$0xff] }
 0x1da   :  { %9944 = vmatpush1.bf16.msra.mxu0 %v15118_v1  ;;  %10503 = vmatpush1.bf16.msra.mxu1 %v15120_v2  ;;  %v15182_v1 = vcombine.low %v1053_v53, %v1057_v54  ;;  %v15184_v2 = vcombine.low %v1054_v55, %v1058_v56  ;;  %v15239_v53 = vcombine.high %v1109_v47, %v1113_v48  ;;  %v1117_v55 = vld [vmem:[%s22638_s1 + $0x2140] sm:$0xff] }
 0x1db   :  { %9945 = vmatprep.subr.bf16.mxu0 %v15127_v3  ;;  %10504 = vmatprep.subr.bf16.mxu1 %v15129_v4  ;;  %v15191_v3 = vcombine.high %v1061_v61, %v1065_v62  ;;  %v15193_v4 = vcombine.high %v1062_v63, %v1066_v0  ;;  %v1121_v56 = vld [vmem:[%s22638_s1 + $0x2160] sm:$0xff] }
 0x1de   :  { %9946 = vmatpush1.bf16.msra.mxu0 %v15126_v9  ;;  %10505 = vmatpush1.bf16.msra.mxu1 %v15128_v10  ;;  %v15190_v9 = vcombine.low %v1061_v61, %v1065_v62  ;;  %v15192_v10 = vcombine.low %v1062_v63, %v1066_v0  ;;  %v15247_v61 = vcombine.high %v1117_v55, %v1121_v56  ;;  %v1125_v63 = vld [vmem:[%s22638_s1 + $0x2180] sm:$0xff] }
 0x1df   :  { %9947 = vmatprep.subr.bf16.mxu0 %v15135_v11  ;;  %10506 = vmatprep.subr.bf16.mxu1 %v15137_v12  ;;  %v15199_v11 = vcombine.high %v1069_v5, %v1073_v6  ;;  %v15201_v12 = vcombine.high %v1070_v7, %v1074_v8  ;;  %v1129_v0 = vld [vmem:[%s22638_s1 + $0x21a0] sm:$0xff] }
 0x1e2   :  { %9948 = vmatpush1.bf16.msra.mxu0 %v15134_v17  ;;  %10507 = vmatpush1.bf16.msra.mxu1 %v15136_v18  ;;  %v15198_v17 = vcombine.low %v1069_v5, %v1073_v6  ;;  %v15200_v18 = vcombine.low %v1070_v7, %v1074_v8  ;;  %v15255_v5 = vcombine.high %v1125_v63, %v1129_v0  ;;  %v1133_v7 = vld [vmem:[%s22638_s1 + $0x21c0] sm:$0xff] }
 0x1e3   :  { %9949 = vmatprep.subr.bf16.mxu0 %v15143_v19  ;;  %10508 = vmatprep.subr.bf16.mxu1 %v15145_v20  ;;  %v15207_v19 = vcombine.high %v1077_v13, %v1081_v14  ;;  %v15209_v20 = vcombine.high %v1078_v15, %v1082_v16  ;;  %v1137_v8 = vld [vmem:[%s22638_s1 + $0x21e0] sm:$0xff] }
 0x1e6   :  { %9950 = vmatpush1.bf16.msra.mxu0 %v15142_v25  ;;  %10509 = vmatpush1.bf16.msra.mxu1 %v15144_v26  ;;  %v1090_v25 = vld [vmem:[%s22638_s1 + $0x2068] sm:$0xff]  ;;  %v15206_v26 = vcombine.low %v1077_v13, %v1081_v14  ;;  %v15263_v13 = vcombine.high %v1133_v7, %v1137_v8 }
 0x1e7   :  { %9951 = vmatprep.subr.bf16.mxu0 %v15151_v27  ;;  %10510 = vmatprep.subr.bf16.mxu1 %v15153_v28  ;;  %v15208_v27 = vcombine.low %v1078_v15, %v1082_v16  ;;  %v15215_v28 = vcombine.high %v1085_v21, %v1089_v22  ;;  %v15217_v29 = vcombine.high %v1086_v24, %v1090_v25  ;;  %v1141_v15 = vld [vmem:[%s22638_s1 + $0x2200] sm:$0xff] }
 0x1e8   :  { %v1145_v16 = vld [vmem:[%s22638_s1 + $0x2220] sm:$0xff] }
 0x1ea   :  { %9952 = vmatpush1.bf16.msra.mxu0 %v15150_v33  ;;  %10511 = vmatpush1.bf16.msra.mxu1 %v15152_v34  ;;  %v1094_v33 = vld [vmem:[%s22638_s1 + $0x2088] sm:$0xff] }
 0x1eb   :  { %9953 = vmatprep.subr.bf16.mxu0 %v15159_v35  ;;  %10512 = vmatprep.subr.bf16.mxu1 %v15161_v36  ;;  %v1098_v34 = vld [vmem:[%s22638_s1 + $0x20a8] sm:$0xff]  ;;  %v15214_v35 = vcombine.low %v1085_v21, %v1089_v22  ;;  %v15216_v36 = vcombine.low %v1086_v24, %v1090_v25  ;;  %v15271_v21 = vcombine.high %v1141_v15, %v1145_v16  ;;  %v1153_v24 = vld [vmem:[%s22638_s1 + $0x2260] sm:$0xff] }
 0x1ec   :  { %v15225_v38 = vcombine.high %v1094_v33, %v1098_v34  ;;  %v1150_v25 = vld [vmem:[%s22638_s1 + $0x2248] sm:$0xff] }
 0x1ee   :  { %9954 = vmatpush1.bf16.msra.mxu0 %v15158_v41  ;;  %10513 = vmatpush1.bf16.msra.mxu1 %v15160_v42  ;;  %v1102_v41 = vld [vmem:[%s22638_s1 + $0x20c8] sm:$0xff] }
 0x1ef   :  { %9955 = vmatprep.subr.bf16.mxu0 %v15167_v43  ;;  %10514 = vmatprep.subr.bf16.mxu1 %v15169_v44  ;;  %v1106_v42 = vld [vmem:[%s22638_s1 + $0x20e8] sm:$0xff]  ;;  %v15222_v43 = vcombine.low %v1093_v30, %v1097_v31  ;;  %v15224_v44 = vcombine.low %v1094_v33, %v1098_v34  ;;  %v1157_v31 = vld [vmem:[%s22638_s1 + $0x2280] sm:$0xff] }
 0x1f0   :  { %v15233_v46 = vcombine.high %v1102_v41, %v1106_v42  ;;  %v1158_v33 = vld [vmem:[%s22638_s1 + $0x2288] sm:$0xff] }
 0x1f1   :  { %v1162_v34 = vld [vmem:[%s22638_s1 + $0x22a8] sm:$0xff] }
 0x1f2   :  { %9956 = vmatpush1.bf16.msra.mxu0 %v15166_v49  ;;  %10515 = vmatpush1.bf16.msra.mxu1 %v15168_v50  ;;  %v1110_v49 = vld [vmem:[%s22638_s1 + $0x2108] sm:$0xff] }
 0x1f3   :  { %9957 = vmatprep.subr.bf16.mxu0 %v15175_v51  ;;  %10516 = vmatprep.subr.bf16.mxu1 %v15177_v52  ;;  %v1114_v50 = vld [vmem:[%s22638_s1 + $0x2128] sm:$0xff]  ;;  %v15230_v51 = vcombine.low %v1101_v39, %v1105_v40  ;;  %v15232_v52 = vcombine.low %v1102_v41, %v1106_v42  ;;  %v1165_v39 = vld [vmem:[%s22638_s1 + $0x22c0] sm:$0xff] }
 0x1f4   :  { %v15241_v54 = vcombine.high %v1110_v49, %v1114_v50  ;;  %v1169_v40 = vld [vmem:[%s22638_s1 + $0x22e0] sm:$0xff]  ;;  %v1166_v41 = vld [vmem:[%s22638_s1 + $0x22c8] sm:$0xff] }
 0x1f5   :  { %v1170_v42 = vld [vmem:[%s22638_s1 + $0x22e8] sm:$0xff] }
 0x1f6   :  { %9958 = vmatpush1.bf16.msra.mxu0 %v15174_v57  ;;  %10517 = vmatpush1.bf16.msra.mxu1 %v15176_v58  ;;  %v1118_v57 = vld [vmem:[%s22638_s1 + $0x2148] sm:$0xff] }
 0x1f7   :  { %9959 = vmatprep.subr.bf16.mxu0 %v15183_v59  ;;  %10518 = vmatprep.subr.bf16.mxu1 %v15185_v60  ;;  %v1122_v58 = vld [vmem:[%s22638_s1 + $0x2168] sm:$0xff]  ;;  %v15238_v59 = vcombine.low %v1109_v47, %v1113_v48  ;;  %v15240_v60 = vcombine.low %v1110_v49, %v1114_v50  ;;  %v1173_v47 = vld [vmem:[%s22638_s1 + $0x2300] sm:$0xff] }
 0x1f8   :  { %v15249_v62 = vcombine.high %v1118_v57, %v1122_v58  ;;  %v1177_v48 = vld [vmem:[%s22638_s1 + $0x2320] sm:$0xff]  ;;  %v1174_v49 = vld [vmem:[%s22638_s1 + $0x2308] sm:$0xff] }
 0x1f9   :  { %v1178_v50 = vld [vmem:[%s22638_s1 + $0x2328] sm:$0xff] }
 0x1fa   :  { %9960 = vmatpush1.bf16.msra.mxu0 %v15182_v1  ;;  %10519 = vmatpush1.bf16.msra.mxu1 %v15184_v2  ;;  %v1126_v1 = vld [vmem:[%s22638_s1 + $0x2188] sm:$0xff] }
 0x1fb   :  { %9961 = vmatprep.subr.bf16.mxu0 %v15191_v3  ;;  %10520 = vmatprep.subr.bf16.mxu1 %v15193_v4  ;;  %v1130_v2 = vld [vmem:[%s22638_s1 + $0x21a8] sm:$0xff]  ;;  %v15246_v3 = vcombine.low %v1117_v55, %v1121_v56  ;;  %v15248_v4 = vcombine.low %v1118_v57, %v1122_v58  ;;  %v1181_v55 = vld [vmem:[%s22638_s1 + $0x2340] sm:$0xff] }
 0x1fc   :  { %v15257_v6 = vcombine.high %v1126_v1, %v1130_v2  ;;  %v1185_v56 = vld [vmem:[%s22638_s1 + $0x2360] sm:$0xff]  ;;  %v1182_v57 = vld [vmem:[%s22638_s1 + $0x2348] sm:$0xff] }
 0x1fd   :  { %v1186_v58 = vld [vmem:[%s22638_s1 + $0x2368] sm:$0xff] }
 0x1fe   :  { %9962 = vmatpush1.bf16.msra.mxu0 %v15190_v9  ;;  %10521 = vmatpush1.bf16.msra.mxu1 %v15192_v10  ;;  %v1134_v9 = vld [vmem:[%s22638_s1 + $0x21c8] sm:$0xff] }
 0x1ff   :  { %9963 = vmatprep.subr.bf16.mxu0 %v15199_v11  ;;  %10522 = vmatprep.subr.bf16.mxu1 %v15201_v12  ;;  %v1138_v10 = vld [vmem:[%s22638_s1 + $0x21e8] sm:$0xff]  ;;  %v15254_v11 = vcombine.low %v1125_v63, %v1129_v0  ;;  %v15256_v12 = vcombine.low %v1126_v1, %v1130_v2  ;;  %v1189_v63 = vld [vmem:[%s22638_s1 + $0x2380] sm:$0xff] }
 0x200   :  { %v15265_v14 = vcombine.high %v1134_v9, %v1138_v10  ;;  %v1193_v0 = vld [vmem:[%s22638_s1 + $0x23a0] sm:$0xff]  ;;  %v1190_v1 = vld [vmem:[%s22638_s1 + $0x2388] sm:$0xff] }
 0x201   :  { %v1194_v2 = vld [vmem:[%s22638_s1 + $0x23a8] sm:$0xff] }
 0x202   :  { %9964 = vmatpush1.bf16.msra.mxu0 %v15198_v17  ;;  %10523 = vmatpush1.bf16.msra.mxu1 %v15200_v18  ;;  %v1142_v17 = vld [vmem:[%s22638_s1 + $0x2208] sm:$0xff] }
 0x203   :  { %9976 = vmatprep.subr.bf16.mxu0 %v15207_v19  ;;  %10535 = vmatprep.subr.bf16.mxu1 %v15209_v20  ;;  %v1146_v18 = vld [vmem:[%s22638_s1 + $0x2228] sm:$0xff]  ;;  %v15262_v19 = vcombine.low %v1133_v7, %v1137_v8  ;;  %v15264_v20 = vcombine.low %v1134_v9, %v1138_v10  ;;  %v1197_v7 = vld [vmem:[%s22638_s1 + $0x23c0] sm:$0xff] }
 0x204   :  { %v15273_v22 = vcombine.high %v1142_v17, %v1146_v18  ;;  %v1201_v8 = vld [vmem:[%s22638_s1 + $0x23e0] sm:$0xff]  ;;  %v1198_v9 = vld [vmem:[%s22638_s1 + $0x23c8] sm:$0xff] }
 0x205   :  { %9966 = vmatmul.mubr.bf16.vlgmr.msra.gmra.mrb[0].mxu0 %v16351_v23  ;;  %10525 = vmatmul.mubr.bf16.vlgmr.msra.gmra.mrb[0].mxu1 %v16351_v23  ;;  %v1149_v23 = vld [vmem:[%s22638_s1 + $0x2240] sm:$0xff]  ;;  %v1202_v10 = vld [vmem:[%s22638_s1 + $0x23e8] sm:$0xff] }
 0x206   :  { %9977 = vmatpush1.bf16.msra.mxu0 %v15206_v26  ;;  %10536 = vmatpush1.bf16.msra.mxu1 %v15208_v27  ;;  %v1154_v26 = vld [vmem:[%s22638_s1 + $0x2268] sm:$0xff]  ;;  %v15270_v27 = vcombine.low %v1141_v15, %v1145_v16  ;;  %v1205_v15 = vld [vmem:[%s22638_s1 + $0x2400] sm:$0xff] }
 0x207   :  { %9978 = vmatprep.subr.bf16.mxu0 %v15215_v28  ;;  %10537 = vmatprep.subr.bf16.mxu1 %v15217_v29  ;;  %v15272_v28 = vcombine.low %v1142_v17, %v1146_v18  ;;  %v15279_v29 = vcombine.high %v1149_v23, %v1153_v24  ;;  %v15281_v30 = vcombine.high %v1150_v25, %v1154_v26  ;;  %v1209_v16 = vld [vmem:[%s22638_s1 + $0x2420] sm:$0xff]  ;;  %v1206_v17 = vld [vmem:[%s22638_s1 + $0x2408] sm:$0xff] }
 0x208   :  { %10008 = vmatprep.mubr.bf16.mxu0 %v16352_v32  ;;  %10567 = vmatprep.mubr.bf16.mxu1 %v16352_v32  ;;  %v1161_v32 = vld [vmem:[%s22638_s1 + $0x22a0] sm:$0xff]  ;;  %v1210_v18 = vld [vmem:[%s22638_s1 + $0x2428] sm:$0xff] }
 0x20a   :  { %9979 = vmatpush1.bf16.msra.mxu0 %v15214_v35  ;;  %10538 = vmatpush1.bf16.msra.mxu1 %v15216_v36  ;;  %v15278_v35 = vcombine.low %v1149_v23, %v1153_v24  ;;  %v15280_v36 = vcombine.low %v1150_v25, %v1154_v26  ;;  %v1213_v23 = vld [vmem:[%s22638_s1 + $0x2440] sm:$0xff]  ;;  %v1214_v26 = vld [vmem:[%s22638_s1 + $0x2448] sm:$0xff] }
 0x20b   :  { %9980 = vmatprep.subr.bf16.mxu0 %v15223_v37  ;;  %10539 = vmatprep.subr.bf16.mxu1 %v15225_v38  ;;  %v15287_v37 = vcombine.high %v1157_v31, %v1161_v32  ;;  %v15289_v38 = vcombine.high %v1158_v33, %v1162_v34  ;;  %v1217_v24 = vld [vmem:[%s22638_s1 + $0x2460] sm:$0xff] }
 0x20c   :  { %v16354_v25 = vld [vmem:[%s22639_s0 + $0x40] ss:$100 sps:$4 sm:$0xff]  }
 0x20e   :  { %9981 = vmatpush1.bf16.msra.mxu0 %v15222_v43  ;;  %10540 = vmatpush1.bf16.msra.mxu1 %v15224_v44  ;;  %v15286_v43 = vcombine.low %v1157_v31, %v1161_v32  ;;  %v15288_v44 = vcombine.low %v1158_v33, %v1162_v34  ;;  %v1221_v32 = vld [vmem:[%s22638_s1 + $0x2480] sm:$0xff]  ;;  %v16355_v34 = vld [vmem:[%s22639_s0 + $0x4c] ss:$100 sps:$4 sm:$0xff]  }
 0x20f   :  { %9982 = vmatprep.subr.bf16.mxu0 %v15231_v45  ;;  %10541 = vmatprep.subr.bf16.mxu1 %v15233_v46  ;;  %v15295_v45 = vcombine.high %v1165_v39, %v1169_v40  ;;  %v15297_v46 = vcombine.high %v1166_v41, %v1170_v42  ;;  %v1225_v33 = vld [vmem:[%s22638_s1 + $0x24a0] sm:$0xff] }
 0x212   :  { %9983 = vmatpush1.bf16.msra.mxu0 %v15230_v51  ;;  %10542 = vmatpush1.bf16.msra.mxu1 %v15232_v52  ;;  %v15294_v51 = vcombine.low %v1165_v39, %v1169_v40  ;;  %v15296_v52 = vcombine.low %v1166_v41, %v1170_v42  ;;  %v15351_v39 = vcombine.high %v1221_v32, %v1225_v33  ;;  %v1229_v41 = vld [vmem:[%s22638_s1 + $0x24c0] sm:$0xff] }
 0x213   :  { %9984 = vmatprep.subr.bf16.mxu0 %v15239_v53  ;;  %10543 = vmatprep.subr.bf16.mxu1 %v15241_v54  ;;  %v15303_v53 = vcombine.high %v1173_v47, %v1177_v48  ;;  %v15305_v54 = vcombine.high %v1174_v49, %v1178_v50  ;;  %v1233_v42 = vld [vmem:[%s22638_s1 + $0x24e0] sm:$0xff] }
 0x216   :  { %9985 = vmatpush1.bf16.msra.mxu0 %v15238_v59  ;;  %10544 = vmatpush1.bf16.msra.mxu1 %v15240_v60  ;;  %v15302_v59 = vcombine.low %v1173_v47, %v1177_v48  ;;  %v15304_v60 = vcombine.low %v1174_v49, %v1178_v50  ;;  %v15359_v47 = vcombine.high %v1229_v41, %v1233_v42  ;;  %v1237_v49 = vld [vmem:[%s22638_s1 + $0x2500] sm:$0xff] }
 0x217   :  { %9986 = vmatprep.subr.bf16.mxu0 %v15247_v61  ;;  %10545 = vmatprep.subr.bf16.mxu1 %v15249_v62  ;;  %v15311_v61 = vcombine.high %v1181_v55, %v1185_v56  ;;  %v15313_v62 = vcombine.high %v1182_v57, %v1186_v58  ;;  %v1241_v50 = vld [vmem:[%s22638_s1 + $0x2520] sm:$0xff] }
 0x21a   :  { %9987 = vmatpush1.bf16.msra.mxu0 %v15246_v3  ;;  %10546 = vmatpush1.bf16.msra.mxu1 %v15248_v4  ;;  %v15310_v3 = vcombine.low %v1181_v55, %v1185_v56  ;;  %v15312_v4 = vcombine.low %v1182_v57, %v1186_v58  ;;  %v15367_v55 = vcombine.high %v1237_v49, %v1241_v50  ;;  %v1245_v57 = vld [vmem:[%s22638_s1 + $0x2540] sm:$0xff] }
 0x21b   :  { %9988 = vmatprep.subr.bf16.mxu0 %v15255_v5  ;;  %10547 = vmatprep.subr.bf16.mxu1 %v15257_v6  ;;  %v15319_v5 = vcombine.high %v1189_v63, %v1193_v0  ;;  %v15321_v6 = vcombine.high %v1190_v1, %v1194_v2  ;;  %v1249_v58 = vld [vmem:[%s22638_s1 + $0x2560] sm:$0xff] }
 0x21e   :  { %9989 = vmatpush1.bf16.msra.mxu0 %v15254_v11  ;;  %10548 = vmatpush1.bf16.msra.mxu1 %v15256_v12  ;;  %v15318_v11 = vcombine.low %v1189_v63, %v1193_v0  ;;  %v15320_v12 = vcombine.low %v1190_v1, %v1194_v2  ;;  %v15375_v63 = vcombine.high %v1245_v57, %v1249_v58  ;;  %v1253_v1 = vld [vmem:[%s22638_s1 + $0x2580] sm:$0xff] }
 0x21f   :  { %9990 = vmatprep.subr.bf16.mxu0 %v15263_v13  ;;  %10549 = vmatprep.subr.bf16.mxu1 %v15265_v14  ;;  %v15327_v13 = vcombine.high %v1197_v7, %v1201_v8  ;;  %v15329_v14 = vcombine.high %v1198_v9, %v1202_v10  ;;  %v1257_v2 = vld [vmem:[%s22638_s1 + $0x25a0] sm:$0xff] }
 0x222   :  { %9991 = vmatpush1.bf16.msra.mxu0 %v15262_v19  ;;  %10550 = vmatpush1.bf16.msra.mxu1 %v15264_v20  ;;  %v15326_v19 = vcombine.low %v1197_v7, %v1201_v8  ;;  %v15328_v20 = vcombine.low %v1198_v9, %v1202_v10  ;;  %v15383_v7 = vcombine.high %v1253_v1, %v1257_v2  ;;  %v1261_v9 = vld [vmem:[%s22638_s1 + $0x25c0] sm:$0xff] }
 0x223   :  { %9992 = vmatprep.subr.bf16.mxu0 %v15271_v21  ;;  %10551 = vmatprep.subr.bf16.mxu1 %v15273_v22  ;;  %v15335_v21 = vcombine.high %v1205_v15, %v1209_v16  ;;  %v15337_v22 = vcombine.high %v1206_v17, %v1210_v18  ;;  %v1265_v10 = vld [vmem:[%s22638_s1 + $0x25e0] sm:$0xff] }
 0x226   :  { %9993 = vmatpush1.bf16.msra.mxu0 %v15270_v27  ;;  %10552 = vmatpush1.bf16.msra.mxu1 %v15272_v28  ;;  %v1218_v27 = vld [vmem:[%s22638_s1 + $0x2468] sm:$0xff]  ;;  %v15334_v28 = vcombine.low %v1205_v15, %v1209_v16  ;;  %v15391_v15 = vcombine.high %v1261_v9, %v1265_v10 }
 0x227   :  { %9994 = vmatprep.subr.bf16.mxu0 %v15279_v29  ;;  %10553 = vmatprep.subr.bf16.mxu1 %v15281_v30  ;;  %v15336_v29 = vcombine.low %v1206_v17, %v1210_v18  ;;  %v15343_v30 = vcombine.high %v1213_v23, %v1217_v24  ;;  %v15345_v31 = vcombine.high %v1214_v26, %v1218_v27  ;;  %v1269_v17 = vld [vmem:[%s22638_s1 + $0x2600] sm:$0xff] }
 0x228   :  { %v1273_v18 = vld [vmem:[%s22638_s1 + $0x2620] sm:$0xff] }
 0x22a   :  { %9995 = vmatpush1.bf16.msra.mxu0 %v15278_v35  ;;  %10554 = vmatpush1.bf16.msra.mxu1 %v15280_v36  ;;  %v1222_v35 = vld [vmem:[%s22638_s1 + $0x2488] sm:$0xff] }
 0x22b   :  { %9996 = vmatprep.subr.bf16.mxu0 %v15287_v37  ;;  %10555 = vmatprep.subr.bf16.mxu1 %v15289_v38  ;;  %v1226_v36 = vld [vmem:[%s22638_s1 + $0x24a8] sm:$0xff]  ;;  %v15342_v37 = vcombine.low %v1213_v23, %v1217_v24  ;;  %v15344_v38 = vcombine.low %v1214_v26, %v1218_v27  ;;  %v15399_v23 = vcombine.high %v1269_v17, %v1273_v18  ;;  %v1281_v26 = vld [vmem:[%s22638_s1 + $0x2660] sm:$0xff] }
 0x22c   :  { %v15353_v40 = vcombine.high %v1222_v35, %v1226_v36  ;;  %v1278_v27 = vld [vmem:[%s22638_s1 + $0x2648] sm:$0xff] }
 0x22e   :  { %9997 = vmatpush1.bf16.msra.mxu0 %v15286_v43  ;;  %10556 = vmatpush1.bf16.msra.mxu1 %v15288_v44  ;;  %v1230_v43 = vld [vmem:[%s22638_s1 + $0x24c8] sm:$0xff] }
 0x22f   :  { %9998 = vmatprep.subr.bf16.mxu0 %v15295_v45  ;;  %10557 = vmatprep.subr.bf16.mxu1 %v15297_v46  ;;  %v1234_v44 = vld [vmem:[%s22638_s1 + $0x24e8] sm:$0xff]  ;;  %v15350_v45 = vcombine.low %v1221_v32, %v1225_v33  ;;  %v15352_v46 = vcombine.low %v1222_v35, %v1226_v36  ;;  %v1285_v33 = vld [vmem:[%s22638_s1 + $0x2680] sm:$0xff] }
 0x230   :  { %v15361_v48 = vcombine.high %v1230_v43, %v1234_v44  ;;  %v1286_v35 = vld [vmem:[%s22638_s1 + $0x2688] sm:$0xff] }
 0x231   :  { %v1290_v36 = vld [vmem:[%s22638_s1 + $0x26a8] sm:$0xff] }
 0x232   :  { %9999 = vmatpush1.bf16.msra.mxu0 %v15294_v51  ;;  %10558 = vmatpush1.bf16.msra.mxu1 %v15296_v52  ;;  %v1238_v51 = vld [vmem:[%s22638_s1 + $0x2508] sm:$0xff] }
 0x233   :  { %10000 = vmatprep.subr.bf16.mxu0 %v15303_v53  ;;  %10559 = vmatprep.subr.bf16.mxu1 %v15305_v54  ;;  %v1242_v52 = vld [vmem:[%s22638_s1 + $0x2528] sm:$0xff]  ;;  %v15358_v53 = vcombine.low %v1229_v41, %v1233_v42  ;;  %v15360_v54 = vcombine.low %v1230_v43, %v1234_v44  ;;  %v1293_v41 = vld [vmem:[%s22638_s1 + $0x26c0] sm:$0xff] }
 0x234   :  { %v15369_v56 = vcombine.high %v1238_v51, %v1242_v52  ;;  %v1297_v42 = vld [vmem:[%s22638_s1 + $0x26e0] sm:$0xff]  ;;  %v1294_v43 = vld [vmem:[%s22638_s1 + $0x26c8] sm:$0xff] }
 0x235   :  { %v1298_v44 = vld [vmem:[%s22638_s1 + $0x26e8] sm:$0xff] }
 0x236   :  { %10001 = vmatpush1.bf16.msra.mxu0 %v15302_v59  ;;  %10560 = vmatpush1.bf16.msra.mxu1 %v15304_v60  ;;  %v1246_v59 = vld [vmem:[%s22638_s1 + $0x2548] sm:$0xff] }
 0x237   :  { %10002 = vmatprep.subr.bf16.mxu0 %v15311_v61  ;;  %10561 = vmatprep.subr.bf16.mxu1 %v15313_v62  ;;  %v1250_v60 = vld [vmem:[%s22638_s1 + $0x2568] sm:$0xff]  ;;  %v15366_v61 = vcombine.low %v1237_v49, %v1241_v50  ;;  %v15368_v62 = vcombine.low %v1238_v51, %v1242_v52  ;;  %v1301_v49 = vld [vmem:[%s22638_s1 + $0x2700] sm:$0xff] }
 0x238   :  { %v15377_v0 = vcombine.high %v1246_v59, %v1250_v60  ;;  %v1305_v50 = vld [vmem:[%s22638_s1 + $0x2720] sm:$0xff]  ;;  %v1302_v51 = vld [vmem:[%s22638_s1 + $0x2708] sm:$0xff] }
 0x239   :  { %v1306_v52 = vld [vmem:[%s22638_s1 + $0x2728] sm:$0xff] }
 0x23a   :  { %10003 = vmatpush1.bf16.msra.mxu0 %v15310_v3  ;;  %10562 = vmatpush1.bf16.msra.mxu1 %v15312_v4  ;;  %v1254_v3 = vld [vmem:[%s22638_s1 + $0x2588] sm:$0xff] }
 0x23b   :  { %10004 = vmatprep.subr.bf16.mxu0 %v15319_v5  ;;  %10563 = vmatprep.subr.bf16.mxu1 %v15321_v6  ;;  %v1258_v4 = vld [vmem:[%s22638_s1 + $0x25a8] sm:$0xff]  ;;  %v15374_v5 = vcombine.low %v1245_v57, %v1249_v58  ;;  %v15376_v6 = vcombine.low %v1246_v59, %v1250_v60  ;;  %v1309_v57 = vld [vmem:[%s22638_s1 + $0x2740] sm:$0xff] }
 0x23c   :  { %v15385_v8 = vcombine.high %v1254_v3, %v1258_v4  ;;  %v1313_v58 = vld [vmem:[%s22638_s1 + $0x2760] sm:$0xff]  ;;  %v1310_v59 = vld [vmem:[%s22638_s1 + $0x2748] sm:$0xff] }
 0x23d   :  { %v1314_v60 = vld [vmem:[%s22638_s1 + $0x2768] sm:$0xff] }
 0x23e   :  { %10005 = vmatpush1.bf16.msra.mxu0 %v15318_v11  ;;  %10564 = vmatpush1.bf16.msra.mxu1 %v15320_v12  ;;  %v1262_v11 = vld [vmem:[%s22638_s1 + $0x25c8] sm:$0xff] }
 0x23f   :  { %10006 = vmatprep.subr.bf16.mxu0 %v15327_v13  ;;  %10565 = vmatprep.subr.bf16.mxu1 %v15329_v14  ;;  %v1266_v12 = vld [vmem:[%s22638_s1 + $0x25e8] sm:$0xff]  ;;  %v15382_v13 = vcombine.low %v1253_v1, %v1257_v2  ;;  %v15384_v14 = vcombine.low %v1254_v3, %v1258_v4  ;;  %v1317_v1 = vld [vmem:[%s22638_s1 + $0x2780] sm:$0xff] }
 0x240   :  { %v15393_v16 = vcombine.high %v1262_v11, %v1266_v12  ;;  %v1321_v2 = vld [vmem:[%s22638_s1 + $0x27a0] sm:$0xff]  ;;  %v1318_v3 = vld [vmem:[%s22638_s1 + $0x2788] sm:$0xff] }
 0x241   :  { %v1322_v4 = vld [vmem:[%s22638_s1 + $0x27a8] sm:$0xff] }
 0x242   :  { %10007 = vmatpush1.bf16.msra.mxu0 %v15326_v19  ;;  %10566 = vmatpush1.bf16.msra.mxu1 %v15328_v20  ;;  %v1270_v19 = vld [vmem:[%s22638_s1 + $0x2608] sm:$0xff] }
 0x243   :  { %10019 = vmatprep.subr.bf16.mxu0 %v15335_v21  ;;  %10578 = vmatprep.subr.bf16.mxu1 %v15337_v22  ;;  %v1274_v20 = vld [vmem:[%s22638_s1 + $0x2628] sm:$0xff]  ;;  %v15390_v21 = vcombine.low %v1261_v9, %v1265_v10  ;;  %v15392_v22 = vcombine.low %v1262_v11, %v1266_v12  ;;  %v1325_v9 = vld [vmem:[%s22638_s1 + $0x27c0] sm:$0xff] }
 0x244   :  { %v15401_v24 = vcombine.high %v1270_v19, %v1274_v20  ;;  %v1329_v10 = vld [vmem:[%s22638_s1 + $0x27e0] sm:$0xff]  ;;  %v1326_v11 = vld [vmem:[%s22638_s1 + $0x27c8] sm:$0xff] }
 0x245   :  { %10009 = vmatmul.mubr.bf16.vlgmr.msra.gmra.mrb[0].mxu0 %v16354_v25  ;;  %10568 = vmatmul.mubr.bf16.vlgmr.msra.gmra.mrb[0].mxu1 %v16354_v25  ;;  %v1277_v25 = vld [vmem:[%s22638_s1 + $0x2640] sm:$0xff]  ;;  %v1330_v12 = vld [vmem:[%s22638_s1 + $0x27e8] sm:$0xff] }
 0x246   :  { %10020 = vmatpush1.bf16.msra.mxu0 %v15334_v28  ;;  %10579 = vmatpush1.bf16.msra.mxu1 %v15336_v29  ;;  %v1282_v28 = vld [vmem:[%s22638_s1 + $0x2668] sm:$0xff]  ;;  %v15398_v29 = vcombine.low %v1269_v17, %v1273_v18  ;;  %v1333_v17 = vld [vmem:[%s22638_s1 + $0x2800] sm:$0xff] }
 0x247   :  { %10021 = vmatprep.subr.bf16.mxu0 %v15343_v30  ;;  %10580 = vmatprep.subr.bf16.mxu1 %v15345_v31  ;;  %v15400_v30 = vcombine.low %v1270_v19, %v1274_v20  ;;  %v15407_v31 = vcombine.high %v1277_v25, %v1281_v26  ;;  %v15409_v32 = vcombine.high %v1278_v27, %v1282_v28  ;;  %v1337_v18 = vld [vmem:[%s22638_s1 + $0x2820] sm:$0xff]  ;;  %v1334_v19 = vld [vmem:[%s22638_s1 + $0x2808] sm:$0xff] }
 0x248   :  { %10051 = vmatprep.mubr.bf16.mxu0 %v16355_v34  ;;  %10610 = vmatprep.mubr.bf16.mxu1 %v16355_v34  ;;  %v1289_v34 = vld [vmem:[%s22638_s1 + $0x26a0] sm:$0xff]  ;;  %v1338_v20 = vld [vmem:[%s22638_s1 + $0x2828] sm:$0xff] }
 0x24a   :  { %10022 = vmatpush1.bf16.msra.mxu0 %v15342_v37  ;;  %10581 = vmatpush1.bf16.msra.mxu1 %v15344_v38  ;;  %v15406_v37 = vcombine.low %v1277_v25, %v1281_v26  ;;  %v15408_v38 = vcombine.low %v1278_v27, %v1282_v28  ;;  %v1341_v25 = vld [vmem:[%s22638_s1 + $0x2840] sm:$0xff]  ;;  %v16357_v27 = vld [vmem:[%s22639_s0 + $0x48] ss:$100 sps:$4 sm:$0xff]  }
 0x24b   :  { %10023 = vmatprep.subr.bf16.mxu0 %v15351_v39  ;;  %10582 = vmatprep.subr.bf16.mxu1 %v15353_v40  ;;  %v15415_v39 = vcombine.high %v1285_v33, %v1289_v34  ;;  %v15417_v40 = vcombine.high %v1286_v35, %v1290_v36  ;;  %v1345_v26 = vld [vmem:[%s22638_s1 + $0x2860] sm:$0xff]  ;;  %v1342_v28 = vld [vmem:[%s22638_s1 + $0x2848] sm:$0xff] }
 0x24e   :  { %10024 = vmatpush1.bf16.msra.mxu0 %v15350_v45  ;;  %10583 = vmatpush1.bf16.msra.mxu1 %v15352_v46  ;;  %v15414_v45 = vcombine.low %v1285_v33, %v1289_v34  ;;  %v15416_v46 = vcombine.low %v1286_v35, %v1290_v36  ;;  %v1349_v34 = vld [vmem:[%s22638_s1 + $0x2880] sm:$0xff]  ;;  %v16358_v36 = vld [vmem:[%s22639_s0 + $0x54] ss:$100 sps:$4 sm:$0xff]  }
 0x24f   :  { %10025 = vmatprep.subr.bf16.mxu0 %v15359_v47  ;;  %10584 = vmatprep.subr.bf16.mxu1 %v15361_v48  ;;  %v15423_v47 = vcombine.high %v1293_v41, %v1297_v42  ;;  %v15425_v48 = vcombine.high %v1294_v43, %v1298_v44  ;;  %v1353_v35 = vld [vmem:[%s22638_s1 + $0x28a0] sm:$0xff] }
 0x252   :  { %10026 = vmatpush1.bf16.msra.mxu0 %v15358_v53  ;;  %10585 = vmatpush1.bf16.msra.mxu1 %v15360_v54  ;;  %v15422_v53 = vcombine.low %v1293_v41, %v1297_v42  ;;  %v15424_v54 = vcombine.low %v1294_v43, %v1298_v44  ;;  %v15479_v41 = vcombine.high %v1349_v34, %v1353_v35  ;;  %v1357_v43 = vld [vmem:[%s22638_s1 + $0x28c0] sm:$0xff] }
 0x253   :  { %10027 = vmatprep.subr.bf16.mxu0 %v15367_v55  ;;  %10586 = vmatprep.subr.bf16.mxu1 %v15369_v56  ;;  %v15431_v55 = vcombine.high %v1301_v49, %v1305_v50  ;;  %v15433_v56 = vcombine.high %v1302_v51, %v1306_v52  ;;  %v1361_v44 = vld [vmem:[%s22638_s1 + $0x28e0] sm:$0xff] }
 0x256   :  { %10028 = vmatpush1.bf16.msra.mxu0 %v15366_v61  ;;  %10587 = vmatpush1.bf16.msra.mxu1 %v15368_v62  ;;  %v15430_v61 = vcombine.low %v1301_v49, %v1305_v50  ;;  %v15432_v62 = vcombine.low %v1302_v51, %v1306_v52  ;;  %v15487_v49 = vcombine.high %v1357_v43, %v1361_v44  ;;  %v1365_v51 = vld [vmem:[%s22638_s1 + $0x2900] sm:$0xff] }
 0x257   :  { %10029 = vmatprep.subr.bf16.mxu0 %v15375_v63  ;;  %10588 = vmatprep.subr.bf16.mxu1 %v15377_v0  ;;  %v15439_v63 = vcombine.high %v1309_v57, %v1313_v58  ;;  %v15441_v0 = vcombine.high %v1310_v59, %v1314_v60  ;;  %v1369_v52 = vld [vmem:[%s22638_s1 + $0x2920] sm:$0xff] }
 0x25a   :  { %10030 = vmatpush1.bf16.msra.mxu0 %v15374_v5  ;;  %10589 = vmatpush1.bf16.msra.mxu1 %v15376_v6  ;;  %v15438_v5 = vcombine.low %v1309_v57, %v1313_v58  ;;  %v15440_v6 = vcombine.low %v1310_v59, %v1314_v60  ;;  %v15495_v57 = vcombine.high %v1365_v51, %v1369_v52  ;;  %v1373_v59 = vld [vmem:[%s22638_s1 + $0x2940] sm:$0xff] }
 0x25b   :  { %10031 = vmatprep.subr.bf16.mxu0 %v15383_v7  ;;  %10590 = vmatprep.subr.bf16.mxu1 %v15385_v8  ;;  %v15447_v7 = vcombine.high %v1317_v1, %v1321_v2  ;;  %v15449_v8 = vcombine.high %v1318_v3, %v1322_v4  ;;  %v1377_v60 = vld [vmem:[%s22638_s1 + $0x2960] sm:$0xff] }
 0x25e   :  { %10032 = vmatpush1.bf16.msra.mxu0 %v15382_v13  ;;  %10591 = vmatpush1.bf16.msra.mxu1 %v15384_v14  ;;  %v15446_v13 = vcombine.low %v1317_v1, %v1321_v2  ;;  %v15448_v14 = vcombine.low %v1318_v3, %v1322_v4  ;;  %v15503_v1 = vcombine.high %v1373_v59, %v1377_v60  ;;  %v1381_v3 = vld [vmem:[%s22638_s1 + $0x2980] sm:$0xff] }
 0x25f   :  { %10033 = vmatprep.subr.bf16.mxu0 %v15391_v15  ;;  %10592 = vmatprep.subr.bf16.mxu1 %v15393_v16  ;;  %v15455_v15 = vcombine.high %v1325_v9, %v1329_v10  ;;  %v15457_v16 = vcombine.high %v1326_v11, %v1330_v12  ;;  %v1385_v4 = vld [vmem:[%s22638_s1 + $0x29a0] sm:$0xff] }
 0x262   :  { %10034 = vmatpush1.bf16.msra.mxu0 %v15390_v21  ;;  %10593 = vmatpush1.bf16.msra.mxu1 %v15392_v22  ;;  %v15454_v21 = vcombine.low %v1325_v9, %v1329_v10  ;;  %v15456_v22 = vcombine.low %v1326_v11, %v1330_v12  ;;  %v15511_v9 = vcombine.high %v1381_v3, %v1385_v4  ;;  %v1389_v11 = vld [vmem:[%s22638_s1 + $0x29c0] sm:$0xff] }
 0x263   :  { %10035 = vmatprep.subr.bf16.mxu0 %v15399_v23  ;;  %10594 = vmatprep.subr.bf16.mxu1 %v15401_v24  ;;  %v15463_v23 = vcombine.high %v1333_v17, %v1337_v18  ;;  %v15465_v24 = vcombine.high %v1334_v19, %v1338_v20  ;;  %v1393_v12 = vld [vmem:[%s22638_s1 + $0x29e0] sm:$0xff] }
 0x266   :  { %10036 = vmatpush1.bf16.msra.mxu0 %v15398_v29  ;;  %10595 = vmatpush1.bf16.msra.mxu1 %v15400_v30  ;;  %v1346_v29 = vld [vmem:[%s22638_s1 + $0x2868] sm:$0xff]  ;;  %v15462_v30 = vcombine.low %v1333_v17, %v1337_v18  ;;  %v15519_v17 = vcombine.high %v1389_v11, %v1393_v12 }
 0x267   :  { %10037 = vmatprep.subr.bf16.mxu0 %v15407_v31  ;;  %10596 = vmatprep.subr.bf16.mxu1 %v15409_v32  ;;  %v15464_v31 = vcombine.low %v1334_v19, %v1338_v20  ;;  %v15471_v32 = vcombine.high %v1341_v25, %v1345_v26  ;;  %v15473_v33 = vcombine.high %v1342_v28, %v1346_v29  ;;  %v1397_v19 = vld [vmem:[%s22638_s1 + $0x2a00] sm:$0xff] }
 0x268   :  { %v1401_v20 = vld [vmem:[%s22638_s1 + $0x2a20] sm:$0xff] }
 0x26a   :  { %10038 = vmatpush1.bf16.msra.mxu0 %v15406_v37  ;;  %10597 = vmatpush1.bf16.msra.mxu1 %v15408_v38  ;;  %v1350_v37 = vld [vmem:[%s22638_s1 + $0x2888] sm:$0xff] }
 0x26b   :  { %10039 = vmatprep.subr.bf16.mxu0 %v15415_v39  ;;  %10598 = vmatprep.subr.bf16.mxu1 %v15417_v40  ;;  %v1354_v38 = vld [vmem:[%s22638_s1 + $0x28a8] sm:$0xff]  ;;  %v15470_v39 = vcombine.low %v1341_v25, %v1345_v26  ;;  %v15472_v40 = vcombine.low %v1342_v28, %v1346_v29  ;;  %v15527_v25 = vcombine.high %v1397_v19, %v1401_v20  ;;  %v1409_v28 = vld [vmem:[%s22638_s1 + $0x2a60] sm:$0xff] }
 0x26c   :  { %v15481_v42 = vcombine.high %v1350_v37, %v1354_v38  ;;  %v1406_v29 = vld [vmem:[%s22638_s1 + $0x2a48] sm:$0xff] }
 0x26e   :  { %10040 = vmatpush1.bf16.msra.mxu0 %v15414_v45  ;;  %10599 = vmatpush1.bf16.msra.mxu1 %v15416_v46  ;;  %v1358_v45 = vld [vmem:[%s22638_s1 + $0x28c8] sm:$0xff] }
 0x26f   :  { %10041 = vmatprep.subr.bf16.mxu0 %v15423_v47  ;;  %10600 = vmatprep.subr.bf16.mxu1 %v15425_v48  ;;  %v1362_v46 = vld [vmem:[%s22638_s1 + $0x28e8] sm:$0xff]  ;;  %v15478_v47 = vcombine.low %v1349_v34, %v1353_v35  ;;  %v15480_v48 = vcombine.low %v1350_v37, %v1354_v38  ;;  %v1413_v35 = vld [vmem:[%s22638_s1 + $0x2a80] sm:$0xff] }
 0x270   :  { %v15489_v50 = vcombine.high %v1358_v45, %v1362_v46  ;;  %v1414_v37 = vld [vmem:[%s22638_s1 + $0x2a88] sm:$0xff] }
 0x271   :  { %v1418_v38 = vld [vmem:[%s22638_s1 + $0x2aa8] sm:$0xff] }
 0x272   :  { %10042 = vmatpush1.bf16.msra.mxu0 %v15422_v53  ;;  %10601 = vmatpush1.bf16.msra.mxu1 %v15424_v54  ;;  %v1366_v53 = vld [vmem:[%s22638_s1 + $0x2908] sm:$0xff] }
 0x273   :  { %10043 = vmatprep.subr.bf16.mxu0 %v15431_v55  ;;  %10602 = vmatprep.subr.bf16.mxu1 %v15433_v56  ;;  %v1370_v54 = vld [vmem:[%s22638_s1 + $0x2928] sm:$0xff]  ;;  %v15486_v55 = vcombine.low %v1357_v43, %v1361_v44  ;;  %v15488_v56 = vcombine.low %v1358_v45, %v1362_v46  ;;  %v1421_v43 = vld [vmem:[%s22638_s1 + $0x2ac0] sm:$0xff] }
 0x274   :  { %v15497_v58 = vcombine.high %v1366_v53, %v1370_v54  ;;  %v1425_v44 = vld [vmem:[%s22638_s1 + $0x2ae0] sm:$0xff]  ;;  %v1422_v45 = vld [vmem:[%s22638_s1 + $0x2ac8] sm:$0xff] }
 0x275   :  { %v1426_v46 = vld [vmem:[%s22638_s1 + $0x2ae8] sm:$0xff] }
 0x276   :  { %10044 = vmatpush1.bf16.msra.mxu0 %v15430_v61  ;;  %10603 = vmatpush1.bf16.msra.mxu1 %v15432_v62  ;;  %v1374_v61 = vld [vmem:[%s22638_s1 + $0x2948] sm:$0xff] }
 0x277   :  { %10045 = vmatprep.subr.bf16.mxu0 %v15439_v63  ;;  %10604 = vmatprep.subr.bf16.mxu1 %v15441_v0  ;;  %v1378_v62 = vld [vmem:[%s22638_s1 + $0x2968] sm:$0xff]  ;;  %v15494_v63 = vcombine.low %v1365_v51, %v1369_v52  ;;  %v15496_v0 = vcombine.low %v1366_v53, %v1370_v54  ;;  %v1429_v51 = vld [vmem:[%s22638_s1 + $0x2b00] sm:$0xff] }
 0x278   :  { %v15505_v2 = vcombine.high %v1374_v61, %v1378_v62  ;;  %v1433_v52 = vld [vmem:[%s22638_s1 + $0x2b20] sm:$0xff]  ;;  %v1430_v53 = vld [vmem:[%s22638_s1 + $0x2b08] sm:$0xff] }
 0x279   :  { %v1434_v54 = vld [vmem:[%s22638_s1 + $0x2b28] sm:$0xff] }
 0x27a   :  { %10046 = vmatpush1.bf16.msra.mxu0 %v15438_v5  ;;  %10605 = vmatpush1.bf16.msra.mxu1 %v15440_v6  ;;  %v1382_v5 = vld [vmem:[%s22638_s1 + $0x2988] sm:$0xff] }
 0x27b   :  { %10047 = vmatprep.subr.bf16.mxu0 %v15447_v7  ;;  %10606 = vmatprep.subr.bf16.mxu1 %v15449_v8  ;;  %v1386_v6 = vld [vmem:[%s22638_s1 + $0x29a8] sm:$0xff]  ;;  %v15502_v7 = vcombine.low %v1373_v59, %v1377_v60  ;;  %v15504_v8 = vcombine.low %v1374_v61, %v1378_v62  ;;  %v1437_v59 = vld [vmem:[%s22638_s1 + $0x2b40] sm:$0xff] }
 0x27c   :  { %v15513_v10 = vcombine.high %v1382_v5, %v1386_v6  ;;  %v1441_v60 = vld [vmem:[%s22638_s1 + $0x2b60] sm:$0xff]  ;;  %v1438_v61 = vld [vmem:[%s22638_s1 + $0x2b48] sm:$0xff] }
 0x27d   :  { %v1442_v62 = vld [vmem:[%s22638_s1 + $0x2b68] sm:$0xff] }
 0x27e   :  { %10048 = vmatpush1.bf16.msra.mxu0 %v15446_v13  ;;  %10607 = vmatpush1.bf16.msra.mxu1 %v15448_v14  ;;  %v1390_v13 = vld [vmem:[%s22638_s1 + $0x29c8] sm:$0xff] }
 0x27f   :  { %10049 = vmatprep.subr.bf16.mxu0 %v15455_v15  ;;  %10608 = vmatprep.subr.bf16.mxu1 %v15457_v16  ;;  %v1394_v14 = vld [vmem:[%s22638_s1 + $0x29e8] sm:$0xff]  ;;  %v15510_v15 = vcombine.low %v1381_v3, %v1385_v4  ;;  %v15512_v16 = vcombine.low %v1382_v5, %v1386_v6  ;;  %v1445_v3 = vld [vmem:[%s22638_s1 + $0x2b80] sm:$0xff] }
 0x280   :  { %v15521_v18 = vcombine.high %v1390_v13, %v1394_v14  ;;  %v1449_v4 = vld [vmem:[%s22638_s1 + $0x2ba0] sm:$0xff]  ;;  %v1446_v5 = vld [vmem:[%s22638_s1 + $0x2b88] sm:$0xff] }
 0x281   :  { %v1450_v6 = vld [vmem:[%s22638_s1 + $0x2ba8] sm:$0xff] }
 0x282   :  { %10050 = vmatpush1.bf16.msra.mxu0 %v15454_v21  ;;  %10609 = vmatpush1.bf16.msra.mxu1 %v15456_v22  ;;  %v1398_v21 = vld [vmem:[%s22638_s1 + $0x2a08] sm:$0xff] }
 0x283   :  { %10062 = vmatprep.subr.bf16.mxu0 %v15463_v23  ;;  %10621 = vmatprep.subr.bf16.mxu1 %v15465_v24  ;;  %v1402_v22 = vld [vmem:[%s22638_s1 + $0x2a28] sm:$0xff]  ;;  %v15518_v23 = vcombine.low %v1389_v11, %v1393_v12  ;;  %v15520_v24 = vcombine.low %v1390_v13, %v1394_v14  ;;  %v1453_v11 = vld [vmem:[%s22638_s1 + $0x2bc0] sm:$0xff] }
 0x284   :  { %v15529_v26 = vcombine.high %v1398_v21, %v1402_v22  ;;  %v1457_v12 = vld [vmem:[%s22638_s1 + $0x2be0] sm:$0xff]  ;;  %v1454_v13 = vld [vmem:[%s22638_s1 + $0x2bc8] sm:$0xff] }
 0x285   :  { %10052 = vmatmul.mubr.bf16.vlgmr.msra.gmra.mrb[0].mxu0 %v16357_v27  ;;  %10611 = vmatmul.mubr.bf16.vlgmr.msra.gmra.mrb[0].mxu1 %v16357_v27  ;;  %v1405_v27 = vld [vmem:[%s22638_s1 + $0x2a40] sm:$0xff]  ;;  %v1458_v14 = vld [vmem:[%s22638_s1 + $0x2be8] sm:$0xff] }
 0x286   :  { %10063 = vmatpush1.bf16.msra.mxu0 %v15462_v30  ;;  %10622 = vmatpush1.bf16.msra.mxu1 %v15464_v31  ;;  %v1410_v30 = vld [vmem:[%s22638_s1 + $0x2a68] sm:$0xff]  ;;  %v15526_v31 = vcombine.low %v1397_v19, %v1401_v20  ;;  %v1461_v19 = vld [vmem:[%s22638_s1 + $0x2c00] sm:$0xff] }
 0x287   :  { %10064 = vmatprep.subr.bf16.mxu0 %v15471_v32  ;;  %10623 = vmatprep.subr.bf16.mxu1 %v15473_v33  ;;  %v15528_v32 = vcombine.low %v1398_v21, %v1402_v22  ;;  %v15535_v33 = vcombine.high %v1405_v27, %v1409_v28  ;;  %v15537_v34 = vcombine.high %v1406_v29, %v1410_v30  ;;  %v1465_v20 = vld [vmem:[%s22638_s1 + $0x2c20] sm:$0xff]  ;;  %v1462_v21 = vld [vmem:[%s22638_s1 + $0x2c08] sm:$0xff] }
 0x288   :  { %10094 = vmatprep.mubr.bf16.mxu0 %v16358_v36  ;;  %10653 = vmatprep.mubr.bf16.mxu1 %v16358_v36  ;;  %v1417_v36 = vld [vmem:[%s22638_s1 + $0x2aa0] sm:$0xff]  ;;  %v1466_v22 = vld [vmem:[%s22638_s1 + $0x2c28] sm:$0xff] }
 0x28a   :  { %10065 = vmatpush1.bf16.msra.mxu0 %v15470_v39  ;;  %10624 = vmatpush1.bf16.msra.mxu1 %v15472_v40  ;;  %v15534_v39 = vcombine.low %v1405_v27, %v1409_v28  ;;  %v15536_v40 = vcombine.low %v1406_v29, %v1410_v30  ;;  %v1469_v27 = vld [vmem:[%s22638_s1 + $0x2c40] sm:$0xff]  ;;  %v16360_v29 = vld [vmem:[%s22639_s0 + $0x50] ss:$100 sps:$4 sm:$0xff]   ;;  %v1470_v30 = vld [vmem:[%s22638_s1 + $0x2c48] sm:$0xff] }
 0x28b   :  { %10066 = vmatprep.subr.bf16.mxu0 %v15479_v41  ;;  %10625 = vmatprep.subr.bf16.mxu1 %v15481_v42  ;;  %v15543_v41 = vcombine.high %v1413_v35, %v1417_v36  ;;  %v15545_v42 = vcombine.high %v1414_v37, %v1418_v38  ;;  %v1473_v28 = vld [vmem:[%s22638_s1 + $0x2c60] sm:$0xff] }
 0x28e   :  { %10067 = vmatpush1.bf16.msra.mxu0 %v15478_v47  ;;  %10626 = vmatpush1.bf16.msra.mxu1 %v15480_v48  ;;  %v15542_v47 = vcombine.low %v1413_v35, %v1417_v36  ;;  %v15544_v48 = vcombine.low %v1414_v37, %v1418_v38  ;;  %v1477_v36 = vld [vmem:[%s22638_s1 + $0x2c80] sm:$0xff] }
 0x28f   :  { %10068 = vmatprep.subr.bf16.mxu0 %v15487_v49  ;;  %10627 = vmatprep.subr.bf16.mxu1 %v15489_v50  ;;  %v15551_v49 = vcombine.high %v1421_v43, %v1425_v44  ;;  %v15553_v50 = vcombine.high %v1422_v45, %v1426_v46  ;;  %v1481_v37 = vld [vmem:[%s22638_s1 + $0x2ca0] sm:$0xff] }
 0x290   :  { %v16361_v38 = vld [vmem:[%s22639_s0 + $0x5c] ss:$100 sps:$4 sm:$0xff]  }
 0x292   :  { %10069 = vmatpush1.bf16.msra.mxu0 %v15486_v55  ;;  %10628 = vmatpush1.bf16.msra.mxu1 %v15488_v56  ;;  %v15550_v55 = vcombine.low %v1421_v43, %v1425_v44  ;;  %v15552_v56 = vcombine.low %v1422_v45, %v1426_v46  ;;  %v15607_v43 = vcombine.high %v1477_v36, %v1481_v37  ;;  %v1485_v45 = vld [vmem:[%s22638_s1 + $0x2cc0] sm:$0xff] }
 0x293   :  { %10070 = vmatprep.subr.bf16.mxu0 %v15495_v57  ;;  %10629 = vmatprep.subr.bf16.mxu1 %v15497_v58  ;;  %v15559_v57 = vcombine.high %v1429_v51, %v1433_v52  ;;  %v15561_v58 = vcombine.high %v1430_v53, %v1434_v54  ;;  %v1489_v46 = vld [vmem:[%s22638_s1 + $0x2ce0] sm:$0xff] }
 0x296   :  { %10071 = vmatpush1.bf16.msra.mxu0 %v15494_v63  ;;  %10630 = vmatpush1.bf16.msra.mxu1 %v15496_v0  ;;  %v15558_v63 = vcombine.low %v1429_v51, %v1433_v52  ;;  %v15560_v0 = vcombine.low %v1430_v53, %v1434_v54  ;;  %v15615_v51 = vcombine.high %v1485_v45, %v1489_v46  ;;  %v1493_v53 = vld [vmem:[%s22638_s1 + $0x2d00] sm:$0xff] }
 0x297   :  { %10072 = vmatprep.subr.bf16.mxu0 %v15503_v1  ;;  %10631 = vmatprep.subr.bf16.mxu1 %v15505_v2  ;;  %v15567_v1 = vcombine.high %v1437_v59, %v1441_v60  ;;  %v15569_v2 = vcombine.high %v1438_v61, %v1442_v62  ;;  %v1497_v54 = vld [vmem:[%s22638_s1 + $0x2d20] sm:$0xff] }
 0x29a   :  { %10073 = vmatpush1.bf16.msra.mxu0 %v15502_v7  ;;  %10632 = vmatpush1.bf16.msra.mxu1 %v15504_v8  ;;  %v15566_v7 = vcombine.low %v1437_v59, %v1441_v60  ;;  %v15568_v8 = vcombine.low %v1438_v61, %v1442_v62  ;;  %v15623_v59 = vcombine.high %v1493_v53, %v1497_v54  ;;  %v1501_v61 = vld [vmem:[%s22638_s1 + $0x2d40] sm:$0xff] }
 0x29b   :  { %10074 = vmatprep.subr.bf16.mxu0 %v15511_v9  ;;  %10633 = vmatprep.subr.bf16.mxu1 %v15513_v10  ;;  %v15575_v9 = vcombine.high %v1445_v3, %v1449_v4  ;;  %v15577_v10 = vcombine.high %v1446_v5, %v1450_v6  ;;  %v1505_v62 = vld [vmem:[%s22638_s1 + $0x2d60] sm:$0xff] }
 0x29e   :  { %10075 = vmatpush1.bf16.msra.mxu0 %v15510_v15  ;;  %10634 = vmatpush1.bf16.msra.mxu1 %v15512_v16  ;;  %v15574_v15 = vcombine.low %v1445_v3, %v1449_v4  ;;  %v15576_v16 = vcombine.low %v1446_v5, %v1450_v6  ;;  %v15631_v3 = vcombine.high %v1501_v61, %v1505_v62  ;;  %v1509_v5 = vld [vmem:[%s22638_s1 + $0x2d80] sm:$0xff] }
 0x29f   :  { %10076 = vmatprep.subr.bf16.mxu0 %v15519_v17  ;;  %10635 = vmatprep.subr.bf16.mxu1 %v15521_v18  ;;  %v15583_v17 = vcombine.high %v1453_v11, %v1457_v12  ;;  %v15585_v18 = vcombine.high %v1454_v13, %v1458_v14  ;;  %v1513_v6 = vld [vmem:[%s22638_s1 + $0x2da0] sm:$0xff] }
 0x2a2   :  { %10077 = vmatpush1.bf16.msra.mxu0 %v15518_v23  ;;  %10636 = vmatpush1.bf16.msra.mxu1 %v15520_v24  ;;  %v15582_v23 = vcombine.low %v1453_v11, %v1457_v12  ;;  %v15584_v24 = vcombine.low %v1454_v13, %v1458_v14  ;;  %v15639_v11 = vcombine.high %v1509_v5, %v1513_v6  ;;  %v1517_v13 = vld [vmem:[%s22638_s1 + $0x2dc0] sm:$0xff] }
 0x2a3   :  { %10078 = vmatprep.subr.bf16.mxu0 %v15527_v25  ;;  %10637 = vmatprep.subr.bf16.mxu1 %v15529_v26  ;;  %v15591_v25 = vcombine.high %v1461_v19, %v1465_v20  ;;  %v15593_v26 = vcombine.high %v1462_v21, %v1466_v22  ;;  %v1521_v14 = vld [vmem:[%s22638_s1 + $0x2de0] sm:$0xff] }
 0x2a6   :  { %10079 = vmatpush1.bf16.msra.mxu0 %v15526_v31  ;;  %10638 = vmatpush1.bf16.msra.mxu1 %v15528_v32  ;;  %v1474_v31 = vld [vmem:[%s22638_s1 + $0x2c68] sm:$0xff]  ;;  %v15590_v32 = vcombine.low %v1461_v19, %v1465_v20  ;;  %v15647_v19 = vcombine.high %v1517_v13, %v1521_v14 }
 0x2a7   :  { %10080 = vmatprep.subr.bf16.mxu0 %v15535_v33  ;;  %10639 = vmatprep.subr.bf16.mxu1 %v15537_v34  ;;  %v15592_v33 = vcombine.low %v1462_v21, %v1466_v22  ;;  %v15599_v34 = vcombine.high %v1469_v27, %v1473_v28  ;;  %v15601_v35 = vcombine.high %v1470_v30, %v1474_v31  ;;  %v1525_v21 = vld [vmem:[%s22638_s1 + $0x2e00] sm:$0xff] }
 0x2a8   :  { %v1529_v22 = vld [vmem:[%s22638_s1 + $0x2e20] sm:$0xff] }
 0x2aa   :  { %10081 = vmatpush1.bf16.msra.mxu0 %v15534_v39  ;;  %10640 = vmatpush1.bf16.msra.mxu1 %v15536_v40  ;;  %v1478_v39 = vld [vmem:[%s22638_s1 + $0x2c88] sm:$0xff] }
 0x2ab   :  { %10082 = vmatprep.subr.bf16.mxu0 %v15543_v41  ;;  %10641 = vmatprep.subr.bf16.mxu1 %v15545_v42  ;;  %v1482_v40 = vld [vmem:[%s22638_s1 + $0x2ca8] sm:$0xff]  ;;  %v15598_v41 = vcombine.low %v1469_v27, %v1473_v28  ;;  %v15600_v42 = vcombine.low %v1470_v30, %v1474_v31  ;;  %v15655_v27 = vcombine.high %v1525_v21, %v1529_v22  ;;  %v1537_v30 = vld [vmem:[%s22638_s1 + $0x2e60] sm:$0xff] }
 0x2ac   :  { %v15609_v44 = vcombine.high %v1478_v39, %v1482_v40  ;;  %v1534_v31 = vld [vmem:[%s22638_s1 + $0x2e48] sm:$0xff] }
 0x2ae   :  { %10083 = vmatpush1.bf16.msra.mxu0 %v15542_v47  ;;  %10642 = vmatpush1.bf16.msra.mxu1 %v15544_v48  ;;  %v1486_v47 = vld [vmem:[%s22638_s1 + $0x2cc8] sm:$0xff] }
 0x2af   :  { %10084 = vmatprep.subr.bf16.mxu0 %v15551_v49  ;;  %10643 = vmatprep.subr.bf16.mxu1 %v15553_v50  ;;  %v1490_v48 = vld [vmem:[%s22638_s1 + $0x2ce8] sm:$0xff]  ;;  %v15606_v49 = vcombine.low %v1477_v36, %v1481_v37  ;;  %v15608_v50 = vcombine.low %v1478_v39, %v1482_v40  ;;  %v1541_v37 = vld [vmem:[%s22638_s1 + $0x2e80] sm:$0xff] }
 0x2b0   :  { %v15617_v52 = vcombine.high %v1486_v47, %v1490_v48  ;;  %v1542_v39 = vld [vmem:[%s22638_s1 + $0x2e88] sm:$0xff] }
 0x2b1   :  { %v1546_v40 = vld [vmem:[%s22638_s1 + $0x2ea8] sm:$0xff] }
 0x2b2   :  { %10085 = vmatpush1.bf16.msra.mxu0 %v15550_v55  ;;  %10644 = vmatpush1.bf16.msra.mxu1 %v15552_v56  ;;  %v1494_v55 = vld [vmem:[%s22638_s1 + $0x2d08] sm:$0xff] }
 0x2b3   :  { %10086 = vmatprep.subr.bf16.mxu0 %v15559_v57  ;;  %10645 = vmatprep.subr.bf16.mxu1 %v15561_v58  ;;  %v1498_v56 = vld [vmem:[%s22638_s1 + $0x2d28] sm:$0xff]  ;;  %v15614_v57 = vcombine.low %v1485_v45, %v1489_v46  ;;  %v15616_v58 = vcombine.low %v1486_v47, %v1490_v48  ;;  %v1549_v45 = vld [vmem:[%s22638_s1 + $0x2ec0] sm:$0xff] }
 0x2b4   :  { %v15625_v60 = vcombine.high %v1494_v55, %v1498_v56  ;;  %v1553_v46 = vld [vmem:[%s22638_s1 + $0x2ee0] sm:$0xff]  ;;  %v1550_v47 = vld [vmem:[%s22638_s1 + $0x2ec8] sm:$0xff] }
 0x2b5   :  { %v1554_v48 = vld [vmem:[%s22638_s1 + $0x2ee8] sm:$0xff] }
 0x2b6   :  { %10087 = vmatpush1.bf16.msra.mxu0 %v15558_v63  ;;  %10646 = vmatpush1.bf16.msra.mxu1 %v15560_v0  ;;  %v1502_v63 = vld [vmem:[%s22638_s1 + $0x2d48] sm:$0xff] }
 0x2b7   :  { %10088 = vmatprep.subr.bf16.mxu0 %v15567_v1  ;;  %10647 = vmatprep.subr.bf16.mxu1 %v15569_v2  ;;  %v1506_v0 = vld [vmem:[%s22638_s1 + $0x2d68] sm:$0xff]  ;;  %v15622_v1 = vcombine.low %v1493_v53, %v1497_v54  ;;  %v15624_v2 = vcombine.low %v1494_v55, %v1498_v56  ;;  %v1557_v53 = vld [vmem:[%s22638_s1 + $0x2f00] sm:$0xff] }
 0x2b8   :  { %v15633_v4 = vcombine.high %v1502_v63, %v1506_v0  ;;  %v1561_v54 = vld [vmem:[%s22638_s1 + $0x2f20] sm:$0xff]  ;;  %v1558_v55 = vld [vmem:[%s22638_s1 + $0x2f08] sm:$0xff] }
 0x2b9   :  { %v1562_v56 = vld [vmem:[%s22638_s1 + $0x2f28] sm:$0xff] }
 0x2ba   :  { %10089 = vmatpush1.bf16.msra.mxu0 %v15566_v7  ;;  %10648 = vmatpush1.bf16.msra.mxu1 %v15568_v8  ;;  %v1510_v7 = vld [vmem:[%s22638_s1 + $0x2d88] sm:$0xff] }
 0x2bb   :  { %10090 = vmatprep.subr.bf16.mxu0 %v15575_v9  ;;  %10649 = vmatprep.subr.bf16.mxu1 %v15577_v10  ;;  %v1514_v8 = vld [vmem:[%s22638_s1 + $0x2da8] sm:$0xff]  ;;  %v15630_v9 = vcombine.low %v1501_v61, %v1505_v62  ;;  %v15632_v10 = vcombine.low %v1502_v63, %v1506_v0  ;;  %v1565_v61 = vld [vmem:[%s22638_s1 + $0x2f40] sm:$0xff] }
 0x2bc   :  { %v15641_v12 = vcombine.high %v1510_v7, %v1514_v8  ;;  %v1569_v62 = vld [vmem:[%s22638_s1 + $0x2f60] sm:$0xff]  ;;  %v1566_v63 = vld [vmem:[%s22638_s1 + $0x2f48] sm:$0xff] }
 0x2bd   :  { %v1570_v0 = vld [vmem:[%s22638_s1 + $0x2f68] sm:$0xff] }
 0x2be   :  { %10091 = vmatpush1.bf16.msra.mxu0 %v15574_v15  ;;  %10650 = vmatpush1.bf16.msra.mxu1 %v15576_v16  ;;  %v1518_v15 = vld [vmem:[%s22638_s1 + $0x2dc8] sm:$0xff] }
 0x2bf   :  { %10092 = vmatprep.subr.bf16.mxu0 %v15583_v17  ;;  %10651 = vmatprep.subr.bf16.mxu1 %v15585_v18  ;;  %v1522_v16 = vld [vmem:[%s22638_s1 + $0x2de8] sm:$0xff]  ;;  %v15638_v17 = vcombine.low %v1509_v5, %v1513_v6  ;;  %v15640_v18 = vcombine.low %v1510_v7, %v1514_v8  ;;  %v1573_v5 = vld [vmem:[%s22638_s1 + $0x2f80] sm:$0xff] }
 0x2c0   :  { %v15649_v20 = vcombine.high %v1518_v15, %v1522_v16  ;;  %v1577_v6 = vld [vmem:[%s22638_s1 + $0x2fa0] sm:$0xff]  ;;  %v1574_v7 = vld [vmem:[%s22638_s1 + $0x2f88] sm:$0xff] }
 0x2c1   :  { %v1578_v8 = vld [vmem:[%s22638_s1 + $0x2fa8] sm:$0xff] }
 0x2c2   :  { %10093 = vmatpush1.bf16.msra.mxu0 %v15582_v23  ;;  %10652 = vmatpush1.bf16.msra.mxu1 %v15584_v24  ;;  %v1526_v23 = vld [vmem:[%s22638_s1 + $0x2e08] sm:$0xff] }
 0x2c3   :  { %10105 = vmatprep.subr.bf16.mxu0 %v15591_v25  ;;  %10664 = vmatprep.subr.bf16.mxu1 %v15593_v26  ;;  %v1530_v24 = vld [vmem:[%s22638_s1 + $0x2e28] sm:$0xff]  ;;  %v15646_v25 = vcombine.low %v1517_v13, %v1521_v14  ;;  %v15648_v26 = vcombine.low %v1518_v15, %v1522_v16  ;;  %v1581_v13 = vld [vmem:[%s22638_s1 + $0x2fc0] sm:$0xff] }
 0x2c4   :  { %v15657_v28 = vcombine.high %v1526_v23, %v1530_v24  ;;  %v1585_v14 = vld [vmem:[%s22638_s1 + $0x2fe0] sm:$0xff]  ;;  %v1582_v15 = vld [vmem:[%s22638_s1 + $0x2fc8] sm:$0xff] }
 0x2c5   :  { %10095 = vmatmul.mubr.bf16.vlgmr.msra.gmra.mrb[0].mxu0 %v16360_v29  ;;  %10654 = vmatmul.mubr.bf16.vlgmr.msra.gmra.mrb[0].mxu1 %v16360_v29  ;;  %v1533_v29 = vld [vmem:[%s22638_s1 + $0x2e40] sm:$0xff]  ;;  %v1586_v16 = vld [vmem:[%s22638_s1 + $0x2fe8] sm:$0xff] }
 0x2c6   :  { %10106 = vmatpush1.bf16.msra.mxu0 %v15590_v32  ;;  %10665 = vmatpush1.bf16.msra.mxu1 %v15592_v33  ;;  %v1538_v32 = vld [vmem:[%s22638_s1 + $0x2e68] sm:$0xff]  ;;  %v15654_v33 = vcombine.low %v1525_v21, %v1529_v22  ;;  %v1589_v21 = vld [vmem:[%s22638_s1 + $0x3000] sm:$0xff] }
 0x2c7   :  { %10107 = vmatprep.subr.bf16.mxu0 %v15599_v34  ;;  %10666 = vmatprep.subr.bf16.mxu1 %v15601_v35  ;;  %v15656_v34 = vcombine.low %v1526_v23, %v1530_v24  ;;  %v15663_v35 = vcombine.high %v1533_v29, %v1537_v30  ;;  %v15665_v36 = vcombine.high %v1534_v31, %v1538_v32  ;;  %v1593_v22 = vld [vmem:[%s22638_s1 + $0x3020] sm:$0xff]  ;;  %v1590_v23 = vld [vmem:[%s22638_s1 + $0x3008] sm:$0xff] }
 0x2c8   :  { %10137 = vmatprep.mubr.bf16.mxu0 %v16361_v38  ;;  %10696 = vmatprep.mubr.bf16.mxu1 %v16361_v38  ;;  %v1545_v38 = vld [vmem:[%s22638_s1 + $0x2ea0] sm:$0xff]  ;;  %v1594_v24 = vld [vmem:[%s22638_s1 + $0x3028] sm:$0xff] }
 0x2ca   :  { %10108 = vmatpush1.bf16.msra.mxu0 %v15598_v41  ;;  %10667 = vmatpush1.bf16.msra.mxu1 %v15600_v42  ;;  %v15662_v41 = vcombine.low %v1533_v29, %v1537_v30  ;;  %v15664_v42 = vcombine.low %v1534_v31, %v1538_v32  ;;  %v1597_v29 = vld [vmem:[%s22638_s1 + $0x3040] sm:$0xff]  ;;  %v16363_v31 = vld [vmem:[%s22639_s0 + $0x58] ss:$100 sps:$4 sm:$0xff]   ;;  %v1598_v32 = vld [vmem:[%s22638_s1 + $0x3048] sm:$0xff] }
 0x2cb   :  { %10109 = vmatprep.subr.bf16.mxu0 %v15607_v43  ;;  %10668 = vmatprep.subr.bf16.mxu1 %v15609_v44  ;;  %v15671_v43 = vcombine.high %v1541_v37, %v1545_v38  ;;  %v15673_v44 = vcombine.high %v1542_v39, %v1546_v40  ;;  %v1601_v30 = vld [vmem:[%s22638_s1 + $0x3060] sm:$0xff] }
 0x2ce   :  { %10110 = vmatpush1.bf16.msra.mxu0 %v15606_v49  ;;  %10669 = vmatpush1.bf16.msra.mxu1 %v15608_v50  ;;  %v15670_v49 = vcombine.low %v1541_v37, %v1545_v38  ;;  %v15672_v50 = vcombine.low %v1542_v39, %v1546_v40  ;;  %v1605_v38 = vld [vmem:[%s22638_s1 + $0x3080] sm:$0xff]  ;;  %v1606_v40 = vld [vmem:[%s22638_s1 + $0x3088] sm:$0xff] }
 0x2cf   :  { %10111 = vmatprep.subr.bf16.mxu0 %v15615_v51  ;;  %10670 = vmatprep.subr.bf16.mxu1 %v15617_v52  ;;  %v15679_v51 = vcombine.high %v1549_v45, %v1553_v46  ;;  %v15681_v52 = vcombine.high %v1550_v47, %v1554_v48  ;;  %v1609_v39 = vld [vmem:[%s22638_s1 + $0x30a0] sm:$0xff] }
 0x2d2   :  { %10112 = vmatpush1.bf16.msra.mxu0 %v15614_v57  ;;  %10671 = vmatpush1.bf16.msra.mxu1 %v15616_v58  ;;  %v15678_v57 = vcombine.low %v1549_v45, %v1553_v46  ;;  %v15680_v58 = vcombine.low %v1550_v47, %v1554_v48  ;;  %v1613_v46 = vld [vmem:[%s22638_s1 + $0x30c0] sm:$0xff]  ;;  %v16807_v48 = vmov 0  }
 0x2d3   :  { %10113 = vmatprep.subr.bf16.mxu0 %v15623_v59  ;;  %10672 = vmatprep.subr.bf16.mxu1 %v15625_v60  ;;  %v15687_v59 = vcombine.high %v1557_v53, %v1561_v54  ;;  %v15689_v60 = vcombine.high %v1558_v55, %v1562_v56  ;;  %v1617_v47 = vld [vmem:[%s22638_s1 + $0x30e0] sm:$0xff] }
 0x2d6   :  { %10114 = vmatpush1.bf16.msra.mxu0 %v15622_v1  ;;  %10673 = vmatpush1.bf16.msra.mxu1 %v15624_v2  ;;  %v15686_v1 = vcombine.low %v1557_v53, %v1561_v54  ;;  %v15688_v2 = vcombine.low %v1558_v55, %v1562_v56  ;;  %v15743_v53 = vcombine.high %v1613_v46, %v1617_v47  ;;  %v55_v55 = vld [vmem:[%s22638_s1 + $0x10] sm:$0xff] }
 0x2d7   :  { %10115 = vmatprep.subr.bf16.mxu0 %v15631_v3  ;;  %10674 = vmatprep.subr.bf16.mxu1 %v15633_v4  ;;  %v15695_v3 = vcombine.high %v1565_v61, %v1569_v62  ;;  %v15697_v4 = vcombine.high %v1566_v63, %v1570_v0  ;;  %v59_v56 = vld [vmem:[%s22638_s1 + $0x30] sm:$0xff] }
 0x2da   :  { %10116 = vmatpush1.bf16.msra.mxu0 %v15630_v9  ;;  %10675 = vmatpush1.bf16.msra.mxu1 %v15632_v10  ;;  %v15694_v9 = vcombine.low %v1565_v61, %v1569_v62  ;;  %v15696_v10 = vcombine.low %v1566_v63, %v1570_v0  ;;  %v14187_v61 = vcombine.high %v55_v55, %v59_v56  ;;  %v63_v63 = vld [vmem:[%s22638_s1 + $0x50] sm:$0xff] }
 0x2db   :  { %10117 = vmatprep.subr.bf16.mxu0 %v15639_v11  ;;  %10676 = vmatprep.subr.bf16.mxu1 %v15641_v12  ;;  %v15703_v11 = vcombine.high %v1573_v5, %v1577_v6  ;;  %v15705_v12 = vcombine.high %v1574_v7, %v1578_v8  ;;  %v67_v0 = vld [vmem:[%s22638_s1 + $0x70] sm:$0xff] }
 0x2de   :  { %10118 = vmatpush1.bf16.msra.mxu0 %v15638_v17  ;;  %10677 = vmatpush1.bf16.msra.mxu1 %v15640_v18  ;;  %v15702_v17 = vcombine.low %v1573_v5, %v1577_v6  ;;  %v15704_v18 = vcombine.low %v1574_v7, %v1578_v8  ;;  %v14195_v6 = vcombine.high %v63_v63, %v67_v0  ;;  %v71_v8 = vld [vmem:[%s22638_s1 + $0x90] sm:$0xff] }
 0x2df   :  { %10119 = vmatprep.subr.bf16.mxu0 %v15647_v19  ;;  %10678 = vmatprep.subr.bf16.mxu1 %v15649_v20  ;;  %v15711_v19 = vcombine.high %v1581_v13, %v1585_v14  ;;  %v15713_v20 = vcombine.high %v1582_v15, %v1586_v16 }
 0x2e2   :  { %10120 = vmatpush1.bf16.msra.mxu0 %v15646_v25  ;;  %10679 = vmatpush1.bf16.msra.mxu1 %v15648_v26  ;;  %v15710_v25 = vcombine.low %v1581_v13, %v1585_v14  ;;  %v15712_v26 = vcombine.low %v1582_v15, %v1586_v16  ;;  %v79_v16 = vld [vmem:[%s22638_s1 + $0xd0] sm:$0xff] }
 0x2e3   :  { %10121 = vmatprep.subr.bf16.mxu0 %v15655_v27  ;;  %10680 = vmatprep.subr.bf16.mxu1 %v15657_v28  ;;  %v15719_v27 = vcombine.high %v1589_v21, %v1593_v22  ;;  %v15721_v28 = vcombine.high %v1590_v23, %v1594_v24 }
 0x2e6   :  { %10122 = vmatpush1.bf16.msra.mxu0 %v15654_v33  ;;  %10681 = vmatpush1.bf16.msra.mxu1 %v15656_v34  ;;  %v1602_v33 = vld [vmem:[%s22638_s1 + $0x3068] sm:$0xff]  ;;  %v15718_v34 = vcombine.low %v1589_v21, %v1593_v22 }
 0x2e7   :  { %10123 = vmatprep.subr.bf16.mxu0 %v15663_v35  ;;  %10682 = vmatprep.subr.bf16.mxu1 %v15665_v36  ;;  %v15720_v35 = vcombine.low %v1590_v23, %v1594_v24  ;;  %v15727_v36 = vcombine.high %v1597_v29, %v1601_v30  ;;  %v15729_v37 = vcombine.high %v1598_v32, %v1602_v33 }
 0x2ea   :  { %10124 = vmatpush1.bf16.msra.mxu0 %v15662_v41  ;;  %10683 = vmatpush1.bf16.msra.mxu1 %v15664_v42  ;;  %v1610_v41 = vld [vmem:[%s22638_s1 + $0x30a8] sm:$0xff]  ;;  %v15726_v42 = vcombine.low %v1597_v29, %v1601_v30 }
 0x2eb   :  { %10125 = vmatprep.subr.bf16.mxu0 %v15671_v43  ;;  %10684 = vmatprep.subr.bf16.mxu1 %v15673_v44  ;;  %v15728_v43 = vcombine.low %v1598_v32, %v1602_v33  ;;  %v15735_v44 = vcombine.high %v1605_v38, %v1609_v39  ;;  %v15737_v45 = vcombine.high %v1606_v40, %v1610_v41  ;;  %v95_v33 = vld [vmem:[%s22638_s1 + $0x150] sm:$0xff] }
 0x2ee   :  { %10126 = vmatpush1.bf16.msra.mxu0 %v15670_v49  ;;  %10685 = vmatpush1.bf16.msra.mxu1 %v15672_v50  ;;  %v1614_v49 = vld [vmem:[%s22638_s1 + $0x30c8] sm:$0xff] }
 0x2ef   :  { %10127 = vmatprep.subr.bf16.mxu0 %v15679_v51  ;;  %10686 = vmatprep.subr.bf16.mxu1 %v15681_v52  ;;  %v1618_v50 = vld [vmem:[%s22638_s1 + $0x30e8] sm:$0xff]  ;;  %v15734_v51 = vcombine.low %v1605_v38, %v1609_v39  ;;  %v15736_v52 = vcombine.low %v1606_v40, %v1610_v41  ;;  %v103_v41 = vld [vmem:[%s22638_s1 + $0x190] sm:$0xff] }
 0x2f0   :  { %v15745_v54 = vcombine.high %v1614_v49, %v1618_v50 }
 0x2f2   :  { %10128 = vmatpush1.bf16.msra.mxu0 %v15678_v57  ;;  %10687 = vmatpush1.bf16.msra.mxu1 %v15680_v58  ;;  %v56_v57 = vld [vmem:[%s22638_s1 + $0x18] sm:$0xff] }
 0x2f3   :  { %10129 = vmatprep.subr.bf16.mxu0 %v15687_v59  ;;  %10688 = vmatprep.subr.bf16.mxu1 %v15689_v60  ;;  %v60_v58 = vld [vmem:[%s22638_s1 + $0x38] sm:$0xff]  ;;  %v15742_v59 = vcombine.low %v1613_v46, %v1617_v47  ;;  %v15744_v60 = vcombine.low %v1614_v49, %v1618_v50  ;;  %v111_v50 = vld [vmem:[%s22638_s1 + $0x1d0] sm:$0xff] }
 0x2f4   :  { %v14189_v62 = vcombine.high %v56_v57, %v60_v58  ;;  %v14188_v5 = vcombine.low %v56_v57, %v60_v58  ;;  %v119_v58 = vld [vmem:[%s22638_s1 + $0x210] sm:$0xff] }
 0x2f6   :  { %10130 = vmatpush1.bf16.msra.mxu0 %v15686_v1  ;;  %10689 = vmatpush1.bf16.msra.mxu1 %v15688_v2  ;;  %v16364_v1 = vld [vmem:[%s22639_s0 + $0x60] ss:$100 sps:$4 sm:$0xff]   ;;  %v64_v2 = vld [vmem:[%s22638_s1 + $0x58] sm:$0xff] }
 0x2f7   :  { %10131 = vmatprep.subr.bf16.mxu0 %v15695_v3  ;;  %10690 = vmatprep.subr.bf16.mxu1 %v15697_v4  ;;  %v68_v3 = vld [vmem:[%s22638_s1 + $0x78] sm:$0xff]  ;;  %v14186_v4 = vcombine.low %v55_v55, %v59_v56 }
 0x2f8   :  { %v14197_v7 = vcombine.high %v64_v2, %v68_v3  ;;  %v14196_v13 = vcombine.low %v64_v2, %v68_v3  ;;  %v127_v2 = vld [vmem:[%s22638_s1 + $0x250] sm:$0xff] }
 0x2f9   :  { %v131_v3 = vld [vmem:[%s22638_s1 + $0x270] sm:$0xff] }
 0x2fa   :  { %10132 = vmatpush1.bf16.msra.mxu0 %v15694_v9  ;;  %10691 = vmatpush1.bf16.msra.mxu1 %v15696_v10  ;;  %v75_v9 = vld [vmem:[%s22638_s1 + $0xb0] sm:$0xff]  ;;  %v72_v10 = vld [vmem:[%s22638_s1 + $0x98] sm:$0xff] }
 0x2fb   :  { %10133 = vmatprep.subr.bf16.mxu0 %v15703_v11  ;;  %10692 = vmatprep.subr.bf16.mxu1 %v15705_v12  ;;  %v76_v11 = vld [vmem:[%s22638_s1 + $0xb8] sm:$0xff]  ;;  %v14194_v12 = vcombine.low %v63_v63, %v67_v0  ;;  %v14203_v14 = vcombine.high %v71_v8, %v75_v9  ;;  %v14202_v21 = vcombine.low %v71_v8, %v75_v9 }
 0x2fc   :  { %v14205_v15 = vcombine.high %v72_v10, %v76_v11  ;;  %v14204_v22 = vcombine.low %v72_v10, %v76_v11  ;;  %v14259_v8 = vcombine.high %v127_v2, %v131_v3  ;;  %v135_v10 = vld [vmem:[%s22638_s1 + $0x290] sm:$0xff] }
 0x2fd   :  { %v139_v11 = vld [vmem:[%s22638_s1 + $0x2b0] sm:$0xff] }
 0x2fe   :  { %10134 = vmatpush1.bf16.msra.mxu0 %v15702_v17  ;;  %10693 = vmatpush1.bf16.msra.mxu1 %v15704_v18  ;;  %v83_v17 = vld [vmem:[%s22638_s1 + $0xf0] sm:$0xff]  ;;  %v16781_v18 = vld [vmem:[%s22639_s0 + $0x4] ss:$100 sps:$4 sm:$0xff]  }
 0x2ff   :  { %10135 = vmatprep.subr.bf16.mxu0 %v15711_v19  ;;  %10694 = vmatprep.subr.bf16.mxu1 %v15713_v20  ;;  %v80_v19 = vld [vmem:[%s22638_s1 + $0xd8] sm:$0xff]  ;;  %v14211_v23 = vcombine.high %v79_v16, %v83_v17  ;;  %v14210_v29 = vcombine.low %v79_v16, %v83_v17  ;;  %v14267_v16 = vcombine.high %v135_v10, %v139_v11 }
 0x300   :  { %v84_v20 = vld [vmem:[%s22638_s1 + $0xf8] sm:$0xff] }
 0x301   :  { %v14213_v24 = vcombine.high %v80_v19, %v84_v20  ;;  %v14212_v30 = vcombine.low %v80_v19, %v84_v20  ;;  %v147_v19 = vld [vmem:[%s22638_s1 + $0x2f0] sm:$0xff]  ;;  %v144_v20 = vld [vmem:[%s22638_s1 + $0x2d8] sm:$0xff] }
 0x302   :  { %10136 = vmatpush1.bf16.msra.mxu0 %v15710_v25  ;;  %10695 = vmatpush1.bf16.msra.mxu1 %v15712_v26  ;;  %v87_v25 = vld [vmem:[%s22638_s1 + $0x110] sm:$0xff] }
 0x303   :  { %10148 = vmatprep.subr.bf16.mxu0 %v15719_v27  ;;  %10707 = vmatprep.subr.bf16.mxu1 %v15721_v28  ;;  %v91_v26 = vld [vmem:[%s22638_s1 + $0x130] sm:$0xff]  ;;  %v88_v27 = vld [vmem:[%s22638_s1 + $0x118] sm:$0xff] }
 0x304   :  { %v92_v28 = vld [vmem:[%s22638_s1 + $0x138] sm:$0xff] }
 0x305   :  { %10138 = vmatmul.mubr.bf16.vlgmr.msra.gmra.mrb[0].mxu0 %v16363_v31  ;;  %10697 = vmatmul.mubr.bf16.vlgmr.msra.gmra.mrb[0].mxu1 %v16363_v31  ;;  %v14219_v31 = vcombine.high %v87_v25, %v91_v26  ;;  %v14221_v32 = vcombine.high %v88_v27, %v92_v28  ;;  %v14220_v38 = vcombine.low %v88_v27, %v92_v28  ;;  %v155_v27 = vld [vmem:[%s22638_s1 + $0x330] sm:$0xff]  ;;  %v152_v28 = vld [vmem:[%s22638_s1 + $0x318] sm:$0xff] }
 0x306   :  { %10149 = vmatpush1.bf16.msra.mxu0 %v15718_v34  ;;  %10708 = vmatpush1.bf16.msra.mxu1 %v15720_v35  ;;  %v99_v34 = vld [vmem:[%s22638_s1 + $0x170] sm:$0xff]  ;;  %v96_v35 = vld [vmem:[%s22638_s1 + $0x158] sm:$0xff] }
 0x307   :  { %10150 = vmatprep.subr.bf16.mxu0 %v15727_v36  ;;  %10709 = vmatprep.subr.bf16.mxu1 %v15729_v37  ;;  %v100_v36 = vld [vmem:[%s22638_s1 + $0x178] sm:$0xff]  ;;  %v14218_v37 = vcombine.low %v87_v25, %v91_v26  ;;  %v14227_v39 = vcombine.high %v95_v33, %v99_v34  ;;  %v151_v26 = vld [vmem:[%s22638_s1 + $0x310] sm:$0xff] }
 0x308   :  { %10180 = vmatprep.mubr.bf16.mxu0 %v16807_v48  ;;  %10739 = vmatprep.mubr.bf16.mxu1 %v16807_v48  ;;  %v14229_v40 = vcombine.high %v96_v35, %v100_v36  ;;  %v14228_v46 = vcombine.low %v96_v35, %v100_v36  ;;  %v163_v35 = vld [vmem:[%s22638_s1 + $0x370] sm:$0xff]  ;;  %v160_v36 = vld [vmem:[%s22638_s1 + $0x358] sm:$0xff] }
 0x30a   :  { %10151 = vmatpush1.bf16.msra.mxu0 %v15726_v42  ;;  %10710 = vmatpush1.bf16.msra.mxu1 %v15728_v43  ;;  %v107_v42 = vld [vmem:[%s22638_s1 + $0x1b0] sm:$0xff]  ;;  %v104_v43 = vld [vmem:[%s22638_s1 + $0x198] sm:$0xff] }
 0x30b   :  { %10152 = vmatprep.subr.bf16.mxu0 %v15735_v44  ;;  %10711 = vmatprep.subr.bf16.mxu1 %v15737_v45  ;;  %v108_v44 = vld [vmem:[%s22638_s1 + $0x1b8] sm:$0xff]  ;;  %v14226_v45 = vcombine.low %v95_v33, %v99_v34  ;;  %v14235_v47 = vcombine.high %v103_v41, %v107_v42  ;;  %v159_v34 = vld [vmem:[%s22638_s1 + $0x350] sm:$0xff] }
 0x30c   :  { %v14237_v49 = vcombine.high %v104_v43, %v108_v44  ;;  %v14236_v55 = vcombine.low %v104_v43, %v108_v44  ;;  %v171_v43 = vld [vmem:[%s22638_s1 + $0x3b0] sm:$0xff]  ;;  %v168_v44 = vld [vmem:[%s22638_s1 + $0x398] sm:$0xff] }
 0x30e   :  { %10153 = vmatpush1.bf16.msra.mxu0 %v15734_v51  ;;  %10712 = vmatpush1.bf16.msra.mxu1 %v15736_v52  ;;  %v115_v51 = vld [vmem:[%s22638_s1 + $0x1f0] sm:$0xff]  ;;  %v112_v52 = vld [vmem:[%s22638_s1 + $0x1d8] sm:$0xff] }
 0x30f   :  { %10154 = vmatprep.subr.bf16.mxu0 %v15743_v53  ;;  %10713 = vmatprep.subr.bf16.mxu1 %v15745_v54  ;;  %v116_v53 = vld [vmem:[%s22638_s1 + $0x1f8] sm:$0xff]  ;;  %v14234_v54 = vcombine.low %v103_v41, %v107_v42  ;;  %v14243_v56 = vcombine.high %v111_v50, %v115_v51  ;;  %v167_v42 = vld [vmem:[%s22638_s1 + $0x390] sm:$0xff] }
 0x310   :  { %v14245_v57 = vcombine.high %v112_v52, %v116_v53  ;;  %v14244_v63 = vcombine.low %v112_v52, %v116_v53  ;;  %v179_v52 = vld [vmem:[%s22638_s1 + $0x3f0] sm:$0xff]  ;;  %v176_v53 = vld [vmem:[%s22638_s1 + $0x3d8] sm:$0xff] }
 0x312   :  { %10155 = vmatpush1.bf16.msra.mxu0 %v15742_v59  ;;  %10714 = vmatpush1.bf16.msra.mxu1 %v15744_v60  ;;  %v123_v59 = vld [vmem:[%s22638_s1 + $0x230] sm:$0xff]  ;;  %v120_v60 = vld [vmem:[%s22638_s1 + $0x218] sm:$0xff] }
 0x313   :  { %10750 = vmatprep.subr.bf16.mxu0 %v14187_v61  ;;  %11309 = vmatprep.subr.bf16.mxu1 %v14189_v62  ;;  %v124_v61 = vld [vmem:[%s22638_s1 + $0x238] sm:$0xff]  ;;  %v14242_v62 = vcombine.low %v111_v50, %v115_v51  ;;  %v14251_v0 = vcombine.high %v119_v58, %v123_v59  ;;  %v175_v51 = vld [vmem:[%s22638_s1 + $0x3d0] sm:$0xff] }
 0x315   :  { %15750 = vmatmul.mubr.msk.bf16.vlgmr.msra.gmra.mrb[0].mxu0 %vm9628_vm0, %v16364_v1  ;;  %15751 = vmatmul.mubr.msk.bf16.vlgmr.msra.gmra.mrb[0].mxu1 %vm9628_vm0, %v16364_v1  ;;  %v14253_v1 = vcombine.high %v120_v60, %v124_v61 }
 0x316   :  { %10751 = vmatpush1.bf16.msra.mxu0 %v14186_v4  ;;  %11310 = vmatpush1.bf16.msra.mxu1 %v14188_v5  ;;  %v128_v4 = vld [vmem:[%s22638_s1 + $0x258] sm:$0xff] }
 0x317   :  { %10752 = vmatprep.subr.bf16.mxu0 %v14195_v6  ;;  %11311 = vmatprep.subr.bf16.mxu1 %v14197_v7  ;;  %v132_v5 = vld [vmem:[%s22638_s1 + $0x278] sm:$0xff]  ;;  %v14250_v6 = vcombine.low %v119_v58, %v123_v59  ;;  %v14252_v7 = vcombine.low %v120_v60, %v124_v61  ;;  %v183_v59 = vld [vmem:[%s22638_s1 + $0x410] sm:$0xff] }
 0x318   :  { %10782 = vmatprep.mubr.bf16.mxu0 %v16781_v18  ;;  %11341 = vmatprep.mubr.bf16.mxu1 %v16781_v18  ;;  %v14261_v9 = vcombine.high %v128_v4, %v132_v5  ;;  %v143_v18 = vld [vmem:[%s22638_s1 + $0x2d0] sm:$0xff]  ;;  %v184_v61 = vld [vmem:[%s22638_s1 + $0x418] sm:$0xff] }
 0x319   :  { %v187_v60 = vld [vmem:[%s22638_s1 + $0x430] sm:$0xff] }
 0x31a   :  { %10753 = vmatpush1.bf16.msra.mxu0 %v14194_v12  ;;  %11312 = vmatpush1.bf16.msra.mxu1 %v14196_v13  ;;  %v136_v12 = vld [vmem:[%s22638_s1 + $0x298] sm:$0xff] }
 0x31b   :  { %10754 = vmatprep.subr.bf16.mxu0 %v14203_v14  ;;  %11313 = vmatprep.subr.bf16.mxu1 %v14205_v15  ;;  %v140_v13 = vld [vmem:[%s22638_s1 + $0x2b8] sm:$0xff]  ;;  %v14258_v14 = vcombine.low %v127_v2, %v131_v3  ;;  %v14260_v15 = vcombine.low %v128_v4, %v132_v5  ;;  %v191_v3 = vld [vmem:[%s22638_s1 + $0x450] sm:$0xff] }
 0x31c   :  { %v14269_v17 = vcombine.high %v136_v12, %v140_v13  ;;  %v195_v4 = vld [vmem:[%s22638_s1 + $0x470] sm:$0xff]  ;;  %v192_v5 = vld [vmem:[%s22638_s1 + $0x458] sm:$0xff] }
 0x31e   :  { %10755 = vmatpush1.bf16.msra.mxu0 %v14202_v21  ;;  %11314 = vmatpush1.bf16.msra.mxu1 %v14204_v22  ;;  %v148_v21 = vld [vmem:[%s22638_s1 + $0x2f8] sm:$0xff]  ;;  %v14266_v22 = vcombine.low %v135_v10, %v139_v11  ;;  %v199_v11 = vld [vmem:[%s22638_s1 + $0x490] sm:$0xff] }
 0x31f   :  { %10756 = vmatprep.subr.bf16.mxu0 %v14211_v23  ;;  %11315 = vmatprep.subr.bf16.mxu1 %v14213_v24  ;;  %v14268_v23 = vcombine.low %v136_v12, %v140_v13  ;;  %v14275_v24 = vcombine.high %v143_v18, %v147_v19  ;;  %v14277_v25 = vcombine.high %v144_v20, %v148_v21  ;;  %v203_v12 = vld [vmem:[%s22638_s1 + $0x4b0] sm:$0xff]  ;;  %v16782_v13 = vld [vmem:[%s22639_s0] ss:$100 sps:$4 sm:$0xff]  }
 0x322   :  { %10757 = vmatpush1.bf16.msra.mxu0 %v14210_v29  ;;  %11316 = vmatpush1.bf16.msra.mxu1 %v14212_v30  ;;  %v156_v29 = vld [vmem:[%s22638_s1 + $0x338] sm:$0xff]  ;;  %v14274_v30 = vcombine.low %v143_v18, %v147_v19  ;;  %v14331_v18 = vcombine.high %v199_v11, %v203_v12 }
 0x323   :  { %10758 = vmatprep.subr.bf16.mxu0 %v14219_v31  ;;  %11317 = vmatprep.subr.bf16.mxu1 %v14221_v32  ;;  %v14276_v31 = vcombine.low %v144_v20, %v148_v21  ;;  %v14283_v32 = vcombine.high %v151_v26, %v155_v27  ;;  %v14285_v33 = vcombine.high %v152_v28, %v156_v29  ;;  %v207_v20 = vld [vmem:[%s22638_s1 + $0x4d0] sm:$0xff] }
 0x324   :  { %v211_v21 = vld [vmem:[%s22638_s1 + $0x4f0] sm:$0xff] }
 0x326   :  { %10759 = vmatpush1.bf16.msra.mxu0 %v14218_v37  ;;  %11318 = vmatpush1.bf16.msra.mxu1 %v14220_v38  ;;  %v164_v37 = vld [vmem:[%s22638_s1 + $0x378] sm:$0xff]  ;;  %v14282_v38 = vcombine.low %v151_v26, %v155_v27  ;;  %v14339_v27 = vcombine.high %v207_v20, %v211_v21 }
 0x327   :  { %10760 = vmatprep.subr.bf16.mxu0 %v14227_v39  ;;  %11319 = vmatprep.subr.bf16.mxu1 %v14229_v40  ;;  %v14284_v39 = vcombine.low %v152_v28, %v156_v29  ;;  %v14291_v40 = vcombine.high %v159_v34, %v163_v35  ;;  %v14293_v41 = vcombine.high %v160_v36, %v164_v37  ;;  %v215_v29 = vld [vmem:[%s22638_s1 + $0x510] sm:$0xff] }
 0x32a   :  { %10761 = vmatpush1.bf16.msra.mxu0 %v14226_v45  ;;  %11320 = vmatpush1.bf16.msra.mxu1 %v14228_v46  ;;  %v172_v45 = vld [vmem:[%s22638_s1 + $0x3b8] sm:$0xff]  ;;  %v14290_v46 = vcombine.low %v159_v34, %v163_v35 }
 0x32b   :  { %10762 = vmatprep.subr.bf16.mxu0 %v14235_v47  ;;  %11321 = vmatprep.subr.bf16.mxu1 %v14237_v49  ;;  %v14292_v47 = vcombine.low %v160_v36, %v164_v37  ;;  %v14299_v49 = vcombine.high %v167_v42, %v171_v43  ;;  %v14301_v50 = vcombine.high %v168_v44, %v172_v45  ;;  %v223_v37 = vld [vmem:[%s22638_s1 + $0x550] sm:$0xff] }
 0x32e   :  { %10763 = vmatpush1.bf16.msra.mxu0 %v14234_v54  ;;  %11322 = vmatpush1.bf16.msra.mxu1 %v14236_v55  ;;  %v180_v54 = vld [vmem:[%s22638_s1 + $0x3f8] sm:$0xff]  ;;  %v14298_v55 = vcombine.low %v167_v42, %v171_v43 }
 0x32f   :  { %10764 = vmatprep.subr.bf16.mxu0 %v14243_v56  ;;  %11323 = vmatprep.subr.bf16.mxu1 %v14245_v57  ;;  %v14300_v56 = vcombine.low %v168_v44, %v172_v45  ;;  %v14307_v57 = vcombine.high %v175_v51, %v179_v52  ;;  %v14309_v58 = vcombine.high %v176_v53, %v180_v54  ;;  %v231_v45 = vld [vmem:[%s22638_s1 + $0x590] sm:$0xff] }
 0x332   :  { %10765 = vmatpush1.bf16.msra.mxu0 %v14242_v62  ;;  %11324 = vmatpush1.bf16.msra.mxu1 %v14244_v63  ;;  %v188_v62 = vld [vmem:[%s22638_s1 + $0x438] sm:$0xff]  ;;  %v14306_v63 = vcombine.low %v175_v51, %v179_v52 }
 0x333   :  { %10766 = vmatprep.subr.bf16.mxu0 %v14251_v0  ;;  %11325 = vmatprep.subr.bf16.mxu1 %v14253_v1  ;;  %v14308_v0 = vcombine.low %v176_v53, %v180_v54  ;;  %v14315_v1 = vcombine.high %v183_v59, %v187_v60  ;;  %v14317_v2 = vcombine.high %v184_v61, %v188_v62  ;;  %v239_v54 = vld [vmem:[%s22638_s1 + $0x5d0] sm:$0xff] }
 0x336   :  { %10767 = vmatpush1.bf16.msra.mxu0 %v14250_v6  ;;  %11326 = vmatpush1.bf16.msra.mxu1 %v14252_v7  ;;  %v196_v6 = vld [vmem:[%s22638_s1 + $0x478] sm:$0xff]  ;;  %v14314_v7 = vcombine.low %v183_v59, %v187_v60 }
 0x337   :  { %10768 = vmatprep.subr.bf16.mxu0 %v14259_v8  ;;  %11327 = vmatprep.subr.bf16.mxu1 %v14261_v9  ;;  %v14316_v8 = vcombine.low %v184_v61, %v188_v62  ;;  %v14323_v9 = vcombine.high %v191_v3, %v195_v4  ;;  %v14325_v10 = vcombine.high %v192_v5, %v196_v6  ;;  %v247_v62 = vld [vmem:[%s22638_s1 + $0x610] sm:$0xff] }
 0x33a   :  { %10769 = vmatpush1.bf16.msra.mxu0 %v14258_v14  ;;  %11328 = vmatpush1.bf16.msra.mxu1 %v14260_v15  ;;  %v200_v14 = vld [vmem:[%s22638_s1 + $0x498] sm:$0xff] }
 0x33b   :  { %10770 = vmatprep.subr.bf16.mxu0 %v14267_v16  ;;  %11329 = vmatprep.subr.bf16.mxu1 %v14269_v17  ;;  %v204_v15 = vld [vmem:[%s22638_s1 + $0x4b8] sm:$0xff]  ;;  %v14322_v16 = vcombine.low %v191_v3, %v195_v4  ;;  %v14324_v17 = vcombine.low %v192_v5, %v196_v6  ;;  %v255_v6 = vld [vmem:[%s22638_s1 + $0x650] sm:$0xff] }
 0x33c   :  { %v14333_v19 = vcombine.high %v200_v14, %v204_v15  ;;  %v14332_v26 = vcombine.low %v200_v14, %v204_v15  ;;  %v263_v14 = vld [vmem:[%s22638_s1 + $0x690] sm:$0xff] }
 0x33d   :  { %v267_v15 = vld [vmem:[%s22638_s1 + $0x6b0] sm:$0xff] }
 0x33e   :  { %10771 = vmatpush1.bf16.msra.mxu0 %v14266_v22  ;;  %11330 = vmatpush1.bf16.msra.mxu1 %v14268_v23  ;;  %v16783_v22 = vld [vmem:[%s22639_s0 + $0xc] ss:$100 sps:$4 sm:$0xff]   ;;  %v208_v23 = vld [vmem:[%s22638_s1 + $0x4d8] sm:$0xff] }
 0x33f   :  { %10772 = vmatprep.subr.bf16.mxu0 %v14275_v24  ;;  %11331 = vmatprep.subr.bf16.mxu1 %v14277_v25  ;;  %v212_v24 = vld [vmem:[%s22638_s1 + $0x4f8] sm:$0xff]  ;;  %v14330_v25 = vcombine.low %v199_v11, %v203_v12 }
 0x340   :  { %v14341_v28 = vcombine.high %v208_v23, %v212_v24  ;;  %v14340_v34 = vcombine.low %v208_v23, %v212_v24  ;;  %v275_v23 = vld [vmem:[%s22638_s1 + $0x6f0] sm:$0xff]  ;;  %v272_v24 = vld [vmem:[%s22638_s1 + $0x6d8] sm:$0xff] }
 0x342   :  { %10773 = vmatpush1.bf16.msra.mxu0 %v14274_v30  ;;  %11332 = vmatpush1.bf16.msra.mxu1 %v14276_v31  ;;  %v219_v30 = vld [vmem:[%s22638_s1 + $0x530] sm:$0xff]  ;;  %v216_v31 = vld [vmem:[%s22638_s1 + $0x518] sm:$0xff] }
 0x343   :  { %10774 = vmatprep.subr.bf16.mxu0 %v14283_v32  ;;  %11333 = vmatprep.subr.bf16.mxu1 %v14285_v33  ;;  %v220_v32 = vld [vmem:[%s22638_s1 + $0x538] sm:$0xff]  ;;  %v14338_v33 = vcombine.low %v207_v20, %v211_v21  ;;  %v14347_v35 = vcombine.high %v215_v29, %v219_v30  ;;  %v14395_v20 = vcombine.high %v263_v14, %v267_v15 }
 0x344   :  { %v14349_v36 = vcombine.high %v216_v31, %v220_v32  ;;  %v14348_v42 = vcombine.low %v216_v31, %v220_v32  ;;  %v283_v31 = vld [vmem:[%s22638_s1 + $0x730] sm:$0xff]  ;;  %v280_v32 = vld [vmem:[%s22638_s1 + $0x718] sm:$0xff] }
 0x346   :  { %10775 = vmatpush1.bf16.msra.mxu0 %v14282_v38  ;;  %11334 = vmatpush1.bf16.msra.mxu1 %v14284_v39  ;;  %v227_v38 = vld [vmem:[%s22638_s1 + $0x570] sm:$0xff]  ;;  %v224_v39 = vld [vmem:[%s22638_s1 + $0x558] sm:$0xff] }
 0x347   :  { %10776 = vmatprep.subr.bf16.mxu0 %v14291_v40  ;;  %11335 = vmatprep.subr.bf16.mxu1 %v14293_v41  ;;  %v228_v40 = vld [vmem:[%s22638_s1 + $0x578] sm:$0xff]  ;;  %v14346_v41 = vcombine.low %v215_v29, %v219_v30  ;;  %v14355_v43 = vcombine.high %v223_v37, %v227_v38  ;;  %v279_v30 = vld [vmem:[%s22638_s1 + $0x710] sm:$0xff] }
 0x348   :  { %v14357_v44 = vcombine.high %v224_v39, %v228_v40  ;;  %v14356_v51 = vcombine.low %v224_v39, %v228_v40  ;;  %v291_v39 = vld [vmem:[%s22638_s1 + $0x770] sm:$0xff]  ;;  %v288_v40 = vld [vmem:[%s22638_s1 + $0x758] sm:$0xff] }
 0x34a   :  { %10777 = vmatpush1.bf16.msra.mxu0 %v14290_v46  ;;  %11336 = vmatpush1.bf16.msra.mxu1 %v14292_v47  ;;  %v235_v46 = vld [vmem:[%s22638_s1 + $0x5b0] sm:$0xff]  ;;  %v232_v47 = vld [vmem:[%s22638_s1 + $0x598] sm:$0xff] }
 0x34b   :  { %10778 = vmatprep.subr.bf16.mxu0 %v14299_v49  ;;  %11337 = vmatprep.subr.bf16.mxu1 %v14301_v50  ;;  %v236_v49 = vld [vmem:[%s22638_s1 + $0x5b8] sm:$0xff]  ;;  %v14354_v50 = vcombine.low %v223_v37, %v227_v38  ;;  %v14363_v52 = vcombine.high %v231_v45, %v235_v46  ;;  %v287_v38 = vld [vmem:[%s22638_s1 + $0x750] sm:$0xff] }
 0x34c   :  { %v14365_v53 = vcombine.high %v232_v47, %v236_v49  ;;  %v14364_v59 = vcombine.low %v232_v47, %v236_v49  ;;  %v299_v47 = vld [vmem:[%s22638_s1 + $0x7b0] sm:$0xff]  ;;  %v296_v49 = vld [vmem:[%s22638_s1 + $0x798] sm:$0xff] }
 0x34e   :  { %10779 = vmatpush1.bf16.msra.mxu0 %v14298_v55  ;;  %11338 = vmatpush1.bf16.msra.mxu1 %v14300_v56  ;;  %v243_v55 = vld [vmem:[%s22638_s1 + $0x5f0] sm:$0xff]  ;;  %v240_v56 = vld [vmem:[%s22638_s1 + $0x5d8] sm:$0xff] }
 0x34f   :  { %10780 = vmatprep.subr.bf16.mxu0 %v14307_v57  ;;  %11339 = vmatprep.subr.bf16.mxu1 %v14309_v58  ;;  %v244_v57 = vld [vmem:[%s22638_s1 + $0x5f8] sm:$0xff]  ;;  %v14362_v58 = vcombine.low %v231_v45, %v235_v46  ;;  %v14371_v60 = vcombine.high %v239_v54, %v243_v55  ;;  %v295_v46 = vld [vmem:[%s22638_s1 + $0x790] sm:$0xff] }
 0x350   :  { %v14373_v61 = vcombine.high %v240_v56, %v244_v57  ;;  %v14372_v3 = vcombine.low %v240_v56, %v244_v57  ;;  %v307_v56 = vld [vmem:[%s22638_s1 + $0x7f0] sm:$0xff]  ;;  %v304_v57 = vld [vmem:[%s22638_s1 + $0x7d8] sm:$0xff] }
 0x352   :  { %10781 = vmatpush1.bf16.msra.mxu0 %v14306_v63  ;;  %11340 = vmatpush1.bf16.msra.mxu1 %v14308_v0  ;;  %v251_v63 = vld [vmem:[%s22638_s1 + $0x630] sm:$0xff]  ;;  %v248_v0 = vld [vmem:[%s22638_s1 + $0x618] sm:$0xff] }
 0x353   :  { %10793 = vmatprep.subr.bf16.mxu0 %v14315_v1  ;;  %11352 = vmatprep.subr.bf16.mxu1 %v14317_v2  ;;  %v252_v1 = vld [vmem:[%s22638_s1 + $0x638] sm:$0xff]  ;;  %v14370_v2 = vcombine.low %v239_v54, %v243_v55  ;;  %v14379_v4 = vcombine.high %v247_v62, %v251_v63  ;;  %v303_v55 = vld [vmem:[%s22638_s1 + $0x7d0] sm:$0xff] }
 0x354   :  { %v14381_v5 = vcombine.high %v248_v0, %v252_v1  ;;  %v14380_v11 = vcombine.low %v248_v0, %v252_v1  ;;  %v315_v0 = vld [vmem:[%s22638_s1 + $0x830] sm:$0xff]  ;;  %v312_v1 = vld [vmem:[%s22638_s1 + $0x818] sm:$0xff] }
 0x355   :  { %10783 = vmatmul.mubr.bf16.vlgmr.msra.gmra.mrb[4].mxu0 %v16782_v13  ;;  %11342 = vmatmul.mubr.bf16.vlgmr.msra.gmra.mrb[4].mxu1 %v16782_v13 }
 0x356   :  { %10794 = vmatpush1.bf16.msra.mxu0 %v14314_v7  ;;  %11353 = vmatpush1.bf16.msra.mxu1 %v14316_v8  ;;  %v259_v7 = vld [vmem:[%s22638_s1 + $0x670] sm:$0xff]  ;;  %v256_v8 = vld [vmem:[%s22638_s1 + $0x658] sm:$0xff] }
 0x357   :  { %10795 = vmatprep.subr.bf16.mxu0 %v14323_v9  ;;  %11354 = vmatprep.subr.bf16.mxu1 %v14325_v10  ;;  %v260_v9 = vld [vmem:[%s22638_s1 + $0x678] sm:$0xff]  ;;  %v14378_v10 = vcombine.low %v247_v62, %v251_v63  ;;  %v14387_v12 = vcombine.high %v255_v6, %v259_v7  ;;  %v311_v63 = vld [vmem:[%s22638_s1 + $0x810] sm:$0xff] }
 0x358   :  { %10825 = vmatprep.mubr.bf16.mxu0 %v16783_v22  ;;  %11384 = vmatprep.mubr.bf16.mxu1 %v16783_v22  ;;  %v14389_v13 = vcombine.high %v256_v8, %v260_v9  ;;  %v271_v22 = vld [vmem:[%s22638_s1 + $0x6d0] sm:$0xff] }
 0x35a   :  { %10796 = vmatpush1.bf16.msra.mxu0 %v14322_v16  ;;  %11355 = vmatpush1.bf16.msra.mxu1 %v14324_v17  ;;  %v264_v16 = vld [vmem:[%s22638_s1 + $0x698] sm:$0xff] }
 0x35b   :  { %10797 = vmatprep.subr.bf16.mxu0 %v14331_v18  ;;  %11356 = vmatprep.subr.bf16.mxu1 %v14333_v19  ;;  %v268_v17 = vld [vmem:[%s22638_s1 + $0x6b8] sm:$0xff]  ;;  %v14386_v18 = vcombine.low %v255_v6, %v259_v7  ;;  %v14388_v19 = vcombine.low %v256_v8, %v260_v9  ;;  %v319_v7 = vld [vmem:[%s22638_s1 + $0x850] sm:$0xff] }
 0x35c   :  { %v14397_v21 = vcombine.high %v264_v16, %v268_v17  ;;  %v323_v8 = vld [vmem:[%s22638_s1 + $0x870] sm:$0xff]  ;;  %v320_v9 = vld [vmem:[%s22638_s1 + $0x858] sm:$0xff] }
 0x35e   :  { %10798 = vmatpush1.bf16.msra.mxu0 %v14330_v25  ;;  %11357 = vmatpush1.bf16.msra.mxu1 %v14332_v26  ;;  %v276_v25 = vld [vmem:[%s22638_s1 + $0x6f8] sm:$0xff]  ;;  %v14394_v26 = vcombine.low %v263_v14, %v267_v15  ;;  %v327_v15 = vld [vmem:[%s22638_s1 + $0x890] sm:$0xff] }
 0x35f   :  { %10799 = vmatprep.subr.bf16.mxu0 %v14339_v27  ;;  %11358 = vmatprep.subr.bf16.mxu1 %v14341_v28  ;;  %v14396_v27 = vcombine.low %v264_v16, %v268_v17  ;;  %v14403_v28 = vcombine.high %v271_v22, %v275_v23  ;;  %v14405_v29 = vcombine.high %v272_v24, %v276_v25  ;;  %v331_v16 = vld [vmem:[%s22638_s1 + $0x8b0] sm:$0xff]  ;;  %v16784_v17 = vld [vmem:[%s22639_s0 + $0x8] ss:$100 sps:$4 sm:$0xff]  }
 0x362   :  { %10800 = vmatpush1.bf16.msra.mxu0 %v14338_v33  ;;  %11359 = vmatpush1.bf16.msra.mxu1 %v14340_v34  ;;  %v284_v33 = vld [vmem:[%s22638_s1 + $0x738] sm:$0xff]  ;;  %v14402_v34 = vcombine.low %v271_v22, %v275_v23  ;;  %v14459_v22 = vcombine.high %v327_v15, %v331_v16 }
 0x363   :  { %10801 = vmatprep.subr.bf16.mxu0 %v14347_v35  ;;  %11360 = vmatprep.subr.bf16.mxu1 %v14349_v36  ;;  %v14404_v35 = vcombine.low %v272_v24, %v276_v25  ;;  %v14411_v36 = vcombine.high %v279_v30, %v283_v31  ;;  %v14413_v37 = vcombine.high %v280_v32, %v284_v33  ;;  %v335_v24 = vld [vmem:[%s22638_s1 + $0x8d0] sm:$0xff] }
 0x364   :  { %v339_v25 = vld [vmem:[%s22638_s1 + $0x8f0] sm:$0xff] }
 0x366   :  { %10802 = vmatpush1.bf16.msra.mxu0 %v14346_v41  ;;  %11361 = vmatpush1.bf16.msra.mxu1 %v14348_v42  ;;  %v292_v41 = vld [vmem:[%s22638_s1 + $0x778] sm:$0xff]  ;;  %v14410_v42 = vcombine.low %v279_v30, %v283_v31  ;;  %v14467_v31 = vcombine.high %v335_v24, %v339_v25 }
 0x367   :  { %10803 = vmatprep.subr.bf16.mxu0 %v14355_v43  ;;  %11362 = vmatprep.subr.bf16.mxu1 %v14357_v44  ;;  %v14412_v43 = vcombine.low %v280_v32, %v284_v33  ;;  %v14419_v44 = vcombine.high %v287_v38, %v291_v39  ;;  %v14421_v45 = vcombine.high %v288_v40, %v292_v41  ;;  %v343_v33 = vld [vmem:[%s22638_s1 + $0x910] sm:$0xff] }
 0x36a   :  { %10804 = vmatpush1.bf16.msra.mxu0 %v14354_v50  ;;  %11363 = vmatpush1.bf16.msra.mxu1 %v14356_v51  ;;  %v300_v50 = vld [vmem:[%s22638_s1 + $0x7b8] sm:$0xff]  ;;  %v14418_v51 = vcombine.low %v287_v38, %v291_v39 }
 0x36b   :  { %10805 = vmatprep.subr.bf16.mxu0 %v14363_v52  ;;  %11364 = vmatprep.subr.bf16.mxu1 %v14365_v53  ;;  %v14420_v52 = vcombine.low %v288_v40, %v292_v41  ;;  %v14427_v53 = vcombine.high %v295_v46, %v299_v47  ;;  %v14429_v54 = vcombine.high %v296_v49, %v300_v50  ;;  %v351_v41 = vld [vmem:[%s22638_s1 + $0x950] sm:$0xff] }
 0x36e   :  { %10806 = vmatpush1.bf16.msra.mxu0 %v14362_v58  ;;  %11365 = vmatpush1.bf16.msra.mxu1 %v14364_v59  ;;  %v308_v58 = vld [vmem:[%s22638_s1 + $0x7f8] sm:$0xff]  ;;  %v14426_v59 = vcombine.low %v295_v46, %v299_v47 }
 0x36f   :  { %10807 = vmatprep.subr.bf16.mxu0 %v14371_v60  ;;  %11366 = vmatprep.subr.bf16.mxu1 %v14373_v61  ;;  %v14428_v60 = vcombine.low %v296_v49, %v300_v50  ;;  %v14435_v61 = vcombine.high %v303_v55, %v307_v56  ;;  %v14437_v62 = vcombine.high %v304_v57, %v308_v58  ;;  %v359_v50 = vld [vmem:[%s22638_s1 + $0x990] sm:$0xff] }
 0x372   :  { %10808 = vmatpush1.bf16.msra.mxu0 %v14370_v2  ;;  %11367 = vmatpush1.bf16.msra.mxu1 %v14372_v3  ;;  %v316_v2 = vld [vmem:[%s22638_s1 + $0x838] sm:$0xff]  ;;  %v14434_v3 = vcombine.low %v303_v55, %v307_v56 }
 0x373   :  { %10809 = vmatprep.subr.bf16.mxu0 %v14379_v4  ;;  %11368 = vmatprep.subr.bf16.mxu1 %v14381_v5  ;;  %v14436_v4 = vcombine.low %v304_v57, %v308_v58  ;;  %v14443_v5 = vcombine.high %v311_v63, %v315_v0  ;;  %v14445_v6 = vcombine.high %v312_v1, %v316_v2  ;;  %v367_v58 = vld [vmem:[%s22638_s1 + $0x9d0] sm:$0xff] }
 0x376   :  { %10810 = vmatpush1.bf16.msra.mxu0 %v14378_v10  ;;  %11369 = vmatpush1.bf16.msra.mxu1 %v14380_v11  ;;  %v324_v10 = vld [vmem:[%s22638_s1 + $0x878] sm:$0xff]  ;;  %v14442_v11 = vcombine.low %v311_v63, %v315_v0 }
 0x377   :  { %10811 = vmatprep.subr.bf16.mxu0 %v14387_v12  ;;  %11370 = vmatprep.subr.bf16.mxu1 %v14389_v13  ;;  %v14444_v12 = vcombine.low %v312_v1, %v316_v2  ;;  %v14451_v13 = vcombine.high %v319_v7, %v323_v8  ;;  %v14453_v14 = vcombine.high %v320_v9, %v324_v10  ;;  %v375_v2 = vld [vmem:[%s22638_s1 + $0xa10] sm:$0xff] }
 0x37a   :  { %10812 = vmatpush1.bf16.msra.mxu0 %v14386_v18  ;;  %11371 = vmatpush1.bf16.msra.mxu1 %v14388_v19  ;;  %v328_v18 = vld [vmem:[%s22638_s1 + $0x898] sm:$0xff] }
 0x37b   :  { %10813 = vmatprep.subr.bf16.mxu0 %v14395_v20  ;;  %11372 = vmatprep.subr.bf16.mxu1 %v14397_v21  ;;  %v332_v19 = vld [vmem:[%s22638_s1 + $0x8b8] sm:$0xff]  ;;  %v14450_v20 = vcombine.low %v319_v7, %v323_v8  ;;  %v14452_v21 = vcombine.low %v320_v9, %v324_v10  ;;  %v383_v10 = vld [vmem:[%s22638_s1 + $0xa50] sm:$0xff] }
 0x37c   :  { %v14461_v23 = vcombine.high %v328_v18, %v332_v19  ;;  %v14460_v30 = vcombine.low %v328_v18, %v332_v19  ;;  %v391_v18 = vld [vmem:[%s22638_s1 + $0xa90] sm:$0xff] }
 0x37d   :  { %v395_v19 = vld [vmem:[%s22638_s1 + $0xab0] sm:$0xff] }
 0x37e   :  { %10814 = vmatpush1.bf16.msra.mxu0 %v14394_v26  ;;  %11373 = vmatpush1.bf16.msra.mxu1 %v14396_v27  ;;  %v16785_v26 = vld [vmem:[%s22639_s0 + $0x14] ss:$100 sps:$4 sm:$0xff]  }
 0x37f   :  { %10815 = vmatprep.subr.bf16.mxu0 %v14403_v28  ;;  %11374 = vmatprep.subr.bf16.mxu1 %v14405_v29  ;;  %v336_v27 = vld [vmem:[%s22638_s1 + $0x8d8] sm:$0xff]  ;;  %v14458_v29 = vcombine.low %v327_v15, %v331_v16 }
 0x380   :  { %v340_v28 = vld [vmem:[%s22638_s1 + $0x8f8] sm:$0xff] }
 0x381   :  { %v14469_v32 = vcombine.high %v336_v27, %v340_v28  ;;  %v14468_v38 = vcombine.low %v336_v27, %v340_v28  ;;  %v403_v27 = vld [vmem:[%s22638_s1 + $0xaf0] sm:$0xff]  ;;  %v400_v28 = vld [vmem:[%s22638_s1 + $0xad8] sm:$0xff] }
 0x382   :  { %10816 = vmatpush1.bf16.msra.mxu0 %v14402_v34  ;;  %11375 = vmatpush1.bf16.msra.mxu1 %v14404_v35  ;;  %v347_v34 = vld [vmem:[%s22638_s1 + $0x930] sm:$0xff]  ;;  %v344_v35 = vld [vmem:[%s22638_s1 + $0x918] sm:$0xff] }
 0x383   :  { %10817 = vmatprep.subr.bf16.mxu0 %v14411_v36  ;;  %11376 = vmatprep.subr.bf16.mxu1 %v14413_v37  ;;  %v348_v36 = vld [vmem:[%s22638_s1 + $0x938] sm:$0xff]  ;;  %v14466_v37 = vcombine.low %v335_v24, %v339_v25  ;;  %v14475_v39 = vcombine.high %v343_v33, %v347_v34  ;;  %v14523_v24 = vcombine.high %v391_v18, %v395_v19 }
 0x384   :  { %v14477_v40 = vcombine.high %v344_v35, %v348_v36  ;;  %v14476_v46 = vcombine.low %v344_v35, %v348_v36  ;;  %v411_v35 = vld [vmem:[%s22638_s1 + $0xb30] sm:$0xff]  ;;  %v408_v36 = vld [vmem:[%s22638_s1 + $0xb18] sm:$0xff] }
 0x386   :  { %10818 = vmatpush1.bf16.msra.mxu0 %v14410_v42  ;;  %11377 = vmatpush1.bf16.msra.mxu1 %v14412_v43  ;;  %v355_v42 = vld [vmem:[%s22638_s1 + $0x970] sm:$0xff]  ;;  %v352_v43 = vld [vmem:[%s22638_s1 + $0x958] sm:$0xff] }
 0x387   :  { %10819 = vmatprep.subr.bf16.mxu0 %v14419_v44  ;;  %11378 = vmatprep.subr.bf16.mxu1 %v14421_v45  ;;  %v356_v44 = vld [vmem:[%s22638_s1 + $0x978] sm:$0xff]  ;;  %v14474_v45 = vcombine.low %v343_v33, %v347_v34  ;;  %v14483_v47 = vcombine.high %v351_v41, %v355_v42  ;;  %v407_v34 = vld [vmem:[%s22638_s1 + $0xb10] sm:$0xff] }
 0x388   :  { %v14485_v49 = vcombine.high %v352_v43, %v356_v44  ;;  %v14484_v55 = vcombine.low %v352_v43, %v356_v44  ;;  %v419_v43 = vld [vmem:[%s22638_s1 + $0xb70] sm:$0xff]  ;;  %v416_v44 = vld [vmem:[%s22638_s1 + $0xb58] sm:$0xff] }
 0x38a   :  { %10820 = vmatpush1.bf16.msra.mxu0 %v14418_v51  ;;  %11379 = vmatpush1.bf16.msra.mxu1 %v14420_v52  ;;  %v363_v51 = vld [vmem:[%s22638_s1 + $0x9b0] sm:$0xff]  ;;  %v360_v52 = vld [vmem:[%s22638_s1 + $0x998] sm:$0xff] }
 0x38b   :  { %10821 = vmatprep.subr.bf16.mxu0 %v14427_v53  ;;  %11380 = vmatprep.subr.bf16.mxu1 %v14429_v54  ;;  %v364_v53 = vld [vmem:[%s22638_s1 + $0x9b8] sm:$0xff]  ;;  %v14482_v54 = vcombine.low %v351_v41, %v355_v42  ;;  %v14491_v56 = vcombine.high %v359_v50, %v363_v51  ;;  %v415_v42 = vld [vmem:[%s22638_s1 + $0xb50] sm:$0xff] }
 0x38c   :  { %v14493_v57 = vcombine.high %v360_v52, %v364_v53  ;;  %v14492_v63 = vcombine.low %v360_v52, %v364_v53  ;;  %v427_v52 = vld [vmem:[%s22638_s1 + $0xbb0] sm:$0xff]  ;;  %v424_v53 = vld [vmem:[%s22638_s1 + $0xb98] sm:$0xff] }
 0x38e   :  { %10822 = vmatpush1.bf16.msra.mxu0 %v14426_v59  ;;  %11381 = vmatpush1.bf16.msra.mxu1 %v14428_v60  ;;  %v371_v59 = vld [vmem:[%s22638_s1 + $0x9f0] sm:$0xff]  ;;  %v368_v60 = vld [vmem:[%s22638_s1 + $0x9d8] sm:$0xff] }
 0x38f   :  { %10823 = vmatprep.subr.bf16.mxu0 %v14435_v61  ;;  %11382 = vmatprep.subr.bf16.mxu1 %v14437_v62  ;;  %v372_v61 = vld [vmem:[%s22638_s1 + $0x9f8] sm:$0xff]  ;;  %v14490_v62 = vcombine.low %v359_v50, %v363_v51  ;;  %v14499_v0 = vcombine.high %v367_v58, %v371_v59  ;;  %v423_v51 = vld [vmem:[%s22638_s1 + $0xb90] sm:$0xff] }
 0x390   :  { %v14501_v1 = vcombine.high %v368_v60, %v372_v61  ;;  %v14500_v7 = vcombine.low %v368_v60, %v372_v61  ;;  %v435_v60 = vld [vmem:[%s22638_s1 + $0xbf0] sm:$0xff]  ;;  %v432_v61 = vld [vmem:[%s22638_s1 + $0xbd8] sm:$0xff] }
 0x392   :  { %10824 = vmatpush1.bf16.msra.mxu0 %v14434_v3  ;;  %11383 = vmatpush1.bf16.msra.mxu1 %v14436_v4  ;;  %v379_v3 = vld [vmem:[%s22638_s1 + $0xa30] sm:$0xff]  ;;  %v376_v4 = vld [vmem:[%s22638_s1 + $0xa18] sm:$0xff] }
 0x393   :  { %10836 = vmatprep.subr.bf16.mxu0 %v14443_v5  ;;  %11395 = vmatprep.subr.bf16.mxu1 %v14445_v6  ;;  %v380_v5 = vld [vmem:[%s22638_s1 + $0xa38] sm:$0xff]  ;;  %v14498_v6 = vcombine.low %v367_v58, %v371_v59  ;;  %v14507_v8 = vcombine.high %v375_v2, %v379_v3  ;;  %v431_v59 = vld [vmem:[%s22638_s1 + $0xbd0] sm:$0xff] }
 0x394   :  { %v14509_v9 = vcombine.high %v376_v4, %v380_v5  ;;  %v14508_v15 = vcombine.low %v376_v4, %v380_v5  ;;  %v443_v4 = vld [vmem:[%s22638_s1 + $0xc30] sm:$0xff]  ;;  %v440_v5 = vld [vmem:[%s22638_s1 + $0xc18] sm:$0xff] }
 0x395   :  { %10826 = vmatmul.mubr.bf16.vlgmr.msra.gmra.mrb[4].mxu0 %v16784_v17  ;;  %11385 = vmatmul.mubr.bf16.vlgmr.msra.gmra.mrb[4].mxu1 %v16784_v17 }
 0x396   :  { %10837 = vmatpush1.bf16.msra.mxu0 %v14442_v11  ;;  %11396 = vmatpush1.bf16.msra.mxu1 %v14444_v12  ;;  %v387_v11 = vld [vmem:[%s22638_s1 + $0xa70] sm:$0xff]  ;;  %v384_v12 = vld [vmem:[%s22638_s1 + $0xa58] sm:$0xff] }
 0x397   :  { %10838 = vmatprep.subr.bf16.mxu0 %v14451_v13  ;;  %11397 = vmatprep.subr.bf16.mxu1 %v14453_v14  ;;  %v388_v13 = vld [vmem:[%s22638_s1 + $0xa78] sm:$0xff]  ;;  %v14506_v14 = vcombine.low %v375_v2, %v379_v3  ;;  %v14515_v16 = vcombine.high %v383_v10, %v387_v11  ;;  %v439_v3 = vld [vmem:[%s22638_s1 + $0xc10] sm:$0xff] }
 0x398   :  { %10868 = vmatprep.mubr.bf16.mxu0 %v16785_v26  ;;  %11427 = vmatprep.mubr.bf16.mxu1 %v16785_v26  ;;  %v14517_v17 = vcombine.high %v384_v12, %v388_v13  ;;  %v399_v26 = vld [vmem:[%s22638_s1 + $0xad0] sm:$0xff] }
 0x39a   :  { %10839 = vmatpush1.bf16.msra.mxu0 %v14450_v20  ;;  %11398 = vmatpush1.bf16.msra.mxu1 %v14452_v21  ;;  %v392_v20 = vld [vmem:[%s22638_s1 + $0xa98] sm:$0xff] }
 0x39b   :  { %10840 = vmatprep.subr.bf16.mxu0 %v14459_v22  ;;  %11399 = vmatprep.subr.bf16.mxu1 %v14461_v23  ;;  %v396_v21 = vld [vmem:[%s22638_s1 + $0xab8] sm:$0xff]  ;;  %v14514_v22 = vcombine.low %v383_v10, %v387_v11  ;;  %v14516_v23 = vcombine.low %v384_v12, %v388_v13  ;;  %v447_v11 = vld [vmem:[%s22638_s1 + $0xc50] sm:$0xff] }
 0x39c   :  { %v14525_v25 = vcombine.high %v392_v20, %v396_v21  ;;  %v451_v12 = vld [vmem:[%s22638_s1 + $0xc70] sm:$0xff]  ;;  %v448_v13 = vld [vmem:[%s22638_s1 + $0xc58] sm:$0xff] }
 0x39e   :  { %10841 = vmatpush1.bf16.msra.mxu0 %v14458_v29  ;;  %11400 = vmatpush1.bf16.msra.mxu1 %v14460_v30  ;;  %v404_v29 = vld [vmem:[%s22638_s1 + $0xaf8] sm:$0xff]  ;;  %v14522_v30 = vcombine.low %v391_v18, %v395_v19  ;;  %v455_v19 = vld [vmem:[%s22638_s1 + $0xc90] sm:$0xff] }
 0x39f   :  { %10842 = vmatprep.subr.bf16.mxu0 %v14467_v31  ;;  %11401 = vmatprep.subr.bf16.mxu1 %v14469_v32  ;;  %v14524_v31 = vcombine.low %v392_v20, %v396_v21  ;;  %v14531_v32 = vcombine.high %v399_v26, %v403_v27  ;;  %v14533_v33 = vcombine.high %v400_v28, %v404_v29  ;;  %v459_v20 = vld [vmem:[%s22638_s1 + $0xcb0] sm:$0xff] }
 0x3a0   :  { %v16786_v21 = vld [vmem:[%s22639_s0 + $0x10] ss:$100 sps:$4 sm:$0xff]  }
 0x3a2   :  { %10843 = vmatpush1.bf16.msra.mxu0 %v14466_v37  ;;  %11402 = vmatpush1.bf16.msra.mxu1 %v14468_v38  ;;  %v412_v37 = vld [vmem:[%s22638_s1 + $0xb38] sm:$0xff]  ;;  %v14530_v38 = vcombine.low %v399_v26, %v403_v27  ;;  %v14587_v26 = vcombine.high %v455_v19, %v459_v20 }
 0x3a3   :  { %10844 = vmatprep.subr.bf16.mxu0 %v14475_v39  ;;  %11403 = vmatprep.subr.bf16.mxu1 %v14477_v40  ;;  %v14532_v39 = vcombine.low %v400_v28, %v404_v29  ;;  %v14539_v40 = vcombine.high %v407_v34, %v411_v35  ;;  %v14541_v41 = vcombine.high %v408_v36, %v412_v37  ;;  %v463_v28 = vld [vmem:[%s22638_s1 + $0xcd0] sm:$0xff] }
 0x3a4   :  { %v467_v29 = vld [vmem:[%s22638_s1 + $0xcf0] sm:$0xff] }
 0x3a6   :  { %10845 = vmatpush1.bf16.msra.mxu0 %v14474_v45  ;;  %11404 = vmatpush1.bf16.msra.mxu1 %v14476_v46  ;;  %v420_v45 = vld [vmem:[%s22638_s1 + $0xb78] sm:$0xff]  ;;  %v14538_v46 = vcombine.low %v407_v34, %v411_v35  ;;  %v14586_v34 = vcombine.low %v455_v19, %v459_v20 }
 0x3a7   :  { %10846 = vmatprep.subr.bf16.mxu0 %v14483_v47  ;;  %11405 = vmatprep.subr.bf16.mxu1 %v14485_v49  ;;  %v14540_v47 = vcombine.low %v408_v36, %v412_v37  ;;  %v14547_v49 = vcombine.high %v415_v42, %v419_v43  ;;  %v14549_v50 = vcombine.high %v416_v44, %v420_v45 }
 0x3a8   :  { %v14595_v36 = vcombine.high %v463_v28, %v467_v29 }
 0x3aa   :  { %10847 = vmatpush1.bf16.msra.mxu0 %v14482_v54  ;;  %11406 = vmatpush1.bf16.msra.mxu1 %v14484_v55  ;;  %v428_v54 = vld [vmem:[%s22638_s1 + $0xbb8] sm:$0xff]  ;;  %v14546_v55 = vcombine.low %v415_v42, %v419_v43  ;;  %v14594_v43 = vcombine.low %v463_v28, %v467_v29 }
 0x3ab   :  { %10848 = vmatprep.subr.bf16.mxu0 %v14491_v56  ;;  %11407 = vmatprep.subr.bf16.mxu1 %v14493_v57  ;;  %v14548_v56 = vcombine.low %v416_v44, %v420_v45  ;;  %v14555_v57 = vcombine.high %v423_v51, %v427_v52  ;;  %v14557_v58 = vcombine.high %v424_v53, %v428_v54 }
 0x3ae   :  { %10849 = vmatpush1.bf16.msra.mxu0 %v14490_v62  ;;  %11408 = vmatpush1.bf16.msra.mxu1 %v14492_v63  ;;  %v436_v62 = vld [vmem:[%s22638_s1 + $0xbf8] sm:$0xff]  ;;  %v14554_v63 = vcombine.low %v423_v51, %v427_v52 }
 0x3af   :  { %10850 = vmatprep.subr.bf16.mxu0 %v14499_v0  ;;  %11409 = vmatprep.subr.bf16.mxu1 %v14501_v1  ;;  %v14556_v0 = vcombine.low %v424_v53, %v428_v54  ;;  %v14563_v1 = vcombine.high %v431_v59, %v435_v60  ;;  %v14565_v2 = vcombine.high %v432_v61, %v436_v62  ;;  %v480_v51 = vld [vmem:[%s22638_s1 + $0xd58] sm:$0xff]  ;;  %v1621_v54 = vld [vmem:[%s22640_s2] sm:$0xff] }
 0x3b0   :  { %v484_v52 = vld [vmem:[%s22638_s1 + $0xd78] sm:$0xff] }
 0x3b2   :  { %10851 = vmatpush1.bf16.msra.mxu0 %v14498_v6  ;;  %11410 = vmatpush1.bf16.msra.mxu1 %v14500_v7  ;;  %v444_v6 = vld [vmem:[%s22638_s1 + $0xc38] sm:$0xff]  ;;  %v14562_v7 = vcombine.low %v431_v59, %v435_v60  ;;  %v14613_v60 = vcombine.high %v480_v51, %v484_v52 }
 0x3b3   :  { %10852 = vmatprep.subr.bf16.mxu0 %v14507_v8  ;;  %11411 = vmatprep.subr.bf16.mxu1 %v14509_v9  ;;  %v14564_v8 = vcombine.low %v432_v61, %v436_v62  ;;  %v14571_v9 = vcombine.high %v439_v3, %v443_v4  ;;  %v14573_v10 = vcombine.high %v440_v5, %v444_v6  ;;  %v487_v61 = vld [vmem:[%s22638_s1 + $0xd90] sm:$0xff] }
 0x3b4   :  { %v491_v62 = vld [vmem:[%s22638_s1 + $0xdb0] sm:$0xff] }
 0x3b6   :  { %10853 = vmatpush1.bf16.msra.mxu0 %v14506_v14  ;;  %11412 = vmatpush1.bf16.msra.mxu1 %v14508_v15  ;;  %v452_v14 = vld [vmem:[%s22638_s1 + $0xc78] sm:$0xff]  ;;  %v14570_v15 = vcombine.low %v439_v3, %v443_v4 }
 0x3b7   :  { %10854 = vmatprep.subr.bf16.mxu0 %v14515_v16  ;;  %11413 = vmatprep.subr.bf16.mxu1 %v14517_v17  ;;  %v14572_v16 = vcombine.low %v440_v5, %v444_v6  ;;  %v14579_v17 = vcombine.high %v447_v11, %v451_v12  ;;  %v14581_v18 = vcombine.high %v448_v13, %v452_v14 }
 0x3b8   :  { %v14612_v6 = vcombine.low %v480_v51, %v484_v52 }
 0x3ba   :  { %10855 = vmatpush1.bf16.msra.mxu0 %v14514_v22  ;;  %11414 = vmatpush1.bf16.msra.mxu1 %v14516_v23  ;;  %v456_v22 = vld [vmem:[%s22638_s1 + $0xc98] sm:$0xff] }
 0x3bb   :  { %10856 = vmatprep.subr.bf16.mxu0 %v14523_v24  ;;  %11415 = vmatprep.subr.bf16.mxu1 %v14525_v25  ;;  %v460_v23 = vld [vmem:[%s22638_s1 + $0xcb8] sm:$0xff]  ;;  %v14578_v24 = vcombine.low %v447_v11, %v451_v12  ;;  %v14580_v25 = vcombine.low %v448_v13, %v452_v14  ;;  %v499_v11 = vld [vmem:[%s22638_s1 + $0xdf0] sm:$0xff] }
 0x3bc   :  { %v14589_v27 = vcombine.high %v456_v22, %v460_v23  ;;  %v14588_v35 = vcombine.low %v456_v22, %v460_v23 }
 0x3be   :  { %10857 = vmatpush1.bf16.msra.mxu0 %v14522_v30  ;;  %11416 = vmatpush1.bf16.msra.mxu1 %v14524_v31  ;;  %v16787_v30 = vld [vmem:[%s22639_s0 + $0x1c] ss:$100 sps:$4 sm:$0xff]  }
 0x3bf   :  { %10858 = vmatprep.subr.bf16.mxu0 %v14531_v32  ;;  %11417 = vmatprep.subr.bf16.mxu1 %v14533_v33  ;;  %v464_v31 = vld [vmem:[%s22638_s1 + $0xcd8] sm:$0xff]  ;;  %v1623_v33 = vlaneseq }
 0x3c0   :  { %v468_v32 = vld [vmem:[%s22638_s1 + $0xcf8] sm:$0xff] }
 0x3c1   :  { %v14597_v37 = vcombine.high %v464_v31, %v468_v32  ;;  %v19936_v42 = vshrl.u32 %v1623_v33, 7  ;;  %v14596_v44 = vcombine.low %v464_v31, %v468_v32  ;;  %v503_v33 = vld [vmem:[%s22638_s1 + $0xe10] sm:$0xff] }
 0x3c2   :  { %10859 = vmatpush1.bf16.msra.mxu0 %v14530_v38  ;;  %11418 = vmatpush1.bf16.msra.mxu1 %v14532_v39  ;;  %v471_v38 = vld [vmem:[%s22638_s1 + $0xd10] sm:$0xff] }
 0x3c3   :  { %10860 = vmatprep.subr.bf16.mxu0 %v14539_v40  ;;  %11419 = vmatprep.subr.bf16.mxu1 %v14541_v41  ;;  %v475_v39 = vld [vmem:[%s22638_s1 + $0xd30] sm:$0xff]  ;;  %v472_v40 = vld [vmem:[%s22638_s1 + $0xd18] sm:$0xff] }
 0x3c4   :  { %v476_v41 = vld [vmem:[%s22638_s1 + $0xd38] sm:$0xff]  ;;  %v14603_v45 = vcombine.high %v471_v38, %v475_v39  ;;  %v14602_v53 = vcombine.low %v471_v38, %v475_v39 }
 0x3c5   :  { %v504_v39 = vld [vmem:[%s22638_s1 + $0xe18] sm:$0xff] }
 0x3c6   :  { %10861 = vmatpush1.bf16.msra.mxu0 %v14538_v46  ;;  %11420 = vmatpush1.bf16.msra.mxu1 %v14540_v47  ;;  %v14605_v46 = vcombine.high %v472_v40, %v476_v41  ;;  %v479_v47 = vld [vmem:[%s22638_s1 + $0xd50] sm:$0xff] }
 0x3c7   :  { %10862 = vmatprep.subr.bf16.mxu0 %v14547_v49  ;;  %11421 = vmatprep.subr.bf16.mxu1 %v14549_v50  ;;  %v483_v49 = vld [vmem:[%s22638_s1 + $0xd70] sm:$0xff]  ;;  %v1625_v50 = vsub.s32 0, %v19936_v42 }
 0x3c8   :  { %v14611_v59 = vcombine.high %v479_v47, %v483_v49  ;;  %v14610_v4 = vcombine.low %v479_v47, %v483_v49 }
 0x3ca   :  { %10863 = vmatpush1.bf16.msra.mxu0 %v14546_v55  ;;  %11422 = vmatpush1.bf16.msra.mxu1 %v14548_v56  ;;  %v1633_v55 = vsub.s32 2, %v19936_v42  ;;  %v1629_v56 = vsub.s32 1, %v19936_v42 }
 0x3cb   :  { %10864 = vmatprep.subr.bf16.mxu0 %v14555_v57  ;;  %11423 = vmatprep.subr.bf16.mxu1 %v14557_v58  ;;  %v14604_v57 = vcombine.low %v472_v40, %v476_v41  ;;  %v1637_v58 = vsub.s32 3, %v19936_v42  ;;  %v508_v40 = vld [vmem:[%s22638_s1 + $0xe38] sm:$0xff] }
 0x3cc   :  { %v1630_v3 = vrot.slane %v1621_v54, %v1629_v56 }
 0x3cd   :  { %v1638_v5 = vrot.slane %v1621_v54, %v1637_v58 }
 0x3ce   :  { %10865 = vmatpush1.bf16.msra.mxu0 %v14554_v63  ;;  %11424 = vmatpush1.bf16.msra.mxu1 %v14556_v0  ;;  %v1626_v63 = vrot.slane %v1621_v54, %v1625_v50  ;;  %v488_v0 = vld [vmem:[%s22638_s1 + $0xd98] sm:$0xff] }
 0x3cf   :  { %10866 = vmatprep.subr.bf16.mxu0 %v14563_v1  ;;  %11425 = vmatprep.subr.bf16.mxu1 %v14565_v2  ;;  %v492_v1 = vld [vmem:[%s22638_s1 + $0xdb8] sm:$0xff]  ;;  %v1634_v2 = vrot.slane %v1621_v54, %v1633_v55  ;;  %v14637_v54 = vcombine.high %v504_v39, %v508_v40 }
 0x3d0   :  { %v14620_v22 = vcombine.low %v488_v0, %v492_v1 }
 0x3d2   :  { %10867 = vmatpush1.bf16.msra.mxu0 %v14562_v7  ;;  %11426 = vmatpush1.bf16.msra.mxu1 %v14564_v8  ;;  %v14619_v7 = vcombine.high %v487_v61, %v491_v62 }
 0x3d3   :  { %10879 = vmatprep.subr.bf16.mxu0 %v14571_v9  ;;  %11438 = vmatprep.subr.bf16.mxu1 %v14573_v10  ;;  %v14621_v9 = vcombine.high %v488_v0, %v492_v1  ;;  %v495_v10 = vld [vmem:[%s22638_s1 + $0xdd0] sm:$0xff]  ;;  %v14636_v0 = vcombine.low %v504_v39, %v508_v40 }
 0x3d4   :  { %v14626_v31 = vcombine.low %v495_v10, %v499_v11 }
 0x3d5   :  { %10869 = vmatmul.mubr.bf16.vlgmr.msra.gmra.mrb[4].mxu0 %v16786_v21  ;;  %11428 = vmatmul.mubr.bf16.vlgmr.msra.gmra.mrb[4].mxu1 %v16786_v21  ;;  %v14618_v21 = vcombine.low %v487_v61, %v491_v62  ;;  %v512_v61 = vld [vmem:[%s22638_s1 + $0xe58] sm:$0xff] }
 0x3d6   :  { %10880 = vmatpush1.bf16.msra.mxu0 %v14570_v15  ;;  %11439 = vmatpush1.bf16.msra.mxu1 %v14572_v16  ;;  %v496_v15 = vld [vmem:[%s22638_s1 + $0xdd8] sm:$0xff] }
 0x3d7   :  { %10881 = vmatprep.subr.bf16.mxu0 %v14579_v17  ;;  %11440 = vmatprep.subr.bf16.mxu1 %v14581_v18  ;;  %v500_v16 = vld [vmem:[%s22638_s1 + $0xdf8] sm:$0xff] }
 0x3d8   :  { %10911 = vmatprep.mubr.bf16.mxu0 %v16787_v30  ;;  %11470 = vmatprep.mubr.bf16.mxu1 %v16787_v30  ;;  %v14629_v32 = vcombine.high %v496_v15, %v500_v16  ;;  %v14628_v38 = vcombine.low %v496_v15, %v500_v16  ;;  %v516_v62 = vld [vmem:[%s22638_s1 + $0xe78] sm:$0xff] }
 0x3da   :  { %10882 = vmatpush1.bf16.msra.mxu0 %v14578_v24  ;;  %11441 = vmatpush1.bf16.msra.mxu1 %v14580_v25 }
 0x3db   :  { %10883 = vmatprep.subr.bf16.mxu0 %v14587_v26  ;;  %11442 = vmatprep.subr.bf16.mxu1 %v14589_v27  ;;  %v14627_v27 = vcombine.high %v495_v10, %v499_v11  ;;  %v527_v11 = vld [vmem:[%s22638_s1 + $0xed0] sm:$0xff] }
 0x3de   :  { %10884 = vmatpush1.bf16.msra.mxu0 %v14586_v34  ;;  %11443 = vmatpush1.bf16.msra.mxu1 %v14588_v35  ;;  %v507_v34 = vld [vmem:[%s22638_s1 + $0xe30] sm:$0xff] }
 0x3df   :  { %10885 = vmatprep.subr.bf16.mxu0 %v14595_v36  ;;  %11444 = vmatprep.subr.bf16.mxu1 %v14597_v37  ;;  %v14635_v51 = vcombine.high %v503_v33, %v507_v34 }
 0x3e2   :  { %10886 = vmatpush1.bf16.msra.mxu0 %v14594_v43  ;;  %11445 = vmatpush1.bf16.msra.mxu1 %v14596_v44 }
 0x3e3   :  { %10887 = vmatprep.subr.bf16.mxu0 %v14603_v45  ;;  %11446 = vmatprep.subr.bf16.mxu1 %v14605_v46 }
 0x3e6   :  { %10888 = vmatpush1.bf16.msra.mxu0 %v14602_v53  ;;  %11447 = vmatpush1.bf16.msra.mxu1 %v14604_v57  ;;  %v511_v57 = vld [vmem:[%s22638_s1 + $0xe50] sm:$0xff] }
 0x3e7   :  { %10889 = vmatprep.subr.bf16.mxu0 %v14611_v59  ;;  %11448 = vmatprep.subr.bf16.mxu1 %v14613_v60  ;;  %v515_v59 = vld [vmem:[%s22638_s1 + $0xe70] sm:$0xff] }
 0x3e8   :  { %v10182_v8 = vpop.f32.mrb[0].mxu0  ;;  %v10741_v13 = vpop.f32.mrb[0].mxu1  ;;  %v14643_v1 = vcombine.high %v511_v57, %v515_v59 }
 0x3e9   :  { %v16087_v12 = vadd.f32 %v10182_v8, %v1626_v63  ;;  %v10184_v14 = vpop.f32.mrb[1].mxu0  ;;  %v16091_v17 = vadd.f32 %v10741_v13, %v1634_v2  ;;  %v10743_v19 = vpop.f32.mrb[1].mxu1  ;;  %v14644_v8 = vcombine.low %v512_v61, %v516_v62  ;;  %v528_v13 = vld [vmem:[%s22638_s1 + $0xed8] sm:$0xff] }
 0x3ea   :  { %v16088_v18 = vadd.f32 %v10184_v14, %v1630_v3  ;;  %v10186_v20 = vpop.f32.mrb[2].mxu0  ;;  %10890 = vmatpush1.bf16.msra.mxu0 %v14610_v4  ;;  %v16092_v23 = vadd.f32 %v10743_v19, %v1638_v5  ;;  %v10745_v25 = vpop.f32.mrb[2].mxu1  ;;  %11449 = vmatpush1.bf16.msra.mxu1 %v14612_v6  ;;  %v523_v4 = vld [vmem:[%s22638_s1 + $0xeb0] sm:$0xff]  ;;  %v524_v6 = vld [vmem:[%s22638_s1 + $0xeb8] sm:$0xff] }
 0x3eb   :  { %v16089_v24 = vadd.f32 %v10186_v20, %v1626_v63  ;;  %v10188_v26 = vpop.f32.mrb[3].mxu0  ;;  %10891 = vmatprep.subr.bf16.mxu0 %v14619_v7  ;;  %v16093_v28 = vadd.f32 %v10745_v25, %v1634_v2  ;;  %v10747_v30 = vpop.f32.mrb[3].mxu1  ;;  %11450 = vmatprep.subr.bf16.mxu1 %v14621_v9  ;;  %v11868_v35 = vmax.f32 %v16087_v12, 0.0  ;;  %v11870_v41 = vmax.f32 %v16091_v17, 0.0  ;;  %v531_v12 = vld [vmem:[%s22638_s1 + $0xef0] sm:$0xff]  ;;  %v532_v14 = vld [vmem:[%s22638_s1 + $0xef8] sm:$0xff] }
 0x3ec   :  { %v16090_v29 = vadd.f32 %v10188_v26, %v1630_v3  ;;  %v16094_v37 = vadd.f32 %v10747_v30, %v1638_v5  ;;  %v11869_v43 = vmax.f32 %v16088_v18, 0.0  ;;  %v11871_v46 = vmax.f32 %v16092_v23, 0.0  ;;  %v519_v3 = vld [vmem:[%s22638_s1 + $0xe90] sm:$0xff]  ;;  %v520_v5 = vld [vmem:[%s22638_s1 + $0xe98] sm:$0xff] }
 0x3ed   :  { %v11876_v36 = vmax.f32 %v16089_v24, 0.0  ;;  %v11878_v44 = vmax.f32 %v16093_v28, 0.0  ;;  %v14634_v63 = vcombine.low %v503_v33, %v507_v34  ;;  %v14645_v2 = vcombine.high %v512_v61, %v516_v62  ;;  %v535_v19 = vld [vmem:[%s22638_s1 + $0xf10] sm:$0xff]  ;;  %v548_v30 = vld [vmem:[%s22638_s1 + $0xf78] sm:$0xff] }
 0x3ee   :  { %v11877_v45 = vmax.f32 %v16090_v29, 0.0  ;;  %10892 = vmatpush1.bf16.msra.mxu0 %v14618_v21  ;;  %v11879_v49 = vmax.f32 %v16094_v37, 0.0  ;;  %11451 = vmatpush1.bf16.msra.mxu1 %v14620_v22  ;;  %v14642_v7 = vcombine.low %v511_v57, %v515_v59  ;;  %v14651_v9 = vcombine.high %v519_v3, %v523_v4  ;;  %v539_v20 = vld [vmem:[%s22638_s1 + $0xf30] sm:$0xff]  ;;  %v536_v21 = vld [vmem:[%s22638_s1 + $0xf18] sm:$0xff] }
 0x3ef   :  { %v20001_v47 = vpack.c.bf16 %v11876_v36, %v11868_v35  ;;  %10893 = vmatprep.subr.bf16.mxu0 %v14627_v27  ;;  %v20003_v52 = vpack.c.bf16 %v11878_v44, %v11870_v41  ;;  %11452 = vmatprep.subr.bf16.mxu1 %v14629_v32  ;;  %v14653_v10 = vcombine.high %v520_v5, %v524_v6  ;;  %v540_v22 = vld [vmem:[%s22638_s1 + $0xf38] sm:$0xff]  ;;  %v543_v27 = vld [vmem:[%s22638_s1 + $0xf50] sm:$0xff] }
 0x3f0   :  { %v20005_v53 = vpack.c.bf16 %v11877_v45, %v11869_v43  ;;  %v20013_v60 = vpack.c.bf16 %v11879_v49, %v11871_v46  ;;  %v14650_v15 = vcombine.low %v519_v3, %v523_v4  ;;  %v14652_v16 = vcombine.low %v520_v5, %v524_v6  ;;  %v547_v28 = vld [vmem:[%s22638_s1 + $0xf70] sm:$0xff]  ;;  %v544_v29 = vld [vmem:[%s22638_s1 + $0xf58] sm:$0xff] }
 0x3f1   :  { %v14659_v17 = vcombine.high %v527_v11, %v531_v12  ;;  %v14661_v18 = vcombine.high %v528_v13, %v532_v14  ;;  %v14658_v23 = vcombine.low %v527_v11, %v531_v12  ;;  %v14660_v24 = vcombine.low %v528_v13, %v532_v14  ;;  %v551_v35 = vld [vmem:[%s22638_s1 + $0xf90] sm:$0xff]  ;;  %v552_v37 = vld [vmem:[%s22638_s1 + $0xf98] sm:$0xff] }
 0x3f2   :  { %10894 = vmatpush1.bf16.msra.mxu0 %v14626_v31  ;;  %11453 = vmatpush1.bf16.msra.mxu1 %v14628_v38  ;;  %v14667_v25 = vcombine.high %v535_v19, %v539_v20  ;;  %v14669_v26 = vcombine.high %v536_v21, %v540_v22  ;;  %v14666_v31 = vcombine.low %v535_v19, %v539_v20  ;;  %v555_v36 = vld [vmem:[%s22638_s1 + $0xfb0] sm:$0xff]  ;;  %v556_v38 = vld [vmem:[%s22638_s1 + $0xfb8] sm:$0xff] }
 0x3f3   :  { %10895 = vmatprep.subr.bf16.mxu0 %v14635_v51  ;;  %11454 = vmatprep.subr.bf16.mxu1 %v14637_v54  ;;  %v14668_v32 = vcombine.low %v536_v21, %v540_v22  ;;  %v14675_v33 = vcombine.high %v543_v27, %v547_v28  ;;  %v14677_v34 = vcombine.high %v544_v29, %v548_v30  ;;  %v559_v44 = vld [vmem:[%s22638_s1 + $0xfd0] sm:$0xff]  ;;  %v560_v46 = vld [vmem:[%s22638_s1 + $0xfd8] sm:$0xff] }
 0x3f4   :  { %v14674_v39 = vcombine.low %v543_v27, %v547_v28  ;;  %v14676_v40 = vcombine.low %v544_v29, %v548_v30  ;;  %v14683_v41 = vcombine.high %v551_v35, %v555_v36  ;;  %v14685_v43 = vcombine.high %v552_v37, %v556_v38  ;;  %v563_v45 = vld [vmem:[%s22638_s1 + $0xff0] sm:$0xff]  ;;  %v564_v49 = vld [vmem:[%s22638_s1 + $0xff8] sm:$0xff] }
 0x3f5   :  { %v14682_v51 = vcombine.low %v551_v35, %v555_v36  ;;  %v14684_v54 = vcombine.low %v552_v37, %v556_v38  ;;  %v14691_v57 = vcombine.high %v559_v44, %v563_v45  ;;  %v14693_v59 = vcombine.high %v560_v46, %v564_v49  ;;  %v567_v61 = vld [vmem:[%s22638_s1 + $0x1010] sm:$0xff] }
 0x3f6   :  { %10896 = vmatpush1.bf16.msra.mxu0 %v14634_v63  ;;  %11455 = vmatpush1.bf16.msra.mxu1 %v14636_v0  ;;  %v571_v62 = vld [vmem:[%s22638_s1 + $0x1030] sm:$0xff]  ;;  %v568_v63 = vld [vmem:[%s22638_s1 + $0x1018] sm:$0xff] }
 0x3f7   :  { %10897 = vmatprep.subr.bf16.mxu0 %v14643_v1  ;;  %11456 = vmatprep.subr.bf16.mxu1 %v14645_v2  ;;  %v572_v0 = vld [vmem:[%s22638_s1 + $0x1038] sm:$0xff]  ;;  %v14690_v1 = vcombine.low %v559_v44, %v563_v45  ;;  %v14692_v2 = vcombine.low %v560_v46, %v564_v49  ;;  %v14699_v3 = vcombine.high %v567_v61, %v571_v62  ;;  %v575_v5 = vld [vmem:[%s22638_s1 + $0x1050] sm:$0xff] }
 0x3f8   :  { %v14701_v4 = vcombine.high %v568_v63, %v572_v0  ;;  %v579_v6 = vld [vmem:[%s22638_s1 + $0x1070] sm:$0xff] }
 0x3f9   :  { %v14707_v11 = vcombine.high %v575_v5, %v579_v6  ;;  %v583_v13 = vld [vmem:[%s22638_s1 + $0x1090] sm:$0xff] }
 0x3fa   :  { %10898 = vmatpush1.bf16.msra.mxu0 %v14642_v7  ;;  %11457 = vmatpush1.bf16.msra.mxu1 %v14644_v8  ;;  %v576_v7 = vld [vmem:[%s22638_s1 + $0x1058] sm:$0xff]  ;;  %v587_v14 = vld [vmem:[%s22638_s1 + $0x10b0] sm:$0xff] }
 0x3fb   :  { %10899 = vmatprep.subr.bf16.mxu0 %v14651_v9  ;;  %11458 = vmatprep.subr.bf16.mxu1 %v14653_v10  ;;  %v580_v8 = vld [vmem:[%s22638_s1 + $0x1078] sm:$0xff]  ;;  %v14698_v9 = vcombine.low %v567_v61, %v571_v62  ;;  %v14700_v10 = vcombine.low %v568_v63, %v572_v0  ;;  %v14715_v20 = vcombine.high %v583_v13, %v587_v14  ;;  %v591_v22 = vld [vmem:[%s22638_s1 + $0x10d0] sm:$0xff] }
 0x3fc   :  { %v14709_v12 = vcombine.high %v576_v7, %v580_v8  ;;  %v14708_v19 = vcombine.low %v576_v7, %v580_v8  ;;  %v14714_v27 = vcombine.low %v583_v13, %v587_v14 }
 0x3fe   :  { %10900 = vmatpush1.bf16.msra.mxu0 %v14650_v15  ;;  %11459 = vmatpush1.bf16.msra.mxu1 %v14652_v16  ;;  %v16788_v15 = vld [vmem:[%s22639_s0 + $0x18] ss:$100 sps:$4 sm:$0xff]  }
 0x3ff   :  { %10901 = vmatprep.subr.bf16.mxu0 %v14659_v17  ;;  %11460 = vmatprep.subr.bf16.mxu1 %v14661_v18  ;;  %v584_v16 = vld [vmem:[%s22638_s1 + $0x1098] sm:$0xff]  ;;  %v14706_v18 = vcombine.low %v575_v5, %v579_v6 }
 0x400   :  { %v588_v17 = vld [vmem:[%s22638_s1 + $0x10b8] sm:$0xff] }
 0x401   :  { %v14717_v21 = vcombine.high %v584_v16, %v588_v17  ;;  %v14716_v28 = vcombine.low %v584_v16, %v588_v17  ;;  %v639_v17 = vld [vmem:[%s22638_s1 + $0x1250] sm:$0xff] }
 0x402   :  { %10902 = vmatpush1.bf16.msra.mxu0 %v14658_v23  ;;  %11461 = vmatpush1.bf16.msra.mxu1 %v14660_v24  ;;  %v595_v23 = vld [vmem:[%s22638_s1 + $0x10f0] sm:$0xff]  ;;  %v16789_v24 = vld [vmem:[%s22639_s0 + $0x24] ss:$100 sps:$4 sm:$0xff]  }
 0x403   :  { %10903 = vmatprep.subr.bf16.mxu0 %v14667_v25  ;;  %11462 = vmatprep.subr.bf16.mxu1 %v14669_v26  ;;  %v592_v25 = vld [vmem:[%s22638_s1 + $0x10d8] sm:$0xff]  ;;  %v14723_v29 = vcombine.high %v591_v22, %v595_v23  ;;  %v14722_v35 = vcombine.low %v591_v22, %v595_v23 }
 0x404   :  { %v596_v26 = vld [vmem:[%s22638_s1 + $0x10f8] sm:$0xff] }
 0x405   :  { %v14725_v30 = vcombine.high %v592_v25, %v596_v26  ;;  %v14724_v36 = vcombine.low %v592_v25, %v596_v26  ;;  %v647_v25 = vld [vmem:[%s22638_s1 + $0x1290] sm:$0xff] }
 0x406   :  { %10904 = vmatpush1.bf16.msra.mxu0 %v14666_v31  ;;  %11463 = vmatpush1.bf16.msra.mxu1 %v14668_v32  ;;  %v599_v31 = vld [vmem:[%s22638_s1 + $0x1110] sm:$0xff] }
 0x407   :  { %10905 = vmatprep.subr.bf16.mxu0 %v14675_v33  ;;  %11464 = vmatprep.subr.bf16.mxu1 %v14677_v34  ;;  %v603_v32 = vld [vmem:[%s22638_s1 + $0x1130] sm:$0xff]  ;;  %v600_v33 = vld [vmem:[%s22638_s1 + $0x1118] sm:$0xff] }
 0x408   :  { %v604_v34 = vld [vmem:[%s22638_s1 + $0x1138] sm:$0xff]  ;;  %v14731_v37 = vcombine.high %v599_v31, %v603_v32  ;;  %v14730_v44 = vcombine.low %v599_v31, %v603_v32  ;;  %v651_v26 = vld [vmem:[%s22638_s1 + $0x12b0] sm:$0xff] }
 0x409   :  { %v14733_v38 = vcombine.high %v600_v33, %v604_v34  ;;  %v14732_v45 = vcombine.low %v600_v33, %v604_v34  ;;  %v14779_v31 = vcombine.high %v647_v25, %v651_v26  ;;  %v655_v33 = vld [vmem:[%s22638_s1 + $0x12d0] sm:$0xff] }
 0x40a   :  { %10906 = vmatpush1.bf16.msra.mxu0 %v14674_v39  ;;  %11465 = vmatpush1.bf16.msra.mxu1 %v14676_v40  ;;  %v607_v39 = vld [vmem:[%s22638_s1 + $0x1150] sm:$0xff] }
 0x40b   :  { %10907 = vmatprep.subr.bf16.mxu0 %v14683_v41  ;;  %11466 = vmatprep.subr.bf16.mxu1 %v14685_v43  ;;  %v611_v40 = vld [vmem:[%s22638_s1 + $0x1170] sm:$0xff]  ;;  %v608_v41 = vld [vmem:[%s22638_s1 + $0x1158] sm:$0xff] }
 0x40c   :  { %v612_v43 = vld [vmem:[%s22638_s1 + $0x1178] sm:$0xff]  ;;  %v14739_v46 = vcombine.high %v607_v39, %v611_v40  ;;  %v14738_v61 = vcombine.low %v607_v39, %v611_v40  ;;  %v659_v34 = vld [vmem:[%s22638_s1 + $0x12f0] sm:$0xff] }
 0x40d   :  { %v14741_v49 = vcombine.high %v608_v41, %v612_v43  ;;  %v14740_v62 = vcombine.low %v608_v41, %v612_v43  ;;  %v14787_v39 = vcombine.high %v655_v33, %v659_v34  ;;  %v663_v41 = vld [vmem:[%s22638_s1 + $0x1310] sm:$0xff] }
 0x40e   :  { %10908 = vmatpush1.bf16.msra.mxu0 %v14682_v51  ;;  %11467 = vmatpush1.bf16.msra.mxu1 %v14684_v54  ;;  %v615_v51 = vld [vmem:[%s22638_s1 + $0x1190] sm:$0xff] }
 0x40f   :  { %10909 = vmatprep.subr.bf16.mxu0 %v14691_v57  ;;  %11468 = vmatprep.subr.bf16.mxu1 %v14693_v59  ;;  %v619_v54 = vld [vmem:[%s22638_s1 + $0x11b0] sm:$0xff]  ;;  %v616_v57 = vld [vmem:[%s22638_s1 + $0x1198] sm:$0xff] }
 0x410   :  { %v620_v59 = vld [vmem:[%s22638_s1 + $0x11b8] sm:$0xff]  ;;  %v14747_v63 = vcombine.high %v615_v51, %v619_v54  ;;  %v14746_v5 = vcombine.low %v615_v51, %v619_v54  ;;  %v667_v43 = vld [vmem:[%s22638_s1 + $0x1330] sm:$0xff] }
 0x411   :  { %v14749_v0 = vcombine.high %v616_v57, %v620_v59  ;;  %v14748_v6 = vcombine.low %v616_v57, %v620_v59  ;;  %v14795_v51 = vcombine.high %v663_v41, %v667_v43  ;;  %v671_v57 = vld [vmem:[%s22638_s1 + $0x1350] sm:$0xff] }
 0x412   :  { %10910 = vmatpush1.bf16.msra.mxu0 %v14690_v1  ;;  %11469 = vmatpush1.bf16.msra.mxu1 %v14692_v2  ;;  %v623_v1 = vld [vmem:[%s22638_s1 + $0x11d0] sm:$0xff] }
 0x413   :  { %10922 = vmatprep.subr.bf16.mxu0 %v14699_v3  ;;  %11481 = vmatprep.subr.bf16.mxu1 %v14701_v4  ;;  %v627_v2 = vld [vmem:[%s22638_s1 + $0x11f0] sm:$0xff]  ;;  %v624_v3 = vld [vmem:[%s22638_s1 + $0x11d8] sm:$0xff] }
 0x414   :  { %v628_v4 = vld [vmem:[%s22638_s1 + $0x11f8] sm:$0xff]  ;;  %v14755_v7 = vcombine.high %v623_v1, %v627_v2  ;;  %v14754_v13 = vcombine.low %v623_v1, %v627_v2  ;;  %v675_v59 = vld [vmem:[%s22638_s1 + $0x1370] sm:$0xff] }
 0x415   :  { %10912 = vmatmul.mubr.bf16.vlgmr.msra.gmra.mrb[4].mxu0 %v16788_v15  ;;  %11471 = vmatmul.mubr.bf16.vlgmr.msra.gmra.mrb[4].mxu1 %v16788_v15  ;;  %v14757_v8 = vcombine.high %v624_v3, %v628_v4  ;;  %v14756_v14 = vcombine.low %v624_v3, %v628_v4  ;;  %v14803_v1 = vcombine.high %v671_v57, %v675_v59  ;;  %v679_v3 = vld [vmem:[%s22638_s1 + $0x1390] sm:$0xff] }
 0x416   :  { %10923 = vmatpush1.bf16.msra.mxu0 %v14698_v9  ;;  %11482 = vmatpush1.bf16.msra.mxu1 %v14700_v10  ;;  %v631_v9 = vld [vmem:[%s22638_s1 + $0x1210] sm:$0xff] }
 0x417   :  { %10924 = vmatprep.subr.bf16.mxu0 %v14707_v11  ;;  %11483 = vmatprep.subr.bf16.mxu1 %v14709_v12  ;;  %v635_v10 = vld [vmem:[%s22638_s1 + $0x1230] sm:$0xff]  ;;  %v632_v11 = vld [vmem:[%s22638_s1 + $0x1218] sm:$0xff] }
 0x418   :  { %10954 = vmatprep.mubr.bf16.mxu0 %v16789_v24  ;;  %11513 = vmatprep.mubr.bf16.mxu1 %v16789_v24  ;;  %v636_v12 = vld [vmem:[%s22638_s1 + $0x1238] sm:$0xff]  ;;  %v14763_v15 = vcombine.high %v631_v9, %v635_v10  ;;  %v683_v4 = vld [vmem:[%s22638_s1 + $0x13b0] sm:$0xff] }
 0x419   :  { %v14765_v16 = vcombine.high %v632_v11, %v636_v12  ;;  %v14764_v22 = vcombine.low %v632_v11, %v636_v12  ;;  %v687_v11 = vld [vmem:[%s22638_s1 + $0x13d0] sm:$0xff] }
 0x41a   :  { %10925 = vmatpush1.bf16.msra.mxu0 %v14706_v18  ;;  %11484 = vmatpush1.bf16.msra.mxu1 %v14708_v19  ;;  %v643_v18 = vld [vmem:[%s22638_s1 + $0x1270] sm:$0xff]  ;;  %v640_v19 = vld [vmem:[%s22638_s1 + $0x1258] sm:$0xff] }
 0x41b   :  { %10926 = vmatprep.subr.bf16.mxu0 %v14715_v20  ;;  %11485 = vmatprep.subr.bf16.mxu1 %v14717_v21  ;;  %v644_v20 = vld [vmem:[%s22638_s1 + $0x1278] sm:$0xff]  ;;  %v14762_v21 = vcombine.low %v631_v9, %v635_v10  ;;  %v14771_v23 = vcombine.high %v639_v17, %v643_v18  ;;  %v14811_v9 = vcombine.high %v679_v3, %v683_v4  ;;  %v691_v12 = vld [vmem:[%s22638_s1 + $0x13f0] sm:$0xff] }
 0x41c   :  { %v14773_v24 = vcombine.high %v640_v19, %v644_v20 }
 0x41e   :  { %10927 = vmatpush1.bf16.msra.mxu0 %v14714_v27  ;;  %11486 = vmatpush1.bf16.msra.mxu1 %v14716_v28  ;;  %v648_v27 = vld [vmem:[%s22638_s1 + $0x1298] sm:$0xff] }
 0x41f   :  { %10928 = vmatprep.subr.bf16.mxu0 %v14723_v29  ;;  %11487 = vmatprep.subr.bf16.mxu1 %v14725_v30  ;;  %v652_v28 = vld [vmem:[%s22638_s1 + $0x12b8] sm:$0xff]  ;;  %v14770_v29 = vcombine.low %v639_v17, %v643_v18  ;;  %v14772_v30 = vcombine.low %v640_v19, %v644_v20  ;;  %v14819_v17 = vcombine.high %v687_v11, %v691_v12  ;;  %v695_v19 = vld [vmem:[%s22638_s1 + $0x1410] sm:$0xff] }
 0x420   :  { %v14781_v32 = vcombine.high %v648_v27, %v652_v28  ;;  %v699_v20 = vld [vmem:[%s22638_s1 + $0x1430] sm:$0xff] }
 0x422   :  { %10929 = vmatpush1.bf16.msra.mxu0 %v14722_v35  ;;  %11488 = vmatpush1.bf16.msra.mxu1 %v14724_v36  ;;  %v656_v35 = vld [vmem:[%s22638_s1 + $0x12d8] sm:$0xff] }
 0x423   :  { %10930 = vmatprep.subr.bf16.mxu0 %v14731_v37  ;;  %11489 = vmatprep.subr.bf16.mxu1 %v14733_v38  ;;  %v660_v36 = vld [vmem:[%s22638_s1 + $0x12f8] sm:$0xff]  ;;  %v14778_v37 = vcombine.low %v647_v25, %v651_v26  ;;  %v14780_v38 = vcombine.low %v648_v27, %v652_v28  ;;  %v14827_v25 = vcombine.high %v695_v19, %v699_v20  ;;  %v703_v27 = vld [vmem:[%s22638_s1 + $0x1450] sm:$0xff] }
 0x424   :  { %v14789_v40 = vcombine.high %v656_v35, %v660_v36  ;;  %v707_v28 = vld [vmem:[%s22638_s1 + $0x1470] sm:$0xff] }
 0x426   :  { %10931 = vmatpush1.bf16.msra.mxu0 %v14730_v44  ;;  %11490 = vmatpush1.bf16.msra.mxu1 %v14732_v45  ;;  %v664_v44 = vld [vmem:[%s22638_s1 + $0x1318] sm:$0xff] }
 0x427   :  { %10932 = vmatprep.subr.bf16.mxu0 %v14739_v46  ;;  %11491 = vmatprep.subr.bf16.mxu1 %v14741_v49  ;;  %v668_v45 = vld [vmem:[%s22638_s1 + $0x1338] sm:$0xff]  ;;  %v14786_v46 = vcombine.low %v655_v33, %v659_v34  ;;  %v14788_v49 = vcombine.low %v656_v35, %v660_v36  ;;  %v14835_v33 = vcombine.high %v703_v27, %v707_v28  ;;  %v711_v35 = vld [vmem:[%s22638_s1 + $0x1490] sm:$0xff] }
 0x428   :  { %v14797_v54 = vcombine.high %v664_v44, %v668_v45  ;;  %v715_v36 = vld [vmem:[%s22638_s1 + $0x14b0] sm:$0xff] }
 0x42a   :  { %10933 = vmatpush1.bf16.msra.mxu0 %v14738_v61  ;;  %11492 = vmatpush1.bf16.msra.mxu1 %v14740_v62  ;;  %v672_v61 = vld [vmem:[%s22638_s1 + $0x1358] sm:$0xff] }
 0x42b   :  { %10934 = vmatprep.subr.bf16.mxu0 %v14747_v63  ;;  %11493 = vmatprep.subr.bf16.mxu1 %v14749_v0  ;;  %v676_v62 = vld [vmem:[%s22638_s1 + $0x1378] sm:$0xff]  ;;  %v14794_v63 = vcombine.low %v663_v41, %v667_v43  ;;  %v14796_v0 = vcombine.low %v664_v44, %v668_v45  ;;  %v14843_v43 = vcombine.high %v711_v35, %v715_v36  ;;  %v719_v45 = vld [vmem:[%s22638_s1 + $0x14d0] sm:$0xff] }
 0x42c   :  { %v14805_v2 = vcombine.high %v672_v61, %v676_v62 }
 0x42e   :  { %10935 = vmatpush1.bf16.msra.mxu0 %v14746_v5  ;;  %11494 = vmatpush1.bf16.msra.mxu1 %v14748_v6  ;;  %v680_v5 = vld [vmem:[%s22638_s1 + $0x1398] sm:$0xff] }
 0x42f   :  { %10936 = vmatprep.subr.bf16.mxu0 %v14755_v7  ;;  %11495 = vmatprep.subr.bf16.mxu1 %v14757_v8  ;;  %v684_v6 = vld [vmem:[%s22638_s1 + $0x13b8] sm:$0xff]  ;;  %v14802_v7 = vcombine.low %v671_v57, %v675_v59  ;;  %v14804_v8 = vcombine.low %v672_v61, %v676_v62  ;;  %v14842_v57 = vcombine.low %v711_v35, %v715_v36 }
 0x430   :  { %v14813_v10 = vcombine.high %v680_v5, %v684_v6 }
 0x432   :  { %10937 = vmatpush1.bf16.msra.mxu0 %v14754_v13  ;;  %11496 = vmatpush1.bf16.msra.mxu1 %v14756_v14  ;;  %v688_v13 = vld [vmem:[%s22638_s1 + $0x13d8] sm:$0xff] }
 0x433   :  { %10938 = vmatprep.subr.bf16.mxu0 %v14763_v15  ;;  %11497 = vmatprep.subr.bf16.mxu1 %v14765_v16  ;;  %v692_v14 = vld [vmem:[%s22638_s1 + $0x13f8] sm:$0xff]  ;;  %v14810_v15 = vcombine.low %v679_v3, %v683_v4  ;;  %v14812_v16 = vcombine.low %v680_v5, %v684_v6 }
 0x434   :  { %v14821_v18 = vcombine.high %v688_v13, %v692_v14 }
 0x436   :  { %10939 = vmatpush1.bf16.msra.mxu0 %v14762_v21  ;;  %11498 = vmatpush1.bf16.msra.mxu1 %v14764_v22  ;;  %v696_v21 = vld [vmem:[%s22638_s1 + $0x1418] sm:$0xff] }
 0x437   :  { %10940 = vmatprep.subr.bf16.mxu0 %v14771_v23  ;;  %11499 = vmatprep.subr.bf16.mxu1 %v14773_v24  ;;  %v700_v22 = vld [vmem:[%s22638_s1 + $0x1438] sm:$0xff]  ;;  %v14818_v23 = vcombine.low %v687_v11, %v691_v12  ;;  %v14820_v24 = vcombine.low %v688_v13, %v692_v14 }
 0x438   :  { %v14829_v26 = vcombine.high %v696_v21, %v700_v22 }
 0x43a   :  { %10941 = vmatpush1.bf16.msra.mxu0 %v14770_v29  ;;  %11500 = vmatpush1.bf16.msra.mxu1 %v14772_v30  ;;  %v704_v29 = vld [vmem:[%s22638_s1 + $0x1458] sm:$0xff] }
 0x43b   :  { %10942 = vmatprep.subr.bf16.mxu0 %v14779_v31  ;;  %11501 = vmatprep.subr.bf16.mxu1 %v14781_v32  ;;  %v708_v30 = vld [vmem:[%s22638_s1 + $0x1478] sm:$0xff]  ;;  %v14826_v31 = vcombine.low %v695_v19, %v699_v20  ;;  %v14828_v32 = vcombine.low %v696_v21, %v700_v22 }
 0x43c   :  { %v14837_v34 = vcombine.high %v704_v29, %v708_v30  ;;  %v14836_v41 = vcombine.low %v704_v29, %v708_v30 }
 0x43e   :  { %10943 = vmatpush1.bf16.msra.mxu0 %v14778_v37  ;;  %11502 = vmatpush1.bf16.msra.mxu1 %v14780_v38  ;;  %v16790_v37 = vld [vmem:[%s22639_s0 + $0x20] ss:$100 sps:$4 sm:$0xff]   ;;  %v712_v38 = vld [vmem:[%s22638_s1 + $0x1498] sm:$0xff] }
 0x43f   :  { %10944 = vmatprep.subr.bf16.mxu0 %v14787_v39  ;;  %11503 = vmatprep.subr.bf16.mxu1 %v14789_v40  ;;  %v716_v39 = vld [vmem:[%s22638_s1 + $0x14b8] sm:$0xff]  ;;  %v14834_v40 = vcombine.low %v703_v27, %v707_v28 }
 0x440   :  { %v14845_v44 = vcombine.high %v712_v38, %v716_v39  ;;  %v14844_v59 = vcombine.low %v712_v38, %v716_v39  ;;  %v767_v39 = vld [vmem:[%s22638_s1 + $0x1650] sm:$0xff] }
 0x442   :  { %10945 = vmatpush1.bf16.msra.mxu0 %v14786_v46  ;;  %11504 = vmatpush1.bf16.msra.mxu1 %v14788_v49  ;;  %v723_v46 = vld [vmem:[%s22638_s1 + $0x14f0] sm:$0xff] }
 0x443   :  { %10946 = vmatprep.subr.bf16.mxu0 %v14795_v51  ;;  %11505 = vmatprep.subr.bf16.mxu1 %v14797_v54  ;;  %v16791_v49 = vld [vmem:[%s22639_s0 + $0x2c] ss:$100 sps:$4 sm:$0xff]   ;;  %v720_v51 = vld [vmem:[%s22638_s1 + $0x14d8] sm:$0xff]  ;;  %v14851_v61 = vcombine.high %v719_v45, %v723_v46  ;;  %v14850_v3 = vcombine.low %v719_v45, %v723_v46 }
 0x444   :  { %v724_v54 = vld [vmem:[%s22638_s1 + $0x14f8] sm:$0xff] }
 0x445   :  { %v14853_v62 = vcombine.high %v720_v51, %v724_v54  ;;  %v14852_v4 = vcombine.low %v720_v51, %v724_v54  ;;  %v775_v51 = vld [vmem:[%s22638_s1 + $0x1690] sm:$0xff] }
 0x446   :  { %10947 = vmatpush1.bf16.msra.mxu0 %v14794_v63  ;;  %11506 = vmatpush1.bf16.msra.mxu1 %v14796_v0  ;;  %v727_v63 = vld [vmem:[%s22638_s1 + $0x1510] sm:$0xff] }
 0x447   :  { %10948 = vmatprep.subr.bf16.mxu0 %v14803_v1  ;;  %11507 = vmatprep.subr.bf16.mxu1 %v14805_v2  ;;  %v731_v0 = vld [vmem:[%s22638_s1 + $0x1530] sm:$0xff]  ;;  %v728_v1 = vld [vmem:[%s22638_s1 + $0x1518] sm:$0xff] }
 0x448   :  { %v732_v2 = vld [vmem:[%s22638_s1 + $0x1538] sm:$0xff]  ;;  %v14859_v5 = vcombine.high %v727_v63, %v731_v0  ;;  %v14858_v11 = vcombine.low %v727_v63, %v731_v0  ;;  %v779_v54 = vld [vmem:[%s22638_s1 + $0x16b0] sm:$0xff] }
 0x449   :  { %v14861_v6 = vcombine.high %v728_v1, %v732_v2  ;;  %v14860_v12 = vcombine.low %v728_v1, %v732_v2  ;;  %v14907_v63 = vcombine.high %v775_v51, %v779_v54  ;;  %v783_v1 = vld [vmem:[%s22638_s1 + $0x16d0] sm:$0xff] }
 0x44a   :  { %10949 = vmatpush1.bf16.msra.mxu0 %v14802_v7  ;;  %11508 = vmatpush1.bf16.msra.mxu1 %v14804_v8  ;;  %v735_v7 = vld [vmem:[%s22638_s1 + $0x1550] sm:$0xff] }
 0x44b   :  { %10950 = vmatprep.subr.bf16.mxu0 %v14811_v9  ;;  %11509 = vmatprep.subr.bf16.mxu1 %v14813_v10  ;;  %v739_v8 = vld [vmem:[%s22638_s1 + $0x1570] sm:$0xff]  ;;  %v736_v9 = vld [vmem:[%s22638_s1 + $0x1558] sm:$0xff] }
 0x44c   :  { %v740_v10 = vld [vmem:[%s22638_s1 + $0x1578] sm:$0xff]  ;;  %v14867_v13 = vcombine.high %v735_v7, %v739_v8  ;;  %v14866_v19 = vcombine.low %v735_v7, %v739_v8  ;;  %v787_v2 = vld [vmem:[%s22638_s1 + $0x16f0] sm:$0xff] }
 0x44d   :  { %v14869_v14 = vcombine.high %v736_v9, %v740_v10  ;;  %v14868_v20 = vcombine.low %v736_v9, %v740_v10  ;;  %v14915_v7 = vcombine.high %v783_v1, %v787_v2  ;;  %v791_v9 = vld [vmem:[%s22638_s1 + $0x1710] sm:$0xff] }
 0x44e   :  { %10951 = vmatpush1.bf16.msra.mxu0 %v14810_v15  ;;  %11510 = vmatpush1.bf16.msra.mxu1 %v14812_v16  ;;  %v743_v15 = vld [vmem:[%s22638_s1 + $0x1590] sm:$0xff] }
 0x44f   :  { %10952 = vmatprep.subr.bf16.mxu0 %v14819_v17  ;;  %11511 = vmatprep.subr.bf16.mxu1 %v14821_v18  ;;  %v747_v16 = vld [vmem:[%s22638_s1 + $0x15b0] sm:$0xff]  ;;  %v744_v17 = vld [vmem:[%s22638_s1 + $0x1598] sm:$0xff] }
 0x450   :  { %v748_v18 = vld [vmem:[%s22638_s1 + $0x15b8] sm:$0xff]  ;;  %v14875_v21 = vcombine.high %v743_v15, %v747_v16  ;;  %v14874_v27 = vcombine.low %v743_v15, %v747_v16  ;;  %v795_v10 = vld [vmem:[%s22638_s1 + $0x1730] sm:$0xff] }
 0x451   :  { %v14877_v22 = vcombine.high %v744_v17, %v748_v18  ;;  %v14876_v28 = vcombine.low %v744_v17, %v748_v18  ;;  %v14923_v15 = vcombine.high %v791_v9, %v795_v10  ;;  %v799_v17 = vld [vmem:[%s22638_s1 + $0x1750] sm:$0xff] }
 0x452   :  { %10953 = vmatpush1.bf16.msra.mxu0 %v14818_v23  ;;  %11512 = vmatpush1.bf16.msra.mxu1 %v14820_v24  ;;  %v751_v23 = vld [vmem:[%s22638_s1 + $0x15d0] sm:$0xff] }
 0x453   :  { %10965 = vmatprep.subr.bf16.mxu0 %v14827_v25  ;;  %11524 = vmatprep.subr.bf16.mxu1 %v14829_v26  ;;  %v755_v24 = vld [vmem:[%s22638_s1 + $0x15f0] sm:$0xff]  ;;  %v752_v25 = vld [vmem:[%s22638_s1 + $0x15d8] sm:$0xff] }
 0x454   :  { %v756_v26 = vld [vmem:[%s22638_s1 + $0x15f8] sm:$0xff]  ;;  %v14883_v29 = vcombine.high %v751_v23, %v755_v24  ;;  %v14882_v35 = vcombine.low %v751_v23, %v755_v24  ;;  %v803_v18 = vld [vmem:[%s22638_s1 + $0x1770] sm:$0xff] }
 0x455   :  { %10955 = vmatmul.mubr.bf16.vlgmr.msra.gmra.mrb[4].mxu0 %v16790_v37  ;;  %11514 = vmatmul.mubr.bf16.vlgmr.msra.gmra.mrb[4].mxu1 %v16790_v37  ;;  %v14885_v30 = vcombine.high %v752_v25, %v756_v26  ;;  %v14884_v36 = vcombine.low %v752_v25, %v756_v26  ;;  %v14931_v23 = vcombine.high %v799_v17, %v803_v18  ;;  %v807_v25 = vld [vmem:[%s22638_s1 + $0x1790] sm:$0xff] }
 0x456   :  { %10966 = vmatpush1.bf16.msra.mxu0 %v14826_v31  ;;  %11525 = vmatpush1.bf16.msra.mxu1 %v14828_v32  ;;  %v759_v31 = vld [vmem:[%s22638_s1 + $0x1610] sm:$0xff] }
 0x457   :  { %10967 = vmatprep.subr.bf16.mxu0 %v14835_v33  ;;  %11526 = vmatprep.subr.bf16.mxu1 %v14837_v34  ;;  %v763_v32 = vld [vmem:[%s22638_s1 + $0x1630] sm:$0xff]  ;;  %v760_v33 = vld [vmem:[%s22638_s1 + $0x1618] sm:$0xff] }
 0x458   :  { %10997 = vmatprep.mubr.bf16.mxu0 %v16791_v49  ;;  %11556 = vmatprep.mubr.bf16.mxu1 %v16791_v49  ;;  %v764_v34 = vld [vmem:[%s22638_s1 + $0x1638] sm:$0xff]  ;;  %v14891_v37 = vcombine.high %v759_v31, %v763_v32  ;;  %v811_v26 = vld [vmem:[%s22638_s1 + $0x17b0] sm:$0xff] }
 0x459   :  { %v14893_v38 = vcombine.high %v760_v33, %v764_v34  ;;  %v14892_v45 = vcombine.low %v760_v33, %v764_v34  ;;  %v815_v33 = vld [vmem:[%s22638_s1 + $0x17d0] sm:$0xff] }
 0x45a   :  { %10968 = vmatpush1.bf16.msra.mxu0 %v14834_v40  ;;  %11527 = vmatpush1.bf16.msra.mxu1 %v14836_v41  ;;  %v771_v40 = vld [vmem:[%s22638_s1 + $0x1670] sm:$0xff]  ;;  %v768_v41 = vld [vmem:[%s22638_s1 + $0x1658] sm:$0xff] }
 0x45b   :  { %10969 = vmatprep.subr.bf16.mxu0 %v14843_v43  ;;  %11528 = vmatprep.subr.bf16.mxu1 %v14845_v44  ;;  %v772_v43 = vld [vmem:[%s22638_s1 + $0x1678] sm:$0xff]  ;;  %v14890_v44 = vcombine.low %v759_v31, %v763_v32  ;;  %v14899_v46 = vcombine.high %v767_v39, %v771_v40  ;;  %v14939_v31 = vcombine.high %v807_v25, %v811_v26  ;;  %v819_v34 = vld [vmem:[%s22638_s1 + $0x17f0] sm:$0xff] }
 0x45c   :  { %v14901_v49 = vcombine.high %v768_v41, %v772_v43 }
 0x45e   :  { %10970 = vmatpush1.bf16.msra.mxu0 %v14842_v57  ;;  %11529 = vmatpush1.bf16.msra.mxu1 %v14844_v59  ;;  %v776_v57 = vld [vmem:[%s22638_s1 + $0x1698] sm:$0xff] }
 0x45f   :  { %10971 = vmatprep.subr.bf16.mxu0 %v14851_v61  ;;  %11530 = vmatprep.subr.bf16.mxu1 %v14853_v62  ;;  %v780_v59 = vld [vmem:[%s22638_s1 + $0x16b8] sm:$0xff]  ;;  %v14898_v61 = vcombine.low %v767_v39, %v771_v40  ;;  %v14900_v62 = vcombine.low %v768_v41, %v772_v43  ;;  %v14947_v39 = vcombine.high %v815_v33, %v819_v34  ;;  %v823_v41 = vld [vmem:[%s22638_s1 + $0x1810] sm:$0xff] }
 0x460   :  { %v14909_v0 = vcombine.high %v776_v57, %v780_v59  ;;  %v827_v43 = vld [vmem:[%s22638_s1 + $0x1830] sm:$0xff] }
 0x462   :  { %10972 = vmatpush1.bf16.msra.mxu0 %v14850_v3  ;;  %11531 = vmatpush1.bf16.msra.mxu1 %v14852_v4  ;;  %v784_v3 = vld [vmem:[%s22638_s1 + $0x16d8] sm:$0xff] }
 0x463   :  { %10973 = vmatprep.subr.bf16.mxu0 %v14859_v5  ;;  %11532 = vmatprep.subr.bf16.mxu1 %v14861_v6  ;;  %v788_v4 = vld [vmem:[%s22638_s1 + $0x16f8] sm:$0xff]  ;;  %v14906_v5 = vcombine.low %v775_v51, %v779_v54  ;;  %v14908_v6 = vcombine.low %v776_v57, %v780_v59  ;;  %v14955_v51 = vcombine.high %v823_v41, %v827_v43  ;;  %v831_v57 = vld [vmem:[%s22638_s1 + $0x1850] sm:$0xff] }
 0x464   :  { %v14917_v8 = vcombine.high %v784_v3, %v788_v4  ;;  %v835_v59 = vld [vmem:[%s22638_s1 + $0x1870] sm:$0xff] }
 0x466   :  { %10974 = vmatpush1.bf16.msra.mxu0 %v14858_v11  ;;  %11533 = vmatpush1.bf16.msra.mxu1 %v14860_v12  ;;  %v792_v11 = vld [vmem:[%s22638_s1 + $0x1718] sm:$0xff] }
 0x467   :  { %10975 = vmatprep.subr.bf16.mxu0 %v14867_v13  ;;  %11534 = vmatprep.subr.bf16.mxu1 %v14869_v14  ;;  %v796_v12 = vld [vmem:[%s22638_s1 + $0x1738] sm:$0xff]  ;;  %v14914_v13 = vcombine.low %v783_v1, %v787_v2  ;;  %v14916_v14 = vcombine.low %v784_v3, %v788_v4  ;;  %v14963_v1 = vcombine.high %v831_v57, %v835_v59  ;;  %v839_v3 = vld [vmem:[%s22638_s1 + $0x1890] sm:$0xff] }
 0x468   :  { %v14925_v16 = vcombine.high %v792_v11, %v796_v12  ;;  %v843_v4 = vld [vmem:[%s22638_s1 + $0x18b0] sm:$0xff] }
 0x46a   :  { %10976 = vmatpush1.bf16.msra.mxu0 %v14866_v19  ;;  %11535 = vmatpush1.bf16.msra.mxu1 %v14868_v20  ;;  %v800_v19 = vld [vmem:[%s22638_s1 + $0x1758] sm:$0xff] }
 0x46b   :  { %10977 = vmatprep.subr.bf16.mxu0 %v14875_v21  ;;  %11536 = vmatprep.subr.bf16.mxu1 %v14877_v22  ;;  %v804_v20 = vld [vmem:[%s22638_s1 + $0x1778] sm:$0xff]  ;;  %v14922_v21 = vcombine.low %v791_v9, %v795_v10  ;;  %v14924_v22 = vcombine.low %v792_v11, %v796_v12  ;;  %v14971_v10 = vcombine.high %v839_v3, %v843_v4  ;;  %v847_v12 = vld [vmem:[%s22638_s1 + $0x18d0] sm:$0xff] }
 0x46c   :  { %v14933_v24 = vcombine.high %v800_v19, %v804_v20 }
 0x46e   :  { %10978 = vmatpush1.bf16.msra.mxu0 %v14874_v27  ;;  %11537 = vmatpush1.bf16.msra.mxu1 %v14876_v28  ;;  %v808_v27 = vld [vmem:[%s22638_s1 + $0x1798] sm:$0xff] }
 0x46f   :  { %10979 = vmatprep.subr.bf16.mxu0 %v14883_v29  ;;  %11538 = vmatprep.subr.bf16.mxu1 %v14885_v30  ;;  %v812_v28 = vld [vmem:[%s22638_s1 + $0x17b8] sm:$0xff]  ;;  %v14930_v29 = vcombine.low %v799_v17, %v803_v18  ;;  %v14932_v30 = vcombine.low %v800_v19, %v804_v20  ;;  %v14970_v17 = vcombine.low %v839_v3, %v843_v4 }
 0x470   :  { %v14941_v32 = vcombine.high %v808_v27, %v812_v28 }
 0x472   :  { %10980 = vmatpush1.bf16.msra.mxu0 %v14882_v35  ;;  %11539 = vmatpush1.bf16.msra.mxu1 %v14884_v36  ;;  %v816_v35 = vld [vmem:[%s22638_s1 + $0x17d8] sm:$0xff] }
 0x473   :  { %10981 = vmatprep.subr.bf16.mxu0 %v14891_v37  ;;  %11540 = vmatprep.subr.bf16.mxu1 %v14893_v38  ;;  %v820_v36 = vld [vmem:[%s22638_s1 + $0x17f8] sm:$0xff]  ;;  %v14938_v37 = vcombine.low %v807_v25, %v811_v26  ;;  %v14940_v38 = vcombine.low %v808_v27, %v812_v28 }
 0x474   :  { %v14949_v40 = vcombine.high %v816_v35, %v820_v36 }
 0x476   :  { %10982 = vmatpush1.bf16.msra.mxu0 %v14890_v44  ;;  %11541 = vmatpush1.bf16.msra.mxu1 %v14892_v45  ;;  %v824_v44 = vld [vmem:[%s22638_s1 + $0x1818] sm:$0xff] }
 0x477   :  { %10983 = vmatprep.subr.bf16.mxu0 %v14899_v46  ;;  %11542 = vmatprep.subr.bf16.mxu1 %v14901_v49  ;;  %v828_v45 = vld [vmem:[%s22638_s1 + $0x1838] sm:$0xff]  ;;  %v14946_v46 = vcombine.low %v815_v33, %v819_v34  ;;  %v14948_v49 = vcombine.low %v816_v35, %v820_v36 }
 0x478   :  { %v14957_v54 = vcombine.high %v824_v44, %v828_v45 }
 0x47a   :  { %10984 = vmatpush1.bf16.msra.mxu0 %v14898_v61  ;;  %11543 = vmatpush1.bf16.msra.mxu1 %v14900_v62  ;;  %v832_v61 = vld [vmem:[%s22638_s1 + $0x1858] sm:$0xff] }
 0x47b   :  { %10985 = vmatprep.subr.bf16.mxu0 %v14907_v63  ;;  %11544 = vmatprep.subr.bf16.mxu1 %v14909_v0  ;;  %v836_v62 = vld [vmem:[%s22638_s1 + $0x1878] sm:$0xff]  ;;  %v14954_v63 = vcombine.low %v823_v41, %v827_v43  ;;  %v14956_v0 = vcombine.low %v824_v44, %v828_v45 }
 0x47c   :  { %v14965_v2 = vcombine.high %v832_v61, %v836_v62  ;;  %v14964_v9 = vcombine.low %v832_v61, %v836_v62 }
 0x47e   :  { %10986 = vmatpush1.bf16.msra.mxu0 %v14906_v5  ;;  %11545 = vmatpush1.bf16.msra.mxu1 %v14908_v6  ;;  %v16792_v5 = vld [vmem:[%s22639_s0 + $0x28] ss:$100 sps:$4 sm:$0xff]   ;;  %v840_v6 = vld [vmem:[%s22638_s1 + $0x1898] sm:$0xff] }
 0x47f   :  { %10987 = vmatprep.subr.bf16.mxu0 %v14915_v7  ;;  %11546 = vmatprep.subr.bf16.mxu1 %v14917_v8  ;;  %v844_v7 = vld [vmem:[%s22638_s1 + $0x18b8] sm:$0xff]  ;;  %v14962_v8 = vcombine.low %v831_v57, %v835_v59 }
 0x480   :  { %v14973_v11 = vcombine.high %v840_v6, %v844_v7  ;;  %v14972_v18 = vcombine.low %v840_v6, %v844_v7  ;;  %v895_v7 = vld [vmem:[%s22638_s1 + $0x1a50] sm:$0xff] }
 0x482   :  { %10988 = vmatpush1.bf16.msra.mxu0 %v14914_v13  ;;  %11547 = vmatpush1.bf16.msra.mxu1 %v14916_v14  ;;  %v851_v13 = vld [vmem:[%s22638_s1 + $0x18f0] sm:$0xff] }
 0x483   :  { %10989 = vmatprep.subr.bf16.mxu0 %v14923_v15  ;;  %11548 = vmatprep.subr.bf16.mxu1 %v14925_v16  ;;  %v16793_v14 = vld [vmem:[%s22639_s0 + $0x34] ss:$100 sps:$4 sm:$0xff]   ;;  %v14979_v19 = vcombine.high %v847_v12, %v851_v13  ;;  %v14978_v25 = vcombine.low %v847_v12, %v851_v13 }
 0x484   :  { %v848_v15 = vld [vmem:[%s22638_s1 + $0x18d8] sm:$0xff] }
 0x485   :  { %v852_v16 = vld [vmem:[%s22638_s1 + $0x18f8] sm:$0xff] }
 0x486   :  { %10990 = vmatpush1.bf16.msra.mxu0 %v14922_v21  ;;  %11549 = vmatpush1.bf16.msra.mxu1 %v14924_v22  ;;  %v14981_v20 = vcombine.high %v848_v15, %v852_v16  ;;  %v855_v21 = vld [vmem:[%s22638_s1 + $0x1910] sm:$0xff]  ;;  %v14980_v26 = vcombine.low %v848_v15, %v852_v16 }
 0x487   :  { %10991 = vmatprep.subr.bf16.mxu0 %v14931_v23  ;;  %11550 = vmatprep.subr.bf16.mxu1 %v14933_v24  ;;  %v859_v22 = vld [vmem:[%s22638_s1 + $0x1930] sm:$0xff]  ;;  %v856_v23 = vld [vmem:[%s22638_s1 + $0x1918] sm:$0xff] }
 0x488   :  { %v860_v24 = vld [vmem:[%s22638_s1 + $0x1938] sm:$0xff]  ;;  %v14987_v27 = vcombine.high %v855_v21, %v859_v22  ;;  %v14986_v33 = vcombine.low %v855_v21, %v859_v22  ;;  %v903_v15 = vld [vmem:[%s22638_s1 + $0x1a90] sm:$0xff] }
 0x489   :  { %v14989_v28 = vcombine.high %v856_v23, %v860_v24  ;;  %v14988_v34 = vcombine.low %v856_v23, %v860_v24  ;;  %v907_v16 = vld [vmem:[%s22638_s1 + $0x1ab0] sm:$0xff] }
 0x48a   :  { %10992 = vmatpush1.bf16.msra.mxu0 %v14930_v29  ;;  %11551 = vmatpush1.bf16.msra.mxu1 %v14932_v30  ;;  %v863_v29 = vld [vmem:[%s22638_s1 + $0x1950] sm:$0xff]  ;;  %v15035_v21 = vcombine.high %v903_v15, %v907_v16 }
 0x48b   :  { %10993 = vmatprep.subr.bf16.mxu0 %v14939_v31  ;;  %11552 = vmatprep.subr.bf16.mxu1 %v14941_v32  ;;  %v867_v30 = vld [vmem:[%s22638_s1 + $0x1970] sm:$0xff]  ;;  %v864_v31 = vld [vmem:[%s22638_s1 + $0x1958] sm:$0xff] }
 0x48c   :  { %v868_v32 = vld [vmem:[%s22638_s1 + $0x1978] sm:$0xff]  ;;  %v14995_v35 = vcombine.high %v863_v29, %v867_v30  ;;  %v14994_v41 = vcombine.low %v863_v29, %v867_v30  ;;  %v911_v23 = vld [vmem:[%s22638_s1 + $0x1ad0] sm:$0xff] }
 0x48d   :  { %v14997_v36 = vcombine.high %v864_v31, %v868_v32  ;;  %v14996_v43 = vcombine.low %v864_v31, %v868_v32  ;;  %v915_v24 = vld [vmem:[%s22638_s1 + $0x1af0] sm:$0xff] }
 0x48e   :  { %10994 = vmatpush1.bf16.msra.mxu0 %v14938_v37  ;;  %11553 = vmatpush1.bf16.msra.mxu1 %v14940_v38  ;;  %v871_v37 = vld [vmem:[%s22638_s1 + $0x1990] sm:$0xff]  ;;  %v15043_v29 = vcombine.high %v911_v23, %v915_v24 }
 0x48f   :  { %10995 = vmatprep.subr.bf16.mxu0 %v14947_v39  ;;  %11554 = vmatprep.subr.bf16.mxu1 %v14949_v40  ;;  %v875_v38 = vld [vmem:[%s22638_s1 + $0x19b0] sm:$0xff]  ;;  %v872_v39 = vld [vmem:[%s22638_s1 + $0x1998] sm:$0xff] }
 0x490   :  { %v876_v40 = vld [vmem:[%s22638_s1 + $0x19b8] sm:$0xff]  ;;  %v15003_v44 = vcombine.high %v871_v37, %v875_v38  ;;  %v15002_v57 = vcombine.low %v871_v37, %v875_v38  ;;  %v919_v31 = vld [vmem:[%s22638_s1 + $0x1b10] sm:$0xff] }
 0x491   :  { %v15005_v45 = vcombine.high %v872_v39, %v876_v40  ;;  %v15004_v59 = vcombine.low %v872_v39, %v876_v40  ;;  %v923_v32 = vld [vmem:[%s22638_s1 + $0x1b30] sm:$0xff] }
 0x492   :  { %10996 = vmatpush1.bf16.msra.mxu0 %v14946_v46  ;;  %11555 = vmatpush1.bf16.msra.mxu1 %v14948_v49  ;;  %v879_v46 = vld [vmem:[%s22638_s1 + $0x19d0] sm:$0xff]  ;;  %v15051_v37 = vcombine.high %v919_v31, %v923_v32 }
 0x493   :  { %11008 = vmatprep.subr.bf16.mxu0 %v14955_v51  ;;  %11567 = vmatprep.subr.bf16.mxu1 %v14957_v54  ;;  %v883_v49 = vld [vmem:[%s22638_s1 + $0x19f0] sm:$0xff]  ;;  %v880_v51 = vld [vmem:[%s22638_s1 + $0x19d8] sm:$0xff] }
 0x494   :  { %v884_v54 = vld [vmem:[%s22638_s1 + $0x19f8] sm:$0xff]  ;;  %v15011_v61 = vcombine.high %v879_v46, %v883_v49  ;;  %v15010_v3 = vcombine.low %v879_v46, %v883_v49  ;;  %v927_v39 = vld [vmem:[%s22638_s1 + $0x1b50] sm:$0xff] }
 0x495   :  { %10998 = vmatmul.mubr.bf16.vlgmr.msra.gmra.mrb[4].mxu0 %v16792_v5  ;;  %11557 = vmatmul.mubr.bf16.vlgmr.msra.gmra.mrb[4].mxu1 %v16792_v5  ;;  %v15013_v62 = vcombine.high %v880_v51, %v884_v54  ;;  %v15012_v4 = vcombine.low %v880_v51, %v884_v54  ;;  %v931_v40 = vld [vmem:[%s22638_s1 + $0x1b70] sm:$0xff] }
 0x496   :  { %11009 = vmatpush1.bf16.msra.mxu0 %v14954_v63  ;;  %11568 = vmatpush1.bf16.msra.mxu1 %v14956_v0  ;;  %v887_v63 = vld [vmem:[%s22638_s1 + $0x1a10] sm:$0xff]  ;;  %v15059_v46 = vcombine.high %v927_v39, %v931_v40 }
 0x497   :  { %11010 = vmatprep.subr.bf16.mxu0 %v14963_v1  ;;  %11569 = vmatprep.subr.bf16.mxu1 %v14965_v2  ;;  %v891_v0 = vld [vmem:[%s22638_s1 + $0x1a30] sm:$0xff]  ;;  %v888_v1 = vld [vmem:[%s22638_s1 + $0x1a18] sm:$0xff] }
 0x498   :  { %11040 = vmatprep.mubr.bf16.mxu0 %v16793_v14  ;;  %11599 = vmatprep.mubr.bf16.mxu1 %v16793_v14  ;;  %v892_v2 = vld [vmem:[%s22638_s1 + $0x1a38] sm:$0xff]  ;;  %v15019_v5 = vcombine.high %v887_v63, %v891_v0  ;;  %v935_v51 = vld [vmem:[%s22638_s1 + $0x1b90] sm:$0xff] }
 0x499   :  { %v15021_v6 = vcombine.high %v888_v1, %v892_v2  ;;  %v15020_v12 = vcombine.low %v888_v1, %v892_v2  ;;  %v939_v54 = vld [vmem:[%s22638_s1 + $0x1bb0] sm:$0xff] }
 0x49a   :  { %11011 = vmatpush1.bf16.msra.mxu0 %v14962_v8  ;;  %11570 = vmatpush1.bf16.msra.mxu1 %v14964_v9  ;;  %v899_v8 = vld [vmem:[%s22638_s1 + $0x1a70] sm:$0xff]  ;;  %v896_v9 = vld [vmem:[%s22638_s1 + $0x1a58] sm:$0xff] }
 0x49b   :  { %11012 = vmatprep.subr.bf16.mxu0 %v14971_v10  ;;  %11571 = vmatprep.subr.bf16.mxu1 %v14973_v11  ;;  %v900_v10 = vld [vmem:[%s22638_s1 + $0x1a78] sm:$0xff]  ;;  %v15018_v11 = vcombine.low %v887_v63, %v891_v0  ;;  %v15027_v13 = vcombine.high %v895_v7, %v899_v8  ;;  %v15067_v63 = vcombine.high %v935_v51, %v939_v54  ;;  %v943_v1 = vld [vmem:[%s22638_s1 + $0x1bd0] sm:$0xff] }
 0x49c   :  { %v15029_v14 = vcombine.high %v896_v9, %v900_v10  ;;  %v947_v2 = vld [vmem:[%s22638_s1 + $0x1bf0] sm:$0xff] }
 0x49e   :  { %11013 = vmatpush1.bf16.msra.mxu0 %v14970_v17  ;;  %11572 = vmatpush1.bf16.msra.mxu1 %v14972_v18  ;;  %v904_v17 = vld [vmem:[%s22638_s1 + $0x1a98] sm:$0xff] }
 0x49f   :  { %11014 = vmatprep.subr.bf16.mxu0 %v14979_v19  ;;  %11573 = vmatprep.subr.bf16.mxu1 %v14981_v20  ;;  %v908_v18 = vld [vmem:[%s22638_s1 + $0x1ab8] sm:$0xff]  ;;  %v15026_v19 = vcombine.low %v895_v7, %v899_v8  ;;  %v15028_v20 = vcombine.low %v896_v9, %v900_v10  ;;  %v15075_v7 = vcombine.high %v943_v1, %v947_v2  ;;  %v951_v9 = vld [vmem:[%s22638_s1 + $0x1c10] sm:$0xff] }
 0x4a0   :  { %v15037_v22 = vcombine.high %v904_v17, %v908_v18  ;;  %v955_v10 = vld [vmem:[%s22638_s1 + $0x1c30] sm:$0xff] }
 0x4a2   :  { %11015 = vmatpush1.bf16.msra.mxu0 %v14978_v25  ;;  %11574 = vmatpush1.bf16.msra.mxu1 %v14980_v26  ;;  %v912_v25 = vld [vmem:[%s22638_s1 + $0x1ad8] sm:$0xff] }
 0x4a3   :  { %11016 = vmatprep.subr.bf16.mxu0 %v14987_v27  ;;  %11575 = vmatprep.subr.bf16.mxu1 %v14989_v28  ;;  %v916_v26 = vld [vmem:[%s22638_s1 + $0x1af8] sm:$0xff]  ;;  %v15034_v27 = vcombine.low %v903_v15, %v907_v16  ;;  %v15036_v28 = vcombine.low %v904_v17, %v908_v18  ;;  %v15083_v15 = vcombine.high %v951_v9, %v955_v10  ;;  %v959_v17 = vld [vmem:[%s22638_s1 + $0x1c50] sm:$0xff] }
 0x4a4   :  { %v15045_v30 = vcombine.high %v912_v25, %v916_v26  ;;  %v963_v18 = vld [vmem:[%s22638_s1 + $0x1c70] sm:$0xff] }
 0x4a6   :  { %11017 = vmatpush1.bf16.msra.mxu0 %v14986_v33  ;;  %11576 = vmatpush1.bf16.msra.mxu1 %v14988_v34  ;;  %v920_v33 = vld [vmem:[%s22638_s1 + $0x1b18] sm:$0xff] }
 0x4a7   :  { %11018 = vmatprep.subr.bf16.mxu0 %v14995_v35  ;;  %11577 = vmatprep.subr.bf16.mxu1 %v14997_v36  ;;  %v924_v34 = vld [vmem:[%s22638_s1 + $0x1b38] sm:$0xff]  ;;  %v15042_v35 = vcombine.low %v911_v23, %v915_v24  ;;  %v15044_v36 = vcombine.low %v912_v25, %v916_v26  ;;  %v15091_v23 = vcombine.high %v959_v17, %v963_v18  ;;  %v967_v25 = vld [vmem:[%s22638_s1 + $0x1c90] sm:$0xff] }
 0x4a8   :  { %v15053_v38 = vcombine.high %v920_v33, %v924_v34  ;;  %v971_v26 = vld [vmem:[%s22638_s1 + $0x1cb0] sm:$0xff] }
 0x4aa   :  { %11019 = vmatpush1.bf16.msra.mxu0 %v14994_v41  ;;  %11578 = vmatpush1.bf16.msra.mxu1 %v14996_v43  ;;  %v928_v41 = vld [vmem:[%s22638_s1 + $0x1b58] sm:$0xff] }
 0x4ab   :  { %11020 = vmatprep.subr.bf16.mxu0 %v15003_v44  ;;  %11579 = vmatprep.subr.bf16.mxu1 %v15005_v45  ;;  %v932_v43 = vld [vmem:[%s22638_s1 + $0x1b78] sm:$0xff]  ;;  %v15050_v44 = vcombine.low %v919_v31, %v923_v32  ;;  %v15052_v45 = vcombine.low %v920_v33, %v924_v34  ;;  %v15099_v32 = vcombine.high %v967_v25, %v971_v26  ;;  %v975_v34 = vld [vmem:[%s22638_s1 + $0x1cd0] sm:$0xff] }
 0x4ac   :  { %v15061_v49 = vcombine.high %v928_v41, %v932_v43 }
 0x4ae   :  { %11021 = vmatpush1.bf16.msra.mxu0 %v15002_v57  ;;  %11580 = vmatpush1.bf16.msra.mxu1 %v15004_v59  ;;  %v936_v57 = vld [vmem:[%s22638_s1 + $0x1b98] sm:$0xff] }
 0x4af   :  { %11022 = vmatprep.subr.bf16.mxu0 %v15011_v61  ;;  %11581 = vmatprep.subr.bf16.mxu1 %v15013_v62  ;;  %v940_v59 = vld [vmem:[%s22638_s1 + $0x1bb8] sm:$0xff]  ;;  %v15058_v61 = vcombine.low %v927_v39, %v931_v40  ;;  %v15060_v62 = vcombine.low %v928_v41, %v932_v43  ;;  %v15098_v39 = vcombine.low %v967_v25, %v971_v26 }
 0x4b0   :  { %v15069_v0 = vcombine.high %v936_v57, %v940_v59 }
 0x4b2   :  { %11023 = vmatpush1.bf16.msra.mxu0 %v15010_v3  ;;  %11582 = vmatpush1.bf16.msra.mxu1 %v15012_v4  ;;  %v944_v3 = vld [vmem:[%s22638_s1 + $0x1bd8] sm:$0xff] }
 0x4b3   :  { %11024 = vmatprep.subr.bf16.mxu0 %v15019_v5  ;;  %11583 = vmatprep.subr.bf16.mxu1 %v15021_v6  ;;  %v948_v4 = vld [vmem:[%s22638_s1 + $0x1bf8] sm:$0xff]  ;;  %v15066_v5 = vcombine.low %v935_v51, %v939_v54  ;;  %v15068_v6 = vcombine.low %v936_v57, %v940_v59 }
 0x4b4   :  { %v15077_v8 = vcombine.high %v944_v3, %v948_v4 }
 0x4b6   :  { %11025 = vmatpush1.bf16.msra.mxu0 %v15018_v11  ;;  %11584 = vmatpush1.bf16.msra.mxu1 %v15020_v12  ;;  %v952_v11 = vld [vmem:[%s22638_s1 + $0x1c18] sm:$0xff] }
 0x4b7   :  { %11026 = vmatprep.subr.bf16.mxu0 %v15027_v13  ;;  %11585 = vmatprep.subr.bf16.mxu1 %v15029_v14  ;;  %v956_v12 = vld [vmem:[%s22638_s1 + $0x1c38] sm:$0xff]  ;;  %v15074_v13 = vcombine.low %v943_v1, %v947_v2  ;;  %v15076_v14 = vcombine.low %v944_v3, %v948_v4 }
 0x4b8   :  { %v15085_v16 = vcombine.high %v952_v11, %v956_v12 }
 0x4ba   :  { %11027 = vmatpush1.bf16.msra.mxu0 %v15026_v19  ;;  %11586 = vmatpush1.bf16.msra.mxu1 %v15028_v20  ;;  %v960_v19 = vld [vmem:[%s22638_s1 + $0x1c58] sm:$0xff] }
 0x4bb   :  { %11028 = vmatprep.subr.bf16.mxu0 %v15035_v21  ;;  %11587 = vmatprep.subr.bf16.mxu1 %v15037_v22  ;;  %v964_v20 = vld [vmem:[%s22638_s1 + $0x1c78] sm:$0xff]  ;;  %v15082_v21 = vcombine.low %v951_v9, %v955_v10  ;;  %v15084_v22 = vcombine.low %v952_v11, %v956_v12 }
 0x4bc   :  { %v15093_v24 = vcombine.high %v960_v19, %v964_v20  ;;  %v15092_v31 = vcombine.low %v960_v19, %v964_v20 }
 0x4be   :  { %11029 = vmatpush1.bf16.msra.mxu0 %v15034_v27  ;;  %11588 = vmatpush1.bf16.msra.mxu1 %v15036_v28  ;;  %v16794_v27 = vld [vmem:[%s22639_s0 + $0x30] ss:$100 sps:$4 sm:$0xff]   ;;  %v968_v28 = vld [vmem:[%s22638_s1 + $0x1c98] sm:$0xff] }
 0x4bf   :  { %11030 = vmatprep.subr.bf16.mxu0 %v15043_v29  ;;  %11589 = vmatprep.subr.bf16.mxu1 %v15045_v30  ;;  %v972_v29 = vld [vmem:[%s22638_s1 + $0x1cb8] sm:$0xff]  ;;  %v15090_v30 = vcombine.low %v959_v17, %v963_v18 }
 0x4c0   :  { %v15101_v33 = vcombine.high %v968_v28, %v972_v29  ;;  %v15100_v40 = vcombine.low %v968_v28, %v972_v29  ;;  %v1023_v29 = vld [vmem:[%s22638_s1 + $0x1e50] sm:$0xff] }
 0x4c2   :  { %11031 = vmatpush1.bf16.msra.mxu0 %v15042_v35  ;;  %11590 = vmatpush1.bf16.msra.mxu1 %v15044_v36  ;;  %v979_v35 = vld [vmem:[%s22638_s1 + $0x1cf0] sm:$0xff]  ;;  %v16795_v36 = vld [vmem:[%s22639_s0 + $0x3c] ss:$100 sps:$4 sm:$0xff]  }
 0x4c3   :  { %11032 = vmatprep.subr.bf16.mxu0 %v15051_v37  ;;  %11591 = vmatprep.subr.bf16.mxu1 %v15053_v38  ;;  %v976_v37 = vld [vmem:[%s22638_s1 + $0x1cd8] sm:$0xff]  ;;  %v15107_v41 = vcombine.high %v975_v34, %v979_v35  ;;  %v15106_v51 = vcombine.low %v975_v34, %v979_v35 }
 0x4c4   :  { %v980_v38 = vld [vmem:[%s22638_s1 + $0x1cf8] sm:$0xff] }
 0x4c5   :  { %v15109_v43 = vcombine.high %v976_v37, %v980_v38  ;;  %v15108_v54 = vcombine.low %v976_v37, %v980_v38  ;;  %v1031_v37 = vld [vmem:[%s22638_s1 + $0x1e90] sm:$0xff] }
 0x4c6   :  { %11033 = vmatpush1.bf16.msra.mxu0 %v15050_v44  ;;  %11592 = vmatpush1.bf16.msra.mxu1 %v15052_v45  ;;  %v983_v44 = vld [vmem:[%s22638_s1 + $0x1d10] sm:$0xff] }
 0x4c7   :  { %11034 = vmatprep.subr.bf16.mxu0 %v15059_v46  ;;  %11593 = vmatprep.subr.bf16.mxu1 %v15061_v49  ;;  %v987_v45 = vld [vmem:[%s22638_s1 + $0x1d30] sm:$0xff]  ;;  %v984_v46 = vld [vmem:[%s22638_s1 + $0x1d18] sm:$0xff] }
 0x4c8   :  { %v988_v49 = vld [vmem:[%s22638_s1 + $0x1d38] sm:$0xff]  ;;  %v15115_v57 = vcombine.high %v983_v44, %v987_v45  ;;  %v15114_v1 = vcombine.low %v983_v44, %v987_v45  ;;  %v1035_v38 = vld [vmem:[%s22638_s1 + $0x1eb0] sm:$0xff] }
 0x4c9   :  { %v15117_v59 = vcombine.high %v984_v46, %v988_v49  ;;  %v15116_v2 = vcombine.low %v984_v46, %v988_v49  ;;  %v15163_v44 = vcombine.high %v1031_v37, %v1035_v38  ;;  %v1039_v46 = vld [vmem:[%s22638_s1 + $0x1ed0] sm:$0xff] }
 0x4ca   :  { %11035 = vmatpush1.bf16.msra.mxu0 %v15058_v61  ;;  %11594 = vmatpush1.bf16.msra.mxu1 %v15060_v62  ;;  %v991_v61 = vld [vmem:[%s22638_s1 + $0x1d50] sm:$0xff] }
 0x4cb   :  { %11036 = vmatprep.subr.bf16.mxu0 %v15067_v63  ;;  %11595 = vmatprep.subr.bf16.mxu1 %v15069_v0  ;;  %v995_v62 = vld [vmem:[%s22638_s1 + $0x1d70] sm:$0xff]  ;;  %v992_v63 = vld [vmem:[%s22638_s1 + $0x1d58] sm:$0xff] }
 0x4cc   :  { %v996_v0 = vld [vmem:[%s22638_s1 + $0x1d78] sm:$0xff]  ;;  %v15123_v3 = vcombine.high %v991_v61, %v995_v62  ;;  %v15122_v9 = vcombine.low %v991_v61, %v995_v62  ;;  %v1043_v49 = vld [vmem:[%s22638_s1 + $0x1ef0] sm:$0xff] }
 0x4cd   :  { %v15125_v4 = vcombine.high %v992_v63, %v996_v0  ;;  %v15124_v10 = vcombine.low %v992_v63, %v996_v0  ;;  %v15171_v61 = vcombine.high %v1039_v46, %v1043_v49  ;;  %v1047_v63 = vld [vmem:[%s22638_s1 + $0x1f10] sm:$0xff] }
 0x4ce   :  { %11037 = vmatpush1.bf16.msra.mxu0 %v15066_v5  ;;  %11596 = vmatpush1.bf16.msra.mxu1 %v15068_v6  ;;  %v999_v5 = vld [vmem:[%s22638_s1 + $0x1d90] sm:$0xff] }
 0x4cf   :  { %11038 = vmatprep.subr.bf16.mxu0 %v15075_v7  ;;  %11597 = vmatprep.subr.bf16.mxu1 %v15077_v8  ;;  %v1003_v6 = vld [vmem:[%s22638_s1 + $0x1db0] sm:$0xff]  ;;  %v1000_v7 = vld [vmem:[%s22638_s1 + $0x1d98] sm:$0xff] }
 0x4d0   :  { %v1004_v8 = vld [vmem:[%s22638_s1 + $0x1db8] sm:$0xff]  ;;  %v15131_v11 = vcombine.high %v999_v5, %v1003_v6  ;;  %v15130_v17 = vcombine.low %v999_v5, %v1003_v6  ;;  %v1051_v0 = vld [vmem:[%s22638_s1 + $0x1f30] sm:$0xff] }
 0x4d1   :  { %v15133_v12 = vcombine.high %v1000_v7, %v1004_v8  ;;  %v15132_v18 = vcombine.low %v1000_v7, %v1004_v8  ;;  %v15179_v5 = vcombine.high %v1047_v63, %v1051_v0  ;;  %v1055_v7 = vld [vmem:[%s22638_s1 + $0x1f50] sm:$0xff] }
 0x4d2   :  { %11039 = vmatpush1.bf16.msra.mxu0 %v15074_v13  ;;  %11598 = vmatpush1.bf16.msra.mxu1 %v15076_v14  ;;  %v1007_v13 = vld [vmem:[%s22638_s1 + $0x1dd0] sm:$0xff] }
 0x4d3   :  { %11051 = vmatprep.subr.bf16.mxu0 %v15083_v15  ;;  %11610 = vmatprep.subr.bf16.mxu1 %v15085_v16  ;;  %v1011_v14 = vld [vmem:[%s22638_s1 + $0x1df0] sm:$0xff]  ;;  %v1008_v15 = vld [vmem:[%s22638_s1 + $0x1dd8] sm:$0xff] }
 0x4d4   :  { %v1012_v16 = vld [vmem:[%s22638_s1 + $0x1df8] sm:$0xff]  ;;  %v15139_v19 = vcombine.high %v1007_v13, %v1011_v14  ;;  %v15138_v25 = vcombine.low %v1007_v13, %v1011_v14  ;;  %v1059_v8 = vld [vmem:[%s22638_s1 + $0x1f70] sm:$0xff] }
 0x4d5   :  { %11041 = vmatmul.mubr.bf16.vlgmr.msra.gmra.mrb[4].mxu0 %v16794_v27  ;;  %11600 = vmatmul.mubr.bf16.vlgmr.msra.gmra.mrb[4].mxu1 %v16794_v27  ;;  %v15141_v20 = vcombine.high %v1008_v15, %v1012_v16  ;;  %v15140_v26 = vcombine.low %v1008_v15, %v1012_v16  ;;  %v15187_v13 = vcombine.high %v1055_v7, %v1059_v8  ;;  %v1063_v15 = vld [vmem:[%s22638_s1 + $0x1f90] sm:$0xff] }
 0x4d6   :  { %11052 = vmatpush1.bf16.msra.mxu0 %v15082_v21  ;;  %11611 = vmatpush1.bf16.msra.mxu1 %v15084_v22  ;;  %v1015_v21 = vld [vmem:[%s22638_s1 + $0x1e10] sm:$0xff] }
 0x4d7   :  { %11053 = vmatprep.subr.bf16.mxu0 %v15091_v23  ;;  %11612 = vmatprep.subr.bf16.mxu1 %v15093_v24  ;;  %v1019_v22 = vld [vmem:[%s22638_s1 + $0x1e30] sm:$0xff]  ;;  %v1016_v23 = vld [vmem:[%s22638_s1 + $0x1e18] sm:$0xff] }
 0x4d8   :  { %11083 = vmatprep.mubr.bf16.mxu0 %v16795_v36  ;;  %11642 = vmatprep.mubr.bf16.mxu1 %v16795_v36  ;;  %v1020_v24 = vld [vmem:[%s22638_s1 + $0x1e38] sm:$0xff]  ;;  %v15147_v27 = vcombine.high %v1015_v21, %v1019_v22  ;;  %v1067_v16 = vld [vmem:[%s22638_s1 + $0x1fb0] sm:$0xff] }
 0x4d9   :  { %v15149_v28 = vcombine.high %v1016_v23, %v1020_v24  ;;  %v15148_v34 = vcombine.low %v1016_v23, %v1020_v24  ;;  %v1071_v23 = vld [vmem:[%s22638_s1 + $0x1fd0] sm:$0xff] }
 0x4da   :  { %11054 = vmatpush1.bf16.msra.mxu0 %v15090_v30  ;;  %11613 = vmatpush1.bf16.msra.mxu1 %v15092_v31  ;;  %v1027_v30 = vld [vmem:[%s22638_s1 + $0x1e70] sm:$0xff]  ;;  %v1024_v31 = vld [vmem:[%s22638_s1 + $0x1e58] sm:$0xff] }
 0x4db   :  { %11055 = vmatprep.subr.bf16.mxu0 %v15099_v32  ;;  %11614 = vmatprep.subr.bf16.mxu1 %v15101_v33  ;;  %v1028_v32 = vld [vmem:[%s22638_s1 + $0x1e78] sm:$0xff]  ;;  %v15146_v33 = vcombine.low %v1015_v21, %v1019_v22  ;;  %v15155_v35 = vcombine.high %v1023_v29, %v1027_v30  ;;  %v15195_v21 = vcombine.high %v1063_v15, %v1067_v16  ;;  %v1075_v24 = vld [vmem:[%s22638_s1 + $0x1ff0] sm:$0xff] }
 0x4dc   :  { %v15157_v36 = vcombine.high %v1024_v31, %v1028_v32 }
 0x4de   :  { %11056 = vmatpush1.bf16.msra.mxu0 %v15098_v39  ;;  %11615 = vmatpush1.bf16.msra.mxu1 %v15100_v40  ;;  %v1032_v39 = vld [vmem:[%s22638_s1 + $0x1e98] sm:$0xff] }
 0x4df   :  { %11057 = vmatprep.subr.bf16.mxu0 %v15107_v41  ;;  %11616 = vmatprep.subr.bf16.mxu1 %v15109_v43  ;;  %v1036_v40 = vld [vmem:[%s22638_s1 + $0x1eb8] sm:$0xff]  ;;  %v15154_v41 = vcombine.low %v1023_v29, %v1027_v30  ;;  %v15156_v43 = vcombine.low %v1024_v31, %v1028_v32  ;;  %v15203_v29 = vcombine.high %v1071_v23, %v1075_v24  ;;  %v1079_v31 = vld [vmem:[%s22638_s1 + $0x2010] sm:$0xff] }
 0x4e0   :  { %v15165_v45 = vcombine.high %v1032_v39, %v1036_v40  ;;  %v1083_v32 = vld [vmem:[%s22638_s1 + $0x2030] sm:$0xff] }
 0x4e2   :  { %11058 = vmatpush1.bf16.msra.mxu0 %v15106_v51  ;;  %11617 = vmatpush1.bf16.msra.mxu1 %v15108_v54  ;;  %v1040_v51 = vld [vmem:[%s22638_s1 + $0x1ed8] sm:$0xff] }
 0x4e3   :  { %11059 = vmatprep.subr.bf16.mxu0 %v15115_v57  ;;  %11618 = vmatprep.subr.bf16.mxu1 %v15117_v59  ;;  %v1044_v54 = vld [vmem:[%s22638_s1 + $0x1ef8] sm:$0xff]  ;;  %v15162_v57 = vcombine.low %v1031_v37, %v1035_v38  ;;  %v15164_v59 = vcombine.low %v1032_v39, %v1036_v40  ;;  %v15211_v37 = vcombine.high %v1079_v31, %v1083_v32  ;;  %v1087_v39 = vld [vmem:[%s22638_s1 + $0x2050] sm:$0xff] }
 0x4e4   :  { %v15173_v62 = vcombine.high %v1040_v51, %v1044_v54  ;;  %v1091_v40 = vld [vmem:[%s22638_s1 + $0x2070] sm:$0xff] }
 0x4e6   :  { %11060 = vmatpush1.bf16.msra.mxu0 %v15114_v1  ;;  %11619 = vmatpush1.bf16.msra.mxu1 %v15116_v2  ;;  %v1048_v1 = vld [vmem:[%s22638_s1 + $0x1f18] sm:$0xff] }
 0x4e7   :  { %11061 = vmatprep.subr.bf16.mxu0 %v15123_v3  ;;  %11620 = vmatprep.subr.bf16.mxu1 %v15125_v4  ;;  %v1052_v2 = vld [vmem:[%s22638_s1 + $0x1f38] sm:$0xff]  ;;  %v15170_v3 = vcombine.low %v1039_v46, %v1043_v49  ;;  %v15172_v4 = vcombine.low %v1040_v51, %v1044_v54  ;;  %v15219_v46 = vcombine.high %v1087_v39, %v1091_v40  ;;  %v1095_v51 = vld [vmem:[%s22638_s1 + $0x2090] sm:$0xff] }
 0x4e8   :  { %v15181_v6 = vcombine.high %v1048_v1, %v1052_v2  ;;  %v1099_v54 = vld [vmem:[%s22638_s1 + $0x20b0] sm:$0xff] }
 0x4ea   :  { %11062 = vmatpush1.bf16.msra.mxu0 %v15122_v9  ;;  %11621 = vmatpush1.bf16.msra.mxu1 %v15124_v10  ;;  %v1056_v9 = vld [vmem:[%s22638_s1 + $0x1f58] sm:$0xff] }
 0x4eb   :  { %11063 = vmatprep.subr.bf16.mxu0 %v15131_v11  ;;  %11622 = vmatprep.subr.bf16.mxu1 %v15133_v12  ;;  %v1060_v10 = vld [vmem:[%s22638_s1 + $0x1f78] sm:$0xff]  ;;  %v15178_v11 = vcombine.low %v1047_v63, %v1051_v0  ;;  %v15180_v12 = vcombine.low %v1048_v1, %v1052_v2  ;;  %v15227_v0 = vcombine.high %v1095_v51, %v1099_v54  ;;  %v1103_v2 = vld [vmem:[%s22638_s1 + $0x20d0] sm:$0xff] }
 0x4ec   :  { %v15189_v14 = vcombine.high %v1056_v9, %v1060_v10 }
 0x4ee   :  { %11064 = vmatpush1.bf16.msra.mxu0 %v15130_v17  ;;  %11623 = vmatpush1.bf16.msra.mxu1 %v15132_v18  ;;  %v1064_v17 = vld [vmem:[%s22638_s1 + $0x1f98] sm:$0xff] }
 0x4ef   :  { %11065 = vmatprep.subr.bf16.mxu0 %v15139_v19  ;;  %11624 = vmatprep.subr.bf16.mxu1 %v15141_v20  ;;  %v1068_v18 = vld [vmem:[%s22638_s1 + $0x1fb8] sm:$0xff]  ;;  %v15186_v19 = vcombine.low %v1055_v7, %v1059_v8  ;;  %v15188_v20 = vcombine.low %v1056_v9, %v1060_v10  ;;  %v15226_v7 = vcombine.low %v1095_v51, %v1099_v54 }
 0x4f0   :  { %v15197_v22 = vcombine.high %v1064_v17, %v1068_v18 }
 0x4f2   :  { %11066 = vmatpush1.bf16.msra.mxu0 %v15138_v25  ;;  %11625 = vmatpush1.bf16.msra.mxu1 %v15140_v26  ;;  %v1072_v25 = vld [vmem:[%s22638_s1 + $0x1fd8] sm:$0xff] }
 0x4f3   :  { %11067 = vmatprep.subr.bf16.mxu0 %v15147_v27  ;;  %11626 = vmatprep.subr.bf16.mxu1 %v15149_v28  ;;  %v1076_v26 = vld [vmem:[%s22638_s1 + $0x1ff8] sm:$0xff]  ;;  %v15194_v27 = vcombine.low %v1063_v15, %v1067_v16  ;;  %v15196_v28 = vcombine.low %v1064_v17, %v1068_v18 }
 0x4f4   :  { %v15205_v30 = vcombine.high %v1072_v25, %v1076_v26 }
 0x4f6   :  { %11068 = vmatpush1.bf16.msra.mxu0 %v15146_v33  ;;  %11627 = vmatpush1.bf16.msra.mxu1 %v15148_v34  ;;  %v1080_v33 = vld [vmem:[%s22638_s1 + $0x2018] sm:$0xff] }
 0x4f7   :  { %11069 = vmatprep.subr.bf16.mxu0 %v15155_v35  ;;  %11628 = vmatprep.subr.bf16.mxu1 %v15157_v36  ;;  %v1084_v34 = vld [vmem:[%s22638_s1 + $0x2038] sm:$0xff]  ;;  %v15202_v35 = vcombine.low %v1071_v23, %v1075_v24  ;;  %v15204_v36 = vcombine.low %v1072_v25, %v1076_v26 }
 0x4f8   :  { %v15213_v38 = vcombine.high %v1080_v33, %v1084_v34 }
 0x4fa   :  { %11070 = vmatpush1.bf16.msra.mxu0 %v15154_v41  ;;  %11629 = vmatpush1.bf16.msra.mxu1 %v15156_v43  ;;  %v1088_v41 = vld [vmem:[%s22638_s1 + $0x2058] sm:$0xff] }
 0x4fb   :  { %11071 = vmatprep.subr.bf16.mxu0 %v15163_v44  ;;  %11630 = vmatprep.subr.bf16.mxu1 %v15165_v45  ;;  %v1092_v43 = vld [vmem:[%s22638_s1 + $0x2078] sm:$0xff]  ;;  %v15210_v44 = vcombine.low %v1079_v31, %v1083_v32  ;;  %v15212_v45 = vcombine.low %v1080_v33, %v1084_v34 }
 0x4fc   :  { %v15221_v49 = vcombine.high %v1088_v41, %v1092_v43  ;;  %v15220_v63 = vcombine.low %v1088_v41, %v1092_v43 }
 0x4fe   :  { %11072 = vmatpush1.bf16.msra.mxu0 %v15162_v57  ;;  %11631 = vmatpush1.bf16.msra.mxu1 %v15164_v59  ;;  %v16796_v57 = vld [vmem:[%s22639_s0 + $0x38] ss:$100 sps:$4 sm:$0xff]  }
 0x4ff   :  { %11073 = vmatprep.subr.bf16.mxu0 %v15171_v61  ;;  %11632 = vmatprep.subr.bf16.mxu1 %v15173_v62  ;;  %v1096_v59 = vld [vmem:[%s22638_s1 + $0x2098] sm:$0xff]  ;;  %v15218_v62 = vcombine.low %v1087_v39, %v1091_v40 }
 0x500   :  { %v1100_v61 = vld [vmem:[%s22638_s1 + $0x20b8] sm:$0xff] }
 0x501   :  { %v15229_v1 = vcombine.high %v1096_v59, %v1100_v61  ;;  %v15228_v8 = vcombine.low %v1096_v59, %v1100_v61  ;;  %v1151_v61 = vld [vmem:[%s22638_s1 + $0x2250] sm:$0xff] }
 0x502   :  { %11074 = vmatpush1.bf16.msra.mxu0 %v15170_v3  ;;  %11633 = vmatpush1.bf16.msra.mxu1 %v15172_v4  ;;  %v1107_v3 = vld [vmem:[%s22638_s1 + $0x20f0] sm:$0xff]  ;;  %v16797_v4 = vld [vmem:[%s22639_s0 + $0x44] ss:$100 sps:$4 sm:$0xff]  }
 0x503   :  { %11075 = vmatprep.subr.bf16.mxu0 %v15179_v5  ;;  %11634 = vmatprep.subr.bf16.mxu1 %v15181_v6  ;;  %v1104_v5 = vld [vmem:[%s22638_s1 + $0x20d8] sm:$0xff]  ;;  %v15235_v9 = vcombine.high %v1103_v2, %v1107_v3  ;;  %v15234_v15 = vcombine.low %v1103_v2, %v1107_v3 }
 0x504   :  { %v1108_v6 = vld [vmem:[%s22638_s1 + $0x20f8] sm:$0xff] }
 0x505   :  { %v15237_v10 = vcombine.high %v1104_v5, %v1108_v6  ;;  %v15236_v16 = vcombine.low %v1104_v5, %v1108_v6  ;;  %v1159_v5 = vld [vmem:[%s22638_s1 + $0x2290] sm:$0xff] }
 0x506   :  { %11076 = vmatpush1.bf16.msra.mxu0 %v15178_v11  ;;  %11635 = vmatpush1.bf16.msra.mxu1 %v15180_v12  ;;  %v1111_v11 = vld [vmem:[%s22638_s1 + $0x2110] sm:$0xff] }
 0x507   :  { %11077 = vmatprep.subr.bf16.mxu0 %v15187_v13  ;;  %11636 = vmatprep.subr.bf16.mxu1 %v15189_v14  ;;  %v1115_v12 = vld [vmem:[%s22638_s1 + $0x2130] sm:$0xff]  ;;  %v1112_v13 = vld [vmem:[%s22638_s1 + $0x2118] sm:$0xff] }
 0x508   :  { %v1116_v14 = vld [vmem:[%s22638_s1 + $0x2138] sm:$0xff]  ;;  %v15243_v17 = vcombine.high %v1111_v11, %v1115_v12  ;;  %v15242_v23 = vcombine.low %v1111_v11, %v1115_v12  ;;  %v1163_v6 = vld [vmem:[%s22638_s1 + $0x22b0] sm:$0xff] }
 0x509   :  { %v15245_v18 = vcombine.high %v1112_v13, %v1116_v14  ;;  %v15244_v24 = vcombine.low %v1112_v13, %v1116_v14  ;;  %v15291_v11 = vcombine.high %v1159_v5, %v1163_v6  ;;  %v1167_v13 = vld [vmem:[%s22638_s1 + $0x22d0] sm:$0xff] }
 0x50a   :  { %11078 = vmatpush1.bf16.msra.mxu0 %v15186_v19  ;;  %11637 = vmatpush1.bf16.msra.mxu1 %v15188_v20  ;;  %v1119_v19 = vld [vmem:[%s22638_s1 + $0x2150] sm:$0xff] }
 0x50b   :  { %11079 = vmatprep.subr.bf16.mxu0 %v15195_v21  ;;  %11638 = vmatprep.subr.bf16.mxu1 %v15197_v22  ;;  %v1123_v20 = vld [vmem:[%s22638_s1 + $0x2170] sm:$0xff]  ;;  %v1120_v21 = vld [vmem:[%s22638_s1 + $0x2158] sm:$0xff] }
 0x50c   :  { %v1124_v22 = vld [vmem:[%s22638_s1 + $0x2178] sm:$0xff]  ;;  %v15251_v25 = vcombine.high %v1119_v19, %v1123_v20  ;;  %v15250_v31 = vcombine.low %v1119_v19, %v1123_v20  ;;  %v1171_v14 = vld [vmem:[%s22638_s1 + $0x22f0] sm:$0xff] }
 0x50d   :  { %v15253_v26 = vcombine.high %v1120_v21, %v1124_v22  ;;  %v15252_v32 = vcombine.low %v1120_v21, %v1124_v22  ;;  %v15299_v19 = vcombine.high %v1167_v13, %v1171_v14  ;;  %v1175_v21 = vld [vmem:[%s22638_s1 + $0x2310] sm:$0xff] }
 0x50e   :  { %11080 = vmatpush1.bf16.msra.mxu0 %v15194_v27  ;;  %11639 = vmatpush1.bf16.msra.mxu1 %v15196_v28  ;;  %v1127_v27 = vld [vmem:[%s22638_s1 + $0x2190] sm:$0xff] }
 0x50f   :  { %11081 = vmatprep.subr.bf16.mxu0 %v15203_v29  ;;  %11640 = vmatprep.subr.bf16.mxu1 %v15205_v30  ;;  %v1131_v28 = vld [vmem:[%s22638_s1 + $0x21b0] sm:$0xff]  ;;  %v1128_v29 = vld [vmem:[%s22638_s1 + $0x2198] sm:$0xff] }
 0x510   :  { %v1132_v30 = vld [vmem:[%s22638_s1 + $0x21b8] sm:$0xff]  ;;  %v15259_v33 = vcombine.high %v1127_v27, %v1131_v28  ;;  %v15258_v39 = vcombine.low %v1127_v27, %v1131_v28  ;;  %v1179_v22 = vld [vmem:[%s22638_s1 + $0x2330] sm:$0xff] }
 0x511   :  { %v15261_v34 = vcombine.high %v1128_v29, %v1132_v30  ;;  %v15260_v40 = vcombine.low %v1128_v29, %v1132_v30  ;;  %v15307_v27 = vcombine.high %v1175_v21, %v1179_v22  ;;  %v1183_v29 = vld [vmem:[%s22638_s1 + $0x2350] sm:$0xff] }
 0x512   :  { %11082 = vmatpush1.bf16.msra.mxu0 %v15202_v35  ;;  %11641 = vmatpush1.bf16.msra.mxu1 %v15204_v36  ;;  %v1135_v35 = vld [vmem:[%s22638_s1 + $0x21d0] sm:$0xff] }
 0x513   :  { %11094 = vmatprep.subr.bf16.mxu0 %v15211_v37  ;;  %11653 = vmatprep.subr.bf16.mxu1 %v15213_v38  ;;  %v1139_v36 = vld [vmem:[%s22638_s1 + $0x21f0] sm:$0xff]  ;;  %v1136_v37 = vld [vmem:[%s22638_s1 + $0x21d8] sm:$0xff] }
 0x514   :  { %v1140_v38 = vld [vmem:[%s22638_s1 + $0x21f8] sm:$0xff]  ;;  %v15267_v41 = vcombine.high %v1135_v35, %v1139_v36  ;;  %v15266_v51 = vcombine.low %v1135_v35, %v1139_v36  ;;  %v1187_v30 = vld [vmem:[%s22638_s1 + $0x2370] sm:$0xff] }
 0x515   :  { %11084 = vmatmul.mubr.bf16.vlgmr.msra.gmra.mrb[4].mxu0 %v16796_v57  ;;  %11643 = vmatmul.mubr.bf16.vlgmr.msra.gmra.mrb[4].mxu1 %v16796_v57  ;;  %v15269_v43 = vcombine.high %v1136_v37, %v1140_v38  ;;  %v15268_v54 = vcombine.low %v1136_v37, %v1140_v38  ;;  %v15315_v35 = vcombine.high %v1183_v29, %v1187_v30  ;;  %v1191_v37 = vld [vmem:[%s22638_s1 + $0x2390] sm:$0xff] }
 0x516   :  { %11095 = vmatpush1.bf16.msra.mxu0 %v15210_v44  ;;  %11654 = vmatpush1.bf16.msra.mxu1 %v15212_v45  ;;  %v1143_v44 = vld [vmem:[%s22638_s1 + $0x2210] sm:$0xff] }
 0x517   :  { %11096 = vmatprep.subr.bf16.mxu0 %v15219_v46  ;;  %11655 = vmatprep.subr.bf16.mxu1 %v15221_v49  ;;  %v1147_v45 = vld [vmem:[%s22638_s1 + $0x2230] sm:$0xff]  ;;  %v1144_v46 = vld [vmem:[%s22638_s1 + $0x2218] sm:$0xff] }
 0x518   :  { %11126 = vmatprep.mubr.bf16.mxu0 %v16797_v4  ;;  %11685 = vmatprep.mubr.bf16.mxu1 %v16797_v4  ;;  %v1148_v49 = vld [vmem:[%s22638_s1 + $0x2238] sm:$0xff]  ;;  %v15275_v57 = vcombine.high %v1143_v44, %v1147_v45  ;;  %v1195_v38 = vld [vmem:[%s22638_s1 + $0x23b0] sm:$0xff] }
 0x519   :  { %v15277_v59 = vcombine.high %v1144_v46, %v1148_v49  ;;  %v15276_v2 = vcombine.low %v1144_v46, %v1148_v49  ;;  %v1199_v46 = vld [vmem:[%s22638_s1 + $0x23d0] sm:$0xff] }
 0x51a   :  { %11097 = vmatpush1.bf16.msra.mxu0 %v15218_v62  ;;  %11656 = vmatpush1.bf16.msra.mxu1 %v15220_v63  ;;  %v1155_v62 = vld [vmem:[%s22638_s1 + $0x2270] sm:$0xff]  ;;  %v1152_v63 = vld [vmem:[%s22638_s1 + $0x2258] sm:$0xff] }
 0x51b   :  { %11098 = vmatprep.subr.bf16.mxu0 %v15227_v0  ;;  %11657 = vmatprep.subr.bf16.mxu1 %v15229_v1  ;;  %v1156_v0 = vld [vmem:[%s22638_s1 + $0x2278] sm:$0xff]  ;;  %v15274_v1 = vcombine.low %v1143_v44, %v1147_v45  ;;  %v15283_v3 = vcombine.high %v1151_v61, %v1155_v62  ;;  %v15323_v44 = vcombine.high %v1191_v37, %v1195_v38  ;;  %v1203_v49 = vld [vmem:[%s22638_s1 + $0x23f0] sm:$0xff] }
 0x51c   :  { %v15285_v4 = vcombine.high %v1152_v63, %v1156_v0 }
 0x51e   :  { %11099 = vmatpush1.bf16.msra.mxu0 %v15226_v7  ;;  %11658 = vmatpush1.bf16.msra.mxu1 %v15228_v8  ;;  %v1160_v7 = vld [vmem:[%s22638_s1 + $0x2298] sm:$0xff] }
 0x51f   :  { %11100 = vmatprep.subr.bf16.mxu0 %v15235_v9  ;;  %11659 = vmatprep.subr.bf16.mxu1 %v15237_v10  ;;  %v1164_v8 = vld [vmem:[%s22638_s1 + $0x22b8] sm:$0xff]  ;;  %v15282_v9 = vcombine.low %v1151_v61, %v1155_v62  ;;  %v15284_v10 = vcombine.low %v1152_v63, %v1156_v0  ;;  %v15331_v61 = vcombine.high %v1199_v46, %v1203_v49  ;;  %v1207_v63 = vld [vmem:[%s22638_s1 + $0x2410] sm:$0xff] }
 0x520   :  { %v15293_v12 = vcombine.high %v1160_v7, %v1164_v8  ;;  %v1211_v0 = vld [vmem:[%s22638_s1 + $0x2430] sm:$0xff] }
 0x522   :  { %11101 = vmatpush1.bf16.msra.mxu0 %v15234_v15  ;;  %11660 = vmatpush1.bf16.msra.mxu1 %v15236_v16  ;;  %v1168_v15 = vld [vmem:[%s22638_s1 + $0x22d8] sm:$0xff] }
 0x523   :  { %11102 = vmatprep.subr.bf16.mxu0 %v15243_v17  ;;  %11661 = vmatprep.subr.bf16.mxu1 %v15245_v18  ;;  %v1172_v16 = vld [vmem:[%s22638_s1 + $0x22f8] sm:$0xff]  ;;  %v15290_v17 = vcombine.low %v1159_v5, %v1163_v6  ;;  %v15292_v18 = vcombine.low %v1160_v7, %v1164_v8  ;;  %v15339_v5 = vcombine.high %v1207_v63, %v1211_v0  ;;  %v1215_v7 = vld [vmem:[%s22638_s1 + $0x2450] sm:$0xff] }
 0x524   :  { %v15301_v20 = vcombine.high %v1168_v15, %v1172_v16  ;;  %v1219_v8 = vld [vmem:[%s22638_s1 + $0x2470] sm:$0xff] }
 0x526   :  { %11103 = vmatpush1.bf16.msra.mxu0 %v15242_v23  ;;  %11662 = vmatpush1.bf16.msra.mxu1 %v15244_v24  ;;  %v1176_v23 = vld [vmem:[%s22638_s1 + $0x2318] sm:$0xff] }
 0x527   :  { %11104 = vmatprep.subr.bf16.mxu0 %v15251_v25  ;;  %11663 = vmatprep.subr.bf16.mxu1 %v15253_v26  ;;  %v1180_v24 = vld [vmem:[%s22638_s1 + $0x2338] sm:$0xff]  ;;  %v15298_v25 = vcombine.low %v1167_v13, %v1171_v14  ;;  %v15300_v26 = vcombine.low %v1168_v15, %v1172_v16  ;;  %v15347_v13 = vcombine.high %v1215_v7, %v1219_v8  ;;  %v1223_v15 = vld [vmem:[%s22638_s1 + $0x2490] sm:$0xff] }
 0x528   :  { %v15309_v28 = vcombine.high %v1176_v23, %v1180_v24  ;;  %v1227_v16 = vld [vmem:[%s22638_s1 + $0x24b0] sm:$0xff] }
 0x52a   :  { %11105 = vmatpush1.bf16.msra.mxu0 %v15250_v31  ;;  %11664 = vmatpush1.bf16.msra.mxu1 %v15252_v32  ;;  %v1184_v31 = vld [vmem:[%s22638_s1 + $0x2358] sm:$0xff] }
 0x52b   :  { %11106 = vmatprep.subr.bf16.mxu0 %v15259_v33  ;;  %11665 = vmatprep.subr.bf16.mxu1 %v15261_v34  ;;  %v1188_v32 = vld [vmem:[%s22638_s1 + $0x2378] sm:$0xff]  ;;  %v15306_v33 = vcombine.low %v1175_v21, %v1179_v22  ;;  %v15308_v34 = vcombine.low %v1176_v23, %v1180_v24  ;;  %v15355_v22 = vcombine.high %v1223_v15, %v1227_v16  ;;  %v1231_v24 = vld [vmem:[%s22638_s1 + $0x24d0] sm:$0xff] }
 0x52c   :  { %v15317_v36 = vcombine.high %v1184_v31, %v1188_v32 }
 0x52e   :  { %11107 = vmatpush1.bf16.msra.mxu0 %v15258_v39  ;;  %11666 = vmatpush1.bf16.msra.mxu1 %v15260_v40  ;;  %v1192_v39 = vld [vmem:[%s22638_s1 + $0x2398] sm:$0xff] }
 0x52f   :  { %11108 = vmatprep.subr.bf16.mxu0 %v15267_v41  ;;  %11667 = vmatprep.subr.bf16.mxu1 %v15269_v43  ;;  %v1196_v40 = vld [vmem:[%s22638_s1 + $0x23b8] sm:$0xff]  ;;  %v15314_v41 = vcombine.low %v1183_v29, %v1187_v30  ;;  %v15316_v43 = vcombine.low %v1184_v31, %v1188_v32  ;;  %v15354_v29 = vcombine.low %v1223_v15, %v1227_v16 }
 0x530   :  { %v15325_v45 = vcombine.high %v1192_v39, %v1196_v40 }
 0x532   :  { %11109 = vmatpush1.bf16.msra.mxu0 %v15266_v51  ;;  %11668 = vmatpush1.bf16.msra.mxu1 %v15268_v54  ;;  %v1200_v51 = vld [vmem:[%s22638_s1 + $0x23d8] sm:$0xff] }
 0x533   :  { %11110 = vmatprep.subr.bf16.mxu0 %v15275_v57  ;;  %11669 = vmatprep.subr.bf16.mxu1 %v15277_v59  ;;  %v1204_v54 = vld [vmem:[%s22638_s1 + $0x23f8] sm:$0xff]  ;;  %v15322_v57 = vcombine.low %v1191_v37, %v1195_v38  ;;  %v15324_v59 = vcombine.low %v1192_v39, %v1196_v40 }
 0x534   :  { %v15333_v62 = vcombine.high %v1200_v51, %v1204_v54 }
 0x536   :  { %11111 = vmatpush1.bf16.msra.mxu0 %v15274_v1  ;;  %11670 = vmatpush1.bf16.msra.mxu1 %v15276_v2  ;;  %v1208_v1 = vld [vmem:[%s22638_s1 + $0x2418] sm:$0xff] }
 0x537   :  { %11112 = vmatprep.subr.bf16.mxu0 %v15283_v3  ;;  %11671 = vmatprep.subr.bf16.mxu1 %v15285_v4  ;;  %v1212_v2 = vld [vmem:[%s22638_s1 + $0x2438] sm:$0xff]  ;;  %v15330_v3 = vcombine.low %v1199_v46, %v1203_v49  ;;  %v15332_v4 = vcombine.low %v1200_v51, %v1204_v54 }
 0x538   :  { %v15341_v6 = vcombine.high %v1208_v1, %v1212_v2 }
 0x53a   :  { %11113 = vmatpush1.bf16.msra.mxu0 %v15282_v9  ;;  %11672 = vmatpush1.bf16.msra.mxu1 %v15284_v10  ;;  %v1216_v9 = vld [vmem:[%s22638_s1 + $0x2458] sm:$0xff] }
 0x53b   :  { %11114 = vmatprep.subr.bf16.mxu0 %v15291_v11  ;;  %11673 = vmatprep.subr.bf16.mxu1 %v15293_v12  ;;  %v1220_v10 = vld [vmem:[%s22638_s1 + $0x2478] sm:$0xff]  ;;  %v15338_v11 = vcombine.low %v1207_v63, %v1211_v0  ;;  %v15340_v12 = vcombine.low %v1208_v1, %v1212_v2 }
 0x53c   :  { %v15349_v14 = vcombine.high %v1216_v9, %v1220_v10  ;;  %v15348_v21 = vcombine.low %v1216_v9, %v1220_v10 }
 0x53e   :  { %11115 = vmatpush1.bf16.msra.mxu0 %v15290_v17  ;;  %11674 = vmatpush1.bf16.msra.mxu1 %v15292_v18  ;;  %v16798_v17 = vld [vmem:[%s22639_s0 + $0x40] ss:$100 sps:$4 sm:$0xff]   ;;  %v1224_v18 = vld [vmem:[%s22638_s1 + $0x2498] sm:$0xff] }
 0x53f   :  { %11116 = vmatprep.subr.bf16.mxu0 %v15299_v19  ;;  %11675 = vmatprep.subr.bf16.mxu1 %v15301_v20  ;;  %v1228_v19 = vld [vmem:[%s22638_s1 + $0x24b8] sm:$0xff]  ;;  %v15346_v20 = vcombine.low %v1215_v7, %v1219_v8 }
 0x540   :  { %v15357_v23 = vcombine.high %v1224_v18, %v1228_v19  ;;  %v15356_v30 = vcombine.low %v1224_v18, %v1228_v19  ;;  %v1279_v19 = vld [vmem:[%s22638_s1 + $0x2650] sm:$0xff] }
 0x542   :  { %11117 = vmatpush1.bf16.msra.mxu0 %v15298_v25  ;;  %11676 = vmatpush1.bf16.msra.mxu1 %v15300_v26  ;;  %v1235_v25 = vld [vmem:[%s22638_s1 + $0x24f0] sm:$0xff] }
 0x543   :  { %11118 = vmatprep.subr.bf16.mxu0 %v15307_v27  ;;  %11677 = vmatprep.subr.bf16.mxu1 %v15309_v28  ;;  %v16799_v26 = vld [vmem:[%s22639_s0 + $0x4c] ss:$100 sps:$4 sm:$0xff]   ;;  %v1232_v27 = vld [vmem:[%s22638_s1 + $0x24d8] sm:$0xff]  ;;  %v15363_v31 = vcombine.high %v1231_v24, %v1235_v25  ;;  %v15362_v37 = vcombine.low %v1231_v24, %v1235_v25 }
 0x544   :  { %v1236_v28 = vld [vmem:[%s22638_s1 + $0x24f8] sm:$0xff] }
 0x545   :  { %v15365_v32 = vcombine.high %v1232_v27, %v1236_v28  ;;  %v15364_v38 = vcombine.low %v1232_v27, %v1236_v28  ;;  %v1287_v27 = vld [vmem:[%s22638_s1 + $0x2690] sm:$0xff] }
 0x546   :  { %11119 = vmatpush1.bf16.msra.mxu0 %v15306_v33  ;;  %11678 = vmatpush1.bf16.msra.mxu1 %v15308_v34  ;;  %v1239_v33 = vld [vmem:[%s22638_s1 + $0x2510] sm:$0xff] }
 0x547   :  { %11120 = vmatprep.subr.bf16.mxu0 %v15315_v35  ;;  %11679 = vmatprep.subr.bf16.mxu1 %v15317_v36  ;;  %v1243_v34 = vld [vmem:[%s22638_s1 + $0x2530] sm:$0xff]  ;;  %v1240_v35 = vld [vmem:[%s22638_s1 + $0x2518] sm:$0xff] }
 0x548   :  { %v1244_v36 = vld [vmem:[%s22638_s1 + $0x2538] sm:$0xff]  ;;  %v15371_v39 = vcombine.high %v1239_v33, %v1243_v34  ;;  %v15370_v46 = vcombine.low %v1239_v33, %v1243_v34  ;;  %v1291_v28 = vld [vmem:[%s22638_s1 + $0x26b0] sm:$0xff] }
 0x549   :  { %v15373_v40 = vcombine.high %v1240_v35, %v1244_v36  ;;  %v15372_v49 = vcombine.low %v1240_v35, %v1244_v36  ;;  %v15419_v33 = vcombine.high %v1287_v27, %v1291_v28  ;;  %v1295_v35 = vld [vmem:[%s22638_s1 + $0x26d0] sm:$0xff] }
 0x54a   :  { %11121 = vmatpush1.bf16.msra.mxu0 %v15314_v41  ;;  %11680 = vmatpush1.bf16.msra.mxu1 %v15316_v43  ;;  %v1247_v41 = vld [vmem:[%s22638_s1 + $0x2550] sm:$0xff] }
 0x54b   :  { %11122 = vmatprep.subr.bf16.mxu0 %v15323_v44  ;;  %11681 = vmatprep.subr.bf16.mxu1 %v15325_v45  ;;  %v1251_v43 = vld [vmem:[%s22638_s1 + $0x2570] sm:$0xff]  ;;  %v1248_v44 = vld [vmem:[%s22638_s1 + $0x2558] sm:$0xff] }
 0x54c   :  { %v1252_v45 = vld [vmem:[%s22638_s1 + $0x2578] sm:$0xff]  ;;  %v15379_v51 = vcombine.high %v1247_v41, %v1251_v43  ;;  %v15378_v63 = vcombine.low %v1247_v41, %v1251_v43  ;;  %v1299_v36 = vld [vmem:[%s22638_s1 + $0x26f0] sm:$0xff] }
 0x54d   :  { %v15381_v54 = vcombine.high %v1248_v44, %v1252_v45  ;;  %v15380_v0 = vcombine.low %v1248_v44, %v1252_v45  ;;  %v15427_v41 = vcombine.high %v1295_v35, %v1299_v36  ;;  %v1303_v44 = vld [vmem:[%s22638_s1 + $0x2710] sm:$0xff] }
 0x54e   :  { %11123 = vmatpush1.bf16.msra.mxu0 %v15322_v57  ;;  %11682 = vmatpush1.bf16.msra.mxu1 %v15324_v59  ;;  %v1255_v57 = vld [vmem:[%s22638_s1 + $0x2590] sm:$0xff] }
 0x54f   :  { %11124 = vmatprep.subr.bf16.mxu0 %v15331_v61  ;;  %11683 = vmatprep.subr.bf16.mxu1 %v15333_v62  ;;  %v1259_v59 = vld [vmem:[%s22638_s1 + $0x25b0] sm:$0xff]  ;;  %v1256_v61 = vld [vmem:[%s22638_s1 + $0x2598] sm:$0xff] }
 0x550   :  { %v1260_v62 = vld [vmem:[%s22638_s1 + $0x25b8] sm:$0xff]  ;;  %v15387_v1 = vcombine.high %v1255_v57, %v1259_v59  ;;  %v15386_v7 = vcombine.low %v1255_v57, %v1259_v59  ;;  %v1307_v45 = vld [vmem:[%s22638_s1 + $0x2730] sm:$0xff] }
 0x551   :  { %v15389_v2 = vcombine.high %v1256_v61, %v1260_v62  ;;  %v15388_v8 = vcombine.low %v1256_v61, %v1260_v62  ;;  %v15435_v57 = vcombine.high %v1303_v44, %v1307_v45  ;;  %v1311_v61 = vld [vmem:[%s22638_s1 + $0x2750] sm:$0xff] }
 0x552   :  { %11125 = vmatpush1.bf16.msra.mxu0 %v15330_v3  ;;  %11684 = vmatpush1.bf16.msra.mxu1 %v15332_v4  ;;  %v1263_v3 = vld [vmem:[%s22638_s1 + $0x25d0] sm:$0xff] }
 0x553   :  { %11137 = vmatprep.subr.bf16.mxu0 %v15339_v5  ;;  %11696 = vmatprep.subr.bf16.mxu1 %v15341_v6  ;;  %v1267_v4 = vld [vmem:[%s22638_s1 + $0x25f0] sm:$0xff]  ;;  %v1264_v5 = vld [vmem:[%s22638_s1 + $0x25d8] sm:$0xff] }
 0x554   :  { %v1268_v6 = vld [vmem:[%s22638_s1 + $0x25f8] sm:$0xff]  ;;  %v15395_v9 = vcombine.high %v1263_v3, %v1267_v4  ;;  %v15394_v15 = vcombine.low %v1263_v3, %v1267_v4  ;;  %v1315_v62 = vld [vmem:[%s22638_s1 + $0x2770] sm:$0xff] }
 0x555   :  { %11127 = vmatmul.mubr.bf16.vlgmr.msra.gmra.mrb[4].mxu0 %v16798_v17  ;;  %11686 = vmatmul.mubr.bf16.vlgmr.msra.gmra.mrb[4].mxu1 %v16798_v17  ;;  %v15397_v10 = vcombine.high %v1264_v5, %v1268_v6  ;;  %v15396_v16 = vcombine.low %v1264_v5, %v1268_v6  ;;  %v15443_v3 = vcombine.high %v1311_v61, %v1315_v62  ;;  %v1319_v5 = vld [vmem:[%s22638_s1 + $0x2790] sm:$0xff] }
 0x556   :  { %11138 = vmatpush1.bf16.msra.mxu0 %v15338_v11  ;;  %11697 = vmatpush1.bf16.msra.mxu1 %v15340_v12  ;;  %v1271_v11 = vld [vmem:[%s22638_s1 + $0x2610] sm:$0xff] }
 0x557   :  { %11139 = vmatprep.subr.bf16.mxu0 %v15347_v13  ;;  %11698 = vmatprep.subr.bf16.mxu1 %v15349_v14  ;;  %v1275_v12 = vld [vmem:[%s22638_s1 + $0x2630] sm:$0xff]  ;;  %v1272_v13 = vld [vmem:[%s22638_s1 + $0x2618] sm:$0xff] }
 0x558   :  { %11169 = vmatprep.mubr.bf16.mxu0 %v16799_v26  ;;  %11728 = vmatprep.mubr.bf16.mxu1 %v16799_v26  ;;  %v1276_v14 = vld [vmem:[%s22638_s1 + $0x2638] sm:$0xff]  ;;  %v15403_v17 = vcombine.high %v1271_v11, %v1275_v12  ;;  %v1323_v6 = vld [vmem:[%s22638_s1 + $0x27b0] sm:$0xff] }
 0x559   :  { %v15405_v18 = vcombine.high %v1272_v13, %v1276_v14  ;;  %v15404_v24 = vcombine.low %v1272_v13, %v1276_v14  ;;  %v1327_v13 = vld [vmem:[%s22638_s1 + $0x27d0] sm:$0xff] }
 0x55a   :  { %11140 = vmatpush1.bf16.msra.mxu0 %v15346_v20  ;;  %11699 = vmatpush1.bf16.msra.mxu1 %v15348_v21  ;;  %v1283_v20 = vld [vmem:[%s22638_s1 + $0x2670] sm:$0xff]  ;;  %v1280_v21 = vld [vmem:[%s22638_s1 + $0x2658] sm:$0xff] }
 0x55b   :  { %11141 = vmatprep.subr.bf16.mxu0 %v15355_v22  ;;  %11700 = vmatprep.subr.bf16.mxu1 %v15357_v23  ;;  %v1284_v22 = vld [vmem:[%s22638_s1 + $0x2678] sm:$0xff]  ;;  %v15402_v23 = vcombine.low %v1271_v11, %v1275_v12  ;;  %v15411_v25 = vcombine.high %v1279_v19, %v1283_v20  ;;  %v15451_v11 = vcombine.high %v1319_v5, %v1323_v6  ;;  %v1331_v14 = vld [vmem:[%s22638_s1 + $0x27f0] sm:$0xff] }
 0x55c   :  { %v15413_v26 = vcombine.high %v1280_v21, %v1284_v22 }
 0x55e   :  { %11142 = vmatpush1.bf16.msra.mxu0 %v15354_v29  ;;  %11701 = vmatpush1.bf16.msra.mxu1 %v15356_v30  ;;  %v1288_v29 = vld [vmem:[%s22638_s1 + $0x2698] sm:$0xff] }
 0x55f   :  { %11143 = vmatprep.subr.bf16.mxu0 %v15363_v31  ;;  %11702 = vmatprep.subr.bf16.mxu1 %v15365_v32  ;;  %v1292_v30 = vld [vmem:[%s22638_s1 + $0x26b8] sm:$0xff]  ;;  %v15410_v31 = vcombine.low %v1279_v19, %v1283_v20  ;;  %v15412_v32 = vcombine.low %v1280_v21, %v1284_v22  ;;  %v15459_v19 = vcombine.high %v1327_v13, %v1331_v14  ;;  %v1335_v21 = vld [vmem:[%s22638_s1 + $0x2810] sm:$0xff] }
 0x560   :  { %v15421_v34 = vcombine.high %v1288_v29, %v1292_v30  ;;  %v1339_v22 = vld [vmem:[%s22638_s1 + $0x2830] sm:$0xff] }
 0x562   :  { %11144 = vmatpush1.bf16.msra.mxu0 %v15362_v37  ;;  %11703 = vmatpush1.bf16.msra.mxu1 %v15364_v38  ;;  %v1296_v37 = vld [vmem:[%s22638_s1 + $0x26d8] sm:$0xff] }
 0x563   :  { %11145 = vmatprep.subr.bf16.mxu0 %v15371_v39  ;;  %11704 = vmatprep.subr.bf16.mxu1 %v15373_v40  ;;  %v1300_v38 = vld [vmem:[%s22638_s1 + $0x26f8] sm:$0xff]  ;;  %v15418_v39 = vcombine.low %v1287_v27, %v1291_v28  ;;  %v15420_v40 = vcombine.low %v1288_v29, %v1292_v30  ;;  %v15467_v27 = vcombine.high %v1335_v21, %v1339_v22  ;;  %v1343_v29 = vld [vmem:[%s22638_s1 + $0x2850] sm:$0xff] }
 0x564   :  { %v15429_v43 = vcombine.high %v1296_v37, %v1300_v38  ;;  %v1347_v30 = vld [vmem:[%s22638_s1 + $0x2870] sm:$0xff] }
 0x566   :  { %11146 = vmatpush1.bf16.msra.mxu0 %v15370_v46  ;;  %11705 = vmatpush1.bf16.msra.mxu1 %v15372_v49  ;;  %v1304_v46 = vld [vmem:[%s22638_s1 + $0x2718] sm:$0xff] }
 0x567   :  { %11147 = vmatprep.subr.bf16.mxu0 %v15379_v51  ;;  %11706 = vmatprep.subr.bf16.mxu1 %v15381_v54  ;;  %v1308_v49 = vld [vmem:[%s22638_s1 + $0x2738] sm:$0xff]  ;;  %v15426_v51 = vcombine.low %v1295_v35, %v1299_v36  ;;  %v15428_v54 = vcombine.low %v1296_v37, %v1300_v38  ;;  %v15475_v35 = vcombine.high %v1343_v29, %v1347_v30  ;;  %v1351_v37 = vld [vmem:[%s22638_s1 + $0x2890] sm:$0xff] }
 0x568   :  { %v15437_v59 = vcombine.high %v1304_v46, %v1308_v49  ;;  %v1355_v38 = vld [vmem:[%s22638_s1 + $0x28b0] sm:$0xff] }
 0x56a   :  { %11148 = vmatpush1.bf16.msra.mxu0 %v15378_v63  ;;  %11707 = vmatpush1.bf16.msra.mxu1 %v15380_v0  ;;  %v1312_v63 = vld [vmem:[%s22638_s1 + $0x2758] sm:$0xff] }
 0x56b   :  { %11149 = vmatprep.subr.bf16.mxu0 %v15387_v1  ;;  %11708 = vmatprep.subr.bf16.mxu1 %v15389_v2  ;;  %v1316_v0 = vld [vmem:[%s22638_s1 + $0x2778] sm:$0xff]  ;;  %v15434_v1 = vcombine.low %v1303_v44, %v1307_v45  ;;  %v15436_v2 = vcombine.low %v1304_v46, %v1308_v49  ;;  %v15483_v45 = vcombine.high %v1351_v37, %v1355_v38  ;;  %v1359_v49 = vld [vmem:[%s22638_s1 + $0x28d0] sm:$0xff] }
 0x56c   :  { %v15445_v4 = vcombine.high %v1312_v63, %v1316_v0 }
 0x56e   :  { %11150 = vmatpush1.bf16.msra.mxu0 %v15386_v7  ;;  %11709 = vmatpush1.bf16.msra.mxu1 %v15388_v8  ;;  %v1320_v7 = vld [vmem:[%s22638_s1 + $0x2798] sm:$0xff] }
 0x56f   :  { %11151 = vmatprep.subr.bf16.mxu0 %v15395_v9  ;;  %11710 = vmatprep.subr.bf16.mxu1 %v15397_v10  ;;  %v1324_v8 = vld [vmem:[%s22638_s1 + $0x27b8] sm:$0xff]  ;;  %v15442_v9 = vcombine.low %v1311_v61, %v1315_v62  ;;  %v15444_v10 = vcombine.low %v1312_v63, %v1316_v0  ;;  %v15482_v61 = vcombine.low %v1351_v37, %v1355_v38 }
 0x570   :  { %v15453_v12 = vcombine.high %v1320_v7, %v1324_v8 }
 0x572   :  { %11152 = vmatpush1.bf16.msra.mxu0 %v15394_v15  ;;  %11711 = vmatpush1.bf16.msra.mxu1 %v15396_v16  ;;  %v1328_v15 = vld [vmem:[%s22638_s1 + $0x27d8] sm:$0xff] }
 0x573   :  { %11153 = vmatprep.subr.bf16.mxu0 %v15403_v17  ;;  %11712 = vmatprep.subr.bf16.mxu1 %v15405_v18  ;;  %v1332_v16 = vld [vmem:[%s22638_s1 + $0x27f8] sm:$0xff]  ;;  %v15450_v17 = vcombine.low %v1319_v5, %v1323_v6  ;;  %v15452_v18 = vcombine.low %v1320_v7, %v1324_v8 }
 0x574   :  { %v15461_v20 = vcombine.high %v1328_v15, %v1332_v16 }
 0x576   :  { %11154 = vmatpush1.bf16.msra.mxu0 %v15402_v23  ;;  %11713 = vmatpush1.bf16.msra.mxu1 %v15404_v24  ;;  %v1336_v23 = vld [vmem:[%s22638_s1 + $0x2818] sm:$0xff] }
 0x577   :  { %11155 = vmatprep.subr.bf16.mxu0 %v15411_v25  ;;  %11714 = vmatprep.subr.bf16.mxu1 %v15413_v26  ;;  %v1340_v24 = vld [vmem:[%s22638_s1 + $0x2838] sm:$0xff]  ;;  %v15458_v25 = vcombine.low %v1327_v13, %v1331_v14  ;;  %v15460_v26 = vcombine.low %v1328_v15, %v1332_v16  ;;  %v1383_v16 = vld [vmem:[%s22638_s1 + $0x2990] sm:$0xff] }
 0x578   :  { %v15469_v28 = vcombine.high %v1336_v23, %v1340_v24 }
 0x57a   :  { %11156 = vmatpush1.bf16.msra.mxu0 %v15410_v31  ;;  %11715 = vmatpush1.bf16.msra.mxu1 %v15412_v32  ;;  %v1344_v31 = vld [vmem:[%s22638_s1 + $0x2858] sm:$0xff] }
 0x57b   :  { %11157 = vmatprep.subr.bf16.mxu0 %v15419_v33  ;;  %11716 = vmatprep.subr.bf16.mxu1 %v15421_v34  ;;  %v1348_v32 = vld [vmem:[%s22638_s1 + $0x2878] sm:$0xff]  ;;  %v15466_v33 = vcombine.low %v1335_v21, %v1339_v22  ;;  %v15468_v34 = vcombine.low %v1336_v23, %v1340_v24 }
 0x57c   :  { %v15477_v36 = vcombine.high %v1344_v31, %v1348_v32  ;;  %v15476_v44 = vcombine.low %v1344_v31, %v1348_v32  ;;  %v1399_v32 = vld [vmem:[%s22638_s1 + $0x2a10] sm:$0xff] }
 0x57e   :  { %11158 = vmatpush1.bf16.msra.mxu0 %v15418_v39  ;;  %11717 = vmatpush1.bf16.msra.mxu1 %v15420_v40  ;;  %v16800_v39 = vld [vmem:[%s22639_s0 + $0x48] ss:$100 sps:$4 sm:$0xff]   ;;  %v1352_v40 = vld [vmem:[%s22638_s1 + $0x2898] sm:$0xff] }
 0x57f   :  { %11159 = vmatprep.subr.bf16.mxu0 %v15427_v41  ;;  %11718 = vmatprep.subr.bf16.mxu1 %v15429_v43  ;;  %v1356_v41 = vld [vmem:[%s22638_s1 + $0x28b8] sm:$0xff]  ;;  %v15474_v43 = vcombine.low %v1343_v29, %v1347_v30 }
 0x580   :  { %v15485_v46 = vcombine.high %v1352_v40, %v1356_v41  ;;  %v15484_v62 = vcombine.low %v1352_v40, %v1356_v41  ;;  %v1407_v40 = vld [vmem:[%s22638_s1 + $0x2a50] sm:$0xff] }
 0x581   :  { %v1411_v41 = vld [vmem:[%s22638_s1 + $0x2a70] sm:$0xff] }
 0x582   :  { %11160 = vmatpush1.bf16.msra.mxu0 %v15426_v51  ;;  %11719 = vmatpush1.bf16.msra.mxu1 %v15428_v54  ;;  %v1363_v51 = vld [vmem:[%s22638_s1 + $0x28f0] sm:$0xff] }
 0x583   :  { %11161 = vmatprep.subr.bf16.mxu0 %v15435_v57  ;;  %11720 = vmatprep.subr.bf16.mxu1 %v15437_v59  ;;  %v16801_v54 = vld [vmem:[%s22639_s0 + $0x54] ss:$100 sps:$4 sm:$0xff]   ;;  %v15491_v63 = vcombine.high %v1359_v49, %v1363_v51  ;;  %v15490_v5 = vcombine.low %v1359_v49, %v1363_v51  ;;  %v15539_v51 = vcombine.high %v1407_v40, %v1411_v41 }
 0x584   :  { %v1360_v57 = vld [vmem:[%s22638_s1 + $0x28d8] sm:$0xff] }
 0x585   :  { %v1364_v59 = vld [vmem:[%s22638_s1 + $0x28f8] sm:$0xff] }
 0x586   :  { %11162 = vmatpush1.bf16.msra.mxu0 %v15434_v1  ;;  %11721 = vmatpush1.bf16.msra.mxu1 %v15436_v2  ;;  %v15493_v0 = vcombine.high %v1360_v57, %v1364_v59  ;;  %v1367_v1 = vld [vmem:[%s22638_s1 + $0x2910] sm:$0xff]  ;;  %v15492_v6 = vcombine.low %v1360_v57, %v1364_v59  ;;  %v1416_v59 = vld [vmem:[%s22638_s1 + $0x2a98] sm:$0xff] }
 0x587   :  { %11163 = vmatprep.subr.bf16.mxu0 %v15443_v3  ;;  %11722 = vmatprep.subr.bf16.mxu1 %v15445_v4  ;;  %v1371_v2 = vld [vmem:[%s22638_s1 + $0x2930] sm:$0xff]  ;;  %v1368_v3 = vld [vmem:[%s22638_s1 + $0x2918] sm:$0xff] }
 0x588   :  { %v1372_v4 = vld [vmem:[%s22638_s1 + $0x2938] sm:$0xff]  ;;  %v15499_v7 = vcombine.high %v1367_v1, %v1371_v2  ;;  %v15498_v13 = vcombine.low %v1367_v1, %v1371_v2  ;;  %v1419_v57 = vld [vmem:[%s22638_s1 + $0x2ab0] sm:$0xff] }
 0x589   :  { %v15501_v8 = vcombine.high %v1368_v3, %v1372_v4  ;;  %v15500_v14 = vcombine.low %v1368_v3, %v1372_v4  ;;  %v1423_v2 = vld [vmem:[%s22638_s1 + $0x2ad0] sm:$0xff]  ;;  %v1424_v4 = vld [vmem:[%s22638_s1 + $0x2ad8] sm:$0xff] }
 0x58a   :  { %11164 = vmatpush1.bf16.msra.mxu0 %v15442_v9  ;;  %11723 = vmatpush1.bf16.msra.mxu1 %v15444_v10  ;;  %v1375_v9 = vld [vmem:[%s22638_s1 + $0x2950] sm:$0xff] }
 0x58b   :  { %11165 = vmatprep.subr.bf16.mxu0 %v15451_v11  ;;  %11724 = vmatprep.subr.bf16.mxu1 %v15453_v12  ;;  %v1379_v10 = vld [vmem:[%s22638_s1 + $0x2970] sm:$0xff]  ;;  %v1376_v11 = vld [vmem:[%s22638_s1 + $0x2958] sm:$0xff] }
 0x58c   :  { %v1380_v12 = vld [vmem:[%s22638_s1 + $0x2978] sm:$0xff]  ;;  %v15507_v15 = vcombine.high %v1375_v9, %v1379_v10  ;;  %v15506_v21 = vcombine.low %v1375_v9, %v1379_v10  ;;  %v1427_v3 = vld [vmem:[%s22638_s1 + $0x2af0] sm:$0xff] }
 0x58d   :  { %v15508_v22 = vcombine.low %v1376_v11, %v1380_v12  ;;  %v15555_v9 = vcombine.high %v1423_v2, %v1427_v3  ;;  %v1431_v10 = vld [vmem:[%s22638_s1 + $0x2b10] sm:$0xff] }
 0x58e   :  { %11166 = vmatpush1.bf16.msra.mxu0 %v15450_v17  ;;  %11725 = vmatpush1.bf16.msra.mxu1 %v15452_v18  ;;  %v1387_v17 = vld [vmem:[%s22638_s1 + $0x29b0] sm:$0xff]  ;;  %v15509_v18 = vcombine.high %v1376_v11, %v1380_v12  ;;  %v1432_v12 = vld [vmem:[%s22638_s1 + $0x2b18] sm:$0xff] }
 0x58f   :  { %11167 = vmatprep.subr.bf16.mxu0 %v15459_v19  ;;  %11726 = vmatprep.subr.bf16.mxu1 %v15461_v20  ;;  %v1384_v19 = vld [vmem:[%s22638_s1 + $0x2998] sm:$0xff]  ;;  %v15515_v23 = vcombine.high %v1383_v16, %v1387_v17  ;;  %v15514_v29 = vcombine.low %v1383_v16, %v1387_v17  ;;  %v1435_v11 = vld [vmem:[%s22638_s1 + $0x2b30] sm:$0xff] }
 0x590   :  { %v1388_v20 = vld [vmem:[%s22638_s1 + $0x29b8] sm:$0xff]  ;;  %v15563_v17 = vcombine.high %v1431_v10, %v1435_v11 }
 0x591   :  { %v15517_v24 = vcombine.high %v1384_v19, %v1388_v20  ;;  %v15516_v30 = vcombine.low %v1384_v19, %v1388_v20  ;;  %v1443_v19 = vld [vmem:[%s22638_s1 + $0x2b70] sm:$0xff]  ;;  %v1440_v20 = vld [vmem:[%s22638_s1 + $0x2b58] sm:$0xff] }
 0x592   :  { %11168 = vmatpush1.bf16.msra.mxu0 %v15458_v25  ;;  %11727 = vmatpush1.bf16.msra.mxu1 %v15460_v26  ;;  %v1391_v25 = vld [vmem:[%s22638_s1 + $0x29d0] sm:$0xff] }
 0x593   :  { %11180 = vmatprep.subr.bf16.mxu0 %v15467_v27  ;;  %11739 = vmatprep.subr.bf16.mxu1 %v15469_v28  ;;  %v1395_v26 = vld [vmem:[%s22638_s1 + $0x29f0] sm:$0xff]  ;;  %v1392_v27 = vld [vmem:[%s22638_s1 + $0x29d8] sm:$0xff] }
 0x594   :  { %v1396_v28 = vld [vmem:[%s22638_s1 + $0x29f8] sm:$0xff]  ;;  %v15523_v31 = vcombine.high %v1391_v25, %v1395_v26  ;;  %v15522_v37 = vcombine.low %v1391_v25, %v1395_v26  ;;  %v1447_v26 = vld [vmem:[%s22638_s1 + $0x2b90] sm:$0xff] }
 0x595   :  { %11170 = vmatmul.mubr.bf16.vlgmr.msra.gmra.mrb[4].mxu0 %v16800_v39  ;;  %11729 = vmatmul.mubr.bf16.vlgmr.msra.gmra.mrb[4].mxu1 %v16800_v39  ;;  %v15524_v38 = vcombine.low %v1392_v27, %v1396_v28 }
 0x596   :  { %11181 = vmatpush1.bf16.msra.mxu0 %v15466_v33  ;;  %11740 = vmatpush1.bf16.msra.mxu1 %v15468_v34  ;;  %v1403_v33 = vld [vmem:[%s22638_s1 + $0x2a30] sm:$0xff]  ;;  %v1400_v34 = vld [vmem:[%s22638_s1 + $0x2a18] sm:$0xff] }
 0x597   :  { %11182 = vmatprep.subr.bf16.mxu0 %v15475_v35  ;;  %11741 = vmatprep.subr.bf16.mxu1 %v15477_v36  ;;  %v15525_v35 = vcombine.high %v1392_v27, %v1396_v28  ;;  %v1404_v36 = vld [vmem:[%s22638_s1 + $0x2a38] sm:$0xff]  ;;  %v15531_v39 = vcombine.high %v1399_v32, %v1403_v33  ;;  %v1451_v27 = vld [vmem:[%s22638_s1 + $0x2bb0] sm:$0xff] }
 0x598   :  { %11212 = vmatprep.mubr.bf16.mxu0 %v16801_v54  ;;  %11771 = vmatprep.mubr.bf16.mxu1 %v16801_v54  ;;  %v15532_v49 = vcombine.low %v1400_v34, %v1404_v36  ;;  %v1415_v54 = vld [vmem:[%s22638_s1 + $0x2a90] sm:$0xff]  ;;  %v1448_v28 = vld [vmem:[%s22638_s1 + $0x2b98] sm:$0xff] }
 0x599   :  { %v15547_v1 = vcombine.high %v1415_v54, %v1419_v57 }
 0x59a   :  { %11183 = vmatpush1.bf16.msra.mxu0 %v15474_v43  ;;  %11742 = vmatpush1.bf16.msra.mxu1 %v15476_v44  ;;  %v1408_v43 = vld [vmem:[%s22638_s1 + $0x2a58] sm:$0xff]  ;;  %v15533_v44 = vcombine.high %v1400_v34, %v1404_v36  ;;  %v1455_v34 = vld [vmem:[%s22638_s1 + $0x2bd0] sm:$0xff] }
 0x59b   :  { %11184 = vmatprep.subr.bf16.mxu0 %v15483_v45  ;;  %11743 = vmatprep.subr.bf16.mxu1 %v15485_v46  ;;  %v1412_v45 = vld [vmem:[%s22638_s1 + $0x2a78] sm:$0xff]  ;;  %v15530_v46 = vcombine.low %v1399_v32, %v1403_v33  ;;  %v15579_v33 = vcombine.high %v1447_v26, %v1451_v27 }
 0x59c   :  { %v1456_v36 = vld [vmem:[%s22638_s1 + $0x2bd8] sm:$0xff] }
 0x59e   :  { %11185 = vmatpush1.bf16.msra.mxu0 %v15482_v61  ;;  %11744 = vmatpush1.bf16.msra.mxu1 %v15484_v62  ;;  %v15541_v61 = vcombine.high %v1408_v43, %v1412_v45  ;;  %v1420_v62 = vld [vmem:[%s22638_s1 + $0x2ab8] sm:$0xff] }
 0x59f   :  { %11186 = vmatprep.subr.bf16.mxu0 %v15491_v63  ;;  %11745 = vmatprep.subr.bf16.mxu1 %v15493_v0  ;;  %v15538_v63 = vcombine.low %v1407_v40, %v1411_v41  ;;  %v15540_v0 = vcombine.low %v1408_v43, %v1412_v45  ;;  %v1463_v43 = vld [vmem:[%s22638_s1 + $0x2c10] sm:$0xff]  ;;  %v1464_v45 = vld [vmem:[%s22638_s1 + $0x2c18] sm:$0xff] }
 0x5a2   :  { %11187 = vmatpush1.bf16.msra.mxu0 %v15490_v5  ;;  %11746 = vmatpush1.bf16.msra.mxu1 %v15492_v6  ;;  %v15549_v5 = vcombine.high %v1416_v59, %v1420_v62  ;;  %v1428_v6 = vld [vmem:[%s22638_s1 + $0x2af8] sm:$0xff] }
 0x5a3   :  { %11188 = vmatprep.subr.bf16.mxu0 %v15499_v7  ;;  %11747 = vmatprep.subr.bf16.mxu1 %v15501_v8  ;;  %v15546_v7 = vcombine.low %v1415_v54, %v1419_v57  ;;  %v15548_v8 = vcombine.low %v1416_v59, %v1420_v62  ;;  %v15556_v16 = vcombine.low %v1424_v4, %v1428_v6  ;;  %v1471_v59 = vld [vmem:[%s22638_s1 + $0x2c50] sm:$0xff]  ;;  %v1472_v62 = vld [vmem:[%s22638_s1 + $0x2c58] sm:$0xff] }
 0x5a6   :  { %11189 = vmatpush1.bf16.msra.mxu0 %v15498_v13  ;;  %11748 = vmatpush1.bf16.msra.mxu1 %v15500_v14  ;;  %v15557_v13 = vcombine.high %v1424_v4, %v1428_v6  ;;  %v1436_v14 = vld [vmem:[%s22638_s1 + $0x2b38] sm:$0xff]  ;;  %v1479_v4 = vld [vmem:[%s22638_s1 + $0x2c90] sm:$0xff] }
 0x5a7   :  { %11190 = vmatprep.subr.bf16.mxu0 %v15507_v15  ;;  %11749 = vmatprep.subr.bf16.mxu1 %v15509_v18  ;;  %v15554_v15 = vcombine.low %v1423_v2, %v1427_v3  ;;  %v1439_v18 = vld [vmem:[%s22638_s1 + $0x2b50] sm:$0xff]  ;;  %v1480_v6 = vld [vmem:[%s22638_s1 + $0x2c98] sm:$0xff] }
 0x5a8   :  { %v15571_v25 = vcombine.high %v1439_v18, %v1443_v19 }
 0x5aa   :  { %11191 = vmatpush1.bf16.msra.mxu0 %v15506_v21  ;;  %11750 = vmatpush1.bf16.msra.mxu1 %v15508_v22  ;;  %v15565_v21 = vcombine.high %v1432_v12, %v1436_v14  ;;  %v1444_v22 = vld [vmem:[%s22638_s1 + $0x2b78] sm:$0xff] }
 0x5ab   :  { %11192 = vmatprep.subr.bf16.mxu0 %v15515_v23  ;;  %11751 = vmatprep.subr.bf16.mxu1 %v15517_v24  ;;  %v15562_v23 = vcombine.low %v1431_v10, %v1435_v11  ;;  %v15564_v24 = vcombine.low %v1432_v12, %v1436_v14  ;;  %v15572_v32 = vcombine.low %v1440_v20, %v1444_v22  ;;  %v1491_v14 = vld [vmem:[%s22638_s1 + $0x2cf0] sm:$0xff] }
 0x5ae   :  { %11193 = vmatpush1.bf16.msra.mxu0 %v15514_v29  ;;  %11752 = vmatpush1.bf16.msra.mxu1 %v15516_v30  ;;  %v15573_v29 = vcombine.high %v1440_v20, %v1444_v22  ;;  %v1452_v30 = vld [vmem:[%s22638_s1 + $0x2bb8] sm:$0xff]  ;;  %v1495_v22 = vld [vmem:[%s22638_s1 + $0x2d10] sm:$0xff] }
 0x5af   :  { %11194 = vmatprep.subr.bf16.mxu0 %v15523_v31  ;;  %11753 = vmatprep.subr.bf16.mxu1 %v15525_v35  ;;  %v15570_v31 = vcombine.low %v1439_v18, %v1443_v19  ;;  %v1459_v35 = vld [vmem:[%s22638_s1 + $0x2bf0] sm:$0xff]  ;;  %v15580_v40 = vcombine.low %v1448_v28, %v1452_v30  ;;  %v16803_v18 = vld [vmem:[%s22639_s0 + $0x5c] ss:$100 sps:$4 sm:$0xff]  }
 0x5b0   :  { %v15587_v41 = vcombine.high %v1455_v34, %v1459_v35 }
 0x5b2   :  { %11195 = vmatpush1.bf16.msra.mxu0 %v15522_v37  ;;  %11754 = vmatpush1.bf16.msra.mxu1 %v15524_v38  ;;  %v15581_v37 = vcombine.high %v1448_v28, %v1452_v30  ;;  %v1460_v38 = vld [vmem:[%s22638_s1 + $0x2bf8] sm:$0xff]  ;;  %v1503_v30 = vld [vmem:[%s22638_s1 + $0x2d50] sm:$0xff] }
 0x5b3   :  { %11196 = vmatprep.subr.bf16.mxu0 %v15531_v39  ;;  %11755 = vmatprep.subr.bf16.mxu1 %v15533_v44  ;;  %v15578_v39 = vcombine.low %v1447_v26, %v1451_v27  ;;  %v1467_v44 = vld [vmem:[%s22638_s1 + $0x2c30] sm:$0xff]  ;;  %v15588_v54 = vcombine.low %v1456_v36, %v1460_v38  ;;  %v1500_v26 = vld [vmem:[%s22638_s1 + $0x2d38] sm:$0xff] }
 0x5b4   :  { %v15595_v57 = vcombine.high %v1463_v43, %v1467_v44 }
 0x5b6   :  { %11197 = vmatpush1.bf16.msra.mxu0 %v15530_v46  ;;  %11756 = vmatpush1.bf16.msra.mxu1 %v15532_v49  ;;  %v15589_v46 = vcombine.high %v1456_v36, %v1460_v38  ;;  %v1468_v49 = vld [vmem:[%s22638_s1 + $0x2c38] sm:$0xff]  ;;  %v1511_v36 = vld [vmem:[%s22638_s1 + $0x2d90] sm:$0xff] }
 0x5b7   :  { %11198 = vmatprep.subr.bf16.mxu0 %v15539_v51  ;;  %11757 = vmatprep.subr.bf16.mxu1 %v15541_v61  ;;  %v15586_v51 = vcombine.low %v1455_v34, %v1459_v35  ;;  %v1475_v61 = vld [vmem:[%s22638_s1 + $0x2c70] sm:$0xff]  ;;  %v15596_v2 = vcombine.low %v1464_v45, %v1468_v49  ;;  %v1508_v34 = vld [vmem:[%s22638_s1 + $0x2d78] sm:$0xff] }
 0x5b8   :  { %v15603_v3 = vcombine.high %v1471_v59, %v1475_v61  ;;  %v15602_v10 = vcombine.low %v1471_v59, %v1475_v61  ;;  %v1524_v59 = vld [vmem:[%s22638_s1 + $0x2df8] sm:$0xff] }
 0x5ba   :  { %11199 = vmatpush1.bf16.msra.mxu0 %v15538_v63  ;;  %11758 = vmatpush1.bf16.msra.mxu1 %v15540_v0  ;;  %v15597_v63 = vcombine.high %v1464_v45, %v1468_v49  ;;  %v1476_v0 = vld [vmem:[%s22638_s1 + $0x2c78] sm:$0xff] }
 0x5bb   :  { %11200 = vmatprep.subr.bf16.mxu0 %v15547_v1  ;;  %11759 = vmatprep.subr.bf16.mxu1 %v15549_v5  ;;  %v15594_v1 = vcombine.low %v1463_v43, %v1467_v44  ;;  %v1483_v5 = vld [vmem:[%s22638_s1 + $0x2cb0] sm:$0xff]  ;;  %v15604_v11 = vcombine.low %v1472_v62, %v1476_v0  ;;  %v1516_v43 = vld [vmem:[%s22638_s1 + $0x2db8] sm:$0xff] }
 0x5bc   :  { %v15611_v12 = vcombine.high %v1479_v4, %v1483_v5  ;;  %v15610_v19 = vcombine.low %v1479_v4, %v1483_v5  ;;  %v1532_v4 = vld [vmem:[%s22638_s1 + $0x2e38] sm:$0xff] }
 0x5be   :  { %11201 = vmatpush1.bf16.msra.mxu0 %v15546_v7  ;;  %11760 = vmatpush1.bf16.msra.mxu1 %v15548_v8  ;;  %v15605_v7 = vcombine.high %v1472_v62, %v1476_v0  ;;  %v1484_v8 = vld [vmem:[%s22638_s1 + $0x2cb8] sm:$0xff]  ;;  %v1527_v0 = vld [vmem:[%s22638_s1 + $0x2e10] sm:$0xff] }
 0x5bf   :  { %11202 = vmatprep.subr.bf16.mxu0 %v15555_v9  ;;  %11761 = vmatprep.subr.bf16.mxu1 %v15557_v13  ;;  %v16802_v9 = vld [vmem:[%s22639_s0 + $0x50] ss:$100 sps:$4 sm:$0xff]   ;;  %v15612_v20 = vcombine.low %v1480_v6, %v1484_v8 }
 0x5c0   :  { %v1487_v13 = vld [vmem:[%s22638_s1 + $0x2cd0] sm:$0xff] }
 0x5c1   :  { %v15618_v27 = vcombine.low %v1487_v13, %v1491_v14 }
 0x5c2   :  { %11203 = vmatpush1.bf16.msra.mxu0 %v15554_v15  ;;  %11762 = vmatpush1.bf16.msra.mxu1 %v15556_v16  ;;  %v1488_v15 = vld [vmem:[%s22638_s1 + $0x2cd8] sm:$0xff]  ;;  %v15613_v16 = vcombine.high %v1480_v6, %v1484_v8  ;;  %v1535_v8 = vld [vmem:[%s22638_s1 + $0x2e50] sm:$0xff] }
 0x5c3   :  { %11204 = vmatprep.subr.bf16.mxu0 %v15563_v17  ;;  %11763 = vmatprep.subr.bf16.mxu1 %v15565_v21  ;;  %v1492_v17 = vld [vmem:[%s22638_s1 + $0x2cf8] sm:$0xff]  ;;  %v15619_v21 = vcombine.high %v1487_v13, %v1491_v14 }
 0x5c4   :  { %v15620_v28 = vcombine.low %v1488_v15, %v1492_v17 }
 0x5c6   :  { %11205 = vmatpush1.bf16.msra.mxu0 %v15562_v23  ;;  %11764 = vmatpush1.bf16.msra.mxu1 %v15564_v24  ;;  %v1499_v23 = vld [vmem:[%s22638_s1 + $0x2d30] sm:$0xff]  ;;  %v1496_v24 = vld [vmem:[%s22638_s1 + $0x2d18] sm:$0xff] }
 0x5c7   :  { %11206 = vmatprep.subr.bf16.mxu0 %v15571_v25  ;;  %11765 = vmatprep.subr.bf16.mxu1 %v15573_v29  ;;  %v15621_v25 = vcombine.high %v1488_v15, %v1492_v17  ;;  %v15627_v29 = vcombine.high %v1495_v22, %v1499_v23  ;;  %v15626_v35 = vcombine.low %v1495_v22, %v1499_v23  ;;  %v1547_v17 = vld [vmem:[%s22638_s1 + $0x2eb0] sm:$0xff] }
 0x5c8   :  { %v15628_v38 = vcombine.low %v1496_v24, %v1500_v26 }
 0x5ca   :  { %11207 = vmatpush1.bf16.msra.mxu0 %v15570_v31  ;;  %11766 = vmatpush1.bf16.msra.mxu1 %v15572_v32  ;;  %v1507_v31 = vld [vmem:[%s22638_s1 + $0x2d70] sm:$0xff]  ;;  %v1504_v32 = vld [vmem:[%s22638_s1 + $0x2d58] sm:$0xff] }
 0x5cb   :  { %11208 = vmatprep.subr.bf16.mxu0 %v15579_v33  ;;  %11767 = vmatprep.subr.bf16.mxu1 %v15581_v37  ;;  %v15629_v33 = vcombine.high %v1496_v24, %v1500_v26  ;;  %v1515_v37 = vld [vmem:[%s22638_s1 + $0x2db0] sm:$0xff]  ;;  %v15634_v44 = vcombine.low %v1503_v30, %v1507_v31  ;;  %v15636_v45 = vcombine.low %v1504_v32, %v1508_v34  ;;  %v1552_v26 = vld [vmem:[%s22638_s1 + $0x2ed8] sm:$0xff] }
 0x5cc   :  { %v15642_v61 = vcombine.low %v1511_v36, %v1515_v37  ;;  %v1551_v24 = vld [vmem:[%s22638_s1 + $0x2ed0] sm:$0xff] }
 0x5ce   :  { %11209 = vmatpush1.bf16.msra.mxu0 %v15578_v39  ;;  %11768 = vmatpush1.bf16.msra.mxu1 %v15580_v40  ;;  %v15635_v39 = vcombine.high %v1503_v30, %v1507_v31  ;;  %v15637_v40 = vcombine.high %v1504_v32, %v1508_v34  ;;  %v1559_v32 = vld [vmem:[%s22638_s1 + $0x2f10] sm:$0xff]  ;;  %v1560_v34 = vld [vmem:[%s22638_s1 + $0x2f18] sm:$0xff] }
 0x5cf   :  { %11210 = vmatprep.subr.bf16.mxu0 %v15587_v41  ;;  %11769 = vmatprep.subr.bf16.mxu1 %v15589_v46  ;;  %v1512_v41 = vld [vmem:[%s22638_s1 + $0x2d98] sm:$0xff]  ;;  %v15643_v46 = vcombine.high %v1511_v36, %v1515_v37 }
 0x5d0   :  { %v15645_v49 = vcombine.high %v1512_v41, %v1516_v43  ;;  %v15644_v62 = vcombine.low %v1512_v41, %v1516_v43  ;;  %v1564_v36 = vld [vmem:[%s22638_s1 + $0x2f38] sm:$0xff]  ;;  %v1571_v41 = vld [vmem:[%s22638_s1 + $0x2f70] sm:$0xff] }
 0x5d1   :  { %v1568_v43 = vld [vmem:[%s22638_s1 + $0x2f58] sm:$0xff] }
 0x5d2   :  { %11211 = vmatpush1.bf16.msra.mxu0 %v15586_v51  ;;  %11770 = vmatpush1.bf16.msra.mxu1 %v15588_v54  ;;  %v1519_v51 = vld [vmem:[%s22638_s1 + $0x2dd0] sm:$0xff] }
 0x5d3   :  { %11223 = vmatprep.subr.bf16.mxu0 %v15595_v57  ;;  %11782 = vmatprep.subr.bf16.mxu1 %v15597_v63  ;;  %v1523_v54 = vld [vmem:[%s22638_s1 + $0x2df0] sm:$0xff]  ;;  %v1520_v57 = vld [vmem:[%s22638_s1 + $0x2dd8] sm:$0xff] }
 0x5d4   :  { %v15651_v63 = vcombine.high %v1519_v51, %v1523_v54  ;;  %v15650_v5 = vcombine.low %v1519_v51, %v1523_v54  ;;  %v15652_v6 = vcombine.low %v1520_v57, %v1524_v59  ;;  %v1575_v54 = vld [vmem:[%s22638_s1 + $0x2f90] sm:$0xff] }
 0x5d5   :  { %11213 = vmatmul.mubr.bf16.vlgmr.msra.gmra.mrb[4].mxu0 %v16802_v9  ;;  %11772 = vmatmul.mubr.bf16.vlgmr.msra.gmra.mrb[4].mxu1 %v16802_v9  ;;  %v1539_v9 = vld [vmem:[%s22638_s1 + $0x2e70] sm:$0xff] }
 0x5d6   :  { %11224 = vmatpush1.bf16.msra.mxu0 %v15594_v1  ;;  %11783 = vmatpush1.bf16.msra.mxu1 %v15596_v2  ;;  %v1531_v1 = vld [vmem:[%s22638_s1 + $0x2e30] sm:$0xff]  ;;  %v1528_v2 = vld [vmem:[%s22638_s1 + $0x2e18] sm:$0xff]  ;;  %v15667_v15 = vcombine.high %v1535_v8, %v1539_v9 }
 0x5d7   :  { %11225 = vmatprep.subr.bf16.mxu0 %v15603_v3  ;;  %11784 = vmatprep.subr.bf16.mxu1 %v15605_v7  ;;  %v15653_v3 = vcombine.high %v1520_v57, %v1524_v59  ;;  %v15659_v7 = vcombine.high %v1527_v0, %v1531_v1  ;;  %v15658_v13 = vcombine.low %v1527_v0, %v1531_v1  ;;  %v1579_v57 = vld [vmem:[%s22638_s1 + $0x2fb0] sm:$0xff]  ;;  %v1576_v59 = vld [vmem:[%s22638_s1 + $0x2f98] sm:$0xff] }
 0x5d8   :  { %11255 = vmatprep.mubr.bf16.mxu0 %v16803_v18  ;;  %11814 = vmatprep.mubr.bf16.mxu1 %v16803_v18  ;;  %v15660_v14 = vcombine.low %v1528_v2, %v1532_v4  ;;  %v1544_v18 = vld [vmem:[%s22638_s1 + $0x2e98] sm:$0xff]  ;;  %v15707_v1 = vcombine.high %v1575_v54, %v1579_v57 }
 0x5da   :  { %11226 = vmatpush1.bf16.msra.mxu0 %v15602_v10  ;;  %11785 = vmatpush1.bf16.msra.mxu1 %v15604_v11  ;;  %v1536_v10 = vld [vmem:[%s22638_s1 + $0x2e58] sm:$0xff]  ;;  %v15661_v11 = vcombine.high %v1528_v2, %v1532_v4  ;;  %v1583_v2 = vld [vmem:[%s22638_s1 + $0x2fd0] sm:$0xff] }
 0x5db   :  { %11227 = vmatprep.subr.bf16.mxu0 %v15611_v12  ;;  %11786 = vmatprep.subr.bf16.mxu1 %v15613_v16  ;;  %v1540_v12 = vld [vmem:[%s22638_s1 + $0x2e78] sm:$0xff]  ;;  %v1543_v16 = vld [vmem:[%s22638_s1 + $0x2e90] sm:$0xff] }
 0x5dc   :  { %v15668_v22 = vcombine.low %v1536_v10, %v1540_v12  ;;  %v15675_v23 = vcombine.high %v1543_v16, %v1547_v17  ;;  %v1584_v4 = vld [vmem:[%s22638_s1 + $0x2fd8] sm:$0xff] }
 0x5de   :  { %11228 = vmatpush1.bf16.msra.mxu0 %v15610_v19  ;;  %11787 = vmatpush1.bf16.msra.mxu1 %v15612_v20  ;;  %v15669_v19 = vcombine.high %v1536_v10, %v1540_v12  ;;  %v1548_v20 = vld [vmem:[%s22638_s1 + $0x2eb8] sm:$0xff]  ;;  %v1591_v10 = vld [vmem:[%s22638_s1 + $0x3010] sm:$0xff] }
 0x5df   :  { %11229 = vmatprep.subr.bf16.mxu0 %v15619_v21  ;;  %11788 = vmatprep.subr.bf16.mxu1 %v15621_v25  ;;  %v15666_v21 = vcombine.low %v1535_v8, %v1539_v9  ;;  %v1555_v25 = vld [vmem:[%s22638_s1 + $0x2ef0] sm:$0xff]  ;;  %v15676_v30 = vcombine.low %v1544_v18, %v1548_v20  ;;  %v1592_v12 = vld [vmem:[%s22638_s1 + $0x3018] sm:$0xff] }
 0x5e0   :  { %v15683_v31 = vcombine.high %v1551_v24, %v1555_v25  ;;  %v15682_v37 = vcombine.low %v1551_v24, %v1555_v25 }
 0x5e2   :  { %11230 = vmatpush1.bf16.msra.mxu0 %v15618_v27  ;;  %11789 = vmatpush1.bf16.msra.mxu1 %v15620_v28  ;;  %v15677_v27 = vcombine.high %v1544_v18, %v1548_v20  ;;  %v1556_v28 = vld [vmem:[%s22638_s1 + $0x2ef8] sm:$0xff]  ;;  %v1599_v18 = vld [vmem:[%s22638_s1 + $0x3050] sm:$0xff] }
 0x5e3   :  { %11231 = vmatprep.subr.bf16.mxu0 %v15627_v29  ;;  %11790 = vmatprep.subr.bf16.mxu1 %v15629_v33  ;;  %v15674_v29 = vcombine.low %v1543_v16, %v1547_v17  ;;  %v1563_v33 = vld [vmem:[%s22638_s1 + $0x2f30] sm:$0xff]  ;;  %v1600_v20 = vld [vmem:[%s22638_s1 + $0x3058] sm:$0xff] }
 0x5e6   :  { %11232 = vmatpush1.bf16.msra.mxu0 %v15626_v35  ;;  %11791 = vmatpush1.bf16.msra.mxu1 %v15628_v38  ;;  %v15685_v35 = vcombine.high %v1552_v26, %v1556_v28  ;;  %v15684_v38 = vcombine.low %v1552_v26, %v1556_v28  ;;  %v1607_v26 = vld [vmem:[%s22638_s1 + $0x3090] sm:$0xff]  ;;  %v1608_v28 = vld [vmem:[%s22638_s1 + $0x3098] sm:$0xff] }
 0x5e7   :  { %11233 = vmatprep.subr.bf16.mxu0 %v15635_v39  ;;  %11792 = vmatprep.subr.bf16.mxu1 %v15637_v40  ;;  %v15691_v39 = vcombine.high %v1559_v32, %v1563_v33  ;;  %v1567_v40 = vld [vmem:[%s22638_s1 + $0x2f50] sm:$0xff] }
 0x5e8   :  { %v15699_v51 = vcombine.high %v1567_v40, %v1571_v41 }
 0x5ea   :  { %11234 = vmatpush1.bf16.msra.mxu0 %v15634_v44  ;;  %11793 = vmatpush1.bf16.msra.mxu1 %v15636_v45  ;;  %v15693_v44 = vcombine.high %v1560_v34, %v1564_v36  ;;  %v1572_v45 = vld [vmem:[%s22638_s1 + $0x2f78] sm:$0xff] }
 0x5eb   :  { %11235 = vmatprep.subr.bf16.mxu0 %v15643_v46  ;;  %11794 = vmatprep.subr.bf16.mxu1 %v15645_v49  ;;  %v15690_v46 = vcombine.low %v1559_v32, %v1563_v33  ;;  %v15692_v49 = vcombine.low %v1560_v34, %v1564_v36  ;;  %v15700_v0 = vcombine.low %v1568_v43, %v1572_v45  ;;  %v1619_v36 = vld [vmem:[%s22638_s1 + $0x30f0] sm:$0xff] }
 0x5ee   :  { %11236 = vmatpush1.bf16.msra.mxu0 %v15642_v61  ;;  %11795 = vmatpush1.bf16.msra.mxu1 %v15644_v62  ;;  %v15701_v61 = vcombine.high %v1568_v43, %v1572_v45  ;;  %v1580_v62 = vld [vmem:[%s22638_s1 + $0x2fb8] sm:$0xff] }
 0x5ef   :  { %11237 = vmatprep.subr.bf16.mxu0 %v15651_v63  ;;  %11796 = vmatprep.subr.bf16.mxu1 %v15653_v3  ;;  %v15698_v63 = vcombine.low %v1567_v40, %v1571_v41  ;;  %v1587_v3 = vld [vmem:[%s22638_s1 + $0x2ff0] sm:$0xff]  ;;  %v15708_v8 = vcombine.low %v1576_v59, %v1580_v62 }
 0x5f0   :  { %v15715_v9 = vcombine.high %v1583_v2, %v1587_v3 }
 0x5f2   :  { %11238 = vmatpush1.bf16.msra.mxu0 %v15650_v5  ;;  %11797 = vmatpush1.bf16.msra.mxu1 %v15652_v6  ;;  %v15709_v5 = vcombine.high %v1576_v59, %v1580_v62  ;;  %v1588_v6 = vld [vmem:[%s22638_s1 + $0x2ff8] sm:$0xff]  ;;  %v16805_v59 = vld [vmem:[%s22639_s0 + $0x60] ss:$100 sps:$4 sm:$0xff]  }
 0x5f3   :  { %11239 = vmatprep.subr.bf16.mxu0 %v15659_v7  ;;  %11798 = vmatprep.subr.bf16.mxu1 %v15661_v11  ;;  %v15706_v7 = vcombine.low %v1575_v54, %v1579_v57  ;;  %v1595_v11 = vld [vmem:[%s22638_s1 + $0x3030] sm:$0xff]  ;;  %v15716_v16 = vcombine.low %v1584_v4, %v1588_v6  ;;  %v16368_v54 = vld [vmem:[%s22641_s3 + $0x8] ss:$16 sps:$4 sm:$0xff]  }
 0x5f4   :  { %v15723_v17 = vcombine.high %v1591_v10, %v1595_v11  ;;  %v16373_v57 = vld [vmem:[%s22641_s3 + $0x24] ss:$16 sps:$4 sm:$0xff]   ;;  %v16371_v62 = vld [vmem:[%s22641_s3 + $0x20] ss:$16 sps:$4 sm:$0xff]  }
 0x5f6   :  { %11240 = vmatpush1.bf16.msra.mxu0 %v15658_v13  ;;  %11799 = vmatpush1.bf16.msra.mxu1 %v15660_v14  ;;  %v15717_v13 = vcombine.high %v1584_v4, %v1588_v6  ;;  %v1596_v14 = vld [vmem:[%s22638_s1 + $0x3038] sm:$0xff] }
 0x5f7   :  { %11241 = vmatprep.subr.bf16.mxu0 %v15667_v15  ;;  %11800 = vmatprep.subr.bf16.mxu1 %v15669_v19  ;;  %v15714_v15 = vcombine.low %v1583_v2, %v1587_v3  ;;  %v1603_v19 = vld [vmem:[%s22638_s1 + $0x3070] sm:$0xff]  ;;  %v15724_v24 = vcombine.low %v1592_v12, %v1596_v14  ;;  %v16380_v3 = vld [vmem:[%s22641_s3 + $0x48] ss:$16 sps:$4 sm:$0xff]   ;;  %v16388_v4 = vld [vmem:[%s22641_s3 + $0x6c] ss:$16 sps:$4 sm:$0xff]  }
 0x5f8   :  { %v15731_v25 = vcombine.high %v1599_v18, %v1603_v19  ;;  %v15730_v32 = vcombine.low %v1599_v18, %v1603_v19  ;;  %v16377_v2 = vld [vmem:[%s22641_s3 + $0x40] ss:$16 sps:$4 sm:$0xff]   ;;  %v16386_v6 = vld [vmem:[%s22641_s3 + $0x68] ss:$16 sps:$4 sm:$0xff]   ;;  %v16409_v19 = vld [vmem:[%s22641_s3 + $0xe4] ss:$16 sps:$4 sm:$0xff]  }
 0x5f9   :  { %v16404_v18 = vld [vmem:[%s22641_s3 + $0xc8] ss:$16 sps:$4 sm:$0xff]  }
 0x5fa   :  { %11242 = vmatpush1.bf16.msra.mxu0 %v15666_v21  ;;  %11801 = vmatpush1.bf16.msra.mxu1 %v15668_v22  ;;  %v15725_v21 = vcombine.high %v1592_v12, %v1596_v14  ;;  %v1604_v22 = vld [vmem:[%s22638_s1 + $0x3078] sm:$0xff] }
 0x5fb   :  { %11243 = vmatprep.subr.bf16.mxu0 %v15675_v23  ;;  %11802 = vmatprep.subr.bf16.mxu1 %v15677_v27  ;;  %v15722_v23 = vcombine.low %v1591_v10, %v1595_v11  ;;  %v1611_v27 = vld [vmem:[%s22638_s1 + $0x30b0] sm:$0xff]  ;;  %v15732_v33 = vcombine.low %v1600_v20, %v1604_v22  ;;  %v16392_v10 = vld [vmem:[%s22641_s3 + $0x88] ss:$16 sps:$4 sm:$0xff]   ;;  %v16400_v12 = vld [vmem:[%s22641_s3 + $0xac] ss:$16 sps:$4 sm:$0xff]  }
 0x5fc   :  { %v15739_v34 = vcombine.high %v1607_v26, %v1611_v27  ;;  %v15738_v40 = vcombine.low %v1607_v26, %v1611_v27  ;;  %v16397_v11 = vld [vmem:[%s22641_s3 + $0xa4] ss:$16 sps:$4 sm:$0xff]   ;;  %v16398_v14 = vld [vmem:[%s22641_s3 + $0xa8] ss:$16 sps:$4 sm:$0xff]  }
 0x5fd   :  { %v16416_v26 = vld [vmem:[%s22641_s3 + $0x108] ss:$16 sps:$4 sm:$0xff]   ;;  %v16421_v27 = vld [vmem:[%s22641_s3 + $0x124] ss:$16 sps:$4 sm:$0xff]  }
 0x5fe   :  { %11244 = vmatpush1.bf16.msra.mxu0 %v15674_v29  ;;  %11803 = vmatpush1.bf16.msra.mxu1 %v15676_v30  ;;  %v15733_v29 = vcombine.high %v1600_v20, %v1604_v22  ;;  %v1612_v30 = vld [vmem:[%s22638_s1 + $0x30b8] sm:$0xff] }
 0x5ff   :  { %11245 = vmatprep.subr.bf16.mxu0 %v15683_v31  ;;  %11804 = vmatprep.subr.bf16.mxu1 %v15685_v35  ;;  %v16804_v31 = vld [vmem:[%s22639_s0 + $0x58] ss:$100 sps:$4 sm:$0xff]   ;;  %v1615_v35 = vld [vmem:[%s22638_s1 + $0x30d0] sm:$0xff]  ;;  %v15740_v41 = vcombine.low %v1608_v28, %v1612_v30 }
 0x600   :  { %v15747_v43 = vcombine.high %v1615_v35, %v1619_v36  ;;  %v15746_v45 = vcombine.low %v1615_v35, %v1619_v36  ;;  %v16412_v20 = vld [vmem:[%s22641_s3 + $0xec] ss:$16 sps:$4 sm:$0xff]   ;;  %v16410_v22 = vld [vmem:[%s22641_s3 + $0xe8] ss:$16 sps:$4 sm:$0xff]   ;;  %v16433_v35 = vld [vmem:[%s22641_s3 + $0x164] ss:$16 sps:$4 sm:$0xff]  }
 0x601   :  { %v16436_v36 = vld [vmem:[%s22641_s3 + $0x16c] ss:$16 sps:$4 sm:$0xff]  }
 0x602   :  { %11246 = vmatpush1.bf16.msra.mxu0 %v15682_v37  ;;  %11805 = vmatpush1.bf16.msra.mxu1 %v15684_v38  ;;  %v1616_v37 = vld [vmem:[%s22638_s1 + $0x30d8] sm:$0xff]  ;;  %v15741_v38 = vcombine.high %v1608_v28, %v1612_v30 }
 0x603   :  { %11247 = vmatprep.subr.bf16.mxu0 %v15691_v39  ;;  %11806 = vmatprep.subr.bf16.mxu1 %v15693_v44  ;;  %v1620_v39 = vld [vmem:[%s22638_s1 + $0x30f8] sm:$0xff] }
 0x604   :  { %v15749_v44 = vcombine.high %v1616_v37, %v1620_v39  ;;  %v16424_v28 = vld [vmem:[%s22641_s3 + $0x12c] ss:$16 sps:$4 sm:$0xff]   ;;  %v16422_v30 = vld [vmem:[%s22641_s3 + $0x128] ss:$16 sps:$4 sm:$0xff]  }
 0x606   :  { %11248 = vmatpush1.bf16.msra.mxu0 %v15690_v46  ;;  %11807 = vmatpush1.bf16.msra.mxu1 %v15692_v49  ;;  %v15748_v46 = vcombine.low %v1616_v37, %v1620_v39  ;;  %v16367_v49 = vld [vmem:[%s22641_s3 + $0x4] ss:$16 sps:$4 sm:$0xff]   ;;  %v16431_v37 = vld [vmem:[%s22641_s3 + $0x160] ss:$16 sps:$4 sm:$0xff]  }
 0x607   :  { %11249 = vmatprep.subr.bf16.mxu0 %v15699_v51  ;;  %11808 = vmatprep.subr.bf16.mxu1 %v15701_v61  ;;  %v16370_v51 = vld [vmem:[%s22641_s3 + $0xc] ss:$16 sps:$4 sm:$0xff]   ;;  %v16439_v39 = vld [vmem:[%s22641_s3 + $0x184] ss:$16 sps:$4 sm:$0xff]  }
 0x608   :  { %v16376_v61 = vld [vmem:[%s22641_s3 + $0x2c] ss:$16 sps:$4 sm:$0xff]  }
 0x60a   :  { %11250 = vmatpush1.bf16.msra.mxu0 %v15698_v63  ;;  %11809 = vmatpush1.bf16.msra.mxu1 %v15700_v0  ;;  %v16374_v63 = vld [vmem:[%s22641_s3 + $0x28] ss:$16 sps:$4 sm:$0xff]   ;;  %v16379_v0 = vld [vmem:[%s22641_s3 + $0x44] ss:$16 sps:$4 sm:$0xff]  }
 0x60b   :  { %11251 = vmatprep.subr.bf16.mxu0 %v15707_v1  ;;  %11810 = vmatprep.subr.bf16.mxu1 %v15709_v5  ;;  %v16382_v1 = vld [vmem:[%s22641_s3 + $0x4c] ss:$16 sps:$4 sm:$0xff]   ;;  %v16383_v5 = vld [vmem:[%s22641_s3 + $0x60] ss:$16 sps:$4 sm:$0xff]  }
 0x60e   :  { %11252 = vmatpush1.bf16.msra.mxu0 %v15706_v7  ;;  %11811 = vmatpush1.bf16.msra.mxu1 %v15708_v8  ;;  %v16391_v7 = vld [vmem:[%s22641_s3 + $0x84] ss:$16 sps:$4 sm:$0xff]   ;;  %v16394_v8 = vld [vmem:[%s22641_s3 + $0x8c] ss:$16 sps:$4 sm:$0xff]  }
 0x60f   :  { %11253 = vmatprep.subr.bf16.mxu0 %v15715_v9  ;;  %11812 = vmatprep.subr.bf16.mxu1 %v15717_v13  ;;  %v16389_v9 = vld [vmem:[%s22641_s3 + $0x80] ss:$16 sps:$4 sm:$0xff]  }
 0x610   :  { %v16395_v13 = vld [vmem:[%s22641_s3 + $0xa0] ss:$16 sps:$4 sm:$0xff]  }
 0x612   :  { %11254 = vmatpush1.bf16.msra.mxu0 %v15714_v15  ;;  %11813 = vmatpush1.bf16.msra.mxu1 %v15716_v16  ;;  %v16403_v15 = vld [vmem:[%s22641_s3 + $0xc4] ss:$16 sps:$4 sm:$0xff]   ;;  %v16406_v16 = vld [vmem:[%s22641_s3 + $0xcc] ss:$16 sps:$4 sm:$0xff]  }
 0x613   :  { %11266 = vmatprep.subr.bf16.mxu0 %v15723_v17  ;;  %11825 = vmatprep.subr.bf16.mxu1 %v15725_v21  ;;  %v16401_v17 = vld [vmem:[%s22641_s3 + $0xc0] ss:$16 sps:$4 sm:$0xff]  }
 0x614   :  { %v16407_v21 = vld [vmem:[%s22641_s3 + $0xe0] ss:$16 sps:$4 sm:$0xff]  }
 0x615   :  { %11256 = vmatmul.mubr.bf16.vlgmr.msra.gmra.mrb[4].mxu0 %v16804_v31  ;;  %11815 = vmatmul.mubr.bf16.vlgmr.msra.gmra.mrb[4].mxu1 %v16804_v31  ;;  %v16427_v31 = vld [vmem:[%s22641_s3 + $0x144] ss:$16 sps:$4 sm:$0xff]  }
 0x616   :  { %11267 = vmatpush1.bf16.msra.mxu0 %v15722_v23  ;;  %11826 = vmatpush1.bf16.msra.mxu1 %v15724_v24  ;;  %v16415_v23 = vld [vmem:[%s22641_s3 + $0x104] ss:$16 sps:$4 sm:$0xff]   ;;  %v16418_v24 = vld [vmem:[%s22641_s3 + $0x10c] ss:$16 sps:$4 sm:$0xff]  }
 0x617   :  { %11268 = vmatprep.subr.bf16.mxu0 %v15731_v25  ;;  %11827 = vmatprep.subr.bf16.mxu1 %v15733_v29  ;;  %v16413_v25 = vld [vmem:[%s22641_s3 + $0x100] ss:$16 sps:$4 sm:$0xff]  }
 0x618   :  { %11298 = vmatprep.mubr.bf16.mxu0 %v16807_v48  ;;  %11857 = vmatprep.mubr.bf16.mxu1 %v16807_v48  ;;  %v16365_v48 = vld [vmem:[%s22641_s3] ss:$16 sps:$4 sm:$0xff]  }
 0x619   :  { %v16419_v29 = vld [vmem:[%s22641_s3 + $0x120] ss:$16 sps:$4 sm:$0xff]  }
 0x61a   :  { %11269 = vmatpush1.bf16.msra.mxu0 %v15730_v32  ;;  %11828 = vmatpush1.bf16.msra.mxu1 %v15732_v33  ;;  %v16430_v32 = vld [vmem:[%s22641_s3 + $0x14c] ss:$16 sps:$4 sm:$0xff]   ;;  %v16425_v33 = vld [vmem:[%s22641_s3 + $0x140] ss:$16 sps:$4 sm:$0xff]  }
 0x61b   :  { %11270 = vmatprep.subr.bf16.mxu0 %v15739_v34  ;;  %11829 = vmatprep.subr.bf16.mxu1 %v15741_v38  ;;  %v16428_v34 = vld [vmem:[%s22641_s3 + $0x148] ss:$16 sps:$4 sm:$0xff]  }
 0x61c   :  { %v16434_v38 = vld [vmem:[%s22641_s3 + $0x168] ss:$16 sps:$4 sm:$0xff]  }
 0x61e   :  { %11271 = vmatpush1.bf16.msra.mxu0 %v15738_v40  ;;  %11830 = vmatpush1.bf16.msra.mxu1 %v15740_v41  ;;  %v16442_v40 = vld [vmem:[%s22641_s3 + $0x18c] ss:$16 sps:$4 sm:$0xff]   ;;  %v16437_v41 = vld [vmem:[%s22641_s3 + $0x180] ss:$16 sps:$4 sm:$0xff]  }
 0x61f   :  { %11272 = vmatprep.subr.bf16.mxu0 %v15747_v43  ;;  %11831 = vmatprep.subr.bf16.mxu1 %v15749_v44  ;;  %v16440_v43 = vld [vmem:[%s22641_s3 + $0x188] ss:$16 sps:$4 sm:$0xff]   ;;  %v16445_v44 = vld [vmem:[%s22641_s3 + $0x1a4] ss:$16 sps:$4 sm:$0xff]  }
 0x622   :  { %11273 = vmatpush1.bf16.msra.mxu0 %v15746_v45  ;;  %11832 = vmatpush1.bf16.msra.mxu1 %v15748_v46  ;;  %v16448_v45 = vld [vmem:[%s22641_s3 + $0x1ac] ss:$16 sps:$4 sm:$0xff]   ;;  %v16443_v46 = vld [vmem:[%s22641_s3 + $0x1a0] ss:$16 sps:$4 sm:$0xff]  }
 0x623   :  { %13450 = vmatprep.subr.bf16.mxu0 %v16367_v49  ;;  %13622 = vmatprep.subr.bf16.mxu1 %v16370_v51  ;;  %v16446_v49 = vld [vmem:[%s22641_s3 + $0x1a8] ss:$16 sps:$4 sm:$0xff]   ;;  %v16454_v51 = vld [vmem:[%s22641_s3 + $0x1cc] ss:$16 sps:$4 sm:$0xff]  }
 0x625   :  { %15752 = vmatmul.mubr.msk.bf16.vlgmr.msra.gmra.mrb[4].mxu0 %vm9628_vm0, %v16805_v59  ;;  %15753 = vmatmul.mubr.msk.bf16.vlgmr.msra.gmra.mrb[4].mxu1 %vm9628_vm0, %v16805_v59  ;;  %v16457_v59 = vld [vmem:[%s22641_s3 + $0x1e4] ss:$16 sps:$4 sm:$0xff]  }
 0x626   :  { %13451 = vmatpush1.bf16.msra.mxu0 %v16365_v48  ;;  %13482 = vmatprep.mubr.bf16.mxu0 %v20005_v53  ;;  %v16451_v48 = vld [vmem:[%s22641_s3 + $0x1c4] ss:$16 sps:$4 sm:$0xff]  }
 0x627   :  { %13623 = vmatpush1.bf16.msra.mxu1 %v16368_v54  ;;  %13654 = vmatprep.mubr.bf16.mxu1 %v20005_v53  ;;  %v16385_v53 = vld [vmem:[%s22641_s3 + $0x64] ss:$16 sps:$4 sm:$0xff]   ;;  %v16449_v54 = vld [vmem:[%s22641_s3 + $0x1c0] ss:$16 sps:$4 sm:$0xff]  }
 0x628   :  { %13452 = vmatprep.subr.bf16.mxu0 %v16373_v57  ;;  %13624 = vmatprep.subr.bf16.mxu1 %v16376_v61  ;;  %v16452_v57 = vld [vmem:[%s22641_s3 + $0x1c8] ss:$16 sps:$4 sm:$0xff]   ;;  %v16460_v61 = vld [vmem:[%s22641_s3 + $0x1ec] ss:$16 sps:$4 sm:$0xff]  }
 0x62a   :  { %13453 = vmatpush1.bf16.msra.mxu0 %v16371_v62  ;;  %v16455_v62 = vld [vmem:[%s22641_s3 + $0x1e0] ss:$16 sps:$4 sm:$0xff]  }
 0x62b   :  { %13625 = vmatpush1.bf16.msra.mxu1 %v16374_v63  ;;  %13454 = vmatprep.subr.bf16.mxu0 %v16379_v0  ;;  %v16458_v63 = vld [vmem:[%s22641_s3 + $0x1e8] ss:$16 sps:$4 sm:$0xff]   ;;  %v16463_v0 = vld [vmem:[%s22641_s3 + $0x204] ss:$16 sps:$4 sm:$0xff]  }
 0x62c   :  { %13626 = vmatprep.subr.bf16.mxu1 %v16382_v1  ;;  %v16466_v1 = vld [vmem:[%s22641_s3 + $0x20c] ss:$16 sps:$4 sm:$0xff]  }
 0x62e   :  { %13455 = vmatpush1.bf16.msra.mxu0 %v16377_v2  ;;  %v16461_v2 = vld [vmem:[%s22641_s3 + $0x200] ss:$16 sps:$4 sm:$0xff]  }
 0x62f   :  { %13627 = vmatpush1.bf16.msra.mxu1 %v16380_v3  ;;  %13456 = vmatprep.subr.bf16.mxu0 %v16385_v53  ;;  %v16464_v3 = vld [vmem:[%s22641_s3 + $0x208] ss:$16 sps:$4 sm:$0xff]   ;;  %v16469_v53 = vld [vmem:[%s22641_s3 + $0x224] ss:$16 sps:$4 sm:$0xff]  }
 0x630   :  { %13628 = vmatprep.subr.bf16.mxu1 %v16388_v4  ;;  %v16472_v4 = vld [vmem:[%s22641_s3 + $0x22c] ss:$16 sps:$4 sm:$0xff]  }
 0x632   :  { %13457 = vmatpush1.bf16.msra.mxu0 %v16383_v5  ;;  %v16467_v5 = vld [vmem:[%s22641_s3 + $0x220] ss:$16 sps:$4 sm:$0xff]  }
 0x633   :  { %13629 = vmatpush1.bf16.msra.mxu1 %v16386_v6  ;;  %13458 = vmatprep.subr.bf16.mxu0 %v16391_v7  ;;  %v16470_v6 = vld [vmem:[%s22641_s3 + $0x228] ss:$16 sps:$4 sm:$0xff]   ;;  %v16475_v7 = vld [vmem:[%s22641_s3 + $0x244] ss:$16 sps:$4 sm:$0xff]  }
 0x634   :  { %13630 = vmatprep.subr.bf16.mxu1 %v16394_v8  ;;  %v16473_v8 = vld [vmem:[%s22641_s3 + $0x240] ss:$16 sps:$4 sm:$0xff]  }
 0x636   :  { %13459 = vmatpush1.bf16.msra.mxu0 %v16389_v9  ;;  %v16476_v9 = vld [vmem:[%s22641_s3 + $0x248] ss:$16 sps:$4 sm:$0xff]  }
 0x637   :  { %13631 = vmatpush1.bf16.msra.mxu1 %v16392_v10  ;;  %13460 = vmatprep.subr.bf16.mxu0 %v16397_v11  ;;  %v16484_v10 = vld [vmem:[%s22641_s3 + $0x26c] ss:$16 sps:$4 sm:$0xff]   ;;  %v16479_v11 = vld [vmem:[%s22641_s3 + $0x260] ss:$16 sps:$4 sm:$0xff]  }
 0x638   :  { %13632 = vmatprep.subr.bf16.mxu1 %v16400_v12  ;;  %v16482_v12 = vld [vmem:[%s22641_s3 + $0x268] ss:$16 sps:$4 sm:$0xff]  }
 0x63a   :  { %13461 = vmatpush1.bf16.msra.mxu0 %v16395_v13  ;;  %v16487_v13 = vld [vmem:[%s22641_s3 + $0x284] ss:$16 sps:$4 sm:$0xff]  }
 0x63b   :  { %13633 = vmatpush1.bf16.msra.mxu1 %v16398_v14  ;;  %13462 = vmatprep.subr.bf16.mxu0 %v16403_v15  ;;  %v16490_v14 = vld [vmem:[%s22641_s3 + $0x28c] ss:$16 sps:$4 sm:$0xff]   ;;  %v16485_v15 = vld [vmem:[%s22641_s3 + $0x280] ss:$16 sps:$4 sm:$0xff]  }
 0x63c   :  { %13634 = vmatprep.subr.bf16.mxu1 %v16406_v16  ;;  %v16488_v16 = vld [vmem:[%s22641_s3 + $0x288] ss:$16 sps:$4 sm:$0xff]  }
 0x63e   :  { %13463 = vmatpush1.bf16.msra.mxu0 %v16401_v17  ;;  %v16493_v17 = vld [vmem:[%s22641_s3 + $0x2a4] ss:$16 sps:$4 sm:$0xff]  }
 0x63f   :  { %13635 = vmatpush1.bf16.msra.mxu1 %v16404_v18  ;;  %13464 = vmatprep.subr.bf16.mxu0 %v16409_v19  ;;  %v16496_v18 = vld [vmem:[%s22641_s3 + $0x2ac] ss:$16 sps:$4 sm:$0xff]   ;;  %v16491_v19 = vld [vmem:[%s22641_s3 + $0x2a0] ss:$16 sps:$4 sm:$0xff]  }
 0x640   :  { %13636 = vmatprep.subr.bf16.mxu1 %v16412_v20  ;;  %v16494_v20 = vld [vmem:[%s22641_s3 + $0x2a8] ss:$16 sps:$4 sm:$0xff]  }
 0x642   :  { %13465 = vmatpush1.bf16.msra.mxu0 %v16407_v21  ;;  %v16499_v21 = vld [vmem:[%s22641_s3 + $0x2c4] ss:$16 sps:$4 sm:$0xff]  }
 0x643   :  { %13637 = vmatpush1.bf16.msra.mxu1 %v16410_v22  ;;  %13466 = vmatprep.subr.bf16.mxu0 %v16415_v23  ;;  %v16502_v22 = vld [vmem:[%s22641_s3 + $0x2cc] ss:$16 sps:$4 sm:$0xff]   ;;  %v16497_v23 = vld [vmem:[%s22641_s3 + $0x2c0] ss:$16 sps:$4 sm:$0xff]  }
 0x644   :  { %13638 = vmatprep.subr.bf16.mxu1 %v16418_v24  ;;  %v16500_v24 = vld [vmem:[%s22641_s3 + $0x2c8] ss:$16 sps:$4 sm:$0xff]  }
 0x646   :  { %13467 = vmatpush1.bf16.msra.mxu0 %v16413_v25  ;;  %v16505_v25 = vld [vmem:[%s22641_s3 + $0x2e4] ss:$16 sps:$4 sm:$0xff]  }
 0x647   :  { %13639 = vmatpush1.bf16.msra.mxu1 %v16416_v26  ;;  %13468 = vmatprep.subr.bf16.mxu0 %v16421_v27  ;;  %v16508_v26 = vld [vmem:[%s22641_s3 + $0x2ec] ss:$16 sps:$4 sm:$0xff]   ;;  %v16503_v27 = vld [vmem:[%s22641_s3 + $0x2e0] ss:$16 sps:$4 sm:$0xff]  }
 0x648   :  { %13640 = vmatprep.subr.bf16.mxu1 %v16424_v28  ;;  %v16506_v28 = vld [vmem:[%s22641_s3 + $0x2e8] ss:$16 sps:$4 sm:$0xff]  }
 0x64a   :  { %13469 = vmatpush1.bf16.msra.mxu0 %v16419_v29  ;;  %v16511_v29 = vld [vmem:[%s22641_s3 + $0x304] ss:$16 sps:$4 sm:$0xff]  }
 0x64b   :  { %13641 = vmatpush1.bf16.msra.mxu1 %v16422_v30  ;;  %13470 = vmatprep.subr.bf16.mxu0 %v16427_v31  ;;  %v16514_v30 = vld [vmem:[%s22641_s3 + $0x30c] ss:$16 sps:$4 sm:$0xff]   ;;  %v16509_v31 = vld [vmem:[%s22641_s3 + $0x300] ss:$16 sps:$4 sm:$0xff]  }
 0x64c   :  { %13642 = vmatprep.subr.bf16.mxu1 %v16430_v32  ;;  %v16512_v32 = vld [vmem:[%s22641_s3 + $0x308] ss:$16 sps:$4 sm:$0xff]  }
 0x64e   :  { %13471 = vmatpush1.bf16.msra.mxu0 %v16425_v33  ;;  %v16517_v33 = vld [vmem:[%s22641_s3 + $0x324] ss:$16 sps:$4 sm:$0xff]  }
 0x64f   :  { %13643 = vmatpush1.bf16.msra.mxu1 %v16428_v34  ;;  %13472 = vmatprep.subr.bf16.mxu0 %v16433_v35  ;;  %v16520_v34 = vld [vmem:[%s22641_s3 + $0x32c] ss:$16 sps:$4 sm:$0xff]   ;;  %v16515_v35 = vld [vmem:[%s22641_s3 + $0x320] ss:$16 sps:$4 sm:$0xff]  }
 0x650   :  { %13644 = vmatprep.subr.bf16.mxu1 %v16436_v36  ;;  %v16518_v36 = vld [vmem:[%s22641_s3 + $0x328] ss:$16 sps:$4 sm:$0xff]  }
 0x652   :  { %13473 = vmatpush1.bf16.msra.mxu0 %v16431_v37  ;;  %v16523_v37 = vld [vmem:[%s22641_s3 + $0x344] ss:$16 sps:$4 sm:$0xff]  }
 0x653   :  { %13645 = vmatpush1.bf16.msra.mxu1 %v16434_v38  ;;  %13474 = vmatprep.subr.bf16.mxu0 %v16439_v39  ;;  %v16526_v38 = vld [vmem:[%s22641_s3 + $0x34c] ss:$16 sps:$4 sm:$0xff]   ;;  %v16521_v39 = vld [vmem:[%s22641_s3 + $0x340] ss:$16 sps:$4 sm:$0xff]  }
 0x654   :  { %13646 = vmatprep.subr.bf16.mxu1 %v16442_v40  ;;  %v16524_v40 = vld [vmem:[%s22641_s3 + $0x348] ss:$16 sps:$4 sm:$0xff]  }
 0x656   :  { %13475 = vmatpush1.bf16.msra.mxu0 %v16437_v41  ;;  %v16529_v41 = vld [vmem:[%s22641_s3 + $0x364] ss:$16 sps:$4 sm:$0xff]  }
 0x657   :  { %13647 = vmatpush1.bf16.msra.mxu1 %v16440_v43  ;;  %13476 = vmatprep.subr.bf16.mxu0 %v16445_v44  ;;  %v16532_v43 = vld [vmem:[%s22641_s3 + $0x36c] ss:$16 sps:$4 sm:$0xff]   ;;  %v16527_v44 = vld [vmem:[%s22641_s3 + $0x360] ss:$16 sps:$4 sm:$0xff]  }
 0x658   :  { %13648 = vmatprep.subr.bf16.mxu1 %v16448_v45  ;;  %v16530_v45 = vld [vmem:[%s22641_s3 + $0x368] ss:$16 sps:$4 sm:$0xff]  }
 0x65a   :  { %13477 = vmatpush1.bf16.msra.mxu0 %v16443_v46  ;;  %v16535_v46 = vld [vmem:[%s22641_s3 + $0x384] ss:$16 sps:$4 sm:$0xff]  }
 0x65b   :  { %13649 = vmatpush1.bf16.msra.mxu1 %v16446_v49  ;;  %13478 = vmatprep.subr.bf16.mxu0 %v16451_v48  ;;  %v16538_v49 = vld [vmem:[%s22641_s3 + $0x38c] ss:$16 sps:$4 sm:$0xff]   ;;  %v16533_v48 = vld [vmem:[%s22641_s3 + $0x380] ss:$16 sps:$4 sm:$0xff]  }
 0x65c   :  { %13650 = vmatprep.subr.bf16.mxu1 %v16454_v51  ;;  %v16536_v51 = vld [vmem:[%s22641_s3 + $0x388] ss:$16 sps:$4 sm:$0xff]  }
 0x65e   :  { %13479 = vmatpush1.bf16.msra.mxu0 %v16449_v54  ;;  %v16541_v54 = vld [vmem:[%s22641_s3 + $0x3a4] ss:$16 sps:$4 sm:$0xff]  }
 0x65f   :  { %13651 = vmatpush1.bf16.msra.mxu1 %v16452_v57  ;;  %13480 = vmatprep.subr.bf16.mxu0 %v16457_v59  ;;  %v16544_v57 = vld [vmem:[%s22641_s3 + $0x3ac] ss:$16 sps:$4 sm:$0xff]   ;;  %v16539_v59 = vld [vmem:[%s22641_s3 + $0x3a0] ss:$16 sps:$4 sm:$0xff]  }
 0x660   :  { %13652 = vmatprep.subr.bf16.mxu1 %v16460_v61  ;;  %v16542_v61 = vld [vmem:[%s22641_s3 + $0x3a8] ss:$16 sps:$4 sm:$0xff]  }
 0x662   :  { %13481 = vmatpush1.bf16.msra.mxu0 %v16455_v62  ;;  %v16547_v62 = vld [vmem:[%s22641_s3 + $0x3c4] ss:$16 sps:$4 sm:$0xff]  }
 0x663   :  { %13653 = vmatpush1.bf16.msra.mxu1 %v16458_v63  ;;  %13493 = vmatprep.subr.bf16.mxu0 %v16463_v0  ;;  %v16550_v63 = vld [vmem:[%s22641_s3 + $0x3cc] ss:$16 sps:$4 sm:$0xff]   ;;  %v16545_v0 = vld [vmem:[%s22641_s3 + $0x3c0] ss:$16 sps:$4 sm:$0xff]  }
 0x664   :  { %13665 = vmatprep.subr.bf16.mxu1 %v16466_v1  ;;  %v16548_v1 = vld [vmem:[%s22641_s3 + $0x3c8] ss:$16 sps:$4 sm:$0xff]  }
 0x665   :  { %13483 = vmatmul.mubr.bf16.vlgmr.msra.gmra.mrb[8].mxu0 %v20001_v47 }
 0x666   :  { %13655 = vmatmul.mubr.bf16.vlgmr.msra.gmra.mrb[8].mxu1 %v20001_v47  ;;  %13494 = vmatpush1.bf16.msra.mxu0 %v16461_v2  ;;  %v16478_v47 = vld [vmem:[%s22641_s3 + $0x24c] ss:$16 sps:$4 sm:$0xff]   ;;  %v16553_v2 = vld [vmem:[%s22641_s3 + $0x3e4] ss:$16 sps:$4 sm:$0xff]  }
 0x667   :  { %13525 = vmatprep.mubr.bf16.mxu0 %v20013_v60  ;;  %13666 = vmatpush1.bf16.msra.mxu1 %v16464_v3  ;;  %v16556_v3 = vld [vmem:[%s22641_s3 + $0x3ec] ss:$16 sps:$4 sm:$0xff]  }
 0x668   :  { %13697 = vmatprep.mubr.bf16.mxu1 %v20013_v60  ;;  %13495 = vmatprep.subr.bf16.mxu0 %v16469_v53  ;;  %v16481_v60 = vld [vmem:[%s22641_s3 + $0x264] ss:$16 sps:$4 sm:$0xff]   ;;  %v16551_v53 = vld [vmem:[%s22641_s3 + $0x3e0] ss:$16 sps:$4 sm:$0xff]  }
 0x669   :  { %13667 = vmatprep.subr.bf16.mxu1 %v16472_v4  ;;  %v16554_v4 = vld [vmem:[%s22641_s3 + $0x3e8] ss:$16 sps:$4 sm:$0xff]  }
 0x66a   :  { %13496 = vmatpush1.bf16.msra.mxu0 %v16467_v5  ;;  %v16559_v5 = vld [vmem:[%s22641_s3 + $0x404] ss:$16 sps:$4 sm:$0xff]  }
 0x66b   :  { %13668 = vmatpush1.bf16.msra.mxu1 %v16470_v6  ;;  %13497 = vmatprep.subr.bf16.mxu0 %v16475_v7  ;;  %v16562_v6 = vld [vmem:[%s22641_s3 + $0x40c] ss:$16 sps:$4 sm:$0xff]   ;;  %v16557_v7 = vld [vmem:[%s22641_s3 + $0x400] ss:$16 sps:$4 sm:$0xff]  }
 0x66c   :  { %13669 = vmatprep.subr.bf16.mxu1 %v16478_v47  ;;  %v16560_v47 = vld [vmem:[%s22641_s3 + $0x408] ss:$16 sps:$4 sm:$0xff]  }
 0x66e   :  { %13498 = vmatpush1.bf16.msra.mxu0 %v16473_v8  ;;  %v16565_v8 = vld [vmem:[%s22641_s3 + $0x424] ss:$16 sps:$4 sm:$0xff]  }
 0x66f   :  { %13670 = vmatpush1.bf16.msra.mxu1 %v16476_v9  ;;  %13499 = vmatprep.subr.bf16.mxu0 %v16481_v60  ;;  %v16568_v9 = vld [vmem:[%s22641_s3 + $0x42c] ss:$16 sps:$4 sm:$0xff]   ;;  %v16563_v60 = vld [vmem:[%s22641_s3 + $0x420] ss:$16 sps:$4 sm:$0xff]  }
 0x670   :  { %13671 = vmatprep.subr.bf16.mxu1 %v16484_v10  ;;  %v16566_v10 = vld [vmem:[%s22641_s3 + $0x428] ss:$16 sps:$4 sm:$0xff]  }
 0x672   :  { %13500 = vmatpush1.bf16.msra.mxu0 %v16479_v11  ;;  %v16571_v11 = vld [vmem:[%s22641_s3 + $0x444] ss:$16 sps:$4 sm:$0xff]  }
 0x673   :  { %13672 = vmatpush1.bf16.msra.mxu1 %v16482_v12  ;;  %13501 = vmatprep.subr.bf16.mxu0 %v16487_v13  ;;  %v16569_v12 = vld [vmem:[%s22641_s3 + $0x440] ss:$16 sps:$4 sm:$0xff]   ;;  %v16572_v13 = vld [vmem:[%s22641_s3 + $0x448] ss:$16 sps:$4 sm:$0xff]  }
 0x674   :  { %13673 = vmatprep.subr.bf16.mxu1 %v16490_v14  ;;  %v16577_v14 = vld [vmem:[%s22641_s3 + $0x464] ss:$16 sps:$4 sm:$0xff]  }
 0x676   :  { %13502 = vmatpush1.bf16.msra.mxu0 %v16485_v15  ;;  %v16580_v15 = vld [vmem:[%s22641_s3 + $0x46c] ss:$16 sps:$4 sm:$0xff]  }
 0x677   :  { %13674 = vmatpush1.bf16.msra.mxu1 %v16488_v16  ;;  %13503 = vmatprep.subr.bf16.mxu0 %v16493_v17  ;;  %v16575_v16 = vld [vmem:[%s22641_s3 + $0x460] ss:$16 sps:$4 sm:$0xff]   ;;  %v16578_v17 = vld [vmem:[%s22641_s3 + $0x468] ss:$16 sps:$4 sm:$0xff]  }
 0x678   :  { %13675 = vmatprep.subr.bf16.mxu1 %v16496_v18  ;;  %v16583_v18 = vld [vmem:[%s22641_s3 + $0x484] ss:$16 sps:$4 sm:$0xff]  }
 0x67a   :  { %13504 = vmatpush1.bf16.msra.mxu0 %v16491_v19  ;;  %v16586_v19 = vld [vmem:[%s22641_s3 + $0x48c] ss:$16 sps:$4 sm:$0xff]  }
 0x67b   :  { %13676 = vmatpush1.bf16.msra.mxu1 %v16494_v20  ;;  %13505 = vmatprep.subr.bf16.mxu0 %v16499_v21  ;;  %v16581_v20 = vld [vmem:[%s22641_s3 + $0x480] ss:$16 sps:$4 sm:$0xff]   ;;  %v16584_v21 = vld [vmem:[%s22641_s3 + $0x488] ss:$16 sps:$4 sm:$0xff]  }
 0x67c   :  { %13677 = vmatprep.subr.bf16.mxu1 %v16502_v22  ;;  %v16589_v22 = vld [vmem:[%s22641_s3 + $0x4a4] ss:$16 sps:$4 sm:$0xff]  }
 0x67e   :  { %13506 = vmatpush1.bf16.msra.mxu0 %v16497_v23  ;;  %v16592_v23 = vld [vmem:[%s22641_s3 + $0x4ac] ss:$16 sps:$4 sm:$0xff]  }
 0x67f   :  { %13678 = vmatpush1.bf16.msra.mxu1 %v16500_v24  ;;  %13507 = vmatprep.subr.bf16.mxu0 %v16505_v25  ;;  %v16587_v24 = vld [vmem:[%s22641_s3 + $0x4a0] ss:$16 sps:$4 sm:$0xff]   ;;  %v16590_v25 = vld [vmem:[%s22641_s3 + $0x4a8] ss:$16 sps:$4 sm:$0xff]  }
 0x680   :  { %13679 = vmatprep.subr.bf16.mxu1 %v16508_v26  ;;  %v16595_v26 = vld [vmem:[%s22641_s3 + $0x4c4] ss:$16 sps:$4 sm:$0xff]  }
 0x682   :  { %13508 = vmatpush1.bf16.msra.mxu0 %v16503_v27  ;;  %v16598_v27 = vld [vmem:[%s22641_s3 + $0x4cc] ss:$16 sps:$4 sm:$0xff]  }
 0x683   :  { %13680 = vmatpush1.bf16.msra.mxu1 %v16506_v28  ;;  %13509 = vmatprep.subr.bf16.mxu0 %v16511_v29  ;;  %v16593_v28 = vld [vmem:[%s22641_s3 + $0x4c0] ss:$16 sps:$4 sm:$0xff]   ;;  %v16596_v29 = vld [vmem:[%s22641_s3 + $0x4c8] ss:$16 sps:$4 sm:$0xff]  }
 0x684   :  { %13681 = vmatprep.subr.bf16.mxu1 %v16514_v30  ;;  %v16601_v30 = vld [vmem:[%s22641_s3 + $0x4e4] ss:$16 sps:$4 sm:$0xff]  }
 0x686   :  { %13510 = vmatpush1.bf16.msra.mxu0 %v16509_v31  ;;  %v16604_v31 = vld [vmem:[%s22641_s3 + $0x4ec] ss:$16 sps:$4 sm:$0xff]  }
 0x687   :  { %13682 = vmatpush1.bf16.msra.mxu1 %v16512_v32  ;;  %13511 = vmatprep.subr.bf16.mxu0 %v16517_v33  ;;  %v16599_v32 = vld [vmem:[%s22641_s3 + $0x4e0] ss:$16 sps:$4 sm:$0xff]   ;;  %v16602_v33 = vld [vmem:[%s22641_s3 + $0x4e8] ss:$16 sps:$4 sm:$0xff]  }
 0x688   :  { %13683 = vmatprep.subr.bf16.mxu1 %v16520_v34  ;;  %v16607_v34 = vld [vmem:[%s22641_s3 + $0x504] ss:$16 sps:$4 sm:$0xff]  }
 0x68a   :  { %13512 = vmatpush1.bf16.msra.mxu0 %v16515_v35  ;;  %v16610_v35 = vld [vmem:[%s22641_s3 + $0x50c] ss:$16 sps:$4 sm:$0xff]  }
 0x68b   :  { %13684 = vmatpush1.bf16.msra.mxu1 %v16518_v36  ;;  %13513 = vmatprep.subr.bf16.mxu0 %v16523_v37  ;;  %v16605_v36 = vld [vmem:[%s22641_s3 + $0x500] ss:$16 sps:$4 sm:$0xff]   ;;  %v16608_v37 = vld [vmem:[%s22641_s3 + $0x508] ss:$16 sps:$4 sm:$0xff]  }
 0x68c   :  { %13685 = vmatprep.subr.bf16.mxu1 %v16526_v38  ;;  %v16613_v38 = vld [vmem:[%s22641_s3 + $0x524] ss:$16 sps:$4 sm:$0xff]  }
 0x68e   :  { %13514 = vmatpush1.bf16.msra.mxu0 %v16521_v39  ;;  %v16616_v39 = vld [vmem:[%s22641_s3 + $0x52c] ss:$16 sps:$4 sm:$0xff]  }
 0x68f   :  { %13686 = vmatpush1.bf16.msra.mxu1 %v16524_v40  ;;  %13515 = vmatprep.subr.bf16.mxu0 %v16529_v41  ;;  %v16611_v40 = vld [vmem:[%s22641_s3 + $0x520] ss:$16 sps:$4 sm:$0xff]   ;;  %v16614_v41 = vld [vmem:[%s22641_s3 + $0x528] ss:$16 sps:$4 sm:$0xff]  }
 0x690   :  { %13687 = vmatprep.subr.bf16.mxu1 %v16532_v43  ;;  %v16619_v43 = vld [vmem:[%s22641_s3 + $0x544] ss:$16 sps:$4 sm:$0xff]  }
 0x692   :  { %13516 = vmatpush1.bf16.msra.mxu0 %v16527_v44  ;;  %v16622_v44 = vld [vmem:[%s22641_s3 + $0x54c] ss:$16 sps:$4 sm:$0xff]  }
 0x693   :  { %13688 = vmatpush1.bf16.msra.mxu1 %v16530_v45  ;;  %13517 = vmatprep.subr.bf16.mxu0 %v16535_v46  ;;  %v16617_v45 = vld [vmem:[%s22641_s3 + $0x540] ss:$16 sps:$4 sm:$0xff]   ;;  %v16620_v46 = vld [vmem:[%s22641_s3 + $0x548] ss:$16 sps:$4 sm:$0xff]  }
 0x694   :  { %13689 = vmatprep.subr.bf16.mxu1 %v16538_v49  ;;  %v16625_v49 = vld [vmem:[%s22641_s3 + $0x564] ss:$16 sps:$4 sm:$0xff]  }
 0x696   :  { %13518 = vmatpush1.bf16.msra.mxu0 %v16533_v48  ;;  %v16628_v48 = vld [vmem:[%s22641_s3 + $0x56c] ss:$16 sps:$4 sm:$0xff]  }
 0x697   :  { %13690 = vmatpush1.bf16.msra.mxu1 %v16536_v51  ;;  %13519 = vmatprep.subr.bf16.mxu0 %v16541_v54  ;;  %v16623_v51 = vld [vmem:[%s22641_s3 + $0x560] ss:$16 sps:$4 sm:$0xff]   ;;  %v16626_v54 = vld [vmem:[%s22641_s3 + $0x568] ss:$16 sps:$4 sm:$0xff]  }
 0x698   :  { %13691 = vmatprep.subr.bf16.mxu1 %v16544_v57  ;;  %v16631_v57 = vld [vmem:[%s22641_s3 + $0x584] ss:$16 sps:$4 sm:$0xff]  }
 0x69a   :  { %13520 = vmatpush1.bf16.msra.mxu0 %v16539_v59  ;;  %v16634_v59 = vld [vmem:[%s22641_s3 + $0x58c] ss:$16 sps:$4 sm:$0xff]  }
 0x69b   :  { %13692 = vmatpush1.bf16.msra.mxu1 %v16542_v61  ;;  %13521 = vmatprep.subr.bf16.mxu0 %v16547_v62  ;;  %v16629_v61 = vld [vmem:[%s22641_s3 + $0x580] ss:$16 sps:$4 sm:$0xff]   ;;  %v16632_v62 = vld [vmem:[%s22641_s3 + $0x588] ss:$16 sps:$4 sm:$0xff]  }
 0x69c   :  { %13693 = vmatprep.subr.bf16.mxu1 %v16550_v63  ;;  %v16637_v63 = vld [vmem:[%s22641_s3 + $0x5a4] ss:$16 sps:$4 sm:$0xff]  }
 0x69e   :  { %13522 = vmatpush1.bf16.msra.mxu0 %v16545_v0  ;;  %v16635_v0 = vld [vmem:[%s22641_s3 + $0x5a0] ss:$16 sps:$4 sm:$0xff]  }
 0x69f   :  { %13694 = vmatpush1.bf16.msra.mxu1 %v16548_v1  ;;  %13523 = vmatprep.subr.bf16.mxu0 %v16553_v2  ;;  %v16640_v1 = vld [vmem:[%s22641_s3 + $0x5ac] ss:$16 sps:$4 sm:$0xff]   ;;  %v16638_v2 = vld [vmem:[%s22641_s3 + $0x5a8] ss:$16 sps:$4 sm:$0xff]  }
 0x6a0   :  { %13695 = vmatprep.subr.bf16.mxu1 %v16556_v3  ;;  %v16643_v3 = vld [vmem:[%s22641_s3 + $0x5c4] ss:$16 sps:$4 sm:$0xff]  }
 0x6a2   :  { %13524 = vmatpush1.bf16.msra.mxu0 %v16551_v53  ;;  %v16646_v53 = vld [vmem:[%s22641_s3 + $0x5cc] ss:$16 sps:$4 sm:$0xff]  }
 0x6a3   :  { %13696 = vmatpush1.bf16.msra.mxu1 %v16554_v4  ;;  %13536 = vmatprep.subr.bf16.mxu0 %v16559_v5  ;;  %v16641_v4 = vld [vmem:[%s22641_s3 + $0x5c0] ss:$16 sps:$4 sm:$0xff]   ;;  %v16644_v5 = vld [vmem:[%s22641_s3 + $0x5c8] ss:$16 sps:$4 sm:$0xff]  }
 0x6a4   :  { %13708 = vmatprep.subr.bf16.mxu1 %v16562_v6  ;;  %v16649_v6 = vld [vmem:[%s22641_s3 + $0x5e4] ss:$16 sps:$4 sm:$0xff]  }
 0x6a5   :  { %13526 = vmatmul.mubr.bf16.vlgmr.msra.gmra.mrb[8].mxu0 %v20003_v52 }
 0x6a6   :  { %13698 = vmatmul.mubr.bf16.vlgmr.msra.gmra.mrb[8].mxu1 %v20003_v52  ;;  %13537 = vmatpush1.bf16.msra.mxu0 %v16557_v7  ;;  %v16574_v52 = vld [vmem:[%s22641_s3 + $0x44c] ss:$16 sps:$4 sm:$0xff]  }
 0x6a7   :  { %13709 = vmatpush1.bf16.msra.mxu1 %v16560_v47  ;;  %13538 = vmatprep.subr.bf16.mxu0 %v16565_v8  ;;  %v16652_v7 = vld [vmem:[%s22641_s3 + $0x5ec] ss:$16 sps:$4 sm:$0xff]   ;;  %v16647_v47 = vld [vmem:[%s22641_s3 + $0x5e0] ss:$16 sps:$4 sm:$0xff]   ;;  %v16650_v8 = vld [vmem:[%s22641_s3 + $0x5e8] ss:$16 sps:$4 sm:$0xff]  }
 0x6a8   :  { %13710 = vmatprep.subr.bf16.mxu1 %v16568_v9  ;;  %v16655_v9 = vld [vmem:[%s22641_s3 + $0x604] ss:$16 sps:$4 sm:$0xff]  }
 0x6aa   :  { %13539 = vmatpush1.bf16.msra.mxu0 %v16563_v60  ;;  %v16658_v60 = vld [vmem:[%s22641_s3 + $0x60c] ss:$16 sps:$4 sm:$0xff]  }
 0x6ab   :  { %13711 = vmatpush1.bf16.msra.mxu1 %v16566_v10  ;;  %13540 = vmatprep.subr.bf16.mxu0 %v16571_v11  ;;  %v1641_v10 = vsub.s32 4, %v19936_v42  ;;  %v1649_v11 = vsub.s32 6, %v19936_v42 }
 0x6ac   :  { %13712 = vmatprep.subr.bf16.mxu1 %v16574_v52  ;;  %v1645_v52 = vsub.s32 5, %v19936_v42 }
 0x6ae   :  { %13541 = vmatpush1.bf16.msra.mxu0 %v16569_v12  ;;  %v1653_v12 = vsub.s32 7, %v19936_v42 }
 0x6af   :  { %13713 = vmatpush1.bf16.msra.mxu1 %v16572_v13  ;;  %13542 = vmatprep.subr.bf16.mxu0 %v16577_v14  ;;  %v16806_v13 = vld [vmem:[%s22640_s2] sm:$0xff] }
 0x6b0   :  { %13714 = vmatprep.subr.bf16.mxu1 %v16580_v15  ;;  %v1642_v14 = vrot.slane %v16806_v13, %v1641_v10  ;;  %v1650_v15 = vrot.slane %v16806_v13, %v1649_v11  ;;  %v16691_v10 = vld [vmem:[%s22641_s3 + $0x6c4] ss:$16 sps:$4 sm:$0xff]   ;;  %v16694_v11 = vld [vmem:[%s22641_s3 + $0x6cc] ss:$16 sps:$4 sm:$0xff]  }
 0x6b2   :  { %13543 = vmatpush1.bf16.msra.mxu0 %v16575_v16  ;;  %v1646_v16 = vrot.slane %v16806_v13, %v1645_v52  ;;  %v16689_v52 = vld [vmem:[%s22641_s3 + $0x6c0] ss:$16 sps:$4 sm:$0xff]  }
 0x6b3   :  { %13715 = vmatpush1.bf16.msra.mxu1 %v16578_v17  ;;  %13544 = vmatprep.subr.bf16.mxu0 %v16583_v18  ;;  %v1654_v17 = vrot.slane %v16806_v13, %v1653_v12  ;;  %v16692_v12 = vld [vmem:[%s22641_s3 + $0x6c8] ss:$16 sps:$4 sm:$0xff]   ;;  %v16697_v13 = vld [vmem:[%s22641_s3 + $0x6e4] ss:$16 sps:$4 sm:$0xff]  }
 0x6b4   :  { %13716 = vmatprep.subr.bf16.mxu1 %v16586_v19 }
 0x6b6   :  { %13545 = vmatpush1.bf16.msra.mxu0 %v16581_v20 }
 0x6b7   :  { %13717 = vmatpush1.bf16.msra.mxu1 %v16584_v21  ;;  %13546 = vmatprep.subr.bf16.mxu0 %v16589_v22 }
 0x6b8   :  { %13718 = vmatprep.subr.bf16.mxu1 %v16592_v23 }
 0x6ba   :  { %13547 = vmatpush1.bf16.msra.mxu0 %v16587_v24 }
 0x6bb   :  { %13719 = vmatpush1.bf16.msra.mxu1 %v16590_v25  ;;  %13548 = vmatprep.subr.bf16.mxu0 %v16595_v26 }
 0x6bc   :  { %13720 = vmatprep.subr.bf16.mxu1 %v16598_v27 }
 0x6be   :  { %13549 = vmatpush1.bf16.msra.mxu0 %v16593_v28 }
 0x6bf   :  { %13721 = vmatpush1.bf16.msra.mxu1 %v16596_v29  ;;  %13550 = vmatprep.subr.bf16.mxu0 %v16601_v30 }
 0x6c0   :  { %13722 = vmatprep.subr.bf16.mxu1 %v16604_v31 }
 0x6c2   :  { %13551 = vmatpush1.bf16.msra.mxu0 %v16599_v32 }
 0x6c3   :  { %13723 = vmatpush1.bf16.msra.mxu1 %v16602_v33  ;;  %13552 = vmatprep.subr.bf16.mxu0 %v16607_v34 }
 0x6c4   :  { %13724 = vmatprep.subr.bf16.mxu1 %v16610_v35 }
 0x6c6   :  { %13553 = vmatpush1.bf16.msra.mxu0 %v16605_v36 }
 0x6c7   :  { %13725 = vmatpush1.bf16.msra.mxu1 %v16608_v37  ;;  %13554 = vmatprep.subr.bf16.mxu0 %v16613_v38 }
 0x6c8   :  { %13726 = vmatprep.subr.bf16.mxu1 %v16616_v39 }
 0x6ca   :  { %13555 = vmatpush1.bf16.msra.mxu0 %v16611_v40 }
 0x6cb   :  { %13727 = vmatpush1.bf16.msra.mxu1 %v16614_v41  ;;  %13556 = vmatprep.subr.bf16.mxu0 %v16619_v43 }
 0x6cc   :  { %13728 = vmatprep.subr.bf16.mxu1 %v16622_v44 }
 0x6ce   :  { %13557 = vmatpush1.bf16.msra.mxu0 %v16617_v45 }
 0x6cf   :  { %13729 = vmatpush1.bf16.msra.mxu1 %v16620_v46  ;;  %13558 = vmatprep.subr.bf16.mxu0 %v16625_v49  ;;  %v16653_v46 = vld [vmem:[%s22641_s3 + $0x600] ss:$16 sps:$4 sm:$0xff]   ;;  %v16656_v49 = vld [vmem:[%s22641_s3 + $0x608] ss:$16 sps:$4 sm:$0xff]  }
 0x6d0   :  { %13730 = vmatprep.subr.bf16.mxu1 %v16628_v48 }
 0x6d2   :  { %13559 = vmatpush1.bf16.msra.mxu0 %v16623_v51  ;;  %v16661_v51 = vld [vmem:[%s22641_s3 + $0x624] ss:$16 sps:$4 sm:$0xff]  }
 0x6d3   :  { %13731 = vmatpush1.bf16.msra.mxu1 %v16626_v54  ;;  %13560 = vmatprep.subr.bf16.mxu0 %v16631_v57  ;;  %v16664_v54 = vld [vmem:[%s22641_s3 + $0x62c] ss:$16 sps:$4 sm:$0xff]   ;;  %v16659_v57 = vld [vmem:[%s22641_s3 + $0x620] ss:$16 sps:$4 sm:$0xff]  }
 0x6d4   :  { %13732 = vmatprep.subr.bf16.mxu1 %v16634_v59  ;;  %v16662_v59 = vld [vmem:[%s22641_s3 + $0x628] ss:$16 sps:$4 sm:$0xff]  }
 0x6d6   :  { %13561 = vmatpush1.bf16.msra.mxu0 %v16629_v61  ;;  %v16667_v61 = vld [vmem:[%s22641_s3 + $0x644] ss:$16 sps:$4 sm:$0xff]  }
 0x6d7   :  { %13733 = vmatpush1.bf16.msra.mxu1 %v16632_v62  ;;  %13562 = vmatprep.subr.bf16.mxu0 %v16637_v63  ;;  %v16670_v62 = vld [vmem:[%s22641_s3 + $0x64c] ss:$16 sps:$4 sm:$0xff]   ;;  %v16665_v63 = vld [vmem:[%s22641_s3 + $0x640] ss:$16 sps:$4 sm:$0xff]  }
 0x6d8   :  { %13734 = vmatprep.subr.bf16.mxu1 %v16640_v1  ;;  %v16673_v1 = vld [vmem:[%s22641_s3 + $0x664] ss:$16 sps:$4 sm:$0xff]  }
 0x6da   :  { %13563 = vmatpush1.bf16.msra.mxu0 %v16635_v0  ;;  %v16668_v0 = vld [vmem:[%s22641_s3 + $0x648] ss:$16 sps:$4 sm:$0xff]  }
 0x6db   :  { %13735 = vmatpush1.bf16.msra.mxu1 %v16638_v2  ;;  %13564 = vmatprep.subr.bf16.mxu0 %v16643_v3  ;;  %v16676_v2 = vld [vmem:[%s22641_s3 + $0x66c] ss:$16 sps:$4 sm:$0xff]   ;;  %v16671_v3 = vld [vmem:[%s22641_s3 + $0x660] ss:$16 sps:$4 sm:$0xff]  }
 0x6dc   :  { %13736 = vmatprep.subr.bf16.mxu1 %v16646_v53  ;;  %v16674_v53 = vld [vmem:[%s22641_s3 + $0x668] ss:$16 sps:$4 sm:$0xff]  }
 0x6de   :  { %13565 = vmatpush1.bf16.msra.mxu0 %v16641_v4  ;;  %v16679_v4 = vld [vmem:[%s22641_s3 + $0x684] ss:$16 sps:$4 sm:$0xff]  }
 0x6df   :  { %13737 = vmatpush1.bf16.msra.mxu1 %v16644_v5  ;;  %13566 = vmatprep.subr.bf16.mxu0 %v16649_v6  ;;  %v16682_v5 = vld [vmem:[%s22641_s3 + $0x68c] ss:$16 sps:$4 sm:$0xff]   ;;  %v16677_v6 = vld [vmem:[%s22641_s3 + $0x680] ss:$16 sps:$4 sm:$0xff]  }
 0x6e0   :  { %13738 = vmatprep.subr.bf16.mxu1 %v16652_v7  ;;  %v16680_v7 = vld [vmem:[%s22641_s3 + $0x688] ss:$16 sps:$4 sm:$0xff]  }
 0x6e2   :  { %13567 = vmatpush1.bf16.msra.mxu0 %v16647_v47  ;;  %v16685_v47 = vld [vmem:[%s22641_s3 + $0x6a4] ss:$16 sps:$4 sm:$0xff]  }
 0x6e3   :  { %13739 = vmatpush1.bf16.msra.mxu1 %v16650_v8  ;;  %13579 = vmatprep.subr.bf16.mxu0 %v16655_v9  ;;  %v16688_v8 = vld [vmem:[%s22641_s3 + $0x6ac] ss:$16 sps:$4 sm:$0xff]   ;;  %v16683_v9 = vld [vmem:[%s22641_s3 + $0x6a0] ss:$16 sps:$4 sm:$0xff]  }
 0x6e4   :  { %13751 = vmatprep.subr.bf16.mxu1 %v16658_v60  ;;  %v16686_v60 = vld [vmem:[%s22641_s3 + $0x6a8] ss:$16 sps:$4 sm:$0xff]  }
 0x6f8   :  { %v11300_v18 = vpop.f32.mrb[4].mxu0  ;;  %v11859_v20 = vpop.f32.mrb[4].mxu1 }
 0x6f9   :  { %v16095_v19 = vadd.f32 %v11300_v18, %v1642_v14  ;;  %v11302_v21 = vpop.f32.mrb[5].mxu0  ;;  %v16099_v22 = vadd.f32 %v11859_v20, %v1650_v15  ;;  %v11861_v24 = vpop.f32.mrb[5].mxu1  ;;  %v16706_v18 = vld [vmem:[%s22641_s3 + $0x70c] ss:$16 sps:$4 sm:$0xff]   ;;  %v16704_v20 = vld [vmem:[%s22641_s3 + $0x708] ss:$16 sps:$4 sm:$0xff]  }
 0x6fa   :  { %v16096_v23 = vadd.f32 %v11302_v21, %v1646_v16  ;;  %v11304_v25 = vpop.f32.mrb[6].mxu0  ;;  %v16100_v26 = vadd.f32 %v11861_v24, %v1654_v17  ;;  %v11863_v28 = vpop.f32.mrb[6].mxu1  ;;  %v16709_v21 = vld [vmem:[%s22641_s3 + $0x724] ss:$16 sps:$4 sm:$0xff]   ;;  %v16710_v24 = vld [vmem:[%s22641_s3 + $0x728] ss:$16 sps:$4 sm:$0xff]  }
 0x6fb   :  { %v16097_v27 = vadd.f32 %v11304_v25, %v1642_v14  ;;  %v11306_v29 = vpop.f32.mrb[7].mxu0  ;;  %v16101_v30 = vadd.f32 %v11863_v28, %v1650_v15  ;;  %v11865_v32 = vpop.f32.mrb[7].mxu1  ;;  %v11872_v33 = vmax.f32 %v16095_v19, 0.0  ;;  %v11874_v36 = vmax.f32 %v16099_v22, 0.0  ;;  %v16700_v14 = vld [vmem:[%s22641_s3 + $0x6ec] ss:$16 sps:$4 sm:$0xff]  }
 0x6fc   :  { %v16098_v31 = vadd.f32 %v11306_v29, %v1646_v16  ;;  %v16102_v35 = vadd.f32 %v11865_v32, %v1654_v17  ;;  %v11873_v37 = vmax.f32 %v16096_v23, 0.0  ;;  %v11875_v40 = vmax.f32 %v16100_v26, 0.0  ;;  %v16695_v15 = vld [vmem:[%s22641_s3 + $0x6e0] ss:$16 sps:$4 sm:$0xff]   ;;  %v16698_v16 = vld [vmem:[%s22641_s3 + $0x6e8] ss:$16 sps:$4 sm:$0xff]  }
 0x6fd   :  { %v11880_v34 = vmax.f32 %v16097_v27, 0.0  ;;  %v11882_v38 = vmax.f32 %v16101_v30, 0.0  ;;  %v16703_v17 = vld [vmem:[%s22641_s3 + $0x704] ss:$16 sps:$4 sm:$0xff]   ;;  %v16701_v19 = vld [vmem:[%s22641_s3 + $0x700] ss:$16 sps:$4 sm:$0xff]  }
 0x6fe   :  { %v11881_v39 = vmax.f32 %v16098_v31, 0.0  ;;  %v11883_v43 = vmax.f32 %v16102_v35, 0.0  ;;  %v16712_v22 = vld [vmem:[%s22641_s3 + $0x72c] ss:$16 sps:$4 sm:$0xff]   ;;  %v16707_v23 = vld [vmem:[%s22641_s3 + $0x720] ss:$16 sps:$4 sm:$0xff]  }
 0x6ff   :  { %v11888_v41 = vpack.c.bf16 %v11880_v34, %v11872_v33  ;;  %v22332_v44 = vpack.c.bf16 %v11882_v38, %v11874_v36  ;;  %v16715_v25 = vld [vmem:[%s22641_s3 + $0x744] ss:$16 sps:$4 sm:$0xff]   ;;  %v16718_v26 = vld [vmem:[%s22641_s3 + $0x74c] ss:$16 sps:$4 sm:$0xff]   ;;  %v16713_v27 = vld [vmem:[%s22641_s3 + $0x740] ss:$16 sps:$4 sm:$0xff]  }
 0x700   :  { %v11889_v45 = vpack.c.bf16 %v11881_v39, %v11873_v37  ;;  %v11891_v48 = vpack.c.bf16 %v11883_v43, %v11875_v40  ;;  %v16716_v28 = vld [vmem:[%s22641_s3 + $0x748] ss:$16 sps:$4 sm:$0xff]   ;;  %v16721_v29 = vld [vmem:[%s22641_s3 + $0x764] ss:$16 sps:$4 sm:$0xff]   ;;  %v16724_v30 = vld [vmem:[%s22641_s3 + $0x76c] ss:$16 sps:$4 sm:$0xff]  }
 0x701   :  { %v16719_v31 = vld [vmem:[%s22641_s3 + $0x760] ss:$16 sps:$4 sm:$0xff]   ;;  %v16722_v32 = vld [vmem:[%s22641_s3 + $0x768] ss:$16 sps:$4 sm:$0xff]   ;;  %v16727_v33 = vld [vmem:[%s22641_s3 + $0x784] ss:$16 sps:$4 sm:$0xff]  }
 0x702   :  { %13568 = vmatprep.mubr.bf16.mxu0 %v11889_v45  ;;  %13740 = vmatprep.mubr.bf16.mxu1 %v11889_v45  ;;  %v16730_v34 = vld [vmem:[%s22641_s3 + $0x78c] ss:$16 sps:$4 sm:$0xff]   ;;  %v16725_v35 = vld [vmem:[%s22641_s3 + $0x780] ss:$16 sps:$4 sm:$0xff]   ;;  %v16728_v36 = vld [vmem:[%s22641_s3 + $0x788] ss:$16 sps:$4 sm:$0xff]  }
 0x703   :  { %13569 = vmatmul.mubr.bf16.vlgmr.msra.gmra.mrb[8].mxu0 %v11888_v41  ;;  %13741 = vmatmul.mubr.bf16.vlgmr.msra.gmra.mrb[8].mxu1 %v11888_v41  ;;  %v16733_v37 = vld [vmem:[%s22641_s3 + $0x7a4] ss:$16 sps:$4 sm:$0xff]   ;;  %v16736_v38 = vld [vmem:[%s22641_s3 + $0x7ac] ss:$16 sps:$4 sm:$0xff]   ;;  %v16731_v39 = vld [vmem:[%s22641_s3 + $0x7a0] ss:$16 sps:$4 sm:$0xff]  }
 0x704   :  { %13580 = vmatpush1.bf16.msra.mxu0 %v16653_v46  ;;  %13752 = vmatpush1.bf16.msra.mxu1 %v16656_v49  ;;  %v16734_v40 = vld [vmem:[%s22641_s3 + $0x7a8] ss:$16 sps:$4 sm:$0xff]   ;;  %v16739_v41 = vld [vmem:[%s22641_s3 + $0x7c4] ss:$16 sps:$4 sm:$0xff]   ;;  %v16742_v43 = vld [vmem:[%s22641_s3 + $0x7cc] ss:$16 sps:$4 sm:$0xff]  }
 0x705   :  { %13611 = vmatprep.mubr.bf16.mxu0 %v11891_v48  ;;  %13783 = vmatprep.mubr.bf16.mxu1 %v11891_v48  ;;  %v16737_v45 = vld [vmem:[%s22641_s3 + $0x7c0] ss:$16 sps:$4 sm:$0xff]   ;;  %v16740_v46 = vld [vmem:[%s22641_s3 + $0x7c8] ss:$16 sps:$4 sm:$0xff]   ;;  %v16745_v49 = vld [vmem:[%s22641_s3 + $0x7e4] ss:$16 sps:$4 sm:$0xff]  }
 0x706   :  { %13581 = vmatprep.subr.bf16.mxu0 %v16661_v51  ;;  %13753 = vmatprep.subr.bf16.mxu1 %v16664_v54  ;;  %v16748_v48 = vld [vmem:[%s22641_s3 + $0x7ec] ss:$16 sps:$4 sm:$0xff]   ;;  %v16743_v51 = vld [vmem:[%s22641_s3 + $0x7e0] ss:$16 sps:$4 sm:$0xff]   ;;  %v16746_v54 = vld [vmem:[%s22641_s3 + $0x7e8] ss:$16 sps:$4 sm:$0xff]  }
 0x708   :  { %13582 = vmatpush1.bf16.msra.mxu0 %v16659_v57  ;;  %13754 = vmatpush1.bf16.msra.mxu1 %v16662_v59  ;;  %v16749_v57 = vld [vmem:[%s22642_s5 + $0x40] sm:$0xff]  }
 0x709   :  { %13583 = vmatprep.subr.bf16.mxu0 %v16667_v61  ;;  %13755 = vmatprep.subr.bf16.mxu1 %v16670_v62  ;;  %v16750_v59 = vld [vmem:[%s22642_s5 + $0xc0] sm:$0xff]  }
 0x70a   :  { %v16751_v61 = vld [vmem:[%s22642_s5] sm:$0xff]  }
 0x70b   :  { %v16752_v62 = vld [vmem:[%s22642_s5 + $0x80] sm:$0xff]  }
 0x70c   :  { %13584 = vmatpush1.bf16.msra.mxu0 %v16665_v63  ;;  %13756 = vmatpush1.bf16.msra.mxu1 %v16668_v0  ;;  %v16753_v63 = vld [vmem:[%s22642_s5 + $0x48] sm:$0xff]  }
 0x70d   :  { %13585 = vmatprep.subr.bf16.mxu0 %v16673_v1  ;;  %13757 = vmatprep.subr.bf16.mxu1 %v16676_v2  ;;  %v16754_v0 = vld [vmem:[%s22642_s5 + $0xc8] sm:$0xff]  }
 0x70e   :  { %v16755_v1 = vld [vmem:[%s22642_s5 + $0x8] sm:$0xff]  }
 0x70f   :  { %v16756_v2 = vld [vmem:[%s22642_s5 + $0x88] sm:$0xff]  }
 0x710   :  { %13586 = vmatpush1.bf16.msra.mxu0 %v16671_v3  ;;  %13758 = vmatpush1.bf16.msra.mxu1 %v16674_v53  ;;  %v16757_v3 = vld [vmem:[%s22642_s5 + $0x50] sm:$0xff]  }
 0x711   :  { %13587 = vmatprep.subr.bf16.mxu0 %v16679_v4  ;;  %13759 = vmatprep.subr.bf16.mxu1 %v16682_v5  ;;  %v16759_v53 = vld [vmem:[%s22642_s5 + $0x10] sm:$0xff]   ;;  %v16761_v5 = vld [vmem:[%s22642_s5 + $0x58] sm:$0xff]  }
 0x712   :  { %v16760_v4 = vld [vmem:[%s22642_s5 + $0x90] sm:$0xff]  }
 0x714   :  { %13588 = vmatpush1.bf16.msra.mxu0 %v16677_v6  ;;  %13760 = vmatpush1.bf16.msra.mxu1 %v16680_v7  ;;  %v16762_v6 = vld [vmem:[%s22642_s5 + $0xd8] sm:$0xff]  }
 0x715   :  { %13589 = vmatprep.subr.bf16.mxu0 %v16685_v47  ;;  %13761 = vmatprep.subr.bf16.mxu1 %v16688_v8  ;;  %v16763_v7 = vld [vmem:[%s22642_s5 + $0x18] sm:$0xff]   ;;  %v16765_v8 = vld [vmem:[%s22642_s5 + $0x60] sm:$0xff]  }
 0x716   :  { %v16764_v47 = vld [vmem:[%s22642_s5 + $0x98] sm:$0xff]  }
 0x718   :  { %13590 = vmatpush1.bf16.msra.mxu0 %v16683_v9  ;;  %13762 = vmatpush1.bf16.msra.mxu1 %v16686_v60  ;;  %v16766_v9 = vld [vmem:[%s22642_s5 + $0xe0] sm:$0xff]  }
 0x719   :  { %13591 = vmatprep.subr.bf16.mxu0 %v16691_v10  ;;  %13763 = vmatprep.subr.bf16.mxu1 %v16694_v11  ;;  %v16767_v60 = vld [vmem:[%s22642_s5 + $0x20] sm:$0xff]   ;;  %v16769_v11 = vld [vmem:[%s22642_s5 + $0x68] sm:$0xff]  }
 0x71a   :  { %v16768_v10 = vld [vmem:[%s22642_s5 + $0xa0] sm:$0xff]  }
 0x71c   :  { %13592 = vmatpush1.bf16.msra.mxu0 %v16689_v52  ;;  %13764 = vmatpush1.bf16.msra.mxu1 %v16692_v12  ;;  %v16770_v52 = vld [vmem:[%s22642_s5 + $0xe8] sm:$0xff]  }
 0x71d   :  { %13593 = vmatprep.subr.bf16.mxu0 %v16697_v13  ;;  %13765 = vmatprep.subr.bf16.mxu1 %v16700_v14  ;;  %v16771_v12 = vld [vmem:[%s22642_s5 + $0x28] sm:$0xff]   ;;  %v16773_v14 = vld [vmem:[%s22642_s5 + $0x70] sm:$0xff]  }
 0x71e   :  { %v16772_v13 = vld [vmem:[%s22642_s5 + $0xa8] sm:$0xff]  }
 0x720   :  { %13594 = vmatpush1.bf16.msra.mxu0 %v16695_v15  ;;  %13766 = vmatpush1.bf16.msra.mxu1 %v16698_v16  ;;  %v16774_v15 = vld [vmem:[%s22642_s5 + $0xf0] sm:$0xff]  }
 0x721   :  { %13595 = vmatprep.subr.bf16.mxu0 %v16703_v17  ;;  %13767 = vmatprep.subr.bf16.mxu1 %v16706_v18  ;;  %v16775_v16 = vld [vmem:[%s22642_s5 + $0x30] sm:$0xff]   ;;  %v16777_v18 = vld [vmem:[%s22642_s5 + $0x78] sm:$0xff]  }
 0x722   :  { %v16776_v17 = vld [vmem:[%s22642_s5 + $0xb0] sm:$0xff]  }
 0x724   :  { %13596 = vmatpush1.bf16.msra.mxu0 %v16701_v19  ;;  %13768 = vmatpush1.bf16.msra.mxu1 %v16704_v20  ;;  %v16778_v19 = vld [vmem:[%s22642_s5 + $0xf8] sm:$0xff]  }
 0x725   :  { %13597 = vmatprep.subr.bf16.mxu0 %v16709_v21  ;;  %13769 = vmatprep.subr.bf16.mxu1 %v16712_v22  ;;  %v16779_v20 = vld [vmem:[%s22642_s5 + $0x38] sm:$0xff]   ;;  %v12148_v22 = vld [vmem:[%s22643_s4] sm:$0xf] }
 0x726   :  { %v16780_v21 = vld [vmem:[%s22642_s5 + $0xb8] sm:$0xff]  }
 0x728   :  { %13598 = vmatpush1.bf16.msra.mxu0 %v16707_v23  ;;  %13770 = vmatpush1.bf16.msra.mxu1 %v16710_v24  ;;  %v12153_v23 = vrot.slane %v12148_v22, %v1625_v50  ;;  %v12161_v24 = vrot.slane %v12148_v22, %v1633_v55 }
 0x729   :  { %13599 = vmatprep.subr.bf16.mxu0 %v16715_v25  ;;  %13771 = vmatprep.subr.bf16.mxu1 %v16718_v26  ;;  %v12157_v25 = vrot.slane %v12148_v22, %v1629_v56  ;;  %v12165_v26 = vrot.slane %v12148_v22, %v1637_v58 }
 0x72c   :  { %13600 = vmatpush1.bf16.msra.mxu0 %v16713_v27  ;;  %13772 = vmatpush1.bf16.msra.mxu1 %v16716_v28 }
 0x72d   :  { %13601 = vmatprep.subr.bf16.mxu0 %v16721_v29  ;;  %13773 = vmatprep.subr.bf16.mxu1 %v16724_v30 }
 0x730   :  { %13602 = vmatpush1.bf16.msra.mxu0 %v16719_v31  ;;  %13774 = vmatpush1.bf16.msra.mxu1 %v16722_v32 }
 0x731   :  { %13603 = vmatprep.subr.bf16.mxu0 %v16727_v33  ;;  %13775 = vmatprep.subr.bf16.mxu1 %v16730_v34 }
 0x734   :  { %13604 = vmatpush1.bf16.msra.mxu0 %v16725_v35  ;;  %13776 = vmatpush1.bf16.msra.mxu1 %v16728_v36 }
 0x735   :  { %13605 = vmatprep.subr.bf16.mxu0 %v16733_v37  ;;  %13777 = vmatprep.subr.bf16.mxu1 %v16736_v38 }
 0x738   :  { %13606 = vmatpush1.bf16.msra.mxu0 %v16731_v39  ;;  %13778 = vmatpush1.bf16.msra.mxu1 %v16734_v40 }
 0x739   :  { %13607 = vmatprep.subr.bf16.mxu0 %v16739_v41  ;;  %13779 = vmatprep.subr.bf16.mxu1 %v16742_v43 }
 0x73c   :  { %13608 = vmatpush1.bf16.msra.mxu0 %v16737_v45  ;;  %13780 = vmatpush1.bf16.msra.mxu1 %v16740_v46 }
 0x73d   :  { %13609 = vmatprep.subr.bf16.mxu0 %v16745_v49  ;;  %13781 = vmatprep.subr.bf16.mxu1 %v16748_v48 }
 0x740   :  { %13610 = vmatpush1.bf16.msra.mxu0 %v16743_v51  ;;  %13782 = vmatpush1.bf16.msra.mxu1 %v16746_v54 }
 0x741   :  { %16043 = vmatprep.subr.bf16.mxu0 %v16749_v57  ;;  %16065 = vmatprep.subr.bf16.mxu1 %v16750_v59 }
 0x743   :  { %13612 = vmatmul.mubr.bf16.vlgmr.msra.gmra.mrb[8].mxu0 %v22332_v44  ;;  %13784 = vmatmul.mubr.bf16.vlgmr.msra.gmra.mrb[8].mxu1 %v22332_v44  ;;  %v16758_v44 = vld [vmem:[%s22642_s5 + $0xd0] sm:$0xff]  }
 0x744   :  { %16044 = vmatpush3.bf16.msra.mxu0 %v16751_v61  ;;  %16066 = vmatpush3.bf16.msra.mxu1 %v16752_v62  ;;  %v16010_v62 = vld [vmem:[%s22644_s6] ss:$0 sm:$0xff] }
 0x745   :  { %16045 = vmatprep.subr.bf16.mxu0 %v16753_v63  ;;  %16067 = vmatprep.subr.bf16.mxu1 %v16754_v0 }
 0x748   :  { %16046 = vmatpush3.bf16.msra.mxu0 %v16755_v1  ;;  %16068 = vmatpush3.bf16.msra.mxu1 %v16756_v2 }
 0x749   :  { %16047 = vmatprep.subr.bf16.mxu0 %v16757_v3  ;;  %16069 = vmatprep.subr.bf16.mxu1 %v16758_v44 }
 0x74c   :  { %16048 = vmatpush3.bf16.msra.mxu0 %v16759_v53  ;;  %16070 = vmatpush3.bf16.msra.mxu1 %v16760_v4 }
 0x74d   :  { %16049 = vmatprep.subr.bf16.mxu0 %v16761_v5  ;;  %16071 = vmatprep.subr.bf16.mxu1 %v16762_v6 }
 0x750   :  { %16050 = vmatpush3.bf16.msra.mxu0 %v16763_v7  ;;  %16072 = vmatpush3.bf16.msra.mxu1 %v16764_v47 }
 0x751   :  { %16051 = vmatprep.subr.bf16.mxu0 %v16765_v8  ;;  %16073 = vmatprep.subr.bf16.mxu1 %v16766_v9 }
 0x754   :  { %16052 = vmatpush3.bf16.msra.mxu0 %v16767_v60  ;;  %16074 = vmatpush3.bf16.msra.mxu1 %v16768_v10 }
 0x755   :  { %16053 = vmatprep.subr.bf16.mxu0 %v16769_v11  ;;  %16075 = vmatprep.subr.bf16.mxu1 %v16770_v52 }
 0x758   :  { %16054 = vmatpush3.bf16.msra.mxu0 %v16771_v12  ;;  %16076 = vmatpush3.bf16.msra.mxu1 %v16772_v13 }
 0x759   :  { %16055 = vmatprep.subr.bf16.mxu0 %v16773_v14  ;;  %16077 = vmatprep.subr.bf16.mxu1 %v16774_v15 }
 0x75c   :  { %16056 = vmatpush3.bf16.msra.mxu0 %v16775_v16  ;;  %16078 = vmatpush3.bf16.msra.mxu1 %v16776_v17 }
 0x75d   :  { %16057 = vmatprep.subr.bf16.mxu0 %v16777_v18  ;;  %16079 = vmatprep.subr.bf16.mxu1 %v16778_v19 }
 0x760   :  { %16058 = vmatpush3.bf16.msra.mxu0 %v16779_v20  ;;  %16080 = vmatpush3.bf16.msra.mxu1 %v16780_v21 }
 0x816   :  { %v13613_v27 = vpop.f32.mrb[8].mxu0  ;;  %v13785_v28 = vpop.f32.mrb[8].mxu1 }
 0x817   :  { %v16103_v29 = vadd.f32 %v13613_v27, %v12153_v23  ;;  %v16107_v30 = vadd.f32 %v13785_v28, %v12161_v24  ;;  %v13615_v31 = vpop.f32.mrb[9].mxu0  ;;  %v13787_v32 = vpop.f32.mrb[9].mxu1 }
 0x818   :  { %v16104_v33 = vadd.f32 %v13615_v31, %v12157_v25  ;;  %v16108_v34 = vadd.f32 %v13787_v32, %v12165_v26  ;;  %v13617_v35 = vpop.f32.mrb[10].mxu0  ;;  %v13789_v36 = vpop.f32.mrb[10].mxu1 }
 0x819   :  { %v16105_v50 = vadd.f32 %v13617_v35, %v12153_v23  ;;  %v16109_v37 = vadd.f32 %v13789_v36, %v12161_v24  ;;  %v13619_v38 = vpop.f32.mrb[11].mxu0  ;;  %v13791_v55 = vpop.f32.mrb[11].mxu1  ;;  %v13794_v56 = vmax.f32 %v16103_v29, 0.0  ;;  %v13796_v41 = vmax.f32 %v16107_v30, 0.0 }
 0x81a   :  { %v16106_v39 = vadd.f32 %v13619_v38, %v12157_v25  ;;  %v16110_v40 = vadd.f32 %v13791_v55, %v12165_v26  ;;  %v13795_v43 = vmax.f32 %v16104_v33, 0.0  ;;  %v13797_v45 = vmax.f32 %v16108_v34, 0.0 }
 0x81b   :  { %v13798_v42 = vmax.f32 %v16105_v50, 0.0  ;;  %v13800_v58 = vmax.f32 %v16109_v37, 0.0 }
 0x81c   :  { %v13799_v46 = vmax.f32 %v16106_v39, 0.0  ;;  %v13801_v49 = vmax.f32 %v16110_v40, 0.0 }
 0x81d   :  { %v13802_v48 = vpack.c.bf16 %v13798_v42, %v13794_v56  ;;  %v13804_v51 = vpack.c.bf16 %v13800_v58, %v13796_v41 }
 0x81e   :  { %v13803_v54 = vpack.c.bf16 %v13799_v46, %v13795_v43  ;;  %v13805_v57 = vpack.c.bf16 %v13801_v49, %v13797_v45 }
 0x820   :  { %14101 = vmatprep.mubr.bf16.mxu0 %v13803_v54  ;;  %14142 = vmatprep.mubr.bf16.mxu1 %v13805_v57 }
 0x821   :  { %14102 = vmatmul.mubr.bf16.vlgmr.msra.gmra.mrb[12].mxu0 %v13802_v48  ;;  %14143 = vmatmul.mubr.bf16.vlgmr.msra.gmra.mrb[12].mxu1 %v13804_v51 }
 0x8f4   :  { %v16059_v59 = vpop.f32.mrb[12].mxu0  ;;  %v16081_v61 = vpop.f32.mrb[12].mxu1 }
 0x8f5   :  { %v16060_v63 = vpop.f32.mrb[13].mxu0  ;;  %v16082_v0 = vpop.f32.mrb[13].mxu1 }
 0x8f6   :  { %v16061_v1 = vadd.f32 %v16060_v63, %v16059_v59  ;;  %v16083_v2 = vadd.f32 %v16082_v0, %v16081_v61  ;;  %v16062_v3 = vpop.f32.mrb[14].mxu0  ;;  %v16084_v44 = vpop.f32.mrb[14].mxu1 }
 0x8f7   :  { %v16063_v53 = vpop.f32.mrb[15].mxu0  ;;  %v16085_v4 = vpop.f32.mrb[15].mxu1 }
 0x8f8   :  { %v14104_v5 = vadd.f32 %v16061_v1, %v16010_v62  ;;  %v16064_v6 = vadd.f32 %v16063_v53, %v16062_v3  ;;  %v16086_v7 = vadd.f32 %v16085_v4, %v16084_v44 }
 0x8fa   :  { %v14145_v47 = vadd.f32 %v16083_v2, %v14104_v5  ;;  %v14107_v8 = vadd.f32 %v16064_v6, %v16010_v62 }
 0x8fc   :  { %14151 = vst [vmem:[%s22645_s7] sm:$0xff] %v14145_v47  ;;  %v14148_v9 = vadd.f32 %v16086_v7, %v14107_v8 }
 0x8fe   :  { %14152 = vst [vmem:[%s22645_s7 + $0x8] sm:$0xff] %v14148_v9 }

</bundles_post_ra>
